<compile_context>
chip_gen: v7x
topology: tpu7x:2x2x1
jax: 0.10.0
libtpu: 0.0.40
codegen_flags: <defaults>
</compile_context>

<pallas_src>
import math

import jax
import jax.numpy as jnp
from jax.experimental import pallas as pl
from jax.experimental.pallas import tpu as pltpu

# ----------------------------- hyperparameters -----------------------------
SRC_VOCAB = 16
TGT_VOCAB = 16
D_MODEL = 32
NUM_HEADS = 4
NUM_LAYERS = 2
D_FF = 64
MAX_SEQ = 16
LN_EPS = 1e-5                      # nn.LayerNorm default
D_K = D_MODEL // NUM_HEADS
_SCALE = 1.0 / math.sqrt(D_K)
_V_PAD = 128                       # lane-dense padded vocab width for the output store


# ---------------------- in-kernel helpers (traced values) ----------------------
def _add_layernorm(x, y, g, b):
    # residual add + LayerNorm over last dim (biased variance, like torch.nn.LayerNorm)
    s = x + y
    mean = jnp.mean(s, axis=-1, keepdims=True)
    var = jnp.mean((s - mean) ** 2, axis=-1, keepdims=True)
    return (s - mean) * jax.lax.rsqrt(var + LN_EPS) * g + b


def _ffn(x, w1, b1, w2, b2):
    h = jnp.maximum(jnp.dot(x, w1, preferred_element_type=jnp.float32) + b1, 0.0)
    return jnp.dot(h, w2, preferred_element_type=jnp.float32) + b2


def _embed(ids_ref, emb_ref, pe_ref, B, S, vocab):
    """In-kernel embedding: one-hot (B*S, V) @ table (V, D) on the MXU, + PE add."""
    ids = ids_ref[...]                                            # (B*S, 1) int32
    iota = jax.lax.broadcasted_iota(jnp.int32, (B * S, vocab), 1)
    onehot = (iota == ids).astype(jnp.float32)                    # (B*S, V)
    emb = jnp.dot(onehot, emb_ref[...], preferred_element_type=jnp.float32)
    pe = pe_ref[0:S, :]                                           # (S, D) static slice
    pe = jnp.concatenate([pe] * B, axis=0)                        # (B*S, D) leading-dim tile
    return emb + pe


def _mha(q2d, k2d, v2d, mmul, madd, B, Sq, Sk):
    """Multi-head attention on VMEM-resident values.

    q2d: (B*Sq, D), k2d/v2d: (B*Sk, D).
    mmul/madd: (B, Sq, Sk) f32 — fused softmax scale + exact masked_fill(-1e9) bias.
    Returns (B*Sq, D) lane-dense merged head output.
    """
    outs = []
    for h in range(NUM_HEADS):                      # static unroll over heads
        lo, hi = h * D_K, (h + 1) * D_K
        qh = q2d[:, lo:hi].reshape(B, Sq, D_K)
        kh = k2d[:, lo:hi].reshape(B, Sk, D_K)
        vh = v2d[:, lo:hi].reshape(B, Sk, D_K)
        # batched over B; contract d_k directly (no K^T materialization)
        s = jax.lax.dot_general(qh, kh, (((2,), (2,)), ((0,), (0,))),
                                preferred_element_type=jnp.float32)
        s = s * mmul + madd                          # scale + masked_fill(-1e9), exact
        s = s - jnp.max(s, axis=-1, keepdims=True)
        p = jnp.exp(s)
        p = p / jnp.sum(p, axis=-1, keepdims=True)
        oh = jax.lax.dot_general(p, vh, (((2,), (1,)), ((0,), (0,))),
                                 preferred_element_type=jnp.float32)   # (B, Sq, dk)
        outs.append(oh.reshape(B * Sq, D_K))
    return jnp.concatenate(outs, axis=-1)            # (B*Sq, D)


# ------------------------------- fused kernel -------------------------------
def _make_transformer_kernel(B, Ss, St):
    def kern(src_ids, tgt_ids, src_emb, tgt_emb, pe,
             e_mm, e_ma, t_mm, t_ma, c_mm, c_ma,
             e_wqkv, e_bqkv, e_wo, e_bo, e_ln1g, e_ln1b,
             e_w1, e_b1, e_w2, e_b2, e_ln2g, e_ln2b,
             d_swqkv, d_sbqkv, d_swo, d_sbo,
             d_cwq, d_cbq, d_cwkv, d_cbkv, d_cwo, d_cbo,
             d_w1, d_b1, d_w2, d_b2,
             d_ln1g, d_ln1b, d_ln2g, d_ln2b, d_ln3g, d_ln3b,
             fcw, fcb, o_ref):
        # ------------- embeddings + positional encoding (in-kernel) -------------
        x = _embed(src_ids, src_emb, pe, B, Ss, SRC_VOCAB)    # (B*Ss, D)
        y = _embed(tgt_ids, tgt_emb, pe, B, St, TGT_VOCAB)    # (B*St, D)

        # masks loaded once, reused across all layers / heads
        e_mmv, e_mav = e_mm[...], e_ma[...]
        t_mmv, t_mav = t_mm[...], t_ma[...]
        c_mmv, c_mav = c_mm[...], c_ma[...]

        # ----------------------- encoder stack (unrolled) -----------------------
        for l in range(NUM_LAYERS):
            qkv = jnp.dot(x, e_wqkv[l], preferred_element_type=jnp.float32) + e_bqkv[l]
            a = _mha(qkv[:, :D_MODEL], qkv[:, D_MODEL:2 * D_MODEL], qkv[:, 2 * D_MODEL:],
                     e_mmv, e_mav, B, Ss, Ss)
            a = jnp.dot(a, e_wo[l], preferred_element_type=jnp.float32) + e_bo[l]
            x = _add_layernorm(x, a, e_ln1g[l], e_ln1b[l])
            f = _ffn(x, e_w1[l], e_b1[l], e_w2[l], e_b2[l])
            x = _add_layernorm(x, f, e_ln2g[l], e_ln2b[l])

        # -------------- decoder stack (unrolled) + vocab projection -------------
        for l in range(NUM_LAYERS):
            # masked self-attention
            qkv = jnp.dot(y, d_swqkv[l], preferred_element_type=jnp.float32) + d_sbqkv[l]
            sa = _mha(qkv[:, :D_MODEL], qkv[:, D_MODEL:2 * D_MODEL], qkv[:, 2 * D_MODEL:],
                      t_mmv, t_mav, B, St, St)
            sa = jnp.dot(sa, d_swo[l], preferred_element_type=jnp.float32) + d_sbo[l]
            y = _add_layernorm(y, sa, d_ln1g[l], d_ln1b[l])

            # cross-attention (Q from decoder, fused K/V from VMEM-resident encoder out)
            cq = jnp.dot(y, d_cwq[l], preferred_element_type=jnp.float32) + d_cbq[l]
            ckv = jnp.dot(x, d_cwkv[l], preferred_element_type=jnp.float32) + d_cbkv[l]
            ca = _mha(cq, ckv[:, :D_MODEL], ckv[:, D_MODEL:], c_mmv, c_mav, B, St, Ss)
            ca = jnp.dot(ca, d_cwo[l], preferred_element_type=jnp.float32) + d_cbo[l]
            y = _add_layernorm(y, ca, d_ln2g[l], d_ln2b[l])

            # feed-forward
            f = _ffn(y, d_w1[l], d_b1[l], d_w2[l], d_b2[l])
            y = _add_layernorm(y, f, d_ln3g[l], d_ln3b[l])

        # lane-dense (B*St, 128) store; real logits are the first TGT_VOCAB columns
        o_ref[...] = (jnp.dot(y, fcw[...], preferred_element_type=jnp.float32)
                      + fcb[...]).astype(o_ref.dtype)

    return kern


# ------------------------------ model forward ------------------------------
def _prep_mask(mask, B, Sq, Sk):
    """(B,1,1,Sk) or (B,1,Sq,Sk) bool mask -> (mmul, madd) f32 pair (B,Sq,Sk)."""
    m = jnp.broadcast_to(mask, (B, 1, Sq, Sk)).reshape(B, Sq, Sk).astype(jnp.float32)
    return m * jnp.float32(_SCALE), (1.0 - m) * jnp.float32(-1e9)


def transformer_forward(params, src, tgt, src_mask, tgt_mask):
    B, Ss = src.shape
    St = tgt.shape[1]

    src_ids = src.reshape(B * Ss, 1).astype(jnp.int32)
    tgt_ids = tgt.reshape(B * St, 1).astype(jnp.int32)

    e_mm, e_ma = _prep_mask(src_mask, B, Ss, Ss)   # encoder self-attn
    t_mm, t_ma = _prep_mask(tgt_mask, B, St, St)   # decoder self-attn (causal + pad)
    c_mm, c_ma = _prep_mask(src_mask, B, St, Ss)   # decoder cross-attn

    enc, dec = params["enc"], params["dec"]
    args = (src_ids, tgt_ids, params["src_embed"], params["tgt_embed"], params["pe"],
            e_mm, e_ma, t_mm, t_ma, c_mm, c_ma,
            enc["wqkv"], enc["bqkv"], enc["wo"], enc["bo"], enc["ln1_g"], enc["ln1_b"],
            enc["w1"], enc["b1"], enc["w2"], enc["b2"], enc["ln2_g"], enc["ln2_b"],
            dec["s_wqkv"], dec["s_bqkv"], dec["s_wo"], dec["s_bo"],
            dec["c_wq"], dec["c_bq"], dec["c_wkv"], dec["c_bkv"], dec["c_wo"], dec["c_bo"],
            dec["w1"], dec["b1"], dec["w2"], dec["b2"],
            dec["ln1_g"], dec["ln1_b"], dec["ln2_g"], dec["ln2_b"],
            dec["ln3_g"], dec["ln3_b"],
            params["fc_w_pad"], params["fc_b_pad"])

    vmem = pl.BlockSpec(memory_space=pltpu.MemorySpace.VMEM)
    logits_pad = pl.pallas_call(
        _make_transformer_kernel(B, Ss, St),
        out_shape=jax.ShapeDtypeStruct((B * St, _V_PAD), jnp.float32),
        in_specs=[vmem] * len(args),
        out_specs=vmem,
    )(*args)

    return logits_pad[:, :TGT_VOCAB].reshape(B, St, TGT_VOCAB)


# ------------------------------ parameter init -------------------------------
def sinusoidal_pe(max_len, d_model):
    pos = jnp.arange(max_len, dtype=jnp.float32)[:, None]
    div = jnp.exp(jnp.arange(0, d_model, 2, dtype=jnp.float32)
                  * (-math.log(10000.0) / d_model))
    pe = jnp.zeros((max_len, d_model), jnp.float32)
    pe = pe.at[:, 0::2].set(jnp.sin(pos * div))
    pe = pe.at[:, 1::2].set(jnp.cos(pos * div))
    return pe


def _init_linear(key, din, dout):
    w = jax.random.normal(key, (din, dout), jnp.float32) * 0.02
    b = jnp.zeros((dout,), jnp.float32)
    return w, b


def _init_enc_layer(key):
    ks = jax.random.split(key, 6)
    wq, bq = _init_linear(ks[0], D_MODEL, D_MODEL)
    wk, bk = _init_linear(ks[1], D_MODEL, D_MODEL)
    wv, bv = _init_linear(ks[2], D_MODEL, D_MODEL)
    wo, bo = _init_linear(ks[3], D_MODEL, D_MODEL)
    w1, b1 = _init_linear(ks[4], D_MODEL, D_FF)
    w2, b2 = _init_linear(ks[5], D_FF, D_MODEL)
    g = jnp.ones((1, D_MODEL), jnp.float32)
    z = jnp.zeros((1, D_MODEL), jnp.float32)
    return dict(
        wqkv=jnp.concatenate([wq, wk, wv], axis=1),        # (D, 3D) fused QKV
        bqkv=jnp.concatenate([bq, bk, bv])[None, :],
        wo=wo, bo=bo[None, :],
        ln1_g=g, ln1_b=z,
        w1=w1, b1=b1[None, :], w2=w2, b2=b2[None, :],
        ln2_g=g, ln2_b=z,
    )


def _init_dec_layer(key):
    ks = jax.random.split(key, 10)
    wq, bq = _init_linear(ks[0], D_MODEL, D_MODEL)
    wk, bk = _init_linear(ks[1], D_MODEL, D_MODEL)
    wv, bv = _init_linear(ks[2], D_MODEL, D_MODEL)
    wo, bo = _init_linear(ks[3], D_MODEL, D_MODEL)
    cwq, cbq = _init_linear(ks[4], D_MODEL, D_MODEL)
    cwk, cbk = _init_linear(ks[5], D_MODEL, D_MODEL)
    cwv, cbv = _init_linear(ks[6], D_MODEL, D_MODEL)
    cwo, cbo = _init_linear(ks[7], D_MODEL, D_MODEL)
    w1, b1 = _init_linear(ks[8], D_MODEL, D_FF)
    w2, b2 = _init_linear(ks[9], D_FF, D_MODEL)
    g = jnp.ones((1, D_MODEL), jnp.float32)
    z = jnp.zeros((1, D_MODEL), jnp.float32)
    return dict(
        s_wqkv=jnp.concatenate([wq, wk, wv], axis=1),      # fused self-attn QKV
        s_bqkv=jnp.concatenate([bq, bk, bv])[None, :],
        s_wo=wo, s_bo=bo[None, :],
        c_wq=cwq, c_bq=cbq[None, :],
        c_wkv=jnp.concatenate([cwk, cwv], axis=1),         # fused cross-attn KV
        c_bkv=jnp.concatenate([cbk, cbv])[None, :],
        c_wo=cwo, c_bo=cbo[None, :],
        w1=w1, b1=b1[None, :], w2=w2, b2=b2[None, :],
        ln1_g=g, ln1_b=z, ln2_g=g, ln2_b=z, ln3_g=g, ln3_b=z,
    )


def _stack(layers):
    return {k: jnp.stack([lyr[k] for lyr in layers]) for k in layers[0]}


def init_params(key):
    keys = jax.random.split(key, 5)
    params = {}
    params["src_embed"] = jax.random.normal(keys[0], (SRC_VOCAB, D_MODEL), jnp.float32) * 0.02
    params["tgt_embed"] = jax.random.normal(keys[1], (TGT_VOCAB, D_MODEL), jnp.float32) * 0.02
    params["pe"] = sinusoidal_pe(MAX_SEQ, D_MODEL)
    params["enc"] = _stack([_init_enc_layer(k) for k in jax.random.split(keys[2], NUM_LAYERS)])
    params["dec"] = _stack([_init_dec_layer(k) for k in jax.random.split(keys[3], NUM_LAYERS)])
    fw, fb = _init_linear(keys[4], D_MODEL, TGT_VOCAB)
    # zero-pad the final projection to 128 output lanes for an unmasked lane-dense store
    params["fc_w_pad"] = jnp.zeros((D_MODEL, _V_PAD), jnp.float32).at[:, :TGT_VOCAB].set(fw)
    params["fc_b_pad"] = jnp.zeros((1, _V_PAD), jnp.float32).at[:, :TGT_VOCAB].set(fb)
    return params


# ----------------------------------- main -------------------------------------
if __name__ == "__main__":
    key = jax.random.PRNGKey(0)
    kp, ks, kt = jax.random.split(key, 3)
    params = init_params(kp)

    B, Ss, St = 2, 8, 8
    src = jax.random.randint(ks, (B, Ss), 1, SRC_VOCAB).astype(jnp.int32)
    tgt = jax.random.randint(kt, (B, St), 1, TGT_VOCAB).astype(jnp.int32)
    src = src.at[:, -2:].set(0)   # simulate padding tokens
    tgt = tgt.at[:, -1:].set(0)

    # masks exactly like the tutorial's generate_mask(): pad mask + causal no-peek mask
    src_mask = (src != 0)[:, None, None, :]                         # (B, 1, 1, Ss)
    nopeak = jnp.tril(jnp.ones((St, St), dtype=bool))[None, None]   # (1, 1, St, St)
    tgt_mask = (tgt != 0)[:, None, :, None] & nopeak                # (B, 1, St, St)

    fwd = jax.jit(transformer_forward)
    out = jax.block_until_ready(fwd(params, src, tgt, src_mask, tgt_mask))

    assert out.shape == (B, St, TGT_VOCAB), out.shape
    assert bool(jnp.all(jnp.isfinite(out)))
    print("KERNEL_OK")
</pallas_src>

<mosaic_0001>
module attributes {stable_mosaic.version = 11 : i64} {
  func.func @kern(%arg0: memref<16x1xi32, #tpu.memory_space<vmem>>, %arg1: memref<16x1xi32, #tpu.memory_space<vmem>>, %arg2: memref<16x32xf32, #tpu.memory_space<vmem>>, %arg3: memref<16x32xf32, #tpu.memory_space<vmem>>, %arg4: memref<16x32xf32, #tpu.memory_space<vmem>>, %arg5: memref<2x8x8xf32, #tpu.memory_space<vmem>>, %arg6: memref<2x8x8xf32, #tpu.memory_space<vmem>>, %arg7: memref<2x8x8xf32, #tpu.memory_space<vmem>>, %arg8: memref<2x8x8xf32, #tpu.memory_space<vmem>>, %arg9: memref<2x8x8xf32, #tpu.memory_space<vmem>>, %arg10: memref<2x8x8xf32, #tpu.memory_space<vmem>>, %arg11: memref<2x32x96xf32, #tpu.memory_space<vmem>>, %arg12: memref<2x1x96xf32, #tpu.memory_space<vmem>>, %arg13: memref<2x32x32xf32, #tpu.memory_space<vmem>>, %arg14: memref<2x1x32xf32, #tpu.memory_space<vmem>>, %arg15: memref<2x1x32xf32, #tpu.memory_space<vmem>>, %arg16: memref<2x1x32xf32, #tpu.memory_space<vmem>>, %arg17: memref<2x32x64xf32, #tpu.memory_space<vmem>>, %arg18: memref<2x1x64xf32, #tpu.memory_space<vmem>>, %arg19: memref<2x64x32xf32, #tpu.memory_space<vmem>>, %arg20: memref<2x1x32xf32, #tpu.memory_space<vmem>>, %arg21: memref<2x1x32xf32, #tpu.memory_space<vmem>>, %arg22: memref<2x1x32xf32, #tpu.memory_space<vmem>>, %arg23: memref<2x32x96xf32, #tpu.memory_space<vmem>>, %arg24: memref<2x1x96xf32, #tpu.memory_space<vmem>>, %arg25: memref<2x32x32xf32, #tpu.memory_space<vmem>>, %arg26: memref<2x1x32xf32, #tpu.memory_space<vmem>>, %arg27: memref<2x32x32xf32, #tpu.memory_space<vmem>>, %arg28: memref<2x1x32xf32, #tpu.memory_space<vmem>>, %arg29: memref<2x32x64xf32, #tpu.memory_space<vmem>>, %arg30: memref<2x1x64xf32, #tpu.memory_space<vmem>>, %arg31: memref<2x32x32xf32, #tpu.memory_space<vmem>>, %arg32: memref<2x1x32xf32, #tpu.memory_space<vmem>>, %arg33: memref<2x32x64xf32, #tpu.memory_space<vmem>>, %arg34: memref<2x1x64xf32, #tpu.memory_space<vmem>>, %arg35: memref<2x64x32xf32, #tpu.memory_space<vmem>>, %arg36: memref<2x1x32xf32, #tpu.memory_space<vmem>>, %arg37: memref<2x1x32xf32, #tpu.memory_space<vmem>>, %arg38: memref<2x1x32xf32, #tpu.memory_space<vmem>>, %arg39: memref<2x1x32xf32, #tpu.memory_space<vmem>>, %arg40: memref<2x1x32xf32, #tpu.memory_space<vmem>>, %arg41: memref<2x1x32xf32, #tpu.memory_space<vmem>>, %arg42: memref<2x1x32xf32, #tpu.memory_space<vmem>>, %arg43: memref<32x128xf32, #tpu.memory_space<vmem>>, %arg44: memref<1x128xf32, #tpu.memory_space<vmem>>, %arg45: memref<16x128xf32, #tpu.memory_space<vmem>>) attributes {dimension_semantics = [], scalar_prefetch = 0 : i64, scratch_operands = 0 : i64, tpu.core_type = #tpu.core_type<tc>} {
    %c0 = arith.constant 0 : index
    %c0_0 = arith.constant 0 : index
    %0 = vector.load %arg0[%c0, %c0_0] : memref<16x1xi32, #tpu.memory_space<vmem>>, vector<16x1xi32>
    %1 = tpu.iota {dimensions = array<i32: 1>} : vector<16x16xi32>
    %2 = vector.broadcast %0 : vector<16x1xi32> to vector<16x16xi32>
    %3 = arith.cmpi eq, %1, %2 : vector<16x16xi32>
    %4 = arith.extui %3 : vector<16x16xi1> to vector<16x16xi32>
    %5 = arith.sitofp %4 : vector<16x16xi32> to vector<16x16xf32>
    %c0_1 = arith.constant 0 : index
    %c0_2 = arith.constant 0 : index
    %6 = vector.load %arg2[%c0_1, %c0_2] : memref<16x32xf32, #tpu.memory_space<vmem>>, vector<16x32xf32>
    %cst = arith.constant dense<0.000000e+00> : vector<16x32xf32>
    %7 = tpu.matmul %5, %6, %cst {dimension_numbers = #tpu.dot_dimension_numbers<[1], [0], [0], [1], [0, 0, 1, 1], [], []>} : vector<16x16xf32>, vector<16x32xf32>, vector<16x32xf32> -> vector<16x32xf32>
    %c0_3 = arith.constant 0 : index
    %c0_4 = arith.constant 0 : index
    %8 = vector.load %arg4[%c0_3, %c0_4] : memref<16x32xf32, #tpu.memory_space<vmem>>, vector<8x32xf32>
    %9 = tpu.concatenate %8, %8 in 0 : vector<8x32xf32>, vector<8x32xf32> -> vector<16x32xf32>
    %10 = arith.addf %7, %9 : vector<16x32xf32>
    %c0_5 = arith.constant 0 : index
    %c0_6 = arith.constant 0 : index
    %11 = vector.load %arg1[%c0_5, %c0_6] : memref<16x1xi32, #tpu.memory_space<vmem>>, vector<16x1xi32>
    %12 = tpu.iota {dimensions = array<i32: 1>} : vector<16x16xi32>
    %13 = vector.broadcast %11 : vector<16x1xi32> to vector<16x16xi32>
    %14 = arith.cmpi eq, %12, %13 : vector<16x16xi32>
    %15 = arith.extui %14 : vector<16x16xi1> to vector<16x16xi32>
    %16 = arith.sitofp %15 : vector<16x16xi32> to vector<16x16xf32>
    %c0_7 = arith.constant 0 : index
    %c0_8 = arith.constant 0 : index
    %17 = vector.load %arg3[%c0_7, %c0_8] : memref<16x32xf32, #tpu.memory_space<vmem>>, vector<16x32xf32>
    %cst_9 = arith.constant dense<0.000000e+00> : vector<16x32xf32>
    %18 = tpu.matmul %16, %17, %cst_9 {dimension_numbers = #tpu.dot_dimension_numbers<[1], [0], [0], [1], [0, 0, 1, 1], [], []>} : vector<16x16xf32>, vector<16x32xf32>, vector<16x32xf32> -> vector<16x32xf32>
    %c0_10 = arith.constant 0 : index
    %c0_11 = arith.constant 0 : index
    %19 = vector.load %arg4[%c0_10, %c0_11] : memref<16x32xf32, #tpu.memory_space<vmem>>, vector<8x32xf32>
    %20 = tpu.concatenate %19, %19 in 0 : vector<8x32xf32>, vector<8x32xf32> -> vector<16x32xf32>
    %21 = arith.addf %18, %20 : vector<16x32xf32>
    %c0_12 = arith.constant 0 : index
    %c0_13 = arith.constant 0 : index
    %c0_14 = arith.constant 0 : index
    %22 = vector.load %arg5[%c0_12, %c0_13, %c0_14] : memref<2x8x8xf32, #tpu.memory_space<vmem>>, vector<2x8x8xf32>
    %c0_15 = arith.constant 0 : index
    %c0_16 = arith.constant 0 : index
    %c0_17 = arith.constant 0 : index
    %23 = vector.load %arg6[%c0_15, %c0_16, %c0_17] : memref<2x8x8xf32, #tpu.memory_space<vmem>>, vector<2x8x8xf32>
    %c0_18 = arith.constant 0 : index
    %c0_19 = arith.constant 0 : index
    %c0_20 = arith.constant 0 : index
    %24 = vector.load %arg7[%c0_18, %c0_19, %c0_20] : memref<2x8x8xf32, #tpu.memory_space<vmem>>, vector<2x8x8xf32>
    %c0_21 = arith.constant 0 : index
    %c0_22 = arith.constant 0 : index
    %c0_23 = arith.constant 0 : index
    %25 = vector.load %arg8[%c0_21, %c0_22, %c0_23] : memref<2x8x8xf32, #tpu.memory_space<vmem>>, vector<2x8x8xf32>
    %c0_24 = arith.constant 0 : index
    %c0_25 = arith.constant 0 : index
    %c0_26 = arith.constant 0 : index
    %26 = vector.load %arg9[%c0_24, %c0_25, %c0_26] : memref<2x8x8xf32, #tpu.memory_space<vmem>>, vector<2x8x8xf32>
    %c0_27 = arith.constant 0 : index
    %c0_28 = arith.constant 0 : index
    %c0_29 = arith.constant 0 : index
    %27 = vector.load %arg10[%c0_27, %c0_28, %c0_29] : memref<2x8x8xf32, #tpu.memory_space<vmem>>, vector<2x8x8xf32>
    %c0_30 = arith.constant 0 : index
    %c0_31 = arith.constant 0 : index
    %c0_32 = arith.constant 0 : index
    %28 = vector.load %arg11[%c0_30, %c0_31, %c0_32] : memref<2x32x96xf32, #tpu.memory_space<vmem>>, vector<1x32x96xf32>
    %29 = vector.shape_cast %28 : vector<1x32x96xf32> to vector<32x96xf32>
    %cst_33 = arith.constant dense<0.000000e+00> : vector<16x96xf32>
    %30 = tpu.matmul %10, %29, %cst_33 {dimension_numbers = #tpu.dot_dimension_numbers<[1], [0], [0], [1], [0, 0, 1, 1], [], []>} : vector<16x32xf32>, vector<32x96xf32>, vector<16x96xf32> -> vector<16x96xf32>
    %c0_34 = arith.constant 0 : index
    %c0_35 = arith.constant 0 : index
    %c0_36 = arith.constant 0 : index
    %31 = vector.load %arg12[%c0_34, %c0_35, %c0_36] : memref<2x1x96xf32, #tpu.memory_space<vmem>>, vector<1x1x96xf32>
    %32 = vector.shape_cast %31 : vector<1x1x96xf32> to vector<1x96xf32>
    %33 = vector.broadcast %32 : vector<1x96xf32> to vector<16x96xf32>
    %34 = arith.addf %30, %33 : vector<16x96xf32>
    %35 = vector.extract_strided_slice %34 {offsets = [0, 0], sizes = [16, 32], strides = [1, 1]} : vector<16x96xf32> to vector<16x32xf32>
    %36 = vector.extract_strided_slice %34 {offsets = [0, 32], sizes = [16, 32], strides = [1, 1]} : vector<16x96xf32> to vector<16x32xf32>
    %37 = vector.extract_strided_slice %34 {offsets = [0, 64], sizes = [16, 32], strides = [1, 1]} : vector<16x96xf32> to vector<16x32xf32>
    %38 = vector.extract_strided_slice %35 {offsets = [0, 0], sizes = [16, 8], strides = [1, 1]} : vector<16x32xf32> to vector<16x8xf32>
    %39 = vector.shape_cast %38 : vector<16x8xf32> to vector<2x8x8xf32>
    %40 = vector.extract_strided_slice %36 {offsets = [0, 0], sizes = [16, 8], strides = [1, 1]} : vector<16x32xf32> to vector<16x8xf32>
    %41 = vector.shape_cast %40 : vector<16x8xf32> to vector<2x8x8xf32>
    %42 = vector.extract_strided_slice %37 {offsets = [0, 0], sizes = [16, 8], strides = [1, 1]} : vector<16x32xf32> to vector<16x8xf32>
    %43 = vector.shape_cast %42 : vector<16x8xf32> to vector<2x8x8xf32>
    %cst_37 = arith.constant dense<0.000000e+00> : vector<2x8x8xf32>
    %44 = tpu.matmul %39, %41, %cst_37 {dimension_numbers = #tpu.dot_dimension_numbers<[2], [2], [1], [1], [0, 0, 0, 1, 1, 1], [0], [0]>} : vector<2x8x8xf32>, vector<2x8x8xf32>, vector<2x8x8xf32> -> vector<2x8x8xf32>
    %45 = arith.mulf %44, %22 : vector<2x8x8xf32>
    %46 = arith.addf %45, %23 : vector<2x8x8xf32>
    %cst_38 = arith.constant dense<0xFF800000> : vector<2x8xf32>
    %47 = vector.multi_reduction <maximumf>, %46, %cst_38 [2] : vector<2x8x8xf32> to vector<2x8xf32>
    %48 = vector.shape_cast %47 : vector<2x8xf32> to vector<2x8x1xf32>
    %49 = vector.broadcast %48 : vector<2x8x1xf32> to vector<2x8x8xf32>
    %50 = arith.subf %46, %49 : vector<2x8x8xf32>
    %51 = math.exp %50 : vector<2x8x8xf32>
    %cst_39 = arith.constant dense<0.000000e+00> : vector<2x8xf32>
    %52 = vector.multi_reduction <add>, %51, %cst_39 [2] : vector<2x8x8xf32> to vector<2x8xf32>
    %53 = vector.shape_cast %52 : vector<2x8xf32> to vector<2x8x1xf32>
    %54 = vector.broadcast %53 : vector<2x8x1xf32> to vector<2x8x8xf32>
    %55 = arith.divf %51, %54 : vector<2x8x8xf32>
    %cst_40 = arith.constant dense<0.000000e+00> : vector<2x8x8xf32>
    %56 = tpu.matmul %55, %43, %cst_40 {dimension_numbers = #tpu.dot_dimension_numbers<[2], [1], [1], [2], [0, 0, 0, 1, 1, 2], [0], [0]>} : vector<2x8x8xf32>, vector<2x8x8xf32>, vector<2x8x8xf32> -> vector<2x8x8xf32>
    %57 = vector.shape_cast %56 : vector<2x8x8xf32> to vector<16x8xf32>
    %58 = vector.extract_strided_slice %35 {offsets = [0, 8], sizes = [16, 8], strides = [1, 1]} : vector<16x32xf32> to vector<16x8xf32>
    %59 = vector.shape_cast %58 : vector<16x8xf32> to vector<2x8x8xf32>
    %60 = vector.extract_strided_slice %36 {offsets = [0, 8], sizes = [16, 8], strides = [1, 1]} : vector<16x32xf32> to vector<16x8xf32>
    %61 = vector.shape_cast %60 : vector<16x8xf32> to vector<2x8x8xf32>
    %62 = vector.extract_strided_slice %37 {offsets = [0, 8], sizes = [16, 8], strides = [1, 1]} : vector<16x32xf32> to vector<16x8xf32>
    %63 = vector.shape_cast %62 : vector<16x8xf32> to vector<2x8x8xf32>
    %cst_41 = arith.constant dense<0.000000e+00> : vector<2x8x8xf32>
    %64 = tpu.matmul %59, %61, %cst_41 {dimension_numbers = #tpu.dot_dimension_numbers<[2], [2], [1], [1], [0, 0, 0, 1, 1, 1], [0], [0]>} : vector<2x8x8xf32>, vector<2x8x8xf32>, vector<2x8x8xf32> -> vector<2x8x8xf32>
    %65 = arith.mulf %64, %22 : vector<2x8x8xf32>
    %66 = arith.addf %65, %23 : vector<2x8x8xf32>
    %cst_42 = arith.constant dense<0xFF800000> : vector<2x8xf32>
    %67 = vector.multi_reduction <maximumf>, %66, %cst_42 [2] : vector<2x8x8xf32> to vector<2x8xf32>
    %68 = vector.shape_cast %67 : vector<2x8xf32> to vector<2x8x1xf32>
    %69 = vector.broadcast %68 : vector<2x8x1xf32> to vector<2x8x8xf32>
    %70 = arith.subf %66, %69 : vector<2x8x8xf32>
    %71 = math.exp %70 : vector<2x8x8xf32>
    %cst_43 = arith.constant dense<0.000000e+00> : vector<2x8xf32>
    %72 = vector.multi_reduction <add>, %71, %cst_43 [2] : vector<2x8x8xf32> to vector<2x8xf32>
    %73 = vector.shape_cast %72 : vector<2x8xf32> to vector<2x8x1xf32>
    %74 = vector.broadcast %73 : vector<2x8x1xf32> to vector<2x8x8xf32>
    %75 = arith.divf %71, %74 : vector<2x8x8xf32>
    %cst_44 = arith.constant dense<0.000000e+00> : vector<2x8x8xf32>
    %76 = tpu.matmul %75, %63, %cst_44 {dimension_numbers = #tpu.dot_dimension_numbers<[2], [1], [1], [2], [0, 0, 0, 1, 1, 2], [0], [0]>} : vector<2x8x8xf32>, vector<2x8x8xf32>, vector<2x8x8xf32> -> vector<2x8x8xf32>
    %77 = vector.shape_cast %76 : vector<2x8x8xf32> to vector<16x8xf32>
    %78 = vector.extract_strided_slice %35 {offsets = [0, 16], sizes = [16, 8], strides = [1, 1]} : vector<16x32xf32> to vector<16x8xf32>
    %79 = vector.shape_cast %78 : vector<16x8xf32> to vector<2x8x8xf32>
    %80 = vector.extract_strided_slice %36 {offsets = [0, 16], sizes = [16, 8], strides = [1, 1]} : vector<16x32xf32> to vector<16x8xf32>
    %81 = vector.shape_cast %80 : vector<16x8xf32> to vector<2x8x8xf32>
    %82 = vector.extract_strided_slice %37 {offsets = [0, 16], sizes = [16, 8], strides = [1, 1]} : vector<16x32xf32> to vector<16x8xf32>
    %83 = vector.shape_cast %82 : vector<16x8xf32> to vector<2x8x8xf32>
    %cst_45 = arith.constant dense<0.000000e+00> : vector<2x8x8xf32>
    %84 = tpu.matmul %79, %81, %cst_45 {dimension_numbers = #tpu.dot_dimension_numbers<[2], [2], [1], [1], [0, 0, 0, 1, 1, 1], [0], [0]>} : vector<2x8x8xf32>, vector<2x8x8xf32>, vector<2x8x8xf32> -> vector<2x8x8xf32>
    %85 = arith.mulf %84, %22 : vector<2x8x8xf32>
    %86 = arith.addf %85, %23 : vector<2x8x8xf32>
    %cst_46 = arith.constant dense<0xFF800000> : vector<2x8xf32>
    %87 = vector.multi_reduction <maximumf>, %86, %cst_46 [2] : vector<2x8x8xf32> to vector<2x8xf32>
    %88 = vector.shape_cast %87 : vector<2x8xf32> to vector<2x8x1xf32>
    %89 = vector.broadcast %88 : vector<2x8x1xf32> to vector<2x8x8xf32>
    %90 = arith.subf %86, %89 : vector<2x8x8xf32>
    %91 = math.exp %90 : vector<2x8x8xf32>
    %cst_47 = arith.constant dense<0.000000e+00> : vector<2x8xf32>
    %92 = vector.multi_reduction <add>, %91, %cst_47 [2] : vector<2x8x8xf32> to vector<2x8xf32>
    %93 = vector.shape_cast %92 : vector<2x8xf32> to vector<2x8x1xf32>
    %94 = vector.broadcast %93 : vector<2x8x1xf32> to vector<2x8x8xf32>
    %95 = arith.divf %91, %94 : vector<2x8x8xf32>
    %cst_48 = arith.constant dense<0.000000e+00> : vector<2x8x8xf32>
    %96 = tpu.matmul %95, %83, %cst_48 {dimension_numbers = #tpu.dot_dimension_numbers<[2], [1], [1], [2], [0, 0, 0, 1, 1, 2], [0], [0]>} : vector<2x8x8xf32>, vector<2x8x8xf32>, vector<2x8x8xf32> -> vector<2x8x8xf32>
    %97 = vector.shape_cast %96 : vector<2x8x8xf32> to vector<16x8xf32>
    %98 = vector.extract_strided_slice %35 {offsets = [0, 24], sizes = [16, 8], strides = [1, 1]} : vector<16x32xf32> to vector<16x8xf32>
    %99 = vector.shape_cast %98 : vector<16x8xf32> to vector<2x8x8xf32>
    %100 = vector.extract_strided_slice %36 {offsets = [0, 24], sizes = [16, 8], strides = [1, 1]} : vector<16x32xf32> to vector<16x8xf32>
    %101 = vector.shape_cast %100 : vector<16x8xf32> to vector<2x8x8xf32>
    %102 = vector.extract_strided_slice %37 {offsets = [0, 24], sizes = [16, 8], strides = [1, 1]} : vector<16x32xf32> to vector<16x8xf32>
    %103 = vector.shape_cast %102 : vector<16x8xf32> to vector<2x8x8xf32>
    %cst_49 = arith.constant dense<0.000000e+00> : vector<2x8x8xf32>
    %104 = tpu.matmul %99, %101, %cst_49 {dimension_numbers = #tpu.dot_dimension_numbers<[2], [2], [1], [1], [0, 0, 0, 1, 1, 1], [0], [0]>} : vector<2x8x8xf32>, vector<2x8x8xf32>, vector<2x8x8xf32> -> vector<2x8x8xf32>
    %105 = arith.mulf %104, %22 : vector<2x8x8xf32>
    %106 = arith.addf %105, %23 : vector<2x8x8xf32>
    %cst_50 = arith.constant dense<0xFF800000> : vector<2x8xf32>
    %107 = vector.multi_reduction <maximumf>, %106, %cst_50 [2] : vector<2x8x8xf32> to vector<2x8xf32>
    %108 = vector.shape_cast %107 : vector<2x8xf32> to vector<2x8x1xf32>
    %109 = vector.broadcast %108 : vector<2x8x1xf32> to vector<2x8x8xf32>
    %110 = arith.subf %106, %109 : vector<2x8x8xf32>
    %111 = math.exp %110 : vector<2x8x8xf32>
    %cst_51 = arith.constant dense<0.000000e+00> : vector<2x8xf32>
    %112 = vector.multi_reduction <add>, %111, %cst_51 [2] : vector<2x8x8xf32> to vector<2x8xf32>
    %113 = vector.shape_cast %112 : vector<2x8xf32> to vector<2x8x1xf32>
    %114 = vector.broadcast %113 : vector<2x8x1xf32> to vector<2x8x8xf32>
    %115 = arith.divf %111, %114 : vector<2x8x8xf32>
    %cst_52 = arith.constant dense<0.000000e+00> : vector<2x8x8xf32>
    %116 = tpu.matmul %115, %103, %cst_52 {dimension_numbers = #tpu.dot_dimension_numbers<[2], [1], [1], [2], [0, 0, 0, 1, 1, 2], [0], [0]>} : vector<2x8x8xf32>, vector<2x8x8xf32>, vector<2x8x8xf32> -> vector<2x8x8xf32>
    %117 = vector.shape_cast %116 : vector<2x8x8xf32> to vector<16x8xf32>
    %118 = tpu.concatenate %57, %77, %97, %117 in 1 : vector<16x8xf32>, vector<16x8xf32>, vector<16x8xf32>, vector<16x8xf32> -> vector<16x32xf32>
    %c0_53 = arith.constant 0 : index
    %c0_54 = arith.constant 0 : index
    %c0_55 = arith.constant 0 : index
    %119 = vector.load %arg13[%c0_53, %c0_54, %c0_55] : memref<2x32x32xf32, #tpu.memory_space<vmem>>, vector<1x32x32xf32>
    %120 = vector.shape_cast %119 : vector<1x32x32xf32> to vector<32x32xf32>
    %cst_56 = arith.constant dense<0.000000e+00> : vector<16x32xf32>
    %121 = tpu.matmul %118, %120, %cst_56 {dimension_numbers = #tpu.dot_dimension_numbers<[1], [0], [0], [1], [0, 0, 1, 1], [], []>} : vector<16x32xf32>, vector<32x32xf32>, vector<16x32xf32> -> vector<16x32xf32>
    %c0_57 = arith.constant 0 : index
    %c0_58 = arith.constant 0 : index
    %c0_59 = arith.constant 0 : index
    %122 = vector.load %arg14[%c0_57, %c0_58, %c0_59] : memref<2x1x32xf32, #tpu.memory_space<vmem>>, vector<1x1x32xf32>
    %123 = vector.shape_cast %122 : vector<1x1x32xf32> to vector<1x32xf32>
    %124 = vector.broadcast %123 : vector<1x32xf32> to vector<16x32xf32>
    %125 = arith.addf %121, %124 : vector<16x32xf32>
    %c0_60 = arith.constant 0 : index
    %c0_61 = arith.constant 0 : index
    %c0_62 = arith.constant 0 : index
    %126 = vector.load %arg15[%c0_60, %c0_61, %c0_62] : memref<2x1x32xf32, #tpu.memory_space<vmem>>, vector<1x1x32xf32>
    %127 = vector.shape_cast %126 : vector<1x1x32xf32> to vector<1x32xf32>
    %c0_63 = arith.constant 0 : index
    %c0_64 = arith.constant 0 : index
    %c0_65 = arith.constant 0 : index
    %128 = vector.load %arg16[%c0_63, %c0_64, %c0_65] : memref<2x1x32xf32, #tpu.memory_space<vmem>>, vector<1x1x32xf32>
    %129 = vector.shape_cast %128 : vector<1x1x32xf32> to vector<1x32xf32>
    %130 = arith.addf %10, %125 : vector<16x32xf32>
    %cst_66 = arith.constant dense<0.000000e+00> : vector<16xf32>
    %131 = vector.multi_reduction <add>, %130, %cst_66 [1] : vector<16x32xf32> to vector<16xf32>
    %132 = vector.shape_cast %131 : vector<16xf32> to vector<16x1xf32>
    %cst_67 = arith.constant 3.200000e+01 : f32
    %133 = vector.broadcast %cst_67 : f32 to vector<16x1xf32>
    %134 = arith.divf %132, %133 : vector<16x1xf32>
    %135 = vector.broadcast %134 : vector<16x1xf32> to vector<16x32xf32>
    %136 = arith.subf %130, %135 : vector<16x32xf32>
    %137 = arith.mulf %136, %136 : vector<16x32xf32>
    %cst_68 = arith.constant dense<0.000000e+00> : vector<16xf32>
    %138 = vector.multi_reduction <add>, %137, %cst_68 [1] : vector<16x32xf32> to vector<16xf32>
    %139 = vector.shape_cast %138 : vector<16xf32> to vector<16x1xf32>
    %cst_69 = arith.constant 3.200000e+01 : f32
    %140 = vector.broadcast %cst_69 : f32 to vector<16x1xf32>
    %141 = arith.divf %139, %140 : vector<16x1xf32>
    %142 = vector.broadcast %134 : vector<16x1xf32> to vector<16x32xf32>
    %143 = arith.subf %130, %142 : vector<16x32xf32>
    %cst_70 = arith.constant 9.99999974E-6 : f32
    %144 = vector.broadcast %cst_70 : f32 to vector<16x1xf32>
    %145 = arith.addf %141, %144 : vector<16x1xf32>
    %146 = math.rsqrt %145 : vector<16x1xf32>
    %147 = vector.broadcast %146 : vector<16x1xf32> to vector<16x32xf32>
    %148 = arith.mulf %143, %147 : vector<16x32xf32>
    %149 = vector.broadcast %127 : vector<1x32xf32> to vector<16x32xf32>
    %150 = arith.mulf %148, %149 : vector<16x32xf32>
    %151 = vector.broadcast %129 : vector<1x32xf32> to vector<16x32xf32>
    %152 = arith.addf %150, %151 : vector<16x32xf32>
    %c0_71 = arith.constant 0 : index
    %c0_72 = arith.constant 0 : index
    %c0_73 = arith.constant 0 : index
    %153 = vector.load %arg17[%c0_71, %c0_72, %c0_73] : memref<2x32x64xf32, #tpu.memory_space<vmem>>, vector<1x32x64xf32>
    %154 = vector.shape_cast %153 : vector<1x32x64xf32> to vector<32x64xf32>
    %c0_74 = arith.constant 0 : index
    %c0_75 = arith.constant 0 : index
    %c0_76 = arith.constant 0 : index
    %155 = vector.load %arg18[%c0_74, %c0_75, %c0_76] : memref<2x1x64xf32, #tpu.memory_space<vmem>>, vector<1x1x64xf32>
    %156 = vector.shape_cast %155 : vector<1x1x64xf32> to vector<1x64xf32>
    %c0_77 = arith.constant 0 : index
    %c0_78 = arith.constant 0 : index
    %c0_79 = arith.constant 0 : index
    %157 = vector.load %arg19[%c0_77, %c0_78, %c0_79] : memref<2x64x32xf32, #tpu.memory_space<vmem>>, vector<1x64x32xf32>
    %158 = vector.shape_cast %157 : vector<1x64x32xf32> to vector<64x32xf32>
    %c0_80 = arith.constant 0 : index
    %c0_81 = arith.constant 0 : index
    %c0_82 = arith.constant 0 : index
    %159 = vector.load %arg20[%c0_80, %c0_81, %c0_82] : memref<2x1x32xf32, #tpu.memory_space<vmem>>, vector<1x1x32xf32>
    %160 = vector.shape_cast %159 : vector<1x1x32xf32> to vector<1x32xf32>
    %cst_83 = arith.constant dense<0.000000e+00> : vector<16x64xf32>
    %161 = tpu.matmul %152, %154, %cst_83 {dimension_numbers = #tpu.dot_dimension_numbers<[1], [0], [0], [1], [0, 0, 1, 1], [], []>} : vector<16x32xf32>, vector<32x64xf32>, vector<16x64xf32> -> vector<16x64xf32>
    %162 = vector.broadcast %156 : vector<1x64xf32> to vector<16x64xf32>
    %163 = arith.addf %161, %162 : vector<16x64xf32>
    %cst_84 = arith.constant 0.000000e+00 : f32
    %164 = vector.broadcast %cst_84 : f32 to vector<16x64xf32>
    %165 = arith.maximumf %163, %164 : vector<16x64xf32>
    %cst_85 = arith.constant dense<0.000000e+00> : vector<16x32xf32>
    %166 = tpu.matmul %165, %158, %cst_85 {dimension_numbers = #tpu.dot_dimension_numbers<[1], [0], [0], [1], [0, 0, 1, 1], [], []>} : vector<16x64xf32>, vector<64x32xf32>, vector<16x32xf32> -> vector<16x32xf32>
    %167 = vector.broadcast %160 : vector<1x32xf32> to vector<16x32xf32>
    %168 = arith.addf %166, %167 : vector<16x32xf32>
    %c0_86 = arith.constant 0 : index
    %c0_87 = arith.constant 0 : index
    %c0_88 = arith.constant 0 : index
    %169 = vector.load %arg21[%c0_86, %c0_87, %c0_88] : memref<2x1x32xf32, #tpu.memory_space<vmem>>, vector<1x1x32xf32>
    %170 = vector.shape_cast %169 : vector<1x1x32xf32> to vector<1x32xf32>
    %c0_89 = arith.constant 0 : index
    %c0_90 = arith.constant 0 : index
    %c0_91 = arith.constant 0 : index
    %171 = vector.load %arg22[%c0_89, %c0_90, %c0_91] : memref<2x1x32xf32, #tpu.memory_space<vmem>>, vector<1x1x32xf32>
    %172 = vector.shape_cast %171 : vector<1x1x32xf32> to vector<1x32xf32>
    %173 = arith.addf %152, %168 : vector<16x32xf32>
    %cst_92 = arith.constant dense<0.000000e+00> : vector<16xf32>
    %174 = vector.multi_reduction <add>, %173, %cst_92 [1] : vector<16x32xf32> to vector<16xf32>
    %175 = vector.shape_cast %174 : vector<16xf32> to vector<16x1xf32>
    %cst_93 = arith.constant 3.200000e+01 : f32
    %176 = vector.broadcast %cst_93 : f32 to vector<16x1xf32>
    %177 = arith.divf %175, %176 : vector<16x1xf32>
    %178 = vector.broadcast %177 : vector<16x1xf32> to vector<16x32xf32>
    %179 = arith.subf %173, %178 : vector<16x32xf32>
    %180 = arith.mulf %179, %179 : vector<16x32xf32>
    %cst_94 = arith.constant dense<0.000000e+00> : vector<16xf32>
    %181 = vector.multi_reduction <add>, %180, %cst_94 [1] : vector<16x32xf32> to vector<16xf32>
    %182 = vector.shape_cast %181 : vector<16xf32> to vector<16x1xf32>
    %cst_95 = arith.constant 3.200000e+01 : f32
    %183 = vector.broadcast %cst_95 : f32 to vector<16x1xf32>
    %184 = arith.divf %182, %183 : vector<16x1xf32>
    %185 = vector.broadcast %177 : vector<16x1xf32> to vector<16x32xf32>
    %186 = arith.subf %173, %185 : vector<16x32xf32>
    %cst_96 = arith.constant 9.99999974E-6 : f32
    %187 = vector.broadcast %cst_96 : f32 to vector<16x1xf32>
    %188 = arith.addf %184, %187 : vector<16x1xf32>
    %189 = math.rsqrt %188 : vector<16x1xf32>
    %190 = vector.broadcast %189 : vector<16x1xf32> to vector<16x32xf32>
    %191 = arith.mulf %186, %190 : vector<16x32xf32>
    %192 = vector.broadcast %170 : vector<1x32xf32> to vector<16x32xf32>
    %193 = arith.mulf %191, %192 : vector<16x32xf32>
    %194 = vector.broadcast %172 : vector<1x32xf32> to vector<16x32xf32>
    %195 = arith.addf %193, %194 : vector<16x32xf32>
    %c1 = arith.constant 1 : index
    %c0_97 = arith.constant 0 : index
    %c0_98 = arith.constant 0 : index
    %196 = vector.load %arg11[%c1, %c0_97, %c0_98] : memref<2x32x96xf32, #tpu.memory_space<vmem>>, vector<1x32x96xf32>
    %197 = vector.shape_cast %196 : vector<1x32x96xf32> to vector<32x96xf32>
    %cst_99 = arith.constant dense<0.000000e+00> : vector<16x96xf32>
    %198 = tpu.matmul %195, %197, %cst_99 {dimension_numbers = #tpu.dot_dimension_numbers<[1], [0], [0], [1], [0, 0, 1, 1], [], []>} : vector<16x32xf32>, vector<32x96xf32>, vector<16x96xf32> -> vector<16x96xf32>
    %c1_100 = arith.constant 1 : index
    %c0_101 = arith.constant 0 : index
    %c0_102 = arith.constant 0 : index
    %199 = vector.load %arg12[%c1_100, %c0_101, %c0_102] : memref<2x1x96xf32, #tpu.memory_space<vmem>>, vector<1x1x96xf32>
    %200 = vector.shape_cast %199 : vector<1x1x96xf32> to vector<1x96xf32>
    %201 = vector.broadcast %200 : vector<1x96xf32> to vector<16x96xf32>
    %202 = arith.addf %198, %201 : vector<16x96xf32>
    %203 = vector.extract_strided_slice %202 {offsets = [0, 0], sizes = [16, 32], strides = [1, 1]} : vector<16x96xf32> to vector<16x32xf32>
    %204 = vector.extract_strided_slice %202 {offsets = [0, 32], sizes = [16, 32], strides = [1, 1]} : vector<16x96xf32> to vector<16x32xf32>
    %205 = vector.extract_strided_slice %202 {offsets = [0, 64], sizes = [16, 32], strides = [1, 1]} : vector<16x96xf32> to vector<16x32xf32>
    %206 = vector.extract_strided_slice %203 {offsets = [0, 0], sizes = [16, 8], strides = [1, 1]} : vector<16x32xf32> to vector<16x8xf32>
    %207 = vector.shape_cast %206 : vector<16x8xf32> to vector<2x8x8xf32>
    %208 = vector.extract_strided_slice %204 {offsets = [0, 0], sizes = [16, 8], strides = [1, 1]} : vector<16x32xf32> to vector<16x8xf32>
    %209 = vector.shape_cast %208 : vector<16x8xf32> to vector<2x8x8xf32>
    %210 = vector.extract_strided_slice %205 {offsets = [0, 0], sizes = [16, 8], strides = [1, 1]} : vector<16x32xf32> to vector<16x8xf32>
    %211 = vector.shape_cast %210 : vector<16x8xf32> to vector<2x8x8xf32>
    %cst_103 = arith.constant dense<0.000000e+00> : vector<2x8x8xf32>
    %212 = tpu.matmul %207, %209, %cst_103 {dimension_numbers = #tpu.dot_dimension_numbers<[2], [2], [1], [1], [0, 0, 0, 1, 1, 1], [0], [0]>} : vector<2x8x8xf32>, vector<2x8x8xf32>, vector<2x8x8xf32> -> vector<2x8x8xf32>
    %213 = arith.mulf %212, %22 : vector<2x8x8xf32>
    %214 = arith.addf %213, %23 : vector<2x8x8xf32>
    %cst_104 = arith.constant dense<0xFF800000> : vector<2x8xf32>
    %215 = vector.multi_reduction <maximumf>, %214, %cst_104 [2] : vector<2x8x8xf32> to vector<2x8xf32>
    %216 = vector.shape_cast %215 : vector<2x8xf32> to vector<2x8x1xf32>
    %217 = vector.broadcast %216 : vector<2x8x1xf32> to vector<2x8x8xf32>
    %218 = arith.subf %214, %217 : vector<2x8x8xf32>
    %219 = math.exp %218 : vector<2x8x8xf32>
    %cst_105 = arith.constant dense<0.000000e+00> : vector<2x8xf32>
    %220 = vector.multi_reduction <add>, %219, %cst_105 [2] : vector<2x8x8xf32> to vector<2x8xf32>
    %221 = vector.shape_cast %220 : vector<2x8xf32> to vector<2x8x1xf32>
    %222 = vector.broadcast %221 : vector<2x8x1xf32> to vector<2x8x8xf32>
    %223 = arith.divf %219, %222 : vector<2x8x8xf32>
    %cst_106 = arith.constant dense<0.000000e+00> : vector<2x8x8xf32>
    %224 = tpu.matmul %223, %211, %cst_106 {dimension_numbers = #tpu.dot_dimension_numbers<[2], [1], [1], [2], [0, 0, 0, 1, 1, 2], [0], [0]>} : vector<2x8x8xf32>, vector<2x8x8xf32>, vector<2x8x8xf32> -> vector<2x8x8xf32>
    %225 = vector.shape_cast %224 : vector<2x8x8xf32> to vector<16x8xf32>
    %226 = vector.extract_strided_slice %203 {offsets = [0, 8], sizes = [16, 8], strides = [1, 1]} : vector<16x32xf32> to vector<16x8xf32>
    %227 = vector.shape_cast %226 : vector<16x8xf32> to vector<2x8x8xf32>
    %228 = vector.extract_strided_slice %204 {offsets = [0, 8], sizes = [16, 8], strides = [1, 1]} : vector<16x32xf32> to vector<16x8xf32>
    %229 = vector.shape_cast %228 : vector<16x8xf32> to vector<2x8x8xf32>
    %230 = vector.extract_strided_slice %205 {offsets = [0, 8], sizes = [16, 8], strides = [1, 1]} : vector<16x32xf32> to vector<16x8xf32>
    %231 = vector.shape_cast %230 : vector<16x8xf32> to vector<2x8x8xf32>
    %cst_107 = arith.constant dense<0.000000e+00> : vector<2x8x8xf32>
    %232 = tpu.matmul %227, %229, %cst_107 {dimension_numbers = #tpu.dot_dimension_numbers<[2], [2], [1], [1], [0, 0, 0, 1, 1, 1], [0], [0]>} : vector<2x8x8xf32>, vector<2x8x8xf32>, vector<2x8x8xf32> -> vector<2x8x8xf32>
    %233 = arith.mulf %232, %22 : vector<2x8x8xf32>
    %234 = arith.addf %233, %23 : vector<2x8x8xf32>
    %cst_108 = arith.constant dense<0xFF800000> : vector<2x8xf32>
    %235 = vector.multi_reduction <maximumf>, %234, %cst_108 [2] : vector<2x8x8xf32> to vector<2x8xf32>
    %236 = vector.shape_cast %235 : vector<2x8xf32> to vector<2x8x1xf32>
    %237 = vector.broadcast %236 : vector<2x8x1xf32> to vector<2x8x8xf32>
    %238 = arith.subf %234, %237 : vector<2x8x8xf32>
    %239 = math.exp %238 : vector<2x8x8xf32>
    %cst_109 = arith.constant dense<0.000000e+00> : vector<2x8xf32>
    %240 = vector.multi_reduction <add>, %239, %cst_109 [2] : vector<2x8x8xf32> to vector<2x8xf32>
    %241 = vector.shape_cast %240 : vector<2x8xf32> to vector<2x8x1xf32>
    %242 = vector.broadcast %241 : vector<2x8x1xf32> to vector<2x8x8xf32>
    %243 = arith.divf %239, %242 : vector<2x8x8xf32>
    %cst_110 = arith.constant dense<0.000000e+00> : vector<2x8x8xf32>
    %244 = tpu.matmul %243, %231, %cst_110 {dimension_numbers = #tpu.dot_dimension_numbers<[2], [1], [1], [2], [0, 0, 0, 1, 1, 2], [0], [0]>} : vector<2x8x8xf32>, vector<2x8x8xf32>, vector<2x8x8xf32> -> vector<2x8x8xf32>
    %245 = vector.shape_cast %244 : vector<2x8x8xf32> to vector<16x8xf32>
    %246 = vector.extract_strided_slice %203 {offsets = [0, 16], sizes = [16, 8], strides = [1, 1]} : vector<16x32xf32> to vector<16x8xf32>
    %247 = vector.shape_cast %246 : vector<16x8xf32> to vector<2x8x8xf32>
    %248 = vector.extract_strided_slice %204 {offsets = [0, 16], sizes = [16, 8], strides = [1, 1]} : vector<16x32xf32> to vector<16x8xf32>
    %249 = vector.shape_cast %248 : vector<16x8xf32> to vector<2x8x8xf32>
    %250 = vector.extract_strided_slice %205 {offsets = [0, 16], sizes = [16, 8], strides = [1, 1]} : vector<16x32xf32> to vector<16x8xf32>
    %251 = vector.shape_cast %250 : vector<16x8xf32> to vector<2x8x8xf32>
    %cst_111 = arith.constant dense<0.000000e+00> : vector<2x8x8xf32>
    %252 = tpu.matmul %247, %249, %cst_111 {dimension_numbers = #tpu.dot_dimension_numbers<[2], [2], [1], [1], [0, 0, 0, 1, 1, 1], [0], [0]>} : vector<2x8x8xf32>, vector<2x8x8xf32>, vector<2x8x8xf32> -> vector<2x8x8xf32>
    %253 = arith.mulf %252, %22 : vector<2x8x8xf32>
    %254 = arith.addf %253, %23 : vector<2x8x8xf32>
    %cst_112 = arith.constant dense<0xFF800000> : vector<2x8xf32>
    %255 = vector.multi_reduction <maximumf>, %254, %cst_112 [2] : vector<2x8x8xf32> to vector<2x8xf32>
    %256 = vector.shape_cast %255 : vector<2x8xf32> to vector<2x8x1xf32>
    %257 = vector.broadcast %256 : vector<2x8x1xf32> to vector<2x8x8xf32>
    %258 = arith.subf %254, %257 : vector<2x8x8xf32>
    %259 = math.exp %258 : vector<2x8x8xf32>
    %cst_113 = arith.constant dense<0.000000e+00> : vector<2x8xf32>
    %260 = vector.multi_reduction <add>, %259, %cst_113 [2] : vector<2x8x8xf32> to vector<2x8xf32>
    %261 = vector.shape_cast %260 : vector<2x8xf32> to vector<2x8x1xf32>
    %262 = vector.broadcast %261 : vector<2x8x1xf32> to vector<2x8x8xf32>
    %263 = arith.divf %259, %262 : vector<2x8x8xf32>
    %cst_114 = arith.constant dense<0.000000e+00> : vector<2x8x8xf32>
    %264 = tpu.matmul %263, %251, %cst_114 {dimension_numbers = #tpu.dot_dimension_numbers<[2], [1], [1], [2], [0, 0, 0, 1, 1, 2], [0], [0]>} : vector<2x8x8xf32>, vector<2x8x8xf32>, vector<2x8x8xf32> -> vector<2x8x8xf32>
    %265 = vector.shape_cast %264 : vector<2x8x8xf32> to vector<16x8xf32>
    %266 = vector.extract_strided_slice %203 {offsets = [0, 24], sizes = [16, 8], strides = [1, 1]} : vector<16x32xf32> to vector<16x8xf32>
    %267 = vector.shape_cast %266 : vector<16x8xf32> to vector<2x8x8xf32>
    %268 = vector.extract_strided_slice %204 {offsets = [0, 24], sizes = [16, 8], strides = [1, 1]} : vector<16x32xf32> to vector<16x8xf32>
    %269 = vector.shape_cast %268 : vector<16x8xf32> to vector<2x8x8xf32>
    %270 = vector.extract_strided_slice %205 {offsets = [0, 24], sizes = [16, 8], strides = [1, 1]} : vector<16x32xf32> to vector<16x8xf32>
    %271 = vector.shape_cast %270 : vector<16x8xf32> to vector<2x8x8xf32>
    %cst_115 = arith.constant dense<0.000000e+00> : vector<2x8x8xf32>
    %272 = tpu.matmul %267, %269, %cst_115 {dimension_numbers = #tpu.dot_dimension_numbers<[2], [2], [1], [1], [0, 0, 0, 1, 1, 1], [0], [0]>} : vector<2x8x8xf32>, vector<2x8x8xf32>, vector<2x8x8xf32> -> vector<2x8x8xf32>
    %273 = arith.mulf %272, %22 : vector<2x8x8xf32>
    %274 = arith.addf %273, %23 : vector<2x8x8xf32>
    %cst_116 = arith.constant dense<0xFF800000> : vector<2x8xf32>
    %275 = vector.multi_reduction <maximumf>, %274, %cst_116 [2] : vector<2x8x8xf32> to vector<2x8xf32>
    %276 = vector.shape_cast %275 : vector<2x8xf32> to vector<2x8x1xf32>
    %277 = vector.broadcast %276 : vector<2x8x1xf32> to vector<2x8x8xf32>
    %278 = arith.subf %274, %277 : vector<2x8x8xf32>
    %279 = math.exp %278 : vector<2x8x8xf32>
    %cst_117 = arith.constant dense<0.000000e+00> : vector<2x8xf32>
    %280 = vector.multi_reduction <add>, %279, %cst_117 [2] : vector<2x8x8xf32> to vector<2x8xf32>
    %281 = vector.shape_cast %280 : vector<2x8xf32> to vector<2x8x1xf32>
    %282 = vector.broadcast %281 : vector<2x8x1xf32> to vector<2x8x8xf32>
    %283 = arith.divf %279, %282 : vector<2x8x8xf32>
    %cst_118 = arith.constant dense<0.000000e+00> : vector<2x8x8xf32>
    %284 = tpu.matmul %283, %271, %cst_118 {dimension_numbers = #tpu.dot_dimension_numbers<[2], [1], [1], [2], [0, 0, 0, 1, 1, 2], [0], [0]>} : vector<2x8x8xf32>, vector<2x8x8xf32>, vector<2x8x8xf32> -> vector<2x8x8xf32>
    %285 = vector.shape_cast %284 : vector<2x8x8xf32> to vector<16x8xf32>
    %286 = tpu.concatenate %225, %245, %265, %285 in 1 : vector<16x8xf32>, vector<16x8xf32>, vector<16x8xf32>, vector<16x8xf32> -> vector<16x32xf32>
    %c1_119 = arith.constant 1 : index
    %c0_120 = arith.constant 0 : index
    %c0_121 = arith.constant 0 : index
    %287 = vector.load %arg13[%c1_119, %c0_120, %c0_121] : memref<2x32x32xf32, #tpu.memory_space<vmem>>, vector<1x32x32xf32>
    %288 = vector.shape_cast %287 : vector<1x32x32xf32> to vector<32x32xf32>
    %cst_122 = arith.constant dense<0.000000e+00> : vector<16x32xf32>
    %289 = tpu.matmul %286, %288, %cst_122 {dimension_numbers = #tpu.dot_dimension_numbers<[1], [0], [0], [1], [0, 0, 1, 1], [], []>} : vector<16x32xf32>, vector<32x32xf32>, vector<16x32xf32> -> vector<16x32xf32>
    %c1_123 = arith.constant 1 : index
    %c0_124 = arith.constant 0 : index
    %c0_125 = arith.constant 0 : index
    %290 = vector.load %arg14[%c1_123, %c0_124, %c0_125] : memref<2x1x32xf32, #tpu.memory_space<vmem>>, vector<1x1x32xf32>
    %291 = vector.shape_cast %290 : vector<1x1x32xf32> to vector<1x32xf32>
    %292 = vector.broadcast %291 : vector<1x32xf32> to vector<16x32xf32>
    %293 = arith.addf %289, %292 : vector<16x32xf32>
    %c1_126 = arith.constant 1 : index
    %c0_127 = arith.constant 0 : index
    %c0_128 = arith.constant 0 : index
    %294 = vector.load %arg15[%c1_126, %c0_127, %c0_128] : memref<2x1x32xf32, #tpu.memory_space<vmem>>, vector<1x1x32xf32>
    %295 = vector.shape_cast %294 : vector<1x1x32xf32> to vector<1x32xf32>
    %c1_129 = arith.constant 1 : index
    %c0_130 = arith.constant 0 : index
    %c0_131 = arith.constant 0 : index
    %296 = vector.load %arg16[%c1_129, %c0_130, %c0_131] : memref<2x1x32xf32, #tpu.memory_space<vmem>>, vector<1x1x32xf32>
    %297 = vector.shape_cast %296 : vector<1x1x32xf32> to vector<1x32xf32>
    %298 = arith.addf %195, %293 : vector<16x32xf32>
    %cst_132 = arith.constant dense<0.000000e+00> : vector<16xf32>
    %299 = vector.multi_reduction <add>, %298, %cst_132 [1] : vector<16x32xf32> to vector<16xf32>
    %300 = vector.shape_cast %299 : vector<16xf32> to vector<16x1xf32>
    %cst_133 = arith.constant 3.200000e+01 : f32
    %301 = vector.broadcast %cst_133 : f32 to vector<16x1xf32>
    %302 = arith.divf %300, %301 : vector<16x1xf32>
    %303 = vector.broadcast %302 : vector<16x1xf32> to vector<16x32xf32>
    %304 = arith.subf %298, %303 : vector<16x32xf32>
    %305 = arith.mulf %304, %304 : vector<16x32xf32>
    %cst_134 = arith.constant dense<0.000000e+00> : vector<16xf32>
    %306 = vector.multi_reduction <add>, %305, %cst_134 [1] : vector<16x32xf32> to vector<16xf32>
    %307 = vector.shape_cast %306 : vector<16xf32> to vector<16x1xf32>
    %cst_135 = arith.constant 3.200000e+01 : f32
    %308 = vector.broadcast %cst_135 : f32 to vector<16x1xf32>
    %309 = arith.divf %307, %308 : vector<16x1xf32>
    %310 = vector.broadcast %302 : vector<16x1xf32> to vector<16x32xf32>
    %311 = arith.subf %298, %310 : vector<16x32xf32>
    %cst_136 = arith.constant 9.99999974E-6 : f32
    %312 = vector.broadcast %cst_136 : f32 to vector<16x1xf32>
    %313 = arith.addf %309, %312 : vector<16x1xf32>
    %314 = math.rsqrt %313 : vector<16x1xf32>
    %315 = vector.broadcast %314 : vector<16x1xf32> to vector<16x32xf32>
    %316 = arith.mulf %311, %315 : vector<16x32xf32>
    %317 = vector.broadcast %295 : vector<1x32xf32> to vector<16x32xf32>
    %318 = arith.mulf %316, %317 : vector<16x32xf32>
    %319 = vector.broadcast %297 : vector<1x32xf32> to vector<16x32xf32>
    %320 = arith.addf %318, %319 : vector<16x32xf32>
    %c1_137 = arith.constant 1 : index
    %c0_138 = arith.constant 0 : index
    %c0_139 = arith.constant 0 : index
    %321 = vector.load %arg17[%c1_137, %c0_138, %c0_139] : memref<2x32x64xf32, #tpu.memory_space<vmem>>, vector<1x32x64xf32>
    %322 = vector.shape_cast %321 : vector<1x32x64xf32> to vector<32x64xf32>
    %c1_140 = arith.constant 1 : index
    %c0_141 = arith.constant 0 : index
    %c0_142 = arith.constant 0 : index
    %323 = vector.load %arg18[%c1_140, %c0_141, %c0_142] : memref<2x1x64xf32, #tpu.memory_space<vmem>>, vector<1x1x64xf32>
    %324 = vector.shape_cast %323 : vector<1x1x64xf32> to vector<1x64xf32>
    %c1_143 = arith.constant 1 : index
    %c0_144 = arith.constant 0 : index
    %c0_145 = arith.constant 0 : index
    %325 = vector.load %arg19[%c1_143, %c0_144, %c0_145] : memref<2x64x32xf32, #tpu.memory_space<vmem>>, vector<1x64x32xf32>
    %326 = vector.shape_cast %325 : vector<1x64x32xf32> to vector<64x32xf32>
    %c1_146 = arith.constant 1 : index
    %c0_147 = arith.constant 0 : index
    %c0_148 = arith.constant 0 : index
    %327 = vector.load %arg20[%c1_146, %c0_147, %c0_148] : memref<2x1x32xf32, #tpu.memory_space<vmem>>, vector<1x1x32xf32>
    %328 = vector.shape_cast %327 : vector<1x1x32xf32> to vector<1x32xf32>
    %cst_149 = arith.constant dense<0.000000e+00> : vector<16x64xf32>
    %329 = tpu.matmul %320, %322, %cst_149 {dimension_numbers = #tpu.dot_dimension_numbers<[1], [0], [0], [1], [0, 0, 1, 1], [], []>} : vector<16x32xf32>, vector<32x64xf32>, vector<16x64xf32> -> vector<16x64xf32>
    %330 = vector.broadcast %324 : vector<1x64xf32> to vector<16x64xf32>
    %331 = arith.addf %329, %330 : vector<16x64xf32>
    %cst_150 = arith.constant 0.000000e+00 : f32
    %332 = vector.broadcast %cst_150 : f32 to vector<16x64xf32>
    %333 = arith.maximumf %331, %332 : vector<16x64xf32>
    %cst_151 = arith.constant dense<0.000000e+00> : vector<16x32xf32>
    %334 = tpu.matmul %333, %326, %cst_151 {dimension_numbers = #tpu.dot_dimension_numbers<[1], [0], [0], [1], [0, 0, 1, 1], [], []>} : vector<16x64xf32>, vector<64x32xf32>, vector<16x32xf32> -> vector<16x32xf32>
    %335 = vector.broadcast %328 : vector<1x32xf32> to vector<16x32xf32>
    %336 = arith.addf %334, %335 : vector<16x32xf32>
    %c1_152 = arith.constant 1 : index
    %c0_153 = arith.constant 0 : index
    %c0_154 = arith.constant 0 : index
    %337 = vector.load %arg21[%c1_152, %c0_153, %c0_154] : memref<2x1x32xf32, #tpu.memory_space<vmem>>, vector<1x1x32xf32>
    %338 = vector.shape_cast %337 : vector<1x1x32xf32> to vector<1x32xf32>
    %c1_155 = arith.constant 1 : index
    %c0_156 = arith.constant 0 : index
    %c0_157 = arith.constant 0 : index
    %339 = vector.load %arg22[%c1_155, %c0_156, %c0_157] : memref<2x1x32xf32, #tpu.memory_space<vmem>>, vector<1x1x32xf32>
    %340 = vector.shape_cast %339 : vector<1x1x32xf32> to vector<1x32xf32>
    %341 = arith.addf %320, %336 : vector<16x32xf32>
    %cst_158 = arith.constant dense<0.000000e+00> : vector<16xf32>
    %342 = vector.multi_reduction <add>, %341, %cst_158 [1] : vector<16x32xf32> to vector<16xf32>
    %343 = vector.shape_cast %342 : vector<16xf32> to vector<16x1xf32>
    %cst_159 = arith.constant 3.200000e+01 : f32
    %344 = vector.broadcast %cst_159 : f32 to vector<16x1xf32>
    %345 = arith.divf %343, %344 : vector<16x1xf32>
    %346 = vector.broadcast %345 : vector<16x1xf32> to vector<16x32xf32>
    %347 = arith.subf %341, %346 : vector<16x32xf32>
    %348 = arith.mulf %347, %347 : vector<16x32xf32>
    %cst_160 = arith.constant dense<0.000000e+00> : vector<16xf32>
    %349 = vector.multi_reduction <add>, %348, %cst_160 [1] : vector<16x32xf32> to vector<16xf32>
    %350 = vector.shape_cast %349 : vector<16xf32> to vector<16x1xf32>
    %cst_161 = arith.constant 3.200000e+01 : f32
    %351 = vector.broadcast %cst_161 : f32 to vector<16x1xf32>
    %352 = arith.divf %350, %351 : vector<16x1xf32>
    %353 = vector.broadcast %345 : vector<16x1xf32> to vector<16x32xf32>
    %354 = arith.subf %341, %353 : vector<16x32xf32>
    %cst_162 = arith.constant 9.99999974E-6 : f32
    %355 = vector.broadcast %cst_162 : f32 to vector<16x1xf32>
    %356 = arith.addf %352, %355 : vector<16x1xf32>
    %357 = math.rsqrt %356 : vector<16x1xf32>
    %358 = vector.broadcast %357 : vector<16x1xf32> to vector<16x32xf32>
    %359 = arith.mulf %354, %358 : vector<16x32xf32>
    %360 = vector.broadcast %338 : vector<1x32xf32> to vector<16x32xf32>
    %361 = arith.mulf %359, %360 : vector<16x32xf32>
    %362 = vector.broadcast %340 : vector<1x32xf32> to vector<16x32xf32>
    %363 = arith.addf %361, %362 : vector<16x32xf32>
    %c0_163 = arith.constant 0 : index
    %c0_164 = arith.constant 0 : index
    %c0_165 = arith.constant 0 : index
    %364 = vector.load %arg23[%c0_163, %c0_164, %c0_165] : memref<2x32x96xf32, #tpu.memory_space<vmem>>, vector<1x32x96xf32>
    %365 = vector.shape_cast %364 : vector<1x32x96xf32> to vector<32x96xf32>
    %cst_166 = arith.constant dense<0.000000e+00> : vector<16x96xf32>
    %366 = tpu.matmul %21, %365, %cst_166 {dimension_numbers = #tpu.dot_dimension_numbers<[1], [0], [0], [1], [0, 0, 1, 1], [], []>} : vector<16x32xf32>, vector<32x96xf32>, vector<16x96xf32> -> vector<16x96xf32>
    %c0_167 = arith.constant 0 : index
    %c0_168 = arith.constant 0 : index
    %c0_169 = arith.constant 0 : index
    %367 = vector.load %arg24[%c0_167, %c0_168, %c0_169] : memref<2x1x96xf32, #tpu.memory_space<vmem>>, vector<1x1x96xf32>
    %368 = vector.shape_cast %367 : vector<1x1x96xf32> to vector<1x96xf32>
    %369 = vector.broadcast %368 : vector<1x96xf32> to vector<16x96xf32>
    %370 = arith.addf %366, %369 : vector<16x96xf32>
    %371 = vector.extract_strided_slice %370 {offsets = [0, 0], sizes = [16, 32], strides = [1, 1]} : vector<16x96xf32> to vector<16x32xf32>
    %372 = vector.extract_strided_slice %370 {offsets = [0, 32], sizes = [16, 32], strides = [1, 1]} : vector<16x96xf32> to vector<16x32xf32>
    %373 = vector.extract_strided_slice %370 {offsets = [0, 64], sizes = [16, 32], strides = [1, 1]} : vector<16x96xf32> to vector<16x32xf32>
    %374 = vector.extract_strided_slice %371 {offsets = [0, 0], sizes = [16, 8], strides = [1, 1]} : vector<16x32xf32> to vector<16x8xf32>
    %375 = vector.shape_cast %374 : vector<16x8xf32> to vector<2x8x8xf32>
    %376 = vector.extract_strided_slice %372 {offsets = [0, 0], sizes = [16, 8], strides = [1, 1]} : vector<16x32xf32> to vector<16x8xf32>
    %377 = vector.shape_cast %376 : vector<16x8xf32> to vector<2x8x8xf32>
    %378 = vector.extract_strided_slice %373 {offsets = [0, 0], sizes = [16, 8], strides = [1, 1]} : vector<16x32xf32> to vector<16x8xf32>
    %379 = vector.shape_cast %378 : vector<16x8xf32> to vector<2x8x8xf32>
    %cst_170 = arith.constant dense<0.000000e+00> : vector<2x8x8xf32>
    %380 = tpu.matmul %375, %377, %cst_170 {dimension_numbers = #tpu.dot_dimension_numbers<[2], [2], [1], [1], [0, 0, 0, 1, 1, 1], [0], [0]>} : vector<2x8x8xf32>, vector<2x8x8xf32>, vector<2x8x8xf32> -> vector<2x8x8xf32>
    %381 = arith.mulf %380, %24 : vector<2x8x8xf32>
    %382 = arith.addf %381, %25 : vector<2x8x8xf32>
    %cst_171 = arith.constant dense<0xFF800000> : vector<2x8xf32>
    %383 = vector.multi_reduction <maximumf>, %382, %cst_171 [2] : vector<2x8x8xf32> to vector<2x8xf32>
    %384 = vector.shape_cast %383 : vector<2x8xf32> to vector<2x8x1xf32>
    %385 = vector.broadcast %384 : vector<2x8x1xf32> to vector<2x8x8xf32>
    %386 = arith.subf %382, %385 : vector<2x8x8xf32>
    %387 = math.exp %386 : vector<2x8x8xf32>
    %cst_172 = arith.constant dense<0.000000e+00> : vector<2x8xf32>
    %388 = vector.multi_reduction <add>, %387, %cst_172 [2] : vector<2x8x8xf32> to vector<2x8xf32>
    %389 = vector.shape_cast %388 : vector<2x8xf32> to vector<2x8x1xf32>
    %390 = vector.broadcast %389 : vector<2x8x1xf32> to vector<2x8x8xf32>
    %391 = arith.divf %387, %390 : vector<2x8x8xf32>
    %cst_173 = arith.constant dense<0.000000e+00> : vector<2x8x8xf32>
    %392 = tpu.matmul %391, %379, %cst_173 {dimension_numbers = #tpu.dot_dimension_numbers<[2], [1], [1], [2], [0, 0, 0, 1, 1, 2], [0], [0]>} : vector<2x8x8xf32>, vector<2x8x8xf32>, vector<2x8x8xf32> -> vector<2x8x8xf32>
    %393 = vector.shape_cast %392 : vector<2x8x8xf32> to vector<16x8xf32>
    %394 = vector.extract_strided_slice %371 {offsets = [0, 8], sizes = [16, 8], strides = [1, 1]} : vector<16x32xf32> to vector<16x8xf32>
    %395 = vector.shape_cast %394 : vector<16x8xf32> to vector<2x8x8xf32>
    %396 = vector.extract_strided_slice %372 {offsets = [0, 8], sizes = [16, 8], strides = [1, 1]} : vector<16x32xf32> to vector<16x8xf32>
    %397 = vector.shape_cast %396 : vector<16x8xf32> to vector<2x8x8xf32>
    %398 = vector.extract_strided_slice %373 {offsets = [0, 8], sizes = [16, 8], strides = [1, 1]} : vector<16x32xf32> to vector<16x8xf32>
    %399 = vector.shape_cast %398 : vector<16x8xf32> to vector<2x8x8xf32>
    %cst_174 = arith.constant dense<0.000000e+00> : vector<2x8x8xf32>
    %400 = tpu.matmul %395, %397, %cst_174 {dimension_numbers = #tpu.dot_dimension_numbers<[2], [2], [1], [1], [0, 0, 0, 1, 1, 1], [0], [0]>} : vector<2x8x8xf32>, vector<2x8x8xf32>, vector<2x8x8xf32> -> vector<2x8x8xf32>
    %401 = arith.mulf %400, %24 : vector<2x8x8xf32>
    %402 = arith.addf %401, %25 : vector<2x8x8xf32>
    %cst_175 = arith.constant dense<0xFF800000> : vector<2x8xf32>
    %403 = vector.multi_reduction <maximumf>, %402, %cst_175 [2] : vector<2x8x8xf32> to vector<2x8xf32>
    %404 = vector.shape_cast %403 : vector<2x8xf32> to vector<2x8x1xf32>
    %405 = vector.broadcast %404 : vector<2x8x1xf32> to vector<2x8x8xf32>
    %406 = arith.subf %402, %405 : vector<2x8x8xf32>
    %407 = math.exp %406 : vector<2x8x8xf32>
    %cst_176 = arith.constant dense<0.000000e+00> : vector<2x8xf32>
    %408 = vector.multi_reduction <add>, %407, %cst_176 [2] : vector<2x8x8xf32> to vector<2x8xf32>
    %409 = vector.shape_cast %408 : vector<2x8xf32> to vector<2x8x1xf32>
    %410 = vector.broadcast %409 : vector<2x8x1xf32> to vector<2x8x8xf32>
    %411 = arith.divf %407, %410 : vector<2x8x8xf32>
    %cst_177 = arith.constant dense<0.000000e+00> : vector<2x8x8xf32>
    %412 = tpu.matmul %411, %399, %cst_177 {dimension_numbers = #tpu.dot_dimension_numbers<[2], [1], [1], [2], [0, 0, 0, 1, 1, 2], [0], [0]>} : vector<2x8x8xf32>, vector<2x8x8xf32>, vector<2x8x8xf32> -> vector<2x8x8xf32>
    %413 = vector.shape_cast %412 : vector<2x8x8xf32> to vector<16x8xf32>
    %414 = vector.extract_strided_slice %371 {offsets = [0, 16], sizes = [16, 8], strides = [1, 1]} : vector<16x32xf32> to vector<16x8xf32>
    %415 = vector.shape_cast %414 : vector<16x8xf32> to vector<2x8x8xf32>
    %416 = vector.extract_strided_slice %372 {offsets = [0, 16], sizes = [16, 8], strides = [1, 1]} : vector<16x32xf32> to vector<16x8xf32>
    %417 = vector.shape_cast %416 : vector<16x8xf32> to vector<2x8x8xf32>
    %418 = vector.extract_strided_slice %373 {offsets = [0, 16], sizes = [16, 8], strides = [1, 1]} : vector<16x32xf32> to vector<16x8xf32>
    %419 = vector.shape_cast %418 : vector<16x8xf32> to vector<2x8x8xf32>
    %cst_178 = arith.constant dense<0.000000e+00> : vector<2x8x8xf32>
    %420 = tpu.matmul %415, %417, %cst_178 {dimension_numbers = #tpu.dot_dimension_numbers<[2], [2], [1], [1], [0, 0, 0, 1, 1, 1], [0], [0]>} : vector<2x8x8xf32>, vector<2x8x8xf32>, vector<2x8x8xf32> -> vector<2x8x8xf32>
    %421 = arith.mulf %420, %24 : vector<2x8x8xf32>
    %422 = arith.addf %421, %25 : vector<2x8x8xf32>
    %cst_179 = arith.constant dense<0xFF800000> : vector<2x8xf32>
    %423 = vector.multi_reduction <maximumf>, %422, %cst_179 [2] : vector<2x8x8xf32> to vector<2x8xf32>
    %424 = vector.shape_cast %423 : vector<2x8xf32> to vector<2x8x1xf32>
    %425 = vector.broadcast %424 : vector<2x8x1xf32> to vector<2x8x8xf32>
    %426 = arith.subf %422, %425 : vector<2x8x8xf32>
    %427 = math.exp %426 : vector<2x8x8xf32>
    %cst_180 = arith.constant dense<0.000000e+00> : vector<2x8xf32>
    %428 = vector.multi_reduction <add>, %427, %cst_180 [2] : vector<2x8x8xf32> to vector<2x8xf32>
    %429 = vector.shape_cast %428 : vector<2x8xf32> to vector<2x8x1xf32>
    %430 = vector.broadcast %429 : vector<2x8x1xf32> to vector<2x8x8xf32>
    %431 = arith.divf %427, %430 : vector<2x8x8xf32>
    %cst_181 = arith.constant dense<0.000000e+00> : vector<2x8x8xf32>
    %432 = tpu.matmul %431, %419, %cst_181 {dimension_numbers = #tpu.dot_dimension_numbers<[2], [1], [1], [2], [0, 0, 0, 1, 1, 2], [0], [0]>} : vector<2x8x8xf32>, vector<2x8x8xf32>, vector<2x8x8xf32> -> vector<2x8x8xf32>
    %433 = vector.shape_cast %432 : vector<2x8x8xf32> to vector<16x8xf32>
    %434 = vector.extract_strided_slice %371 {offsets = [0, 24], sizes = [16, 8], strides = [1, 1]} : vector<16x32xf32> to vector<16x8xf32>
    %435 = vector.shape_cast %434 : vector<16x8xf32> to vector<2x8x8xf32>
    %436 = vector.extract_strided_slice %372 {offsets = [0, 24], sizes = [16, 8], strides = [1, 1]} : vector<16x32xf32> to vector<16x8xf32>
    %437 = vector.shape_cast %436 : vector<16x8xf32> to vector<2x8x8xf32>
    %438 = vector.extract_strided_slice %373 {offsets = [0, 24], sizes = [16, 8], strides = [1, 1]} : vector<16x32xf32> to vector<16x8xf32>
    %439 = vector.shape_cast %438 : vector<16x8xf32> to vector<2x8x8xf32>
    %cst_182 = arith.constant dense<0.000000e+00> : vector<2x8x8xf32>
    %440 = tpu.matmul %435, %437, %cst_182 {dimension_numbers = #tpu.dot_dimension_numbers<[2], [2], [1], [1], [0, 0, 0, 1, 1, 1], [0], [0]>} : vector<2x8x8xf32>, vector<2x8x8xf32>, vector<2x8x8xf32> -> vector<2x8x8xf32>
    %441 = arith.mulf %440, %24 : vector<2x8x8xf32>
    %442 = arith.addf %441, %25 : vector<2x8x8xf32>
    %cst_183 = arith.constant dense<0xFF800000> : vector<2x8xf32>
    %443 = vector.multi_reduction <maximumf>, %442, %cst_183 [2] : vector<2x8x8xf32> to vector<2x8xf32>
    %444 = vector.shape_cast %443 : vector<2x8xf32> to vector<2x8x1xf32>
    %445 = vector.broadcast %444 : vector<2x8x1xf32> to vector<2x8x8xf32>
    %446 = arith.subf %442, %445 : vector<2x8x8xf32>
    %447 = math.exp %446 : vector<2x8x8xf32>
    %cst_184 = arith.constant dense<0.000000e+00> : vector<2x8xf32>
    %448 = vector.multi_reduction <add>, %447, %cst_184 [2] : vector<2x8x8xf32> to vector<2x8xf32>
    %449 = vector.shape_cast %448 : vector<2x8xf32> to vector<2x8x1xf32>
    %450 = vector.broadcast %449 : vector<2x8x1xf32> to vector<2x8x8xf32>
    %451 = arith.divf %447, %450 : vector<2x8x8xf32>
    %cst_185 = arith.constant dense<0.000000e+00> : vector<2x8x8xf32>
    %452 = tpu.matmul %451, %439, %cst_185 {dimension_numbers = #tpu.dot_dimension_numbers<[2], [1], [1], [2], [0, 0, 0, 1, 1, 2], [0], [0]>} : vector<2x8x8xf32>, vector<2x8x8xf32>, vector<2x8x8xf32> -> vector<2x8x8xf32>
    %453 = vector.shape_cast %452 : vector<2x8x8xf32> to vector<16x8xf32>
    %454 = tpu.concatenate %393, %413, %433, %453 in 1 : vector<16x8xf32>, vector<16x8xf32>, vector<16x8xf32>, vector<16x8xf32> -> vector<16x32xf32>
    %c0_186 = arith.constant 0 : index
    %c0_187 = arith.constant 0 : index
    %c0_188 = arith.constant 0 : index
    %455 = vector.load %arg25[%c0_186, %c0_187, %c0_188] : memref<2x32x32xf32, #tpu.memory_space<vmem>>, vector<1x32x32xf32>
    %456 = vector.shape_cast %455 : vector<1x32x32xf32> to vector<32x32xf32>
    %cst_189 = arith.constant dense<0.000000e+00> : vector<16x32xf32>
    %457 = tpu.matmul %454, %456, %cst_189 {dimension_numbers = #tpu.dot_dimension_numbers<[1], [0], [0], [1], [0, 0, 1, 1], [], []>} : vector<16x32xf32>, vector<32x32xf32>, vector<16x32xf32> -> vector<16x32xf32>
    %c0_190 = arith.constant 0 : index
    %c0_191 = arith.constant 0 : index
    %c0_192 = arith.constant 0 : index
    %458 = vector.load %arg26[%c0_190, %c0_191, %c0_192] : memref<2x1x32xf32, #tpu.memory_space<vmem>>, vector<1x1x32xf32>
    %459 = vector.shape_cast %458 : vector<1x1x32xf32> to vector<1x32xf32>
    %460 = vector.broadcast %459 : vector<1x32xf32> to vector<16x32xf32>
    %461 = arith.addf %457, %460 : vector<16x32xf32>
    %c0_193 = arith.constant 0 : index
    %c0_194 = arith.constant 0 : index
    %c0_195 = arith.constant 0 : index
    %462 = vector.load %arg37[%c0_193, %c0_194, %c0_195] : memref<2x1x32xf32, #tpu.memory_space<vmem>>, vector<1x1x32xf32>
    %463 = vector.shape_cast %462 : vector<1x1x32xf32> to vector<1x32xf32>
    %c0_196 = arith.constant 0 : index
    %c0_197 = arith.constant 0 : index
    %c0_198 = arith.constant 0 : index
    %464 = vector.load %arg38[%c0_196, %c0_197, %c0_198] : memref<2x1x32xf32, #tpu.memory_space<vmem>>, vector<1x1x32xf32>
    %465 = vector.shape_cast %464 : vector<1x1x32xf32> to vector<1x32xf32>
    %466 = arith.addf %21, %461 : vector<16x32xf32>
    %cst_199 = arith.constant dense<0.000000e+00> : vector<16xf32>
    %467 = vector.multi_reduction <add>, %466, %cst_199 [1] : vector<16x32xf32> to vector<16xf32>
    %468 = vector.shape_cast %467 : vector<16xf32> to vector<16x1xf32>
    %cst_200 = arith.constant 3.200000e+01 : f32
    %469 = vector.broadcast %cst_200 : f32 to vector<16x1xf32>
    %470 = arith.divf %468, %469 : vector<16x1xf32>
    %471 = vector.broadcast %470 : vector<16x1xf32> to vector<16x32xf32>
    %472 = arith.subf %466, %471 : vector<16x32xf32>
    %473 = arith.mulf %472, %472 : vector<16x32xf32>
    %cst_201 = arith.constant dense<0.000000e+00> : vector<16xf32>
    %474 = vector.multi_reduction <add>, %473, %cst_201 [1] : vector<16x32xf32> to vector<16xf32>
    %475 = vector.shape_cast %474 : vector<16xf32> to vector<16x1xf32>
    %cst_202 = arith.constant 3.200000e+01 : f32
    %476 = vector.broadcast %cst_202 : f32 to vector<16x1xf32>
    %477 = arith.divf %475, %476 : vector<16x1xf32>
    %478 = vector.broadcast %470 : vector<16x1xf32> to vector<16x32xf32>
    %479 = arith.subf %466, %478 : vector<16x32xf32>
    %cst_203 = arith.constant 9.99999974E-6 : f32
    %480 = vector.broadcast %cst_203 : f32 to vector<16x1xf32>
    %481 = arith.addf %477, %480 : vector<16x1xf32>
    %482 = math.rsqrt %481 : vector<16x1xf32>
    %483 = vector.broadcast %482 : vector<16x1xf32> to vector<16x32xf32>
    %484 = arith.mulf %479, %483 : vector<16x32xf32>
    %485 = vector.broadcast %463 : vector<1x32xf32> to vector<16x32xf32>
    %486 = arith.mulf %484, %485 : vector<16x32xf32>
    %487 = vector.broadcast %465 : vector<1x32xf32> to vector<16x32xf32>
    %488 = arith.addf %486, %487 : vector<16x32xf32>
    %c0_204 = arith.constant 0 : index
    %c0_205 = arith.constant 0 : index
    %c0_206 = arith.constant 0 : index
    %489 = vector.load %arg27[%c0_204, %c0_205, %c0_206] : memref<2x32x32xf32, #tpu.memory_space<vmem>>, vector<1x32x32xf32>
    %490 = vector.shape_cast %489 : vector<1x32x32xf32> to vector<32x32xf32>
    %cst_207 = arith.constant dense<0.000000e+00> : vector<16x32xf32>
    %491 = tpu.matmul %488, %490, %cst_207 {dimension_numbers = #tpu.dot_dimension_numbers<[1], [0], [0], [1], [0, 0, 1, 1], [], []>} : vector<16x32xf32>, vector<32x32xf32>, vector<16x32xf32> -> vector<16x32xf32>
    %c0_208 = arith.constant 0 : index
    %c0_209 = arith.constant 0 : index
    %c0_210 = arith.constant 0 : index
    %492 = vector.load %arg28[%c0_208, %c0_209, %c0_210] : memref<2x1x32xf32, #tpu.memory_space<vmem>>, vector<1x1x32xf32>
    %493 = vector.shape_cast %492 : vector<1x1x32xf32> to vector<1x32xf32>
    %494 = vector.broadcast %493 : vector<1x32xf32> to vector<16x32xf32>
    %495 = arith.addf %491, %494 : vector<16x32xf32>
    %c0_211 = arith.constant 0 : index
    %c0_212 = arith.constant 0 : index
    %c0_213 = arith.constant 0 : index
    %496 = vector.load %arg29[%c0_211, %c0_212, %c0_213] : memref<2x32x64xf32, #tpu.memory_space<vmem>>, vector<1x32x64xf32>
    %497 = vector.shape_cast %496 : vector<1x32x64xf32> to vector<32x64xf32>
    %cst_214 = arith.constant dense<0.000000e+00> : vector<16x64xf32>
    %498 = tpu.matmul %363, %497, %cst_214 {dimension_numbers = #tpu.dot_dimension_numbers<[1], [0], [0], [1], [0, 0, 1, 1], [], []>} : vector<16x32xf32>, vector<32x64xf32>, vector<16x64xf32> -> vector<16x64xf32>
    %c0_215 = arith.constant 0 : index
    %c0_216 = arith.constant 0 : index
    %c0_217 = arith.constant 0 : index
    %499 = vector.load %arg30[%c0_215, %c0_216, %c0_217] : memref<2x1x64xf32, #tpu.memory_space<vmem>>, vector<1x1x64xf32>
    %500 = vector.shape_cast %499 : vector<1x1x64xf32> to vector<1x64xf32>
    %501 = vector.broadcast %500 : vector<1x64xf32> to vector<16x64xf32>
    %502 = arith.addf %498, %501 : vector<16x64xf32>
    %503 = vector.extract_strided_slice %502 {offsets = [0, 0], sizes = [16, 32], strides = [1, 1]} : vector<16x64xf32> to vector<16x32xf32>
    %504 = vector.extract_strided_slice %502 {offsets = [0, 32], sizes = [16, 32], strides = [1, 1]} : vector<16x64xf32> to vector<16x32xf32>
    %505 = vector.extract_strided_slice %495 {offsets = [0, 0], sizes = [16, 8], strides = [1, 1]} : vector<16x32xf32> to vector<16x8xf32>
    %506 = vector.shape_cast %505 : vector<16x8xf32> to vector<2x8x8xf32>
    %507 = vector.extract_strided_slice %503 {offsets = [0, 0], sizes = [16, 8], strides = [1, 1]} : vector<16x32xf32> to vector<16x8xf32>
    %508 = vector.shape_cast %507 : vector<16x8xf32> to vector<2x8x8xf32>
    %509 = vector.extract_strided_slice %504 {offsets = [0, 0], sizes = [16, 8], strides = [1, 1]} : vector<16x32xf32> to vector<16x8xf32>
    %510 = vector.shape_cast %509 : vector<16x8xf32> to vector<2x8x8xf32>
    %cst_218 = arith.constant dense<0.000000e+00> : vector<2x8x8xf32>
    %511 = tpu.matmul %506, %508, %cst_218 {dimension_numbers = #tpu.dot_dimension_numbers<[2], [2], [1], [1], [0, 0, 0, 1, 1, 1], [0], [0]>} : vector<2x8x8xf32>, vector<2x8x8xf32>, vector<2x8x8xf32> -> vector<2x8x8xf32>
    %512 = arith.mulf %511, %26 : vector<2x8x8xf32>
    %513 = arith.addf %512, %27 : vector<2x8x8xf32>
    %cst_219 = arith.constant dense<0xFF800000> : vector<2x8xf32>
    %514 = vector.multi_reduction <maximumf>, %513, %cst_219 [2] : vector<2x8x8xf32> to vector<2x8xf32>
    %515 = vector.shape_cast %514 : vector<2x8xf32> to vector<2x8x1xf32>
    %516 = vector.broadcast %515 : vector<2x8x1xf32> to vector<2x8x8xf32>
    %517 = arith.subf %513, %516 : vector<2x8x8xf32>
    %518 = math.exp %517 : vector<2x8x8xf32>
    %cst_220 = arith.constant dense<0.000000e+00> : vector<2x8xf32>
    %519 = vector.multi_reduction <add>, %518, %cst_220 [2] : vector<2x8x8xf32> to vector<2x8xf32>
    %520 = vector.shape_cast %519 : vector<2x8xf32> to vector<2x8x1xf32>
    %521 = vector.broadcast %520 : vector<2x8x1xf32> to vector<2x8x8xf32>
    %522 = arith.divf %518, %521 : vector<2x8x8xf32>
    %cst_221 = arith.constant dense<0.000000e+00> : vector<2x8x8xf32>
    %523 = tpu.matmul %522, %510, %cst_221 {dimension_numbers = #tpu.dot_dimension_numbers<[2], [1], [1], [2], [0, 0, 0, 1, 1, 2], [0], [0]>} : vector<2x8x8xf32>, vector<2x8x8xf32>, vector<2x8x8xf32> -> vector<2x8x8xf32>
    %524 = vector.shape_cast %523 : vector<2x8x8xf32> to vector<16x8xf32>
    %525 = vector.extract_strided_slice %495 {offsets = [0, 8], sizes = [16, 8], strides = [1, 1]} : vector<16x32xf32> to vector<16x8xf32>
    %526 = vector.shape_cast %525 : vector<16x8xf32> to vector<2x8x8xf32>
    %527 = vector.extract_strided_slice %503 {offsets = [0, 8], sizes = [16, 8], strides = [1, 1]} : vector<16x32xf32> to vector<16x8xf32>
    %528 = vector.shape_cast %527 : vector<16x8xf32> to vector<2x8x8xf32>
    %529 = vector.extract_strided_slice %504 {offsets = [0, 8], sizes = [16, 8], strides = [1, 1]} : vector<16x32xf32> to vector<16x8xf32>
    %530 = vector.shape_cast %529 : vector<16x8xf32> to vector<2x8x8xf32>
    %cst_222 = arith.constant dense<0.000000e+00> : vector<2x8x8xf32>
    %531 = tpu.matmul %526, %528, %cst_222 {dimension_numbers = #tpu.dot_dimension_numbers<[2], [2], [1], [1], [0, 0, 0, 1, 1, 1], [0], [0]>} : vector<2x8x8xf32>, vector<2x8x8xf32>, vector<2x8x8xf32> -> vector<2x8x8xf32>
    %532 = arith.mulf %531, %26 : vector<2x8x8xf32>
    %533 = arith.addf %532, %27 : vector<2x8x8xf32>
    %cst_223 = arith.constant dense<0xFF800000> : vector<2x8xf32>
    %534 = vector.multi_reduction <maximumf>, %533, %cst_223 [2] : vector<2x8x8xf32> to vector<2x8xf32>
    %535 = vector.shape_cast %534 : vector<2x8xf32> to vector<2x8x1xf32>
    %536 = vector.broadcast %535 : vector<2x8x1xf32> to vector<2x8x8xf32>
    %537 = arith.subf %533, %536 : vector<2x8x8xf32>
    %538 = math.exp %537 : vector<2x8x8xf32>
    %cst_224 = arith.constant dense<0.000000e+00> : vector<2x8xf32>
    %539 = vector.multi_reduction <add>, %538, %cst_224 [2] : vector<2x8x8xf32> to vector<2x8xf32>
    %540 = vector.shape_cast %539 : vector<2x8xf32> to vector<2x8x1xf32>
    %541 = vector.broadcast %540 : vector<2x8x1xf32> to vector<2x8x8xf32>
    %542 = arith.divf %538, %541 : vector<2x8x8xf32>
    %cst_225 = arith.constant dense<0.000000e+00> : vector<2x8x8xf32>
    %543 = tpu.matmul %542, %530, %cst_225 {dimension_numbers = #tpu.dot_dimension_numbers<[2], [1], [1], [2], [0, 0, 0, 1, 1, 2], [0], [0]>} : vector<2x8x8xf32>, vector<2x8x8xf32>, vector<2x8x8xf32> -> vector<2x8x8xf32>
    %544 = vector.shape_cast %543 : vector<2x8x8xf32> to vector<16x8xf32>
    %545 = vector.extract_strided_slice %495 {offsets = [0, 16], sizes = [16, 8], strides = [1, 1]} : vector<16x32xf32> to vector<16x8xf32>
    %546 = vector.shape_cast %545 : vector<16x8xf32> to vector<2x8x8xf32>
    %547 = vector.extract_strided_slice %503 {offsets = [0, 16], sizes = [16, 8], strides = [1, 1]} : vector<16x32xf32> to vector<16x8xf32>
    %548 = vector.shape_cast %547 : vector<16x8xf32> to vector<2x8x8xf32>
    %549 = vector.extract_strided_slice %504 {offsets = [0, 16], sizes = [16, 8], strides = [1, 1]} : vector<16x32xf32> to vector<16x8xf32>
    %550 = vector.shape_cast %549 : vector<16x8xf32> to vector<2x8x8xf32>
    %cst_226 = arith.constant dense<0.000000e+00> : vector<2x8x8xf32>
    %551 = tpu.matmul %546, %548, %cst_226 {dimension_numbers = #tpu.dot_dimension_numbers<[2], [2], [1], [1], [0, 0, 0, 1, 1, 1], [0], [0]>} : vector<2x8x8xf32>, vector<2x8x8xf32>, vector<2x8x8xf32> -> vector<2x8x8xf32>
    %552 = arith.mulf %551, %26 : vector<2x8x8xf32>
    %553 = arith.addf %552, %27 : vector<2x8x8xf32>
    %cst_227 = arith.constant dense<0xFF800000> : vector<2x8xf32>
    %554 = vector.multi_reduction <maximumf>, %553, %cst_227 [2] : vector<2x8x8xf32> to vector<2x8xf32>
    %555 = vector.shape_cast %554 : vector<2x8xf32> to vector<2x8x1xf32>
    %556 = vector.broadcast %555 : vector<2x8x1xf32> to vector<2x8x8xf32>
    %557 = arith.subf %553, %556 : vector<2x8x8xf32>
    %558 = math.exp %557 : vector<2x8x8xf32>
    %cst_228 = arith.constant dense<0.000000e+00> : vector<2x8xf32>
    %559 = vector.multi_reduction <add>, %558, %cst_228 [2] : vector<2x8x8xf32> to vector<2x8xf32>
    %560 = vector.shape_cast %559 : vector<2x8xf32> to vector<2x8x1xf32>
    %561 = vector.broadcast %560 : vector<2x8x1xf32> to vector<2x8x8xf32>
    %562 = arith.divf %558, %561 : vector<2x8x8xf32>
    %cst_229 = arith.constant dense<0.000000e+00> : vector<2x8x8xf32>
    %563 = tpu.matmul %562, %550, %cst_229 {dimension_numbers = #tpu.dot_dimension_numbers<[2], [1], [1], [2], [0, 0, 0, 1, 1, 2], [0], [0]>} : vector<2x8x8xf32>, vector<2x8x8xf32>, vector<2x8x8xf32> -> vector<2x8x8xf32>
    %564 = vector.shape_cast %563 : vector<2x8x8xf32> to vector<16x8xf32>
    %565 = vector.extract_strided_slice %495 {offsets = [0, 24], sizes = [16, 8], strides = [1, 1]} : vector<16x32xf32> to vector<16x8xf32>
    %566 = vector.shape_cast %565 : vector<16x8xf32> to vector<2x8x8xf32>
    %567 = vector.extract_strided_slice %503 {offsets = [0, 24], sizes = [16, 8], strides = [1, 1]} : vector<16x32xf32> to vector<16x8xf32>
    %568 = vector.shape_cast %567 : vector<16x8xf32> to vector<2x8x8xf32>
    %569 = vector.extract_strided_slice %504 {offsets = [0, 24], sizes = [16, 8], strides = [1, 1]} : vector<16x32xf32> to vector<16x8xf32>
    %570 = vector.shape_cast %569 : vector<16x8xf32> to vector<2x8x8xf32>
    %cst_230 = arith.constant dense<0.000000e+00> : vector<2x8x8xf32>
    %571 = tpu.matmul %566, %568, %cst_230 {dimension_numbers = #tpu.dot_dimension_numbers<[2], [2], [1], [1], [0, 0, 0, 1, 1, 1], [0], [0]>} : vector<2x8x8xf32>, vector<2x8x8xf32>, vector<2x8x8xf32> -> vector<2x8x8xf32>
    %572 = arith.mulf %571, %26 : vector<2x8x8xf32>
    %573 = arith.addf %572, %27 : vector<2x8x8xf32>
    %cst_231 = arith.constant dense<0xFF800000> : vector<2x8xf32>
    %574 = vector.multi_reduction <maximumf>, %573, %cst_231 [2] : vector<2x8x8xf32> to vector<2x8xf32>
    %575 = vector.shape_cast %574 : vector<2x8xf32> to vector<2x8x1xf32>
    %576 = vector.broadcast %575 : vector<2x8x1xf32> to vector<2x8x8xf32>
    %577 = arith.subf %573, %576 : vector<2x8x8xf32>
    %578 = math.exp %577 : vector<2x8x8xf32>
    %cst_232 = arith.constant dense<0.000000e+00> : vector<2x8xf32>
    %579 = vector.multi_reduction <add>, %578, %cst_232 [2] : vector<2x8x8xf32> to vector<2x8xf32>
    %580 = vector.shape_cast %579 : vector<2x8xf32> to vector<2x8x1xf32>
    %581 = vector.broadcast %580 : vector<2x8x1xf32> to vector<2x8x8xf32>
    %582 = arith.divf %578, %581 : vector<2x8x8xf32>
    %cst_233 = arith.constant dense<0.000000e+00> : vector<2x8x8xf32>
    %583 = tpu.matmul %582, %570, %cst_233 {dimension_numbers = #tpu.dot_dimension_numbers<[2], [1], [1], [2], [0, 0, 0, 1, 1, 2], [0], [0]>} : vector<2x8x8xf32>, vector<2x8x8xf32>, vector<2x8x8xf32> -> vector<2x8x8xf32>
    %584 = vector.shape_cast %583 : vector<2x8x8xf32> to vector<16x8xf32>
    %585 = tpu.concatenate %524, %544, %564, %584 in 1 : vector<16x8xf32>, vector<16x8xf32>, vector<16x8xf32>, vector<16x8xf32> -> vector<16x32xf32>
    %c0_234 = arith.constant 0 : index
    %c0_235 = arith.constant 0 : index
    %c0_236 = arith.constant 0 : index
    %586 = vector.load %arg31[%c0_234, %c0_235, %c0_236] : memref<2x32x32xf32, #tpu.memory_space<vmem>>, vector<1x32x32xf32>
    %587 = vector.shape_cast %586 : vector<1x32x32xf32> to vector<32x32xf32>
    %cst_237 = arith.constant dense<0.000000e+00> : vector<16x32xf32>
    %588 = tpu.matmul %585, %587, %cst_237 {dimension_numbers = #tpu.dot_dimension_numbers<[1], [0], [0], [1], [0, 0, 1, 1], [], []>} : vector<16x32xf32>, vector<32x32xf32>, vector<16x32xf32> -> vector<16x32xf32>
    %c0_238 = arith.constant 0 : index
    %c0_239 = arith.constant 0 : index
    %c0_240 = arith.constant 0 : index
    %589 = vector.load %arg32[%c0_238, %c0_239, %c0_240] : memref<2x1x32xf32, #tpu.memory_space<vmem>>, vector<1x1x32xf32>
    %590 = vector.shape_cast %589 : vector<1x1x32xf32> to vector<1x32xf32>
    %591 = vector.broadcast %590 : vector<1x32xf32> to vector<16x32xf32>
    %592 = arith.addf %588, %591 : vector<16x32xf32>
    %c0_241 = arith.constant 0 : index
    %c0_242 = arith.constant 0 : index
    %c0_243 = arith.constant 0 : index
    %593 = vector.load %arg39[%c0_241, %c0_242, %c0_243] : memref<2x1x32xf32, #tpu.memory_space<vmem>>, vector<1x1x32xf32>
    %594 = vector.shape_cast %593 : vector<1x1x32xf32> to vector<1x32xf32>
    %c0_244 = arith.constant 0 : index
    %c0_245 = arith.constant 0 : index
    %c0_246 = arith.constant 0 : index
    %595 = vector.load %arg40[%c0_244, %c0_245, %c0_246] : memref<2x1x32xf32, #tpu.memory_space<vmem>>, vector<1x1x32xf32>
    %596 = vector.shape_cast %595 : vector<1x1x32xf32> to vector<1x32xf32>
    %597 = arith.addf %488, %592 : vector<16x32xf32>
    %cst_247 = arith.constant dense<0.000000e+00> : vector<16xf32>
    %598 = vector.multi_reduction <add>, %597, %cst_247 [1] : vector<16x32xf32> to vector<16xf32>
    %599 = vector.shape_cast %598 : vector<16xf32> to vector<16x1xf32>
    %cst_248 = arith.constant 3.200000e+01 : f32
    %600 = vector.broadcast %cst_248 : f32 to vector<16x1xf32>
    %601 = arith.divf %599, %600 : vector<16x1xf32>
    %602 = vector.broadcast %601 : vector<16x1xf32> to vector<16x32xf32>
    %603 = arith.subf %597, %602 : vector<16x32xf32>
    %604 = arith.mulf %603, %603 : vector<16x32xf32>
    %cst_249 = arith.constant dense<0.000000e+00> : vector<16xf32>
    %605 = vector.multi_reduction <add>, %604, %cst_249 [1] : vector<16x32xf32> to vector<16xf32>
    %606 = vector.shape_cast %605 : vector<16xf32> to vector<16x1xf32>
    %cst_250 = arith.constant 3.200000e+01 : f32
    %607 = vector.broadcast %cst_250 : f32 to vector<16x1xf32>
    %608 = arith.divf %606, %607 : vector<16x1xf32>
    %609 = vector.broadcast %601 : vector<16x1xf32> to vector<16x32xf32>
    %610 = arith.subf %597, %609 : vector<16x32xf32>
    %cst_251 = arith.constant 9.99999974E-6 : f32
    %611 = vector.broadcast %cst_251 : f32 to vector<16x1xf32>
    %612 = arith.addf %608, %611 : vector<16x1xf32>
    %613 = math.rsqrt %612 : vector<16x1xf32>
    %614 = vector.broadcast %613 : vector<16x1xf32> to vector<16x32xf32>
    %615 = arith.mulf %610, %614 : vector<16x32xf32>
    %616 = vector.broadcast %594 : vector<1x32xf32> to vector<16x32xf32>
    %617 = arith.mulf %615, %616 : vector<16x32xf32>
    %618 = vector.broadcast %596 : vector<1x32xf32> to vector<16x32xf32>
    %619 = arith.addf %617, %618 : vector<16x32xf32>
    %c0_252 = arith.constant 0 : index
    %c0_253 = arith.constant 0 : index
    %c0_254 = arith.constant 0 : index
    %620 = vector.load %arg33[%c0_252, %c0_253, %c0_254] : memref<2x32x64xf32, #tpu.memory_space<vmem>>, vector<1x32x64xf32>
    %621 = vector.shape_cast %620 : vector<1x32x64xf32> to vector<32x64xf32>
    %c0_255 = arith.constant 0 : index
    %c0_256 = arith.constant 0 : index
    %c0_257 = arith.constant 0 : index
    %622 = vector.load %arg34[%c0_255, %c0_256, %c0_257] : memref<2x1x64xf32, #tpu.memory_space<vmem>>, vector<1x1x64xf32>
    %623 = vector.shape_cast %622 : vector<1x1x64xf32> to vector<1x64xf32>
    %c0_258 = arith.constant 0 : index
    %c0_259 = arith.constant 0 : index
    %c0_260 = arith.constant 0 : index
    %624 = vector.load %arg35[%c0_258, %c0_259, %c0_260] : memref<2x64x32xf32, #tpu.memory_space<vmem>>, vector<1x64x32xf32>
    %625 = vector.shape_cast %624 : vector<1x64x32xf32> to vector<64x32xf32>
    %c0_261 = arith.constant 0 : index
    %c0_262 = arith.constant 0 : index
    %c0_263 = arith.constant 0 : index
    %626 = vector.load %arg36[%c0_261, %c0_262, %c0_263] : memref<2x1x32xf32, #tpu.memory_space<vmem>>, vector<1x1x32xf32>
    %627 = vector.shape_cast %626 : vector<1x1x32xf32> to vector<1x32xf32>
    %cst_264 = arith.constant dense<0.000000e+00> : vector<16x64xf32>
    %628 = tpu.matmul %619, %621, %cst_264 {dimension_numbers = #tpu.dot_dimension_numbers<[1], [0], [0], [1], [0, 0, 1, 1], [], []>} : vector<16x32xf32>, vector<32x64xf32>, vector<16x64xf32> -> vector<16x64xf32>
    %629 = vector.broadcast %623 : vector<1x64xf32> to vector<16x64xf32>
    %630 = arith.addf %628, %629 : vector<16x64xf32>
    %cst_265 = arith.constant 0.000000e+00 : f32
    %631 = vector.broadcast %cst_265 : f32 to vector<16x64xf32>
    %632 = arith.maximumf %630, %631 : vector<16x64xf32>
    %cst_266 = arith.constant dense<0.000000e+00> : vector<16x32xf32>
    %633 = tpu.matmul %632, %625, %cst_266 {dimension_numbers = #tpu.dot_dimension_numbers<[1], [0], [0], [1], [0, 0, 1, 1], [], []>} : vector<16x64xf32>, vector<64x32xf32>, vector<16x32xf32> -> vector<16x32xf32>
    %634 = vector.broadcast %627 : vector<1x32xf32> to vector<16x32xf32>
    %635 = arith.addf %633, %634 : vector<16x32xf32>
    %c0_267 = arith.constant 0 : index
    %c0_268 = arith.constant 0 : index
    %c0_269 = arith.constant 0 : index
    %636 = vector.load %arg41[%c0_267, %c0_268, %c0_269] : memref<2x1x32xf32, #tpu.memory_space<vmem>>, vector<1x1x32xf32>
    %637 = vector.shape_cast %636 : vector<1x1x32xf32> to vector<1x32xf32>
    %c0_270 = arith.constant 0 : index
    %c0_271 = arith.constant 0 : index
    %c0_272 = arith.constant 0 : index
    %638 = vector.load %arg42[%c0_270, %c0_271, %c0_272] : memref<2x1x32xf32, #tpu.memory_space<vmem>>, vector<1x1x32xf32>
    %639 = vector.shape_cast %638 : vector<1x1x32xf32> to vector<1x32xf32>
    %640 = arith.addf %619, %635 : vector<16x32xf32>
    %cst_273 = arith.constant dense<0.000000e+00> : vector<16xf32>
    %641 = vector.multi_reduction <add>, %640, %cst_273 [1] : vector<16x32xf32> to vector<16xf32>
    %642 = vector.shape_cast %641 : vector<16xf32> to vector<16x1xf32>
    %cst_274 = arith.constant 3.200000e+01 : f32
    %643 = vector.broadcast %cst_274 : f32 to vector<16x1xf32>
    %644 = arith.divf %642, %643 : vector<16x1xf32>
    %645 = vector.broadcast %644 : vector<16x1xf32> to vector<16x32xf32>
    %646 = arith.subf %640, %645 : vector<16x32xf32>
    %647 = arith.mulf %646, %646 : vector<16x32xf32>
    %cst_275 = arith.constant dense<0.000000e+00> : vector<16xf32>
    %648 = vector.multi_reduction <add>, %647, %cst_275 [1] : vector<16x32xf32> to vector<16xf32>
    %649 = vector.shape_cast %648 : vector<16xf32> to vector<16x1xf32>
    %cst_276 = arith.constant 3.200000e+01 : f32
    %650 = vector.broadcast %cst_276 : f32 to vector<16x1xf32>
    %651 = arith.divf %649, %650 : vector<16x1xf32>
    %652 = vector.broadcast %644 : vector<16x1xf32> to vector<16x32xf32>
    %653 = arith.subf %640, %652 : vector<16x32xf32>
    %cst_277 = arith.constant 9.99999974E-6 : f32
    %654 = vector.broadcast %cst_277 : f32 to vector<16x1xf32>
    %655 = arith.addf %651, %654 : vector<16x1xf32>
    %656 = math.rsqrt %655 : vector<16x1xf32>
    %657 = vector.broadcast %656 : vector<16x1xf32> to vector<16x32xf32>
    %658 = arith.mulf %653, %657 : vector<16x32xf32>
    %659 = vector.broadcast %637 : vector<1x32xf32> to vector<16x32xf32>
    %660 = arith.mulf %658, %659 : vector<16x32xf32>
    %661 = vector.broadcast %639 : vector<1x32xf32> to vector<16x32xf32>
    %662 = arith.addf %660, %661 : vector<16x32xf32>
    %c1_278 = arith.constant 1 : index
    %c0_279 = arith.constant 0 : index
    %c0_280 = arith.constant 0 : index
    %663 = vector.load %arg23[%c1_278, %c0_279, %c0_280] : memref<2x32x96xf32, #tpu.memory_space<vmem>>, vector<1x32x96xf32>
    %664 = vector.shape_cast %663 : vector<1x32x96xf32> to vector<32x96xf32>
    %cst_281 = arith.constant dense<0.000000e+00> : vector<16x96xf32>
    %665 = tpu.matmul %662, %664, %cst_281 {dimension_numbers = #tpu.dot_dimension_numbers<[1], [0], [0], [1], [0, 0, 1, 1], [], []>} : vector<16x32xf32>, vector<32x96xf32>, vector<16x96xf32> -> vector<16x96xf32>
    %c1_282 = arith.constant 1 : index
    %c0_283 = arith.constant 0 : index
    %c0_284 = arith.constant 0 : index
    %666 = vector.load %arg24[%c1_282, %c0_283, %c0_284] : memref<2x1x96xf32, #tpu.memory_space<vmem>>, vector<1x1x96xf32>
    %667 = vector.shape_cast %666 : vector<1x1x96xf32> to vector<1x96xf32>
    %668 = vector.broadcast %667 : vector<1x96xf32> to vector<16x96xf32>
    %669 = arith.addf %665, %668 : vector<16x96xf32>
    %670 = vector.extract_strided_slice %669 {offsets = [0, 0], sizes = [16, 32], strides = [1, 1]} : vector<16x96xf32> to vector<16x32xf32>
    %671 = vector.extract_strided_slice %669 {offsets = [0, 32], sizes = [16, 32], strides = [1, 1]} : vector<16x96xf32> to vector<16x32xf32>
    %672 = vector.extract_strided_slice %669 {offsets = [0, 64], sizes = [16, 32], strides = [1, 1]} : vector<16x96xf32> to vector<16x32xf32>
    %673 = vector.extract_strided_slice %670 {offsets = [0, 0], sizes = [16, 8], strides = [1, 1]} : vector<16x32xf32> to vector<16x8xf32>
    %674 = vector.shape_cast %673 : vector<16x8xf32> to vector<2x8x8xf32>
    %675 = vector.extract_strided_slice %671 {offsets = [0, 0], sizes = [16, 8], strides = [1, 1]} : vector<16x32xf32> to vector<16x8xf32>
    %676 = vector.shape_cast %675 : vector<16x8xf32> to vector<2x8x8xf32>
    %677 = vector.extract_strided_slice %672 {offsets = [0, 0], sizes = [16, 8], strides = [1, 1]} : vector<16x32xf32> to vector<16x8xf32>
    %678 = vector.shape_cast %677 : vector<16x8xf32> to vector<2x8x8xf32>
    %cst_285 = arith.constant dense<0.000000e+00> : vector<2x8x8xf32>
    %679 = tpu.matmul %674, %676, %cst_285 {dimension_numbers = #tpu.dot_dimension_numbers<[2], [2], [1], [1], [0, 0, 0, 1, 1, 1], [0], [0]>} : vector<2x8x8xf32>, vector<2x8x8xf32>, vector<2x8x8xf32> -> vector<2x8x8xf32>
    %680 = arith.mulf %679, %24 : vector<2x8x8xf32>
    %681 = arith.addf %680, %25 : vector<2x8x8xf32>
    %cst_286 = arith.constant dense<0xFF800000> : vector<2x8xf32>
    %682 = vector.multi_reduction <maximumf>, %681, %cst_286 [2] : vector<2x8x8xf32> to vector<2x8xf32>
    %683 = vector.shape_cast %682 : vector<2x8xf32> to vector<2x8x1xf32>
    %684 = vector.broadcast %683 : vector<2x8x1xf32> to vector<2x8x8xf32>
    %685 = arith.subf %681, %684 : vector<2x8x8xf32>
    %686 = math.exp %685 : vector<2x8x8xf32>
    %cst_287 = arith.constant dense<0.000000e+00> : vector<2x8xf32>
    %687 = vector.multi_reduction <add>, %686, %cst_287 [2] : vector<2x8x8xf32> to vector<2x8xf32>
    %688 = vector.shape_cast %687 : vector<2x8xf32> to vector<2x8x1xf32>
    %689 = vector.broadcast %688 : vector<2x8x1xf32> to vector<2x8x8xf32>
    %690 = arith.divf %686, %689 : vector<2x8x8xf32>
    %cst_288 = arith.constant dense<0.000000e+00> : vector<2x8x8xf32>
    %691 = tpu.matmul %690, %678, %cst_288 {dimension_numbers = #tpu.dot_dimension_numbers<[2], [1], [1], [2], [0, 0, 0, 1, 1, 2], [0], [0]>} : vector<2x8x8xf32>, vector<2x8x8xf32>, vector<2x8x8xf32> -> vector<2x8x8xf32>
    %692 = vector.shape_cast %691 : vector<2x8x8xf32> to vector<16x8xf32>
    %693 = vector.extract_strided_slice %670 {offsets = [0, 8], sizes = [16, 8], strides = [1, 1]} : vector<16x32xf32> to vector<16x8xf32>
    %694 = vector.shape_cast %693 : vector<16x8xf32> to vector<2x8x8xf32>
    %695 = vector.extract_strided_slice %671 {offsets = [0, 8], sizes = [16, 8], strides = [1, 1]} : vector<16x32xf32> to vector<16x8xf32>
    %696 = vector.shape_cast %695 : vector<16x8xf32> to vector<2x8x8xf32>
    %697 = vector.extract_strided_slice %672 {offsets = [0, 8], sizes = [16, 8], strides = [1, 1]} : vector<16x32xf32> to vector<16x8xf32>
    %698 = vector.shape_cast %697 : vector<16x8xf32> to vector<2x8x8xf32>
    %cst_289 = arith.constant dense<0.000000e+00> : vector<2x8x8xf32>
    %699 = tpu.matmul %694, %696, %cst_289 {dimension_numbers = #tpu.dot_dimension_numbers<[2], [2], [1], [1], [0, 0, 0, 1, 1, 1], [0], [0]>} : vector<2x8x8xf32>, vector<2x8x8xf32>, vector<2x8x8xf32> -> vector<2x8x8xf32>
    %700 = arith.mulf %699, %24 : vector<2x8x8xf32>
    %701 = arith.addf %700, %25 : vector<2x8x8xf32>
    %cst_290 = arith.constant dense<0xFF800000> : vector<2x8xf32>
    %702 = vector.multi_reduction <maximumf>, %701, %cst_290 [2] : vector<2x8x8xf32> to vector<2x8xf32>
    %703 = vector.shape_cast %702 : vector<2x8xf32> to vector<2x8x1xf32>
    %704 = vector.broadcast %703 : vector<2x8x1xf32> to vector<2x8x8xf32>
    %705 = arith.subf %701, %704 : vector<2x8x8xf32>
    %706 = math.exp %705 : vector<2x8x8xf32>
    %cst_291 = arith.constant dense<0.000000e+00> : vector<2x8xf32>
    %707 = vector.multi_reduction <add>, %706, %cst_291 [2] : vector<2x8x8xf32> to vector<2x8xf32>
    %708 = vector.shape_cast %707 : vector<2x8xf32> to vector<2x8x1xf32>
    %709 = vector.broadcast %708 : vector<2x8x1xf32> to vector<2x8x8xf32>
    %710 = arith.divf %706, %709 : vector<2x8x8xf32>
    %cst_292 = arith.constant dense<0.000000e+00> : vector<2x8x8xf32>
    %711 = tpu.matmul %710, %698, %cst_292 {dimension_numbers = #tpu.dot_dimension_numbers<[2], [1], [1], [2], [0, 0, 0, 1, 1, 2], [0], [0]>} : vector<2x8x8xf32>, vector<2x8x8xf32>, vector<2x8x8xf32> -> vector<2x8x8xf32>
    %712 = vector.shape_cast %711 : vector<2x8x8xf32> to vector<16x8xf32>
    %713 = vector.extract_strided_slice %670 {offsets = [0, 16], sizes = [16, 8], strides = [1, 1]} : vector<16x32xf32> to vector<16x8xf32>
    %714 = vector.shape_cast %713 : vector<16x8xf32> to vector<2x8x8xf32>
    %715 = vector.extract_strided_slice %671 {offsets = [0, 16], sizes = [16, 8], strides = [1, 1]} : vector<16x32xf32> to vector<16x8xf32>
    %716 = vector.shape_cast %715 : vector<16x8xf32> to vector<2x8x8xf32>
    %717 = vector.extract_strided_slice %672 {offsets = [0, 16], sizes = [16, 8], strides = [1, 1]} : vector<16x32xf32> to vector<16x8xf32>
    %718 = vector.shape_cast %717 : vector<16x8xf32> to vector<2x8x8xf32>
    %cst_293 = arith.constant dense<0.000000e+00> : vector<2x8x8xf32>
    %719 = tpu.matmul %714, %716, %cst_293 {dimension_numbers = #tpu.dot_dimension_numbers<[2], [2], [1], [1], [0, 0, 0, 1, 1, 1], [0], [0]>} : vector<2x8x8xf32>, vector<2x8x8xf32>, vector<2x8x8xf32> -> vector<2x8x8xf32>
    %720 = arith.mulf %719, %24 : vector<2x8x8xf32>
    %721 = arith.addf %720, %25 : vector<2x8x8xf32>
    %cst_294 = arith.constant dense<0xFF800000> : vector<2x8xf32>
    %722 = vector.multi_reduction <maximumf>, %721, %cst_294 [2] : vector<2x8x8xf32> to vector<2x8xf32>
    %723 = vector.shape_cast %722 : vector<2x8xf32> to vector<2x8x1xf32>
    %724 = vector.broadcast %723 : vector<2x8x1xf32> to vector<2x8x8xf32>
    %725 = arith.subf %721, %724 : vector<2x8x8xf32>
    %726 = math.exp %725 : vector<2x8x8xf32>
    %cst_295 = arith.constant dense<0.000000e+00> : vector<2x8xf32>
    %727 = vector.multi_reduction <add>, %726, %cst_295 [2] : vector<2x8x8xf32> to vector<2x8xf32>
    %728 = vector.shape_cast %727 : vector<2x8xf32> to vector<2x8x1xf32>
    %729 = vector.broadcast %728 : vector<2x8x1xf32> to vector<2x8x8xf32>
    %730 = arith.divf %726, %729 : vector<2x8x8xf32>
    %cst_296 = arith.constant dense<0.000000e+00> : vector<2x8x8xf32>
    %731 = tpu.matmul %730, %718, %cst_296 {dimension_numbers = #tpu.dot_dimension_numbers<[2], [1], [1], [2], [0, 0, 0, 1, 1, 2], [0], [0]>} : vector<2x8x8xf32>, vector<2x8x8xf32>, vector<2x8x8xf32> -> vector<2x8x8xf32>
    %732 = vector.shape_cast %731 : vector<2x8x8xf32> to vector<16x8xf32>
    %733 = vector.extract_strided_slice %670 {offsets = [0, 24], sizes = [16, 8], strides = [1, 1]} : vector<16x32xf32> to vector<16x8xf32>
    %734 = vector.shape_cast %733 : vector<16x8xf32> to vector<2x8x8xf32>
    %735 = vector.extract_strided_slice %671 {offsets = [0, 24], sizes = [16, 8], strides = [1, 1]} : vector<16x32xf32> to vector<16x8xf32>
    %736 = vector.shape_cast %735 : vector<16x8xf32> to vector<2x8x8xf32>
    %737 = vector.extract_strided_slice %672 {offsets = [0, 24], sizes = [16, 8], strides = [1, 1]} : vector<16x32xf32> to vector<16x8xf32>
    %738 = vector.shape_cast %737 : vector<16x8xf32> to vector<2x8x8xf32>
    %cst_297 = arith.constant dense<0.000000e+00> : vector<2x8x8xf32>
    %739 = tpu.matmul %734, %736, %cst_297 {dimension_numbers = #tpu.dot_dimension_numbers<[2], [2], [1], [1], [0, 0, 0, 1, 1, 1], [0], [0]>} : vector<2x8x8xf32>, vector<2x8x8xf32>, vector<2x8x8xf32> -> vector<2x8x8xf32>
    %740 = arith.mulf %739, %24 : vector<2x8x8xf32>
    %741 = arith.addf %740, %25 : vector<2x8x8xf32>
    %cst_298 = arith.constant dense<0xFF800000> : vector<2x8xf32>
    %742 = vector.multi_reduction <maximumf>, %741, %cst_298 [2] : vector<2x8x8xf32> to vector<2x8xf32>
    %743 = vector.shape_cast %742 : vector<2x8xf32> to vector<2x8x1xf32>
    %744 = vector.broadcast %743 : vector<2x8x1xf32> to vector<2x8x8xf32>
    %745 = arith.subf %741, %744 : vector<2x8x8xf32>
    %746 = math.exp %745 : vector<2x8x8xf32>
    %cst_299 = arith.constant dense<0.000000e+00> : vector<2x8xf32>
    %747 = vector.multi_reduction <add>, %746, %cst_299 [2] : vector<2x8x8xf32> to vector<2x8xf32>
    %748 = vector.shape_cast %747 : vector<2x8xf32> to vector<2x8x1xf32>
    %749 = vector.broadcast %748 : vector<2x8x1xf32> to vector<2x8x8xf32>
    %750 = arith.divf %746, %749 : vector<2x8x8xf32>
    %cst_300 = arith.constant dense<0.000000e+00> : vector<2x8x8xf32>
    %751 = tpu.matmul %750, %738, %cst_300 {dimension_numbers = #tpu.dot_dimension_numbers<[2], [1], [1], [2], [0, 0, 0, 1, 1, 2], [0], [0]>} : vector<2x8x8xf32>, vector<2x8x8xf32>, vector<2x8x8xf32> -> vector<2x8x8xf32>
    %752 = vector.shape_cast %751 : vector<2x8x8xf32> to vector<16x8xf32>
    %753 = tpu.concatenate %692, %712, %732, %752 in 1 : vector<16x8xf32>, vector<16x8xf32>, vector<16x8xf32>, vector<16x8xf32> -> vector<16x32xf32>
    %c1_301 = arith.constant 1 : index
    %c0_302 = arith.constant 0 : index
    %c0_303 = arith.constant 0 : index
    %754 = vector.load %arg25[%c1_301, %c0_302, %c0_303] : memref<2x32x32xf32, #tpu.memory_space<vmem>>, vector<1x32x32xf32>
    %755 = vector.shape_cast %754 : vector<1x32x32xf32> to vector<32x32xf32>
    %cst_304 = arith.constant dense<0.000000e+00> : vector<16x32xf32>
    %756 = tpu.matmul %753, %755, %cst_304 {dimension_numbers = #tpu.dot_dimension_numbers<[1], [0], [0], [1], [0, 0, 1, 1], [], []>} : vector<16x32xf32>, vector<32x32xf32>, vector<16x32xf32> -> vector<16x32xf32>
    %c1_305 = arith.constant 1 : index
    %c0_306 = arith.constant 0 : index
    %c0_307 = arith.constant 0 : index
    %757 = vector.load %arg26[%c1_305, %c0_306, %c0_307] : memref<2x1x32xf32, #tpu.memory_space<vmem>>, vector<1x1x32xf32>
    %758 = vector.shape_cast %757 : vector<1x1x32xf32> to vector<1x32xf32>
    %759 = vector.broadcast %758 : vector<1x32xf32> to vector<16x32xf32>
    %760 = arith.addf %756, %759 : vector<16x32xf32>
    %c1_308 = arith.constant 1 : index
    %c0_309 = arith.constant 0 : index
    %c0_310 = arith.constant 0 : index
    %761 = vector.load %arg37[%c1_308, %c0_309, %c0_310] : memref<2x1x32xf32, #tpu.memory_space<vmem>>, vector<1x1x32xf32>
    %762 = vector.shape_cast %761 : vector<1x1x32xf32> to vector<1x32xf32>
    %c1_311 = arith.constant 1 : index
    %c0_312 = arith.constant 0 : index
    %c0_313 = arith.constant 0 : index
    %763 = vector.load %arg38[%c1_311, %c0_312, %c0_313] : memref<2x1x32xf32, #tpu.memory_space<vmem>>, vector<1x1x32xf32>
    %764 = vector.shape_cast %763 : vector<1x1x32xf32> to vector<1x32xf32>
    %765 = arith.addf %662, %760 : vector<16x32xf32>
    %cst_314 = arith.constant dense<0.000000e+00> : vector<16xf32>
    %766 = vector.multi_reduction <add>, %765, %cst_314 [1] : vector<16x32xf32> to vector<16xf32>
    %767 = vector.shape_cast %766 : vector<16xf32> to vector<16x1xf32>
    %cst_315 = arith.constant 3.200000e+01 : f32
    %768 = vector.broadcast %cst_315 : f32 to vector<16x1xf32>
    %769 = arith.divf %767, %768 : vector<16x1xf32>
    %770 = vector.broadcast %769 : vector<16x1xf32> to vector<16x32xf32>
    %771 = arith.subf %765, %770 : vector<16x32xf32>
    %772 = arith.mulf %771, %771 : vector<16x32xf32>
    %cst_316 = arith.constant dense<0.000000e+00> : vector<16xf32>
    %773 = vector.multi_reduction <add>, %772, %cst_316 [1] : vector<16x32xf32> to vector<16xf32>
    %774 = vector.shape_cast %773 : vector<16xf32> to vector<16x1xf32>
    %cst_317 = arith.constant 3.200000e+01 : f32
    %775 = vector.broadcast %cst_317 : f32 to vector<16x1xf32>
    %776 = arith.divf %774, %775 : vector<16x1xf32>
    %777 = vector.broadcast %769 : vector<16x1xf32> to vector<16x32xf32>
    %778 = arith.subf %765, %777 : vector<16x32xf32>
    %cst_318 = arith.constant 9.99999974E-6 : f32
    %779 = vector.broadcast %cst_318 : f32 to vector<16x1xf32>
    %780 = arith.addf %776, %779 : vector<16x1xf32>
    %781 = math.rsqrt %780 : vector<16x1xf32>
    %782 = vector.broadcast %781 : vector<16x1xf32> to vector<16x32xf32>
    %783 = arith.mulf %778, %782 : vector<16x32xf32>
    %784 = vector.broadcast %762 : vector<1x32xf32> to vector<16x32xf32>
    %785 = arith.mulf %783, %784 : vector<16x32xf32>
    %786 = vector.broadcast %764 : vector<1x32xf32> to vector<16x32xf32>
    %787 = arith.addf %785, %786 : vector<16x32xf32>
    %c1_319 = arith.constant 1 : index
    %c0_320 = arith.constant 0 : index
    %c0_321 = arith.constant 0 : index
    %788 = vector.load %arg27[%c1_319, %c0_320, %c0_321] : memref<2x32x32xf32, #tpu.memory_space<vmem>>, vector<1x32x32xf32>
    %789 = vector.shape_cast %788 : vector<1x32x32xf32> to vector<32x32xf32>
    %cst_322 = arith.constant dense<0.000000e+00> : vector<16x32xf32>
    %790 = tpu.matmul %787, %789, %cst_322 {dimension_numbers = #tpu.dot_dimension_numbers<[1], [0], [0], [1], [0, 0, 1, 1], [], []>} : vector<16x32xf32>, vector<32x32xf32>, vector<16x32xf32> -> vector<16x32xf32>
    %c1_323 = arith.constant 1 : index
    %c0_324 = arith.constant 0 : index
    %c0_325 = arith.constant 0 : index
    %791 = vector.load %arg28[%c1_323, %c0_324, %c0_325] : memref<2x1x32xf32, #tpu.memory_space<vmem>>, vector<1x1x32xf32>
    %792 = vector.shape_cast %791 : vector<1x1x32xf32> to vector<1x32xf32>
    %793 = vector.broadcast %792 : vector<1x32xf32> to vector<16x32xf32>
    %794 = arith.addf %790, %793 : vector<16x32xf32>
    %c1_326 = arith.constant 1 : index
    %c0_327 = arith.constant 0 : index
    %c0_328 = arith.constant 0 : index
    %795 = vector.load %arg29[%c1_326, %c0_327, %c0_328] : memref<2x32x64xf32, #tpu.memory_space<vmem>>, vector<1x32x64xf32>
    %796 = vector.shape_cast %795 : vector<1x32x64xf32> to vector<32x64xf32>
    %cst_329 = arith.constant dense<0.000000e+00> : vector<16x64xf32>
    %797 = tpu.matmul %363, %796, %cst_329 {dimension_numbers = #tpu.dot_dimension_numbers<[1], [0], [0], [1], [0, 0, 1, 1], [], []>} : vector<16x32xf32>, vector<32x64xf32>, vector<16x64xf32> -> vector<16x64xf32>
    %c1_330 = arith.constant 1 : index
    %c0_331 = arith.constant 0 : index
    %c0_332 = arith.constant 0 : index
    %798 = vector.load %arg30[%c1_330, %c0_331, %c0_332] : memref<2x1x64xf32, #tpu.memory_space<vmem>>, vector<1x1x64xf32>
    %799 = vector.shape_cast %798 : vector<1x1x64xf32> to vector<1x64xf32>
    %800 = vector.broadcast %799 : vector<1x64xf32> to vector<16x64xf32>
    %801 = arith.addf %797, %800 : vector<16x64xf32>
    %802 = vector.extract_strided_slice %801 {offsets = [0, 0], sizes = [16, 32], strides = [1, 1]} : vector<16x64xf32> to vector<16x32xf32>
    %803 = vector.extract_strided_slice %801 {offsets = [0, 32], sizes = [16, 32], strides = [1, 1]} : vector<16x64xf32> to vector<16x32xf32>
    %804 = vector.extract_strided_slice %794 {offsets = [0, 0], sizes = [16, 8], strides = [1, 1]} : vector<16x32xf32> to vector<16x8xf32>
    %805 = vector.shape_cast %804 : vector<16x8xf32> to vector<2x8x8xf32>
    %806 = vector.extract_strided_slice %802 {offsets = [0, 0], sizes = [16, 8], strides = [1, 1]} : vector<16x32xf32> to vector<16x8xf32>
    %807 = vector.shape_cast %806 : vector<16x8xf32> to vector<2x8x8xf32>
    %808 = vector.extract_strided_slice %803 {offsets = [0, 0], sizes = [16, 8], strides = [1, 1]} : vector<16x32xf32> to vector<16x8xf32>
    %809 = vector.shape_cast %808 : vector<16x8xf32> to vector<2x8x8xf32>
    %cst_333 = arith.constant dense<0.000000e+00> : vector<2x8x8xf32>
    %810 = tpu.matmul %805, %807, %cst_333 {dimension_numbers = #tpu.dot_dimension_numbers<[2], [2], [1], [1], [0, 0, 0, 1, 1, 1], [0], [0]>} : vector<2x8x8xf32>, vector<2x8x8xf32>, vector<2x8x8xf32> -> vector<2x8x8xf32>
    %811 = arith.mulf %810, %26 : vector<2x8x8xf32>
    %812 = arith.addf %811, %27 : vector<2x8x8xf32>
    %cst_334 = arith.constant dense<0xFF800000> : vector<2x8xf32>
    %813 = vector.multi_reduction <maximumf>, %812, %cst_334 [2] : vector<2x8x8xf32> to vector<2x8xf32>
    %814 = vector.shape_cast %813 : vector<2x8xf32> to vector<2x8x1xf32>
    %815 = vector.broadcast %814 : vector<2x8x1xf32> to vector<2x8x8xf32>
    %816 = arith.subf %812, %815 : vector<2x8x8xf32>
    %817 = math.exp %816 : vector<2x8x8xf32>
    %cst_335 = arith.constant dense<0.000000e+00> : vector<2x8xf32>
    %818 = vector.multi_reduction <add>, %817, %cst_335 [2] : vector<2x8x8xf32> to vector<2x8xf32>
    %819 = vector.shape_cast %818 : vector<2x8xf32> to vector<2x8x1xf32>
    %820 = vector.broadcast %819 : vector<2x8x1xf32> to vector<2x8x8xf32>
    %821 = arith.divf %817, %820 : vector<2x8x8xf32>
    %cst_336 = arith.constant dense<0.000000e+00> : vector<2x8x8xf32>
    %822 = tpu.matmul %821, %809, %cst_336 {dimension_numbers = #tpu.dot_dimension_numbers<[2], [1], [1], [2], [0, 0, 0, 1, 1, 2], [0], [0]>} : vector<2x8x8xf32>, vector<2x8x8xf32>, vector<2x8x8xf32> -> vector<2x8x8xf32>
    %823 = vector.shape_cast %822 : vector<2x8x8xf32> to vector<16x8xf32>
    %824 = vector.extract_strided_slice %794 {offsets = [0, 8], sizes = [16, 8], strides = [1, 1]} : vector<16x32xf32> to vector<16x8xf32>
    %825 = vector.shape_cast %824 : vector<16x8xf32> to vector<2x8x8xf32>
    %826 = vector.extract_strided_slice %802 {offsets = [0, 8], sizes = [16, 8], strides = [1, 1]} : vector<16x32xf32> to vector<16x8xf32>
    %827 = vector.shape_cast %826 : vector<16x8xf32> to vector<2x8x8xf32>
    %828 = vector.extract_strided_slice %803 {offsets = [0, 8], sizes = [16, 8], strides = [1, 1]} : vector<16x32xf32> to vector<16x8xf32>
    %829 = vector.shape_cast %828 : vector<16x8xf32> to vector<2x8x8xf32>
    %cst_337 = arith.constant dense<0.000000e+00> : vector<2x8x8xf32>
    %830 = tpu.matmul %825, %827, %cst_337 {dimension_numbers = #tpu.dot_dimension_numbers<[2], [2], [1], [1], [0, 0, 0, 1, 1, 1], [0], [0]>} : vector<2x8x8xf32>, vector<2x8x8xf32>, vector<2x8x8xf32> -> vector<2x8x8xf32>
    %831 = arith.mulf %830, %26 : vector<2x8x8xf32>
    %832 = arith.addf %831, %27 : vector<2x8x8xf32>
    %cst_338 = arith.constant dense<0xFF800000> : vector<2x8xf32>
    %833 = vector.multi_reduction <maximumf>, %832, %cst_338 [2] : vector<2x8x8xf32> to vector<2x8xf32>
    %834 = vector.shape_cast %833 : vector<2x8xf32> to vector<2x8x1xf32>
    %835 = vector.broadcast %834 : vector<2x8x1xf32> to vector<2x8x8xf32>
    %836 = arith.subf %832, %835 : vector<2x8x8xf32>
    %837 = math.exp %836 : vector<2x8x8xf32>
    %cst_339 = arith.constant dense<0.000000e+00> : vector<2x8xf32>
    %838 = vector.multi_reduction <add>, %837, %cst_339 [2] : vector<2x8x8xf32> to vector<2x8xf32>
    %839 = vector.shape_cast %838 : vector<2x8xf32> to vector<2x8x1xf32>
    %840 = vector.broadcast %839 : vector<2x8x1xf32> to vector<2x8x8xf32>
    %841 = arith.divf %837, %840 : vector<2x8x8xf32>
    %cst_340 = arith.constant dense<0.000000e+00> : vector<2x8x8xf32>
    %842 = tpu.matmul %841, %829, %cst_340 {dimension_numbers = #tpu.dot_dimension_numbers<[2], [1], [1], [2], [0, 0, 0, 1, 1, 2], [0], [0]>} : vector<2x8x8xf32>, vector<2x8x8xf32>, vector<2x8x8xf32> -> vector<2x8x8xf32>
    %843 = vector.shape_cast %842 : vector<2x8x8xf32> to vector<16x8xf32>
    %844 = vector.extract_strided_slice %794 {offsets = [0, 16], sizes = [16, 8], strides = [1, 1]} : vector<16x32xf32> to vector<16x8xf32>
    %845 = vector.shape_cast %844 : vector<16x8xf32> to vector<2x8x8xf32>
    %846 = vector.extract_strided_slice %802 {offsets = [0, 16], sizes = [16, 8], strides = [1, 1]} : vector<16x32xf32> to vector<16x8xf32>
    %847 = vector.shape_cast %846 : vector<16x8xf32> to vector<2x8x8xf32>
    %848 = vector.extract_strided_slice %803 {offsets = [0, 16], sizes = [16, 8], strides = [1, 1]} : vector<16x32xf32> to vector<16x8xf32>
    %849 = vector.shape_cast %848 : vector<16x8xf32> to vector<2x8x8xf32>
    %cst_341 = arith.constant dense<0.000000e+00> : vector<2x8x8xf32>
    %850 = tpu.matmul %845, %847, %cst_341 {dimension_numbers = #tpu.dot_dimension_numbers<[2], [2], [1], [1], [0, 0, 0, 1, 1, 1], [0], [0]>} : vector<2x8x8xf32>, vector<2x8x8xf32>, vector<2x8x8xf32> -> vector<2x8x8xf32>
    %851 = arith.mulf %850, %26 : vector<2x8x8xf32>
    %852 = arith.addf %851, %27 : vector<2x8x8xf32>
    %cst_342 = arith.constant dense<0xFF800000> : vector<2x8xf32>
    %853 = vector.multi_reduction <maximumf>, %852, %cst_342 [2] : vector<2x8x8xf32> to vector<2x8xf32>
    %854 = vector.shape_cast %853 : vector<2x8xf32> to vector<2x8x1xf32>
    %855 = vector.broadcast %854 : vector<2x8x1xf32> to vector<2x8x8xf32>
    %856 = arith.subf %852, %855 : vector<2x8x8xf32>
    %857 = math.exp %856 : vector<2x8x8xf32>
    %cst_343 = arith.constant dense<0.000000e+00> : vector<2x8xf32>
    %858 = vector.multi_reduction <add>, %857, %cst_343 [2] : vector<2x8x8xf32> to vector<2x8xf32>
    %859 = vector.shape_cast %858 : vector<2x8xf32> to vector<2x8x1xf32>
    %860 = vector.broadcast %859 : vector<2x8x1xf32> to vector<2x8x8xf32>
    %861 = arith.divf %857, %860 : vector<2x8x8xf32>
    %cst_344 = arith.constant dense<0.000000e+00> : vector<2x8x8xf32>
    %862 = tpu.matmul %861, %849, %cst_344 {dimension_numbers = #tpu.dot_dimension_numbers<[2], [1], [1], [2], [0, 0, 0, 1, 1, 2], [0], [0]>} : vector<2x8x8xf32>, vector<2x8x8xf32>, vector<2x8x8xf32> -> vector<2x8x8xf32>
    %863 = vector.shape_cast %862 : vector<2x8x8xf32> to vector<16x8xf32>
    %864 = vector.extract_strided_slice %794 {offsets = [0, 24], sizes = [16, 8], strides = [1, 1]} : vector<16x32xf32> to vector<16x8xf32>
    %865 = vector.shape_cast %864 : vector<16x8xf32> to vector<2x8x8xf32>
    %866 = vector.extract_strided_slice %802 {offsets = [0, 24], sizes = [16, 8], strides = [1, 1]} : vector<16x32xf32> to vector<16x8xf32>
    %867 = vector.shape_cast %866 : vector<16x8xf32> to vector<2x8x8xf32>
    %868 = vector.extract_strided_slice %803 {offsets = [0, 24], sizes = [16, 8], strides = [1, 1]} : vector<16x32xf32> to vector<16x8xf32>
    %869 = vector.shape_cast %868 : vector<16x8xf32> to vector<2x8x8xf32>
    %cst_345 = arith.constant dense<0.000000e+00> : vector<2x8x8xf32>
    %870 = tpu.matmul %865, %867, %cst_345 {dimension_numbers = #tpu.dot_dimension_numbers<[2], [2], [1], [1], [0, 0, 0, 1, 1, 1], [0], [0]>} : vector<2x8x8xf32>, vector<2x8x8xf32>, vector<2x8x8xf32> -> vector<2x8x8xf32>
    %871 = arith.mulf %870, %26 : vector<2x8x8xf32>
    %872 = arith.addf %871, %27 : vector<2x8x8xf32>
    %cst_346 = arith.constant dense<0xFF800000> : vector<2x8xf32>
    %873 = vector.multi_reduction <maximumf>, %872, %cst_346 [2] : vector<2x8x8xf32> to vector<2x8xf32>
    %874 = vector.shape_cast %873 : vector<2x8xf32> to vector<2x8x1xf32>
    %875 = vector.broadcast %874 : vector<2x8x1xf32> to vector<2x8x8xf32>
    %876 = arith.subf %872, %875 : vector<2x8x8xf32>
    %877 = math.exp %876 : vector<2x8x8xf32>
    %cst_347 = arith.constant dense<0.000000e+00> : vector<2x8xf32>
    %878 = vector.multi_reduction <add>, %877, %cst_347 [2] : vector<2x8x8xf32> to vector<2x8xf32>
    %879 = vector.shape_cast %878 : vector<2x8xf32> to vector<2x8x1xf32>
    %880 = vector.broadcast %879 : vector<2x8x1xf32> to vector<2x8x8xf32>
    %881 = arith.divf %877, %880 : vector<2x8x8xf32>
    %cst_348 = arith.constant dense<0.000000e+00> : vector<2x8x8xf32>
    %882 = tpu.matmul %881, %869, %cst_348 {dimension_numbers = #tpu.dot_dimension_numbers<[2], [1], [1], [2], [0, 0, 0, 1, 1, 2], [0], [0]>} : vector<2x8x8xf32>, vector<2x8x8xf32>, vector<2x8x8xf32> -> vector<2x8x8xf32>
    %883 = vector.shape_cast %882 : vector<2x8x8xf32> to vector<16x8xf32>
    %884 = tpu.concatenate %823, %843, %863, %883 in 1 : vector<16x8xf32>, vector<16x8xf32>, vector<16x8xf32>, vector<16x8xf32> -> vector<16x32xf32>
    %c1_349 = arith.constant 1 : index
    %c0_350 = arith.constant 0 : index
    %c0_351 = arith.constant 0 : index
    %885 = vector.load %arg31[%c1_349, %c0_350, %c0_351] : memref<2x32x32xf32, #tpu.memory_space<vmem>>, vector<1x32x32xf32>
    %886 = vector.shape_cast %885 : vector<1x32x32xf32> to vector<32x32xf32>
    %cst_352 = arith.constant dense<0.000000e+00> : vector<16x32xf32>
    %887 = tpu.matmul %884, %886, %cst_352 {dimension_numbers = #tpu.dot_dimension_numbers<[1], [0], [0], [1], [0, 0, 1, 1], [], []>} : vector<16x32xf32>, vector<32x32xf32>, vector<16x32xf32> -> vector<16x32xf32>
    %c1_353 = arith.constant 1 : index
    %c0_354 = arith.constant 0 : index
    %c0_355 = arith.constant 0 : index
    %888 = vector.load %arg32[%c1_353, %c0_354, %c0_355] : memref<2x1x32xf32, #tpu.memory_space<vmem>>, vector<1x1x32xf32>
    %889 = vector.shape_cast %888 : vector<1x1x32xf32> to vector<1x32xf32>
    %890 = vector.broadcast %889 : vector<1x32xf32> to vector<16x32xf32>
    %891 = arith.addf %887, %890 : vector<16x32xf32>
    %c1_356 = arith.constant 1 : index
    %c0_357 = arith.constant 0 : index
    %c0_358 = arith.constant 0 : index
    %892 = vector.load %arg39[%c1_356, %c0_357, %c0_358] : memref<2x1x32xf32, #tpu.memory_space<vmem>>, vector<1x1x32xf32>
    %893 = vector.shape_cast %892 : vector<1x1x32xf32> to vector<1x32xf32>
    %c1_359 = arith.constant 1 : index
    %c0_360 = arith.constant 0 : index
    %c0_361 = arith.constant 0 : index
    %894 = vector.load %arg40[%c1_359, %c0_360, %c0_361] : memref<2x1x32xf32, #tpu.memory_space<vmem>>, vector<1x1x32xf32>
    %895 = vector.shape_cast %894 : vector<1x1x32xf32> to vector<1x32xf32>
    %896 = arith.addf %787, %891 : vector<16x32xf32>
    %cst_362 = arith.constant dense<0.000000e+00> : vector<16xf32>
    %897 = vector.multi_reduction <add>, %896, %cst_362 [1] : vector<16x32xf32> to vector<16xf32>
    %898 = vector.shape_cast %897 : vector<16xf32> to vector<16x1xf32>
    %cst_363 = arith.constant 3.200000e+01 : f32
    %899 = vector.broadcast %cst_363 : f32 to vector<16x1xf32>
    %900 = arith.divf %898, %899 : vector<16x1xf32>
    %901 = vector.broadcast %900 : vector<16x1xf32> to vector<16x32xf32>
    %902 = arith.subf %896, %901 : vector<16x32xf32>
    %903 = arith.mulf %902, %902 : vector<16x32xf32>
    %cst_364 = arith.constant dense<0.000000e+00> : vector<16xf32>
    %904 = vector.multi_reduction <add>, %903, %cst_364 [1] : vector<16x32xf32> to vector<16xf32>
    %905 = vector.shape_cast %904 : vector<16xf32> to vector<16x1xf32>
    %cst_365 = arith.constant 3.200000e+01 : f32
    %906 = vector.broadcast %cst_365 : f32 to vector<16x1xf32>
    %907 = arith.divf %905, %906 : vector<16x1xf32>
    %908 = vector.broadcast %900 : vector<16x1xf32> to vector<16x32xf32>
    %909 = arith.subf %896, %908 : vector<16x32xf32>
    %cst_366 = arith.constant 9.99999974E-6 : f32
    %910 = vector.broadcast %cst_366 : f32 to vector<16x1xf32>
    %911 = arith.addf %907, %910 : vector<16x1xf32>
    %912 = math.rsqrt %911 : vector<16x1xf32>
    %913 = vector.broadcast %912 : vector<16x1xf32> to vector<16x32xf32>
    %914 = arith.mulf %909, %913 : vector<16x32xf32>
    %915 = vector.broadcast %893 : vector<1x32xf32> to vector<16x32xf32>
    %916 = arith.mulf %914, %915 : vector<16x32xf32>
    %917 = vector.broadcast %895 : vector<1x32xf32> to vector<16x32xf32>
    %918 = arith.addf %916, %917 : vector<16x32xf32>
    %c1_367 = arith.constant 1 : index
    %c0_368 = arith.constant 0 : index
    %c0_369 = arith.constant 0 : index
    %919 = vector.load %arg33[%c1_367, %c0_368, %c0_369] : memref<2x32x64xf32, #tpu.memory_space<vmem>>, vector<1x32x64xf32>
    %920 = vector.shape_cast %919 : vector<1x32x64xf32> to vector<32x64xf32>
    %c1_370 = arith.constant 1 : index
    %c0_371 = arith.constant 0 : index
    %c0_372 = arith.constant 0 : index
    %921 = vector.load %arg34[%c1_370, %c0_371, %c0_372] : memref<2x1x64xf32, #tpu.memory_space<vmem>>, vector<1x1x64xf32>
    %922 = vector.shape_cast %921 : vector<1x1x64xf32> to vector<1x64xf32>
    %c1_373 = arith.constant 1 : index
    %c0_374 = arith.constant 0 : index
    %c0_375 = arith.constant 0 : index
    %923 = vector.load %arg35[%c1_373, %c0_374, %c0_375] : memref<2x64x32xf32, #tpu.memory_space<vmem>>, vector<1x64x32xf32>
    %924 = vector.shape_cast %923 : vector<1x64x32xf32> to vector<64x32xf32>
    %c1_376 = arith.constant 1 : index
    %c0_377 = arith.constant 0 : index
    %c0_378 = arith.constant 0 : index
    %925 = vector.load %arg36[%c1_376, %c0_377, %c0_378] : memref<2x1x32xf32, #tpu.memory_space<vmem>>, vector<1x1x32xf32>
    %926 = vector.shape_cast %925 : vector<1x1x32xf32> to vector<1x32xf32>
    %cst_379 = arith.constant dense<0.000000e+00> : vector<16x64xf32>
    %927 = tpu.matmul %918, %920, %cst_379 {dimension_numbers = #tpu.dot_dimension_numbers<[1], [0], [0], [1], [0, 0, 1, 1], [], []>} : vector<16x32xf32>, vector<32x64xf32>, vector<16x64xf32> -> vector<16x64xf32>
    %928 = vector.broadcast %922 : vector<1x64xf32> to vector<16x64xf32>
    %929 = arith.addf %927, %928 : vector<16x64xf32>
    %cst_380 = arith.constant 0.000000e+00 : f32
    %930 = vector.broadcast %cst_380 : f32 to vector<16x64xf32>
    %931 = arith.maximumf %929, %930 : vector<16x64xf32>
    %cst_381 = arith.constant dense<0.000000e+00> : vector<16x32xf32>
    %932 = tpu.matmul %931, %924, %cst_381 {dimension_numbers = #tpu.dot_dimension_numbers<[1], [0], [0], [1], [0, 0, 1, 1], [], []>} : vector<16x64xf32>, vector<64x32xf32>, vector<16x32xf32> -> vector<16x32xf32>
    %933 = vector.broadcast %926 : vector<1x32xf32> to vector<16x32xf32>
    %934 = arith.addf %932, %933 : vector<16x32xf32>
    %c1_382 = arith.constant 1 : index
    %c0_383 = arith.constant 0 : index
    %c0_384 = arith.constant 0 : index
    %935 = vector.load %arg41[%c1_382, %c0_383, %c0_384] : memref<2x1x32xf32, #tpu.memory_space<vmem>>, vector<1x1x32xf32>
    %936 = vector.shape_cast %935 : vector<1x1x32xf32> to vector<1x32xf32>
    %c1_385 = arith.constant 1 : index
    %c0_386 = arith.constant 0 : index
    %c0_387 = arith.constant 0 : index
    %937 = vector.load %arg42[%c1_385, %c0_386, %c0_387] : memref<2x1x32xf32, #tpu.memory_space<vmem>>, vector<1x1x32xf32>
    %938 = vector.shape_cast %937 : vector<1x1x32xf32> to vector<1x32xf32>
    %939 = arith.addf %918, %934 : vector<16x32xf32>
    %cst_388 = arith.constant dense<0.000000e+00> : vector<16xf32>
    %940 = vector.multi_reduction <add>, %939, %cst_388 [1] : vector<16x32xf32> to vector<16xf32>
    %941 = vector.shape_cast %940 : vector<16xf32> to vector<16x1xf32>
    %cst_389 = arith.constant 3.200000e+01 : f32
    %942 = vector.broadcast %cst_389 : f32 to vector<16x1xf32>
    %943 = arith.divf %941, %942 : vector<16x1xf32>
    %944 = vector.broadcast %943 : vector<16x1xf32> to vector<16x32xf32>
    %945 = arith.subf %939, %944 : vector<16x32xf32>
    %946 = arith.mulf %945, %945 : vector<16x32xf32>
    %cst_390 = arith.constant dense<0.000000e+00> : vector<16xf32>
    %947 = vector.multi_reduction <add>, %946, %cst_390 [1] : vector<16x32xf32> to vector<16xf32>
    %948 = vector.shape_cast %947 : vector<16xf32> to vector<16x1xf32>
    %cst_391 = arith.constant 3.200000e+01 : f32
    %949 = vector.broadcast %cst_391 : f32 to vector<16x1xf32>
    %950 = arith.divf %948, %949 : vector<16x1xf32>
    %951 = vector.broadcast %943 : vector<16x1xf32> to vector<16x32xf32>
    %952 = arith.subf %939, %951 : vector<16x32xf32>
    %cst_392 = arith.constant 9.99999974E-6 : f32
    %953 = vector.broadcast %cst_392 : f32 to vector<16x1xf32>
    %954 = arith.addf %950, %953 : vector<16x1xf32>
    %955 = math.rsqrt %954 : vector<16x1xf32>
    %956 = vector.broadcast %955 : vector<16x1xf32> to vector<16x32xf32>
    %957 = arith.mulf %952, %956 : vector<16x32xf32>
    %958 = vector.broadcast %936 : vector<1x32xf32> to vector<16x32xf32>
    %959 = arith.mulf %957, %958 : vector<16x32xf32>
    %960 = vector.broadcast %938 : vector<1x32xf32> to vector<16x32xf32>
    %961 = arith.addf %959, %960 : vector<16x32xf32>
    %c0_393 = arith.constant 0 : index
    %c0_394 = arith.constant 0 : index
    %962 = vector.load %arg43[%c0_393, %c0_394] : memref<32x128xf32, #tpu.memory_space<vmem>>, vector<32x128xf32>
    %cst_395 = arith.constant dense<0.000000e+00> : vector<16x128xf32>
    %963 = tpu.matmul %961, %962, %cst_395 {dimension_numbers = #tpu.dot_dimension_numbers<[1], [0], [0], [1], [0, 0, 1, 1], [], []>} : vector<16x32xf32>, vector<32x128xf32>, vector<16x128xf32> -> vector<16x128xf32>
    %c0_396 = arith.constant 0 : index
    %c0_397 = arith.constant 0 : index
    %964 = vector.load %arg44[%c0_396, %c0_397] : memref<1x128xf32, #tpu.memory_space<vmem>>, vector<1x128xf32>
    %965 = vector.broadcast %964 : vector<1x128xf32> to vector<16x128xf32>
    %966 = arith.addf %963, %965 : vector<16x128xf32>
    %c0_398 = arith.constant 0 : index
    %c0_399 = arith.constant 0 : index
    %967 = vector.load %arg45[%c0_398, %c0_399] : memref<16x128xf32, #tpu.memory_space<vmem>>, vector<16x128xf32>
    tpu.vector_store %arg45[%c0_398, %c0_399], %966 {strides = array<i32>} : memref<16x128xf32, #tpu.memory_space<vmem>>, vector<16x128xf32>,
    return
  }
}

</mosaic_0001>

<bundles_post_ra>
// kernel: transformer_forward.1
= control target key start
LH: loop header
LB: loop body
LE: loop exit
PB: predicated region body
PF: predicated region fallthrough
CT: control target
= control target key end

     0   :  { %s14161_s6 = smov 1   ;;  %s14162_s10 = smov 2   ;;  %s16073_s0 = inlined_call_operand.smem [shape: u32[46], index: -1, kind: input, shape index: {}] }
   0x1   :  { %s14258_s5 = sld [smem:[%s16073_s0]]   ;;  %s14163_s14 = smov 3  }
   0x2   :  { %s14263_s9 = sld [smem:[%s16073_s0 + %s14161_s6]]   ;;  %s14164_s18 = smov 4  }
   0x3   :  { %s14268_s13 = sld [smem:[%s16073_s0 + %s14162_s10]]   ;;  %s14165_s22 = smov 5  }
   0x4   :  { %s14273_s17 = sld [smem:[%s16073_s0 + %s14163_s14]]   ;;  %s14166_s26 = smov 6  }
   0x5   :  { %s14278_s21 = sld [smem:[%s16073_s0 + %s14164_s18]]   ;;  %s14167_s30 = smov 7  }
   0x6   :  { %s14283_s25 = sld [smem:[%s16073_s0 + %s14165_s22]]   ;;  %s14168_s4 = smov 8  }
   0x7   :  { %16102 = sst [smem:[#allocation53_spill]] %s14258_s5  ;;  %s14169_s10 = smov 9  }
   0x8   :  { %16103 = sst [smem:[#allocation54_spill]] %s14263_s9  ;;  %s14170_s15 = smov 10  }
   0x9   :  { %16104 = sst [smem:[#allocation55_spill]] %s14268_s13  ;;  %s14171_s20 = smov 11  }
   0xa   :  { %16105 = sst [smem:[#allocation56_spill]] %s14273_s17  ;;  %s14173_s1 = smov 13  }
   0xb   :  { %s14288_s29 = sld [smem:[%s16073_s0 + %s14166_s26]]   ;;  %s14172_s26 = smov 12  }
   0xc   :  { %16106 = sst [smem:[#allocation57_spill]] %s14283_s25  ;;  %s14174_s7 = smov 14  }
   0xd   :  { %s14293_s3 = sld [smem:[%s16073_s0 + %s14167_s30]]   ;;  %s14176_s22 = smov 16  }
   0xe   :  { %s14298_s8 = sld [smem:[%s16073_s0 + %s14168_s4]]   ;;  %s14177_s28 = smov 17  }
   0xf   :  { %s14303_s14 = sld [smem:[%s16073_s0 + %s14169_s10]]  }
  0x10   :  { %s14308_s19 = sld [smem:[%s16073_s0 + %s14170_s15]]   ;;  %s14175_s15 = smov 15  }
  0x11   :  { %16107 = sst [smem:[#allocation58_spill]] %s14288_s29 }
  0x12   :  { %s14313_s24 = sld [smem:[%s16073_s0 + %s14171_s20]]  }
  0x13   :  { %16108 = sst [smem:[#allocation59_spill]] %s14293_s3 }
  0x14   :  { %16109 = sst [smem:[#allocation60_spill]] %s14298_s8 }
  0x15   :  { %16110 = sst [smem:[#allocation61_spill]] %s14303_s14 }
  0x16   :  { %16111 = sst [smem:[#allocation62_spill]] %s14308_s19 }
  0x17   :  { %s14318_s30 = sld [smem:[%s16073_s0 + %s14172_s26]]  }
  0x18   :  { %16112 = sst [smem:[#allocation63_spill]] %s14313_s24 }
  0x19   :  { %s14323_s6 = sld [smem:[%s16073_s0 + %s14173_s1]]  }
  0x1a   :  { %s14328_s12 = sld [smem:[%s16073_s0 + %s14174_s7]]   ;;  %s14178_s7 = smov 18  }
  0x1b   :  { %s14333_s20 = sld [smem:[%s16073_s0 + %s14175_s15]]   ;;  %s14179_s15 = smov 19  }
  0x1c   :  { %s14338_s27 = sld [smem:[%s16073_s0 + %s14176_s22]]   ;;  %s14180_s22 = smov 20  }
  0x1d   :  { %s14343_s4 = sld [smem:[%s16073_s0 + %s14177_s28]]   ;;  %s14181_s28 = smov 21  }
  0x1e   :  { %s14348_s19 = sld [smem:[%s16073_s0 + %s14178_s7]]   ;;  %s14182_s7 = smov 22  }
  0x1f   :  { %16113 = sst [smem:[#allocation64_spill]] %s14323_s6 }
  0x20   :  { %s14353_s14 = sld [smem:[%s16073_s0 + %s14179_s15]]   ;;  %s14183_s15 = smov 23  }
  0x21   :  { %s14358_s8 = sld [smem:[%s16073_s0 + %s14180_s22]]   ;;  %s14184_s22 = smov 24  }
  0x22   :  { %s14363_s3 = sld [smem:[%s16073_s0 + %s14181_s28]]   ;;  %s14185_s28 = smov 25  }
  0x23   :  { %16114 = sst [smem:[#allocation65_spill]] %s14343_s4 }
  0x24   :  { %s14368_s4 = sld [smem:[%s16073_s0 + %s14182_s7]]   ;;  %s14186_s7 = smov 26  }
  0x25   :  { %s14378_s6 = sld [smem:[%s16073_s0 + %s14184_s22]]   ;;  %s14188_s22 = smov 28  }
  0x26   :  { %16115 = sst [smem:[#allocation66_spill]] %s14353_s14 }
  0x27   :  { %16116 = sst [smem:[#allocation67_spill]] %s14358_s8 }
  0x28   :  { %s14373_s14 = sld [smem:[%s16073_s0 + %s14183_s15]]   ;;  %s14187_s15 = smov 27  }
  0x29   :  { %s14383_s29 = sld [smem:[%s16073_s0 + %s14185_s28]]   ;;  %s14189_s28 = smov 29  }
  0x2a   :  { %16117 = sst [smem:[#allocation68_spill]] %s14368_s4 }
  0x2b   :  { %s14388_s25 = sld [smem:[%s16073_s0 + %s14186_s7]]   ;;  %s14190_s7 = smov 30  }
  0x2c   :  { %s14398_s17 = sld [smem:[%s16073_s0 + %s14188_s22]]   ;;  %s14192_s22 = smov 32  }
  0x2d   :  { %s14408_s9 = sld [smem:[%s16073_s0 + %s14190_s7]]   ;;  %s14194_s7 = smov 34  }
  0x2e   :  { %16118 = sst [smem:[#allocation69_spill]] %s14373_s14 }
  0x2f   :  { %16119 = sst [smem:[#allocation70_spill]] %s14383_s29 }
  0x30   :  { %s14393_s14 = sld [smem:[%s16073_s0 + %s14187_s15]]   ;;  %s14191_s15 = smov 31  }
  0x31   :  { %16120 = sst [smem:[#allocation71_spill]] %s14388_s25 }
  0x32   :  { %s14403_s29 = sld [smem:[%s16073_s0 + %s14189_s28]]   ;;  %s14193_s28 = smov 33  }
  0x33   :  { %s14418_s24 = sld [smem:[%s16073_s0 + %s14192_s22]]   ;;  %s14196_s22 = smov 36  }
  0x34   :  { %s14423_s13 = sld [smem:[%s16073_s0 + %s14193_s28]]   ;;  %s14197_s28 = smov 37  }
  0x35   :  { %s14428_s5 = sld [smem:[%s16073_s0 + %s14194_s7]]   ;;  %s14198_s7 = smov 38  }
  0x36   :  { %16121 = sst [smem:[#allocation72_spill]] %s14393_s14 }
  0x37   :  { %s14413_s14 = sld [smem:[%s16073_s0 + %s14191_s15]]   ;;  %s14195_s15 = smov 35  }
  0x38   :  { %16122 = sst [smem:[#allocation73_spill]] %s14403_s29 }
  0x39   :  { %s14438_s29 = sld [smem:[%s16073_s0 + %s14196_s22]]   ;;  %s14200_s22 = smov 40  }
  0x3a   :  { %16124 = sst [smem:[#allocation75_spill]] %s14423_s13 }
  0x3b   :  { %16125 = sst [smem:[#allocation76_spill]] %s14428_s5 }
  0x3c   :  { %s14443_s13 = sld [smem:[%s16073_s0 + %s14197_s28]]   ;;  %s14201_s28 = smov 41  }
  0x3d   :  { %16123 = sst [smem:[#allocation74_spill]] %s14413_s14 }
  0x3e   :  { %s14433_s14 = sld [smem:[%s16073_s0 + %s14195_s15]]   ;;  %s14199_s15 = smov 39  }
  0x3f   :  { %s14448_s5 = sld [smem:[%s16073_s0 + %s14198_s7]]   ;;  %s14202_s7 = smov 42  }
  0x40   :  { %s14458_s25 = sld [smem:[%s16073_s0 + %s14200_s22]]   ;;  %s14204_s22 = smov 44  }
  0x41   :  { %s14468_s4 = sld [smem:[%s16073_s0 + %s14202_s7]]  }
  0x42   :  { %16127 = sst [smem:[#allocation78_spill]] %s14443_s13 }
  0x43   :  { %s14463_s13 = sld [smem:[%s16073_s0 + %s14201_s28]]   ;;  %s14205_s28 = smov 45  }
  0x44   :  { %16126 = sst [smem:[#allocation77_spill]] %s14433_s14 }
  0x45   :  { %s14453_s14 = sld [smem:[%s16073_s0 + %s14199_s15]]   ;;  %s14203_s15 = smov 43  }
  0x46   :  { %s14478_s8 = sld [smem:[%s16073_s0 + %s14204_s22]]  }
  0x49   :  { %16129 = sst [smem:[#allocation80_spill]] %s14463_s13 }
  0x4a   :  { %s14483_s13 = sld [smem:[%s16073_s0 + %s14205_s28]]  }
  0x4b   :  { %16128 = sst [smem:[#allocation79_spill]] %s14453_s14 }
  0x4c   :  { %s14473_s14 = sld [smem:[%s16073_s0 + %s14203_s15]]  }
  0x4d   :  { %96 = vsyncpa [#allocation3], 0 }
  0x4e   :  { %97 = vsyncpa [#allocation5], 0 }
  0x4f   :  { %98 = vsyncpa [#allocation8], 0 }
  0x50   :  { %99 = vsyncpa [#allocation11], 0 }
  0x51   :  { %100 = vsyncpa [#allocation14], 0 }
  0x52   :  { %101 = vsyncpa [#allocation17], 0 }
  0x53   :  { %102 = vsyncpa [#allocation20], 0 }
  0x54   :  { %103 = vsyncpa [#allocation23], 0 }
  0x55   :  { %104 = vsyncpa [#allocation26], 0 }
  0x56   :  { %105 = vsyncpa [#allocation29], 0 }
  0x57   :  { %106 = vsyncpa [#allocation32], 0 }
  0x58   :  { %107 = vsyncpa [#allocation35], 0 }
  0x59   :  { %108 = vsyncpa [#allocation38], 0  ;;  %s14206_s7 = smov [#allocation4]   ;;  %s13585_s0 = scalar_lea.hbm %s14318_s30, 32 }
  0x5a   :  { %s148_s10 = sshll.u32 %s14206_s7, 4  ;;  %p13586_p0 = scmp.ne.s32.totalorder %s14318_s30, %s13585_s0  ;;  %s149_s10 = int_to_ptr.vmem [resolvable:$true] %s148_s10 }
  0x5b   :  { %p13589_p1 = scmp.lt.u32.totalorder %s13585_s0, %s14318_s30 }
  0x5d   :  { %p13591_p2 = pnand %p13589_p1, %p13586_p0 }
  0x5f   :  { %13594 = shalt.err (!%p13591_p2)
}
  0x60   :  { %s13595_s11 = scalar_lea.vmem %s149_s10, 32  ;;  %p13600_p4 = scmp.lt.s32.totalorder %s149_s10, %s149_s10 }
  0x61   :  { %p13596_p3 = scmp.ne.s32.totalorder %s149_s10, %s13595_s11  ;;  %p13601_p5 = scmp.lt.s32.totalorder %s13595_s11, %s13595_s11 }
  0x63   :  { %p13602_p6 = por %p13601_p5, %p13600_p4 }
  0x65   :  { %p13603_p7 = pnand %p13602_p6, %p13596_p3 }
  0x67   :  { %13606 = shalt.err (!%p13603_p7)
}
  0x68   :  { %s14207_s15 = smov 16   ;;  %s14208_s16 = smov 1  }
  0x69   :  { %154 = dma.hbm_to_vmem [thread:$0]  %s14318_s30, 32, %s149_s10, [#allocation5], %s14207_s15, %s14207_s15, %s14208_s16  }
  0x6a   :  { %s14209_s18 = smov [#allocation7]   ;;  %s14210_s23 = smov [#allocation10]  }
  0x6b   :  { %s174_s22 = sshll.u32 %s14209_s18, 4  ;;  %s200_s26 = sshll.u32 %s14210_s23, 4  ;;  %s175_s22 = int_to_ptr.vmem [resolvable:$true] %s174_s22  ;;  %s201_s26 = int_to_ptr.vmem [resolvable:$true] %s200_s26 }
  0x6c   :  { %s13607_s28 = scalar_lea.hbm %s14333_s20, 32 }
  0x6d   :  { %p13608_p8 = scmp.ne.s32.totalorder %s14333_s20, %s13607_s28  ;;  %p13611_p9 = scmp.lt.u32.totalorder %s13607_s28, %s14333_s20 }
  0x6f   :  { %p13613_p10 = pnand %p13611_p9, %p13608_p8 }
  0x71   :  { %13616 = shalt.err (!%p13613_p10)
}
  0x72   :  { %s13617_s1 = scalar_lea.vmem %s175_s22, 32  ;;  %p13622_p12 = scmp.lt.s32.totalorder %s175_s22, %s175_s22 }
  0x73   :  { %p13618_p11 = scmp.ne.s32.totalorder %s175_s22, %s13617_s1  ;;  %p13623_p13 = scmp.lt.s32.totalorder %s13617_s1, %s13617_s1 }
  0x75   :  { %p13624_p0 = por %p13623_p13, %p13622_p12 }
  0x77   :  { %p13625_p1 = pnand %p13624_p0, %p13618_p11 }
  0x79   :  { %13628 = shalt.err (!%p13625_p1)
}
  0x7a   :  { %180 = dma.hbm_to_vmem [thread:$0]  %s14333_s20, 32, %s175_s22, [#allocation8], %s14207_s15, %s14207_s15, %s14208_s16  }
  0x7b   :  { %s13629_s30 = scalar_lea.hbm %s14348_s19, 32 }
  0x7c   :  { %p13630_p2 = scmp.ne.s32.totalorder %s14348_s19, %s13629_s30  ;;  %p13633_p3 = scmp.lt.u32.totalorder %s13629_s30, %s14348_s19 }
  0x7e   :  { %p13635_p4 = pnand %p13633_p3, %p13630_p2 }
  0x80   :  { %13638 = shalt.err (!%p13635_p4)
}
  0x81   :  { %s13639_s2 = scalar_lea.vmem %s201_s26, 32  ;;  %p13644_p6 = scmp.lt.s32.totalorder %s201_s26, %s201_s26 }
  0x82   :  { %p13640_p5 = scmp.ne.s32.totalorder %s201_s26, %s13639_s2  ;;  %p13645_p7 = scmp.lt.s32.totalorder %s13639_s2, %s13639_s2 }
  0x84   :  { %p13646_p8 = por %p13645_p7, %p13644_p6 }
  0x86   :  { %p13647_p9 = pnand %p13646_p8, %p13640_p5 }
  0x88   :  { %13650 = shalt.err (!%p13647_p9)
}
  0x89   :  { %206 = dma.hbm_to_vmem [thread:$0]  %s14348_s19, 32, %s201_s26, [#allocation11], %s14207_s15, %s14207_s15, %s14208_s16  }
  0x8a   :  { %s14211_s20 = smov [#allocation13]   ;;  %s14212_s10 = smov [#allocation16]  }
  0x8b   :  { %s226_s7 = sshll.u32 %s14211_s20, 4  ;;  %s252_s0 = sshll.u32 %s14212_s10, 4  ;;  %s227_s7 = int_to_ptr.vmem [resolvable:$true] %s226_s7  ;;  %s253_s0 = int_to_ptr.vmem [resolvable:$true] %s252_s0 }
  0x8c   :  { %s13651_s11 = scalar_lea.hbm %s14363_s3, 32 }
  0x8d   :  { %p13652_p10 = scmp.ne.s32.totalorder %s14363_s3, %s13651_s11  ;;  %p13655_p11 = scmp.lt.u32.totalorder %s13651_s11, %s14363_s3 }
  0x8f   :  { %p13657_p12 = pnand %p13655_p11, %p13652_p10 }
  0x91   :  { %13660 = shalt.err (!%p13657_p12)
}
  0x92   :  { %s13661_s18 = scalar_lea.vmem %s227_s7, 32  ;;  %p13666_p0 = scmp.lt.s32.totalorder %s227_s7, %s227_s7 }
  0x93   :  { %p13662_p13 = scmp.ne.s32.totalorder %s227_s7, %s13661_s18  ;;  %p13667_p1 = scmp.lt.s32.totalorder %s13661_s18, %s13661_s18 }
  0x95   :  { %p13668_p2 = por %p13667_p1, %p13666_p0 }
  0x97   :  { %p13669_p3 = pnand %p13668_p2, %p13662_p13 }
  0x99   :  { %13672 = shalt.err (!%p13669_p3)
}
  0x9a   :  { %232 = dma.hbm_to_vmem [thread:$0]  %s14363_s3, 32, %s227_s7, [#allocation14], %s14207_s15, %s14207_s15, %s14208_s16  }
  0x9b   :  { %s13673_s19 = scalar_lea.hbm %s14378_s6, 32 }
  0x9c   :  { %p13674_p4 = scmp.ne.s32.totalorder %s14378_s6, %s13673_s19  ;;  %p13677_p5 = scmp.lt.u32.totalorder %s13673_s19, %s14378_s6 }
  0x9e   :  { %p13679_p6 = pnand %p13677_p5, %p13674_p4 }
  0xa0   :  { %13682 = shalt.err (!%p13679_p6)
}
  0xa1   :  { %s13683_s22 = scalar_lea.vmem %s253_s0, 32  ;;  %p13688_p8 = scmp.lt.s32.totalorder %s253_s0, %s253_s0 }
  0xa2   :  { %p13684_p7 = scmp.ne.s32.totalorder %s253_s0, %s13683_s22  ;;  %p13689_p9 = scmp.lt.s32.totalorder %s13683_s22, %s13683_s22 }
  0xa4   :  { %p13690_p10 = por %p13689_p9, %p13688_p8 }
  0xa6   :  { %p13691_p11 = pnand %p13690_p10, %p13684_p7 }
  0xa8   :  { %13694 = shalt.err (!%p13691_p11)
}
  0xa9   :  { %258 = dma.hbm_to_vmem [thread:$0]  %s14378_s6, 32, %s253_s0, [#allocation17], %s14207_s15, %s14207_s15, %s14208_s16  }
  0xaa   :  { %s14213_s3 = smov [#allocation19]   ;;  %s14214_s26 = smov [#allocation22]  }
  0xab   :  { %s280_s23 = sshll.u32 %s14213_s3, 4  ;;  %s304_s28 = sshll.u32 %s14214_s26, 4  ;;  %s281_s23 = int_to_ptr.vmem [resolvable:$true] %s280_s23  ;;  %s305_s28 = int_to_ptr.vmem [resolvable:$true] %s304_s28 }
  0xac   :  { %s13695_s1 = scalar_lea.hbm %s14398_s17, 32 }
  0xad   :  { %p13696_p12 = scmp.ne.s32.totalorder %s14398_s17, %s13695_s1  ;;  %p13699_p13 = scmp.lt.u32.totalorder %s13695_s1, %s14398_s17 }
  0xaf   :  { %p13701_p0 = pnand %p13699_p13, %p13696_p12 }
  0xb1   :  { %13704 = shalt.err (!%p13701_p0)
}
  0xb2   :  { %s13705_s30 = scalar_lea.vmem %s281_s23, 32  ;;  %p13710_p2 = scmp.lt.s32.totalorder %s281_s23, %s281_s23 }
  0xb3   :  { %p13706_p1 = scmp.ne.s32.totalorder %s281_s23, %s13705_s30  ;;  %p13711_p3 = scmp.lt.s32.totalorder %s13705_s30, %s13705_s30 }
  0xb5   :  { %p13712_p4 = por %p13711_p3, %p13710_p2 }
  0xb7   :  { %p13713_p5 = pnand %p13712_p4, %p13706_p1 }
  0xb9   :  { %13716 = shalt.err (!%p13713_p5)
}
  0xba   :  { %286 = dma.hbm_to_vmem [thread:$0]  %s14398_s17, 32, %s281_s23, [#allocation20], %s14207_s15, %s14207_s15, %s14208_s16  }
  0xbb   :  { %s13717_s6 = scalar_lea.hbm %s14408_s9, 32 }
  0xbc   :  { %p13718_p6 = scmp.ne.s32.totalorder %s14408_s9, %s13717_s6  ;;  %p13721_p7 = scmp.lt.u32.totalorder %s13717_s6, %s14408_s9 }
  0xbe   :  { %p13723_p8 = pnand %p13721_p7, %p13718_p6 }
  0xc0   :  { %13726 = shalt.err (!%p13723_p8)
}
  0xc1   :  { %s13727_s2 = scalar_lea.vmem %s305_s28, 32  ;;  %p13732_p10 = scmp.lt.s32.totalorder %s305_s28, %s305_s28 }
  0xc2   :  { %p13728_p9 = scmp.ne.s32.totalorder %s305_s28, %s13727_s2  ;;  %p13733_p11 = scmp.lt.s32.totalorder %s13727_s2, %s13727_s2 }
  0xc4   :  { %p13734_p12 = por %p13733_p11, %p13732_p10 }
  0xc6   :  { %p13735_p13 = pnand %p13734_p12, %p13728_p9 }
  0xc8   :  { %13738 = shalt.err (!%p13735_p13)
}
  0xc9   :  { %310 = dma.hbm_to_vmem [thread:$0]  %s14408_s9, 32, %s305_s28, [#allocation23], %s14207_s15, %s14207_s15, %s14208_s16  }
  0xca   :  { %s14215_s17 = smov [#allocation25]   ;;  %s14216_s7 = smov [#allocation28]  }
  0xcb   :  { %s328_s20 = sshll.u32 %s14215_s17, 4  ;;  %s356_s10 = sshll.u32 %s14216_s7, 4  ;;  %s329_s20 = int_to_ptr.vmem [resolvable:$true] %s328_s20  ;;  %s357_s10 = int_to_ptr.vmem [resolvable:$true] %s356_s10 }
  0xcc   :  { %s13739_s0 = scalar_lea.hbm %s14418_s24, 32 }
  0xcd   :  { %p13740_p0 = scmp.ne.s32.totalorder %s14418_s24, %s13739_s0  ;;  %p13743_p1 = scmp.lt.u32.totalorder %s13739_s0, %s14418_s24 }
  0xcf   :  { %p13745_p2 = pnand %p13743_p1, %p13740_p0 }
  0xd1   :  { %13748 = shalt.err (!%p13745_p2)
}
  0xd2   :  { %s13749_s11 = scalar_lea.vmem %s329_s20, 32  ;;  %p13754_p4 = scmp.lt.s32.totalorder %s329_s20, %s329_s20 }
  0xd3   :  { %p13750_p3 = scmp.ne.s32.totalorder %s329_s20, %s13749_s11  ;;  %p13755_p5 = scmp.lt.s32.totalorder %s13749_s11, %s13749_s11 }
  0xd5   :  { %p13756_p6 = por %p13755_p5, %p13754_p4 }
  0xd7   :  { %p13757_p7 = pnand %p13756_p6, %p13750_p3 }
  0xd9   :  { %13760 = shalt.err (!%p13757_p7)
}
  0xda   :  { %334 = dma.hbm_to_vmem [thread:$0]  %s14418_s24, 32, %s329_s20, [#allocation26], %s14207_s15, %s14207_s15, %s14208_s16  }
  0xdb   :  { %s13761_s9 = scalar_lea.hbm %s14438_s29, 32 }
  0xdc   :  { %p13762_p8 = scmp.ne.s32.totalorder %s14438_s29, %s13761_s9  ;;  %p13765_p9 = scmp.lt.u32.totalorder %s13761_s9, %s14438_s29 }
  0xde   :  { %p13767_p10 = pnand %p13765_p9, %p13762_p8 }
  0xe0   :  { %13770 = shalt.err (!%p13767_p10)
}
  0xe1   :  { %s13771_s18 = scalar_lea.vmem %s357_s10, 32  ;;  %p13776_p12 = scmp.lt.s32.totalorder %s357_s10, %s357_s10 }
  0xe2   :  { %p13772_p11 = scmp.ne.s32.totalorder %s357_s10, %s13771_s18  ;;  %p13777_p13 = scmp.lt.s32.totalorder %s13771_s18, %s13771_s18 }
  0xe4   :  { %p13778_p0 = por %p13777_p13, %p13776_p12 }
  0xe6   :  { %p13779_p1 = pnand %p13778_p0, %p13772_p11 }
  0xe8   :  { %13782 = shalt.err (!%p13779_p1)
}
  0xe9   :  { %362 = dma.hbm_to_vmem [thread:$0]  %s14438_s29, 32, %s357_s10, [#allocation29], %s14207_s15, %s14207_s15, %s14208_s16  }
  0xea   :  { %s14217_s24 = smov [#allocation31]   ;;  %s14218_s22 = smov [#allocation34]  }
  0xeb   :  { %s380_s19 = sshll.u32 %s14217_s24, 4  ;;  %s404_s3 = sshll.u32 %s14218_s22, 4  ;;  %s381_s19 = int_to_ptr.vmem [resolvable:$true] %s380_s19  ;;  %s405_s3 = int_to_ptr.vmem [resolvable:$true] %s404_s3 }
  0xec   :  { %s13783_s23 = scalar_lea.hbm %s14448_s5, 32 }
  0xed   :  { %p13784_p2 = scmp.ne.s32.totalorder %s14448_s5, %s13783_s23  ;;  %p13787_p3 = scmp.lt.u32.totalorder %s13783_s23, %s14448_s5 }
  0xef   :  { %p13789_p4 = pnand %p13787_p3, %p13784_p2 }
  0xf1   :  { %13792 = shalt.err (!%p13789_p4)
}
  0xf2   :  { %s13793_s26 = scalar_lea.vmem %s381_s19, 32  ;;  %p13798_p6 = scmp.lt.s32.totalorder %s381_s19, %s381_s19 }
  0xf3   :  { %p13794_p5 = scmp.ne.s32.totalorder %s381_s19, %s13793_s26  ;;  %p13799_p7 = scmp.lt.s32.totalorder %s13793_s26, %s13793_s26 }
  0xf5   :  { %p13800_p8 = por %p13799_p7, %p13798_p6 }
  0xf7   :  { %p13801_p9 = pnand %p13800_p8, %p13794_p5 }
  0xf9   :  { %13804 = shalt.err (!%p13801_p9)
}
  0xfa   :  { %386 = dma.hbm_to_vmem [thread:$0]  %s14448_s5, 32, %s381_s19, [#allocation32], %s14207_s15, %s14207_s15, %s14208_s16  }
  0xfb   :  { %s13805_s29 = scalar_lea.hbm %s14458_s25, 32 }
  0xfc   :  { %p13806_p10 = scmp.ne.s32.totalorder %s14458_s25, %s13805_s29  ;;  %p13809_p11 = scmp.lt.u32.totalorder %s13805_s29, %s14458_s25 }
  0xfe   :  { %p13811_p12 = pnand %p13809_p11, %p13806_p10 }
 0x100   :  { %13814 = shalt.err (!%p13811_p12)
}
 0x101   :  { %s13815_s28 = scalar_lea.vmem %s405_s3, 32  ;;  %p13820_p0 = scmp.lt.s32.totalorder %s405_s3, %s405_s3 }
 0x102   :  { %p13816_p13 = scmp.ne.s32.totalorder %s405_s3, %s13815_s28  ;;  %p13821_p1 = scmp.lt.s32.totalorder %s13815_s28, %s13815_s28 }
 0x104   :  { %p13822_p2 = por %p13821_p1, %p13820_p0 }
 0x106   :  { %p13823_p3 = pnand %p13822_p2, %p13816_p13 }
 0x108   :  { %13826 = shalt.err (!%p13823_p3)
}
 0x109   :  { %410 = dma.hbm_to_vmem [thread:$0]  %s14458_s25, 32, %s405_s3, [#allocation35], %s14207_s15, %s14207_s15, %s14208_s16  }
 0x10a   :  { %s14219_s5 = smov [#allocation37]   ;;  %s14220_s30 = smov [#allocation2]  }
 0x10b   :  { %s428_s1 = sshll.u32 %s14219_s5, 4  ;;  %s122_s6 = sshll.u32 %s14220_s30, 4  ;;  %s429_s1 = int_to_ptr.vmem [resolvable:$true] %s428_s1  ;;  %s123_s6 = int_to_ptr.vmem [resolvable:$true] %s122_s6 }
 0x10c   :  { %s13827_s2 = scalar_lea.hbm %s14468_s4, 32 }
 0x10d   :  { %p13828_p4 = scmp.ne.s32.totalorder %s14468_s4, %s13827_s2  ;;  %p13831_p5 = scmp.lt.u32.totalorder %s13827_s2, %s14468_s4 }
 0x10f   :  { %p13833_p6 = pnand %p13831_p5, %p13828_p4 }
 0x111   :  { %13836 = shalt.err (!%p13833_p6)
}
 0x112   :  { %s13837_s17 = scalar_lea.vmem %s429_s1, 32  ;;  %p13842_p8 = scmp.lt.s32.totalorder %s429_s1, %s429_s1 }
 0x113   :  { %p13838_p7 = scmp.ne.s32.totalorder %s429_s1, %s13837_s17  ;;  %p13843_p9 = scmp.lt.s32.totalorder %s13837_s17, %s13837_s17 }
 0x115   :  { %p13844_p10 = por %p13843_p9, %p13842_p8 }
 0x117   :  { %p13845_p11 = pnand %p13844_p10, %p13838_p7 }
 0x119   :  { %13848 = shalt.err (!%p13845_p11)
}
 0x11a   :  { %434 = dma.hbm_to_vmem [thread:$0]  %s14468_s4, 32, %s429_s1, [#allocation38], %s14207_s15, %s14207_s15, %s14208_s16  }
 0x11b   :  { %s13849_s25 = scalar_lea.hbm %s14278_s21, 256 }
 0x11c   :  { %p13850_p12 = scmp.ne.s32.totalorder %s14278_s21, %s13849_s25  ;;  %p13853_p13 = scmp.lt.u32.totalorder %s13849_s25, %s14278_s21 }
 0x11e   :  { %p13855_p0 = pnand %p13853_p13, %p13850_p12 }
 0x120   :  { %13858 = shalt.err (!%p13855_p0)
}
 0x121   :  { %s13859_s20 = scalar_lea.vmem %s123_s6, 256  ;;  %p13864_p2 = scmp.lt.s32.totalorder %s123_s6, %s123_s6 }
 0x122   :  { %p13860_p1 = scmp.ne.s32.totalorder %s123_s6, %s13859_s20  ;;  %p13865_p3 = scmp.lt.s32.totalorder %s13859_s20, %s13859_s20 }
 0x124   :  { %p13866_p4 = por %p13865_p3, %p13864_p2 }
 0x126   :  { %p13867_p5 = pnand %p13866_p4, %p13860_p1 }
 0x128   :  { %13870 = shalt.err (!%p13867_p5)
}
 0x129   :  { %s14221_s7 = smov 128   ;;  %s14222_s10 = smov 8  }
 0x12a   :  { %128 = dma.hbm_to_vmem [thread:$0]  %s14278_s21, 256, %s123_s6, [#allocation3], %s14221_s7, %s14221_s7, %s14222_s10  }
 0x12b   :  { %s14223_s4 = smov [#allocation6]   ;;  %s14224_s11 = smov [#allocation9]  }
 0x12c   :  { %s162_s0 = sshll.u32 %s14223_s4, 4  ;;  %s186_s9 = sshll.u32 %s14224_s11, 4  ;;  %s163_s0 = int_to_ptr.vmem [resolvable:$true] %s162_s0  ;;  %s187_s9 = int_to_ptr.vmem [resolvable:$true] %s186_s9 }
 0x12d   :  { %s13871_s18 = scalar_lea.hbm %s14328_s12, 32 }
 0x12e   :  { %p13872_p6 = scmp.ne.s32.totalorder %s14328_s12, %s13871_s18  ;;  %p13875_p7 = scmp.lt.u32.totalorder %s13871_s18, %s14328_s12 }
 0x130   :  { %p13877_p8 = pnand %p13875_p7, %p13872_p6 }
 0x132   :  { %13880 = shalt.err (!%p13877_p8)
}
 0x133   :  { %s13881_s24 = scalar_lea.vmem %s163_s0, 32  ;;  %p13886_p10 = scmp.lt.s32.totalorder %s163_s0, %s163_s0 }
 0x134   :  { %p13882_p9 = scmp.ne.s32.totalorder %s163_s0, %s13881_s24  ;;  %p13887_p11 = scmp.lt.s32.totalorder %s13881_s24, %s13881_s24 }
 0x136   :  { %p13888_p12 = por %p13887_p11, %p13886_p10 }
 0x138   :  { %p13889_p13 = pnand %p13888_p12, %p13882_p9 }
 0x13a   :  { %13892 = shalt.err (!%p13889_p13)
}
 0x13b   :  { %168 = dma.hbm_to_vmem [thread:$0]  %s14328_s12, 32, %s163_s0, [#allocation5], %s14207_s15, %s14207_s15, %s14208_s16  }
 0x13c   :  { %s13893_s21 = scalar_lea.hbm %s14338_s27, 32 }
 0x13d   :  { %p13894_p0 = scmp.ne.s32.totalorder %s14338_s27, %s13893_s21  ;;  %p13897_p1 = scmp.lt.u32.totalorder %s13893_s21, %s14338_s27 }
 0x13f   :  { %p13899_p2 = pnand %p13897_p1, %p13894_p0 }
 0x141   :  { %13902 = shalt.err (!%p13899_p2)
}
 0x142   :  { %s13903_s19 = scalar_lea.vmem %s187_s9, 32  ;;  %p13908_p4 = scmp.lt.s32.totalorder %s187_s9, %s187_s9 }
 0x143   :  { %p13904_p3 = scmp.ne.s32.totalorder %s187_s9, %s13903_s19  ;;  %p13909_p5 = scmp.lt.s32.totalorder %s13903_s19, %s13903_s19 }
 0x145   :  { %p13910_p6 = por %p13909_p5, %p13908_p4 }
 0x147   :  { %p13911_p7 = pnand %p13910_p6, %p13904_p3 }
 0x149   :  { %13914 = shalt.err (!%p13911_p7)
}
 0x14a   :  { %s16130_s22 = sld [smem:[#allocation67_spill]]  ;;  %s14225_s12 = smov [#allocation12]  }
 0x14b   :  { %192 = dma.hbm_to_vmem [thread:$0]  %s14338_s27, 32, %s187_s9, [#allocation8], %s14207_s15, %s14207_s15, %s14208_s16  }
 0x14c   :  { %s214_s3 = sshll.u32 %s14225_s12, 4  ;;  %s14226_s23 = smov [#allocation15]   ;;  %s215_s3 = int_to_ptr.vmem [resolvable:$true] %s214_s3 }
 0x14d   :  { %s238_s26 = sshll.u32 %s14226_s23, 4  ;;  %s239_s26 = int_to_ptr.vmem [resolvable:$true] %s238_s26 }
 0x150   :  { %s13915_s29 = scalar_lea.hbm %s16130_s22, 32 }
 0x151   :  { %p13916_p8 = scmp.ne.s32.totalorder %s16130_s22, %s13915_s29  ;;  %p13919_p9 = scmp.lt.u32.totalorder %s13915_s29, %s16130_s22 }
 0x153   :  { %p13921_p10 = pnand %p13919_p9, %p13916_p8 }
 0x155   :  { %13924 = shalt.err (!%p13921_p10)
}
 0x156   :  { %s13925_s28 = scalar_lea.vmem %s215_s3, 32  ;;  %p13930_p12 = scmp.lt.s32.totalorder %s215_s3, %s215_s3 }
 0x157   :  { %p13926_p11 = scmp.ne.s32.totalorder %s215_s3, %s13925_s28  ;;  %p13931_p13 = scmp.lt.s32.totalorder %s13925_s28, %s13925_s28 }
 0x159   :  { %p13932_p0 = por %p13931_p13, %p13930_p12 }
 0x15b   :  { %p13933_p1 = pnand %p13932_p0, %p13926_p11 }
 0x15d   :  { %13936 = shalt.err (!%p13933_p1)
}
 0x15e   :  { %s16131_s27 = sld [smem:[#allocation68_spill]] }
 0x15f   :  { %220 = dma.hbm_to_vmem [thread:$0]  %s16130_s22, 32, %s215_s3, [#allocation11], %s14207_s15, %s14207_s15, %s14208_s16  }
 0x164   :  { %s13937_s5 = scalar_lea.hbm %s16131_s27, 32 }
 0x165   :  { %p13938_p2 = scmp.ne.s32.totalorder %s16131_s27, %s13937_s5  ;;  %p13941_p3 = scmp.lt.u32.totalorder %s13937_s5, %s16131_s27 }
 0x167   :  { %p13943_p4 = pnand %p13941_p3, %p13938_p2 }
 0x169   :  { %13946 = shalt.err (!%p13943_p4)
}
 0x16a   :  { %s13947_s1 = scalar_lea.vmem %s239_s26, 32  ;;  %p13952_p6 = scmp.lt.s32.totalorder %s239_s26, %s239_s26 }
 0x16b   :  { %p13948_p5 = scmp.ne.s32.totalorder %s239_s26, %s13947_s1  ;;  %p13953_p7 = scmp.lt.s32.totalorder %s13947_s1, %s13947_s1 }
 0x16d   :  { %p13954_p8 = por %p13953_p7, %p13952_p6 }
 0x16f   :  { %p13955_p9 = pnand %p13954_p8, %p13948_p5 }
 0x171   :  { %13958 = shalt.err (!%p13955_p9)
}
 0x172   :  { %s16132_s30 = sld [smem:[#allocation71_spill]]  ;;  %s14227_s6 = smov [#allocation18]  }
 0x173   :  { %244 = dma.hbm_to_vmem [thread:$0]  %s16131_s27, 32, %s239_s26, [#allocation14], %s14207_s15, %s14207_s15, %s14208_s16  }
 0x174   :  { %s266_s2 = sshll.u32 %s14227_s6, 4  ;;  %s14228_s17 = smov [#allocation21]   ;;  %s267_s2 = int_to_ptr.vmem [resolvable:$true] %s266_s2 }
 0x175   :  { %s292_s25 = sshll.u32 %s14228_s17, 4  ;;  %s293_s25 = int_to_ptr.vmem [resolvable:$true] %s292_s25 }
 0x178   :  { %s13959_s20 = scalar_lea.hbm %s16132_s30, 32 }
 0x179   :  { %p13960_p10 = scmp.ne.s32.totalorder %s16132_s30, %s13959_s20  ;;  %p13963_p11 = scmp.lt.u32.totalorder %s13959_s20, %s16132_s30 }
 0x17b   :  { %p13965_p12 = pnand %p13963_p11, %p13960_p10 }
 0x17d   :  { %13968 = shalt.err (!%p13965_p12)
}
 0x17e   :  { %s13969_s4 = scalar_lea.vmem %s267_s2, 32  ;;  %p13974_p0 = scmp.lt.s32.totalorder %s267_s2, %s267_s2 }
 0x17f   :  { %p13970_p13 = scmp.ne.s32.totalorder %s267_s2, %s13969_s4  ;;  %p13975_p1 = scmp.lt.s32.totalorder %s13969_s4, %s13969_s4 }
 0x181   :  { %p13976_p2 = por %p13975_p1, %p13974_p0 }
 0x183   :  { %p13977_p3 = pnand %p13976_p2, %p13970_p13 }
 0x185   :  { %13980 = shalt.err (!%p13977_p3)
}
 0x186   :  { %s16133_s0 = sld [smem:[#allocation73_spill]] }
 0x187   :  { %272 = dma.hbm_to_vmem [thread:$0]  %s16132_s30, 32, %s267_s2, [#allocation17], %s14207_s15, %s14207_s15, %s14208_s16  }
 0x18c   :  { %s13981_s11 = scalar_lea.hbm %s16133_s0, 1024 }
 0x18d   :  { %p13982_p4 = scmp.ne.s32.totalorder %s16133_s0, %s13981_s11  ;;  %p13985_p5 = scmp.lt.u32.totalorder %s13981_s11, %s16133_s0 }
 0x18f   :  { %p13987_p6 = pnand %p13985_p5, %p13982_p4 }
 0x191   :  { %13990 = shalt.err (!%p13987_p6)
}
 0x192   :  { %s13991_s9 = scalar_lea.vmem %s293_s25, 1024  ;;  %p13996_p8 = scmp.lt.s32.totalorder %s293_s25, %s293_s25 }
 0x193   :  { %p13992_p7 = scmp.ne.s32.totalorder %s293_s25, %s13991_s9  ;;  %p13997_p9 = scmp.lt.s32.totalorder %s13991_s9, %s13991_s9 }
 0x195   :  { %p13998_p10 = por %p13997_p9, %p13996_p8 }
 0x197   :  { %p13999_p11 = pnand %p13998_p10, %p13992_p7 }
 0x199   :  { %14002 = shalt.err (!%p13999_p11)
}
 0x19a   :  { %s16134_s18 = sld [smem:[#allocation74_spill]]  ;;  %s14229_s24 = smov [#allocation24]  }
 0x19b   :  { %298 = dma.hbm_to_vmem [thread:$0]  %s16133_s0, 1024, %s293_s25, [#allocation20], %s14221_s7, %s14221_s7, %s14222_s10  }
 0x19c   :  { %s316_s21 = sshll.u32 %s14229_s24, 4  ;;  %s14230_s19 = smov [#allocation27]   ;;  %s317_s21 = int_to_ptr.vmem [resolvable:$true] %s316_s21 }
 0x19d   :  { %s342_s22 = sshll.u32 %s14230_s19, 4  ;;  %s343_s22 = int_to_ptr.vmem [resolvable:$true] %s342_s22 }
 0x1a0   :  { %s14003_s12 = scalar_lea.hbm %s16134_s18, 1024 }
 0x1a1   :  { %p14004_p12 = scmp.ne.s32.totalorder %s16134_s18, %s14003_s12  ;;  %p14007_p13 = scmp.lt.u32.totalorder %s14003_s12, %s16134_s18 }
 0x1a3   :  { %p14009_p0 = pnand %p14007_p13, %p14004_p12 }
 0x1a5   :  { %14012 = shalt.err (!%p14009_p0)
}
 0x1a6   :  { %s14013_s3 = scalar_lea.vmem %s317_s21, 1024  ;;  %p14018_p2 = scmp.lt.s32.totalorder %s317_s21, %s317_s21 }
 0x1a7   :  { %p14014_p1 = scmp.ne.s32.totalorder %s317_s21, %s14013_s3  ;;  %p14019_p3 = scmp.lt.s32.totalorder %s14013_s3, %s14013_s3 }
 0x1a9   :  { %p14020_p4 = por %p14019_p3, %p14018_p2 }
 0x1ab   :  { %p14021_p5 = pnand %p14020_p4, %p14014_p1 }
 0x1ad   :  { %14024 = shalt.err (!%p14021_p5)
}
 0x1ae   :  { %s16135_s23 = sld [smem:[#allocation76_spill]] }
 0x1af   :  { %322 = dma.hbm_to_vmem [thread:$0]  %s16134_s18, 1024, %s317_s21, [#allocation23], %s14221_s7, %s14221_s7, %s14222_s10  }
 0x1b4   :  { %s14025_s26 = scalar_lea.hbm %s16135_s23, 32 }
 0x1b5   :  { %p14026_p6 = scmp.ne.s32.totalorder %s16135_s23, %s14025_s26  ;;  %p14029_p7 = scmp.lt.u32.totalorder %s14025_s26, %s16135_s23 }
 0x1b7   :  { %p14031_p8 = pnand %p14029_p7, %p14026_p6 }
 0x1b9   :  { %14034 = shalt.err (!%p14031_p8)
}
 0x1ba   :  { %s14035_s29 = scalar_lea.vmem %s343_s22, 32  ;;  %p14040_p10 = scmp.lt.s32.totalorder %s343_s22, %s343_s22 }
 0x1bb   :  { %p14036_p9 = scmp.ne.s32.totalorder %s343_s22, %s14035_s29  ;;  %p14041_p11 = scmp.lt.s32.totalorder %s14035_s29, %s14035_s29 }
 0x1bd   :  { %p14042_p12 = por %p14041_p11, %p14040_p10 }
 0x1bf   :  { %p14043_p13 = pnand %p14042_p12, %p14036_p9 }
 0x1c1   :  { %14046 = shalt.err (!%p14043_p13)
}
 0x1c2   :  { %s16136_s28 = sld [smem:[#allocation78_spill]]  ;;  %s14231_s7 = smov [#allocation30]  }
 0x1c3   :  { %348 = dma.hbm_to_vmem [thread:$0]  %s16135_s23, 32, %s343_s22, [#allocation26], %s14207_s15, %s14207_s15, %s14208_s16  }
 0x1c4   :  { %s368_s27 = sshll.u32 %s14231_s7, 4  ;;  %s14232_s5 = smov [#allocation33]   ;;  %s369_s27 = int_to_ptr.vmem [resolvable:$true] %s368_s27 }
 0x1c5   :  { %s392_s1 = sshll.u32 %s14232_s5, 4  ;;  %s393_s1 = int_to_ptr.vmem [resolvable:$true] %s392_s1 }
 0x1c8   :  { %s14047_s30 = scalar_lea.hbm %s16136_s28, 32 }
 0x1c9   :  { %p14048_p0 = scmp.ne.s32.totalorder %s16136_s28, %s14047_s30  ;;  %p14051_p1 = scmp.lt.u32.totalorder %s14047_s30, %s16136_s28 }
 0x1cb   :  { %p14053_p2 = pnand %p14051_p1, %p14048_p0 }
 0x1cd   :  { %14056 = shalt.err (!%p14053_p2)
}
 0x1ce   :  { %s14057_s6 = scalar_lea.vmem %s369_s27, 32  ;;  %p14062_p4 = scmp.lt.s32.totalorder %s369_s27, %s369_s27 }
 0x1cf   :  { %p14058_p3 = scmp.ne.s32.totalorder %s369_s27, %s14057_s6  ;;  %p14063_p5 = scmp.lt.s32.totalorder %s14057_s6, %s14057_s6 }
 0x1d1   :  { %p14064_p6 = por %p14063_p5, %p14062_p4 }
 0x1d3   :  { %p14065_p7 = pnand %p14064_p6, %p14058_p3 }
 0x1d5   :  { %14068 = shalt.err (!%p14065_p7)
}
 0x1d6   :  { %s16137_s2 = sld [smem:[#allocation79_spill]] }
 0x1d7   :  { %374 = dma.hbm_to_vmem [thread:$0]  %s16136_s28, 32, %s369_s27, [#allocation29], %s14207_s15, %s14207_s15, %s14208_s16  }
 0x1dc   :  { %s14069_s17 = scalar_lea.hbm %s16137_s2, 32 }
 0x1dd   :  { %p14070_p8 = scmp.ne.s32.totalorder %s16137_s2, %s14069_s17  ;;  %p14073_p9 = scmp.lt.u32.totalorder %s14069_s17, %s16137_s2 }
 0x1df   :  { %p14075_p10 = pnand %p14073_p9, %p14070_p8 }
 0x1e1   :  { %14078 = shalt.err (!%p14075_p10)
}
 0x1e2   :  { %s14079_s25 = scalar_lea.vmem %s393_s1, 32  ;;  %p14084_p12 = scmp.lt.s32.totalorder %s393_s1, %s393_s1 }
 0x1e3   :  { %p14080_p11 = scmp.ne.s32.totalorder %s393_s1, %s14079_s25  ;;  %p14085_p13 = scmp.lt.s32.totalorder %s14079_s25, %s14079_s25 }
 0x1e5   :  { %p14086_p0 = por %p14085_p13, %p14084_p12 }
 0x1e7   :  { %p14087_p1 = pnand %p14086_p0, %p14080_p11 }
 0x1e9   :  { %14090 = shalt.err (!%p14087_p1)
}
 0x1ea   :  { %s16138_s20 = sld [smem:[#allocation80_spill]]  ;;  %s14233_s4 = smov [#allocation36]  }
 0x1eb   :  { %398 = dma.hbm_to_vmem [thread:$0]  %s16137_s2, 32, %s393_s1, [#allocation32], %s14207_s15, %s14207_s15, %s14208_s16  }
 0x1ec   :  { %s416_s0 = sshll.u32 %s14233_s4, 4  ;;  %s14234_s11 = smov [#allocation39]   ;;  %s417_s0 = int_to_ptr.vmem [resolvable:$true] %s416_s0 }
 0x1ed   :  { %s443_s9 = sshll.u32 %s14234_s11, 4  ;;  %s444_s9 = int_to_ptr.vmem [resolvable:$true] %s443_s9 }
 0x1f0   :  { %s14091_s18 = scalar_lea.hbm %s16138_s20, 32 }
 0x1f1   :  { %p14092_p2 = scmp.ne.s32.totalorder %s16138_s20, %s14091_s18  ;;  %p14095_p3 = scmp.lt.u32.totalorder %s14091_s18, %s16138_s20 }
 0x1f3   :  { %p14097_p4 = pnand %p14095_p3, %p14092_p2 }
 0x1f5   :  { %14100 = shalt.err (!%p14097_p4)
}
 0x1f6   :  { %s14101_s24 = scalar_lea.vmem %s417_s0, 32  ;;  %p14106_p6 = scmp.lt.s32.totalorder %s417_s0, %s417_s0 }
 0x1f7   :  { %p14102_p5 = scmp.ne.s32.totalorder %s417_s0, %s14101_s24  ;;  %p14107_p7 = scmp.lt.s32.totalorder %s14101_s24, %s14101_s24 }
 0x1f9   :  { %p14108_p8 = por %p14107_p7, %p14106_p6 }
 0x1fb   :  { %p14109_p9 = pnand %p14108_p8, %p14102_p5 }
 0x1fd   :  { %14112 = shalt.err (!%p14109_p9)
}
 0x1fe   :  { %422 = dma.hbm_to_vmem [thread:$0]  %s16138_s20, 32, %s417_s0, [#allocation35], %s14207_s15, %s14207_s15, %s14208_s16  }
 0x1ff   :  { %s14113_s21 = scalar_lea.hbm %s14478_s8, 16 }
 0x200   :  { %p14114_p10 = scmp.ne.s32.totalorder %s14478_s8, %s14113_s21  ;;  %p14117_p11 = scmp.lt.u32.totalorder %s14113_s21, %s14478_s8 }
 0x202   :  { %p14119_p12 = pnand %p14117_p11, %p14114_p10 }
 0x204   :  { %14122 = shalt.err (!%p14119_p12)
}
 0x205   :  { %s14123_s19 = scalar_lea.vmem %s444_s9, 16  ;;  %s14127_s22 = scalar_lea.vmem %s444_s9, 32 }
 0x206   :  { %p14124_p13 = scmp.ne.s32.totalorder %s444_s9, %s14123_s19  ;;  %p14128_p0 = scmp.lt.s32.totalorder %s444_s9, %s444_s9 }
 0x207   :  { %p14129_p1 = scmp.lt.s32.totalorder %s14127_s22, %s14123_s19 }
 0x209   :  { %p14130_p2 = por %p14129_p1, %p14128_p0 }
 0x20b   :  { %p14131_p3 = pnand %p14130_p2, %p14124_p13 }
 0x20d   :  { %14134 = shalt.err (!%p14131_p3)
}
 0x20e   :  { %446 = dma.hbm_to_vmem [thread:$0]  %s14478_s8, 16, %s444_s9, [#allocation38]  }
 0x20f   :  { %14135 = dma.done.wait [#allocation3], 256  }
 0x210   :  { %14136 = vsyncadd [#allocation3], 4294967040 }
 0x211   :  { %14137 = dma.done.wait [#allocation5], 64  }
 0x212   :  { %14138 = vsyncadd [#allocation5], 4294967232 }
 0x213   :  { %14139 = dma.done.wait [#allocation8], 64  }
 0x214   :  { %14140 = vsyncadd [#allocation8], 4294967232 }
 0x215   :  { %14141 = dma.done.wait [#allocation11], 64  }
 0x216   :  { %14142 = vsyncadd [#allocation11], 4294967232 }
 0x217   :  { %14143 = dma.done.wait [#allocation14], 64  }
 0x218   :  { %14144 = vsyncadd [#allocation14], 4294967232 }
 0x219   :  { %14145 = dma.done.wait [#allocation17], 64  }
 0x21a   :  { %14146 = vsyncadd [#allocation17], 4294967232 }
 0x21b   :  { %14147 = dma.done.wait [#allocation20], 1056  }
 0x21c   :  { %14148 = vsyncadd [#allocation20], 4294966240 }
 0x21d   :  { %14149 = dma.done.wait [#allocation23], 1056  }
 0x21e   :  { %14150 = vsyncadd [#allocation23], 4294966240 }
 0x21f   :  { %14151 = dma.done.wait [#allocation26], 64  }
 0x220   :  { %14152 = vsyncadd [#allocation26], 4294967232 }
 0x221   :  { %14153 = dma.done.wait [#allocation29], 64  }
 0x222   :  { %14154 = vsyncadd [#allocation29], 4294967232 }
 0x223   :  { %14155 = dma.done.wait [#allocation32], 64  }
 0x224   :  { %14156 = vsyncadd [#allocation32], 4294967232 }
 0x225   :  { %14157 = dma.done.wait [#allocation35], 64  }
 0x226   :  { %14158 = vsyncadd [#allocation35], 4294967232 }
 0x227   :  { %14159 = dma.done.wait [#allocation38], 48  }
 0x228   :  { %14160 = vsyncadd [#allocation38], 4294967248  ;;  %s16139_s8 = sld [smem:[#allocation53_spill]]  ;;  %s16140_s16 = sld [smem:[#allocation55_spill]]  ;;  %v14235_v0 = vmov 0   ;;  %v524_v9 = vlaneseq  ;;  %vm541_vm0 = vcmask 130048  }
 0x229   :  { %s16141_s12 = sld [smem:[#allocation63_spill]]  ;;  %13338 = vset.pattern.permute.xlu0 %v14235_v0  ;;  %13339 = vset.pattern.permute.xlu1 %v14235_v0  ;;  %s16142_s3 = sld [smem:[#allocation54_spill]]  ;;  %v14236_v12 = vmov 0.0   ;;  %v540_v21 = vld [vmem:[#allocation2] sm:$0xff]  ;;  %vm743_vm3 = vcmask 261120   ;;  %vm14237_vm6 = vmmov 0  }
 0x22a   :  { %v525_v10 = vand.u32 127, %v524_v9  ;;  %s16143_s23 = sld [smem:[#allocation56_spill]]  ;;  %v11615_v33 = vld [vmem:[#allocation4] ss:$0 sm:$0xff]  ;;  %s14238_s26 = smov 96   ;;  %vm828_vm7 = vcmask 64512  }
 0x22b   :  { %s16144_s29 = sld [smem:[#allocation57_spill]]  ;;  %s16145_s28 = sld [smem:[#allocation58_spill]]  ;;  %vm2188_vm8 = vcmask 195584   ;;  %vm2439_vm9 = vcmask 523264  }
 0x22c   :  { %s14239_s7 = smov 64   ;;  %s14240_s27 = smov 88  }
 0x22d   :  { %s14241_s5 = smov 120   ;;  %s14242_s1 = smov 56  }
 0x22e   :  { %v522_v1 = vld [vmem:[%s16139_s8] sm:$0xff]  ;;  %v539_v3 = vld [vmem:[%s16140_s16 + $0x8] sm:$0xff]  ;;  %s14243_s30 = smov 80   ;;  %s14244_s6 = smov 112  }
 0x22f   :  { %v538_v2 = vld [vmem:[%s16140_s16] sm:$0xff]  ;;  %527 = vperm.xlu0 %13338, %v522_v1   ;;  %v523_v4 = vld [vmem:[%s16139_s8 + $0x8] sm:$0xff]  ;;  %v734_v16 = vld [vmem:[%s16141_s12 + $0x10] sm:$0xff]  ;;  %s14245_s2 = smov 48   ;;  %s14246_s17 = smov 72  }
 0x230   :  { %v13025_v5 = vpack.c.bf16 %v539_v3, %v538_v2  ;;  %v732_v6 = vld [vmem:[%s16141_s12] sm:$0xff]  ;;  %v733_v7 = vld [vmem:[%s16141_s12 + $0x8] sm:$0xff]  ;;  %v735_v17 = vld [vmem:[%s16141_s12 + $0x18] sm:$0xff]  ;;  %s14247_s25 = smov 104   ;;  %s14248_s20 = smov 40  }
 0x231   :  { %v13033_v8 = vpack.c.bf16 %v733_v7, %v732_v6  ;;  %v13037_v18 = vpack.c.bf16 %v735_v17, %v734_v16  ;;  %v623_v19 = vld [vmem:[%s16142_s3] sm:$0xff]  ;;  %v624_v20 = vld [vmem:[%s16142_s3 + $0x8] sm:$0xff]  ;;  %s16146_s4 = sld [smem:[#allocation64_spill]]  ;;  %s14249_s0 = smov 24  }
 0x232   :  { %13026 = vmatprep.subr.bf16.mxu1 %v13025_v5  ;;  %626 = vperm.xlu1 %13339, %v623_v19   ;;  %v637_v27 = vld [vmem:[%s16143_s23] sm:$0xff]  ;;  %v638_v28 = vld [vmem:[%s16143_s23 + $0x8] sm:$0xff]  ;;  %s16147_s11 = sld [smem:[#allocation65_spill]]  ;;  %s16148_s9 = sld [smem:[#allocation66_spill]] }
 0x233   :  { %530 = vperm.xlu0 %13338, %v523_v4   ;;  %13028 = vmatpush3.bf16.msra.mxu1 %v13025_v5  ;;  %v13029_v29 = vpack.c.bf16 %v638_v28, %v637_v27  ;;  %v14716_v42 = vld [vmem:[%s16144_s29] sm:$0xff]  ;;  %v14723_v47 = vld [vmem:[%s16144_s29 + $0x8] sm:$0xff]  ;;  %s16149_s18 = sld [smem:[#allocation69_spill]]  ;;  %s16150_s24 = sld [smem:[#allocation59_spill]] }
 0x234   :  { %13034 = vmatprep.subr.bf16.mxu0 %v13033_v8  ;;  %v14719_v44 = vld [vmem:[%s16145_s28] sm:$0xff]  ;;  %v14727_v50 = vld [vmem:[%s16145_s28 + $0x8] sm:$0xff]  ;;  %s16151_s21 = sld [smem:[#allocation60_spill]]  ;;  %s16152_s19 = sld [smem:[#allocation70_spill]] }
 0x235   :  { %13036 = vmatpush3.bf16.msra.mxu0 %v13033_v8  ;;  %13030 = vmatprep.subr.bf16.mxu1 %v13029_v29  ;;  %s16153_s22 = sld [smem:[#allocation72_spill]]  ;;  %s16154_s8 = sld [smem:[#allocation61_spill]] }
 0x236   :  { %13038 = vmatprep.subr.bf16.mxu0 %v13037_v18  ;;  %629 = vperm.xlu1 %13339, %v624_v20   ;;  %s16155_s16 = sld [smem:[#allocation62_spill]]  ;;  %s16157_s3 = sld [smem:[#allocation77_spill]] }
 0x239   :  { %13040 = vmatpush3.bf16.msra.mxu0 %v13037_v18 }
 0x23a   :  { %12281 = vmatprep.subr.mxu0 %v14236_v12 }
 0x2ae   :  { %v528_v11 = vpop.permute.xlu0 %527 }
 0x2af   :  { %vm532_vm1 = vcmp.eq.s32.totalorder %v525_v10, %v528_v11 }
 0x2b0   :  { %v11607_v13 = vsel %vm532_vm1, 1.0, %v14236_v12 }
 0x2b1   :  { %12250 = vmatprep.mubr.msk.f32.mxu1 %vm541_vm0, %v11607_v13  ;;  %v627_v26 = vpop.permute.xlu1 %626 }
 0x2b2   :  { %v531_v14 = vpop.permute.xlu0 %530  ;;  %vm631_vm4 = vcmp.eq.s32.totalorder %v525_v10, %v627_v26 }
 0x2b3   :  { %vm533_vm2 = vcmp.eq.s32.totalorder %v525_v10, %v531_v14  ;;  %v11611_v30 = vsel %vm631_vm4, 1.0, %v14236_v12 }
 0x2b4   :  { %v11608_v15 = vsel %vm533_vm2, 1.0, %v14236_v12 }
 0x2b5   :  { %12251 = vmatmul.mubr.msk.f32.vlgmr.msra.gmra.mrb[0].mxu1 %vm541_vm0, %v11608_v15  ;;  %v630_v31 = vpop.permute.xlu1 %629 }
 0x2b6   :  { %12257 = vmatprep.mubr.msk.f32.mxu1 %vm541_vm0, %v11611_v30  ;;  %13032 = vmatpush3.bf16.msra.mxu1 %v13029_v29  ;;  %vm632_vm5 = vcmp.eq.s32.totalorder %v525_v10, %v630_v31 }
 0x2b7   :  { %12271 = vmatprep.subr.mxu1 %v14236_v12  ;;  %v11612_v32 = vsel %vm632_vm5, 1.0, %v14236_v12 }
 0x2b9   :  { %12258 = vmatmul.mubr.msk.f32.vlgmr.msra.gmra.mrb[2].mxu1 %vm541_vm0, %v11612_v32 }
 0x2ba   :  { %12273 = vmatprep.mubr.msk.f32.mxu1 %vm14237_vm6, %v14236_v12 }
 0x388   :  { %v12252_v22 = vpop.f32.mrb[0].mxu1 }
 0x389   :  { %v614_v23 = vpop.f32.mrb[1].mxu1  ;;  %v14674_v25 = vadd.f32 %v12252_v22, %v540_v21 }
 0x38a   :  { %v14672_v24 = vadd.f32 %v614_v23, %v540_v21 }
 0x38c   :  { %12268 = vmatprep.mubr.msk.f32.mxu0 %vm743_vm3, %v14672_v24  ;;  %v14699_v38 = vpop.f32.mrb[2].mxu1 }
 0x38d   :  { %12269 = vmatmul.mubr.msk.f32.vlgmr.msra.gmra.mrb[0].mxu0 %vm743_vm3, %v14674_v25  ;;  %v14701_v39 = vpop.f32.mrb[3].mxu1 }
 0x38e   :  { %12283 = vmatprep.mubr.msk.f32.mxu0 %vm14237_vm6, %v14236_v12 }
 0x460   :  { %v12270_v34 = vpop.f32.mrb[0].mxu0 }
 0x461   :  { %v14691_v35 = vadd.f32 %v12270_v34, %v11615_v33  ;;  %v816_v36 = vpop.f32.mrb[1].mxu0 }
 0x462   :  { %v14693_v37 = vadd.f32 %v11615_v33, %v816_v36 }
 0x463   :  { %904 = vrot.lane.b32.xlu1 %v14691_v35, %s14238_s26 }
 0x464   :  { %826 = vrot.lane.b32.xlu0 %v14693_v37, %s14238_s26 }
 0x4d5   :  { %v905_v41 = vpop.permute.xlu1 %904 }
 0x4d6   :  { %v827_v40 = vpop.permute.xlu0 %826 }
 0x4d7   :  { %12272 = vmatpush3.xpose.msk.msra.mxu1 %vm828_vm7, %v827_v40 }
 0x4d8   :  { %12276 = vmatprep.subr.mxu1 %v14236_v12 }
 0x4da   :  { %12274 = vmatmul.mubr.msk.f32.vlgmr.msra.gmra.mrb[4].mxu1 %vm828_vm7, %v14693_v37 }
 0x4db   :  { %12277 = vmatpush3.xpose.msk.msra.mxu1 %vm828_vm7, %v905_v41  ;;  %12278 = vmatprep.mubr.msk.f32.mxu1 %vm14237_vm6, %v14236_v12 }
 0x4dc   :  { %12286 = vmatprep.subr.mxu1 %v14236_v12 }
 0x4de   :  { %12279 = vmatmul.mubr.msk.f32.vlgmr.msra.gmra.mrb[6].mxu1 %vm828_vm7, %v14691_v35 }
 0x4df   :  { %12288 = vmatprep.mubr.msk.f32.mxu1 %vm14237_vm6, %v14236_v12 }
 0x5ad   :  { %v899_v43 = vpop.f32.mrb[4].mxu1 }
 0x5ae   :  { %v980_v45 = vmul.f32 %v899_v43, %v14716_v42  ;;  %v12275_v46 = vpop.f32.mrb[5].mxu1 }
 0x5b0   :  { %v982_v48 = vadd.f32 %v980_v45, %v14719_v44 }
 0x5b1   :  { %v976_v49 = vpop.f32.mrb[6].mxu1 }
 0x5b2   :  { %v981_v51 = vmul.f32 %v976_v49, %v14723_v47  ;;  %v12280_v52 = vpop.f32.mrb[7].mxu1  ;;  %v984_v53 = vsel %vm828_vm7, %v982_v48, -inf }
 0x5b3   :  { %985 = vmax.xlane.f32.xlu0 %v984_v53 }
 0x5b4   :  { %v983_v54 = vadd.f32 %v981_v51, %v14727_v50 }
 0x5b6   :  { %v987_v55 = vsel %vm828_vm7, %v983_v54, -inf }
 0x5b7   :  { %988 = vmax.xlane.f32.xlu1 %v987_v55 }
 0x5c8   :  { %1006 = vrot.lane.b32.xlu1 %v14693_v37, %s14239_s7 }
 0x5c9   :  { %1082 = vrot.lane.b32.xlu0 %v14691_v35, %s14239_s7 }
 0x5cc   :  { %1160 = vrot.lane.b32.xlu1 %v14693_v37, %s14240_s27 }
 0x5d0   :  { %1238 = vrot.lane.b32.xlu1 %v14691_v35, %s14240_s27 }
 0x5d4   :  { %1236 = vrot.lane.b32.xlu1 %v14691_v35, %s14241_s5 }
 0x640   :  { %v986_v56 = vpop.xlane.xlu0 %985 }
 0x641   :  { %v990_v57 = vsub.f32 %v982_v48, %v986_v56 }
 0x643   :  { %v992_v58 = vmul.f32 1.442695, %v990_v57 }
 0x644   :  { %v1083_v59 = vpop.permute.xlu0 %1082  ;;  %v989_v60 = vpop.xlane.xlu1 %988 }
 0x645   :  { %13340 = vpow2.f32 %v992_v58  ;;  %v991_v61 = vsub.f32 %v983_v54, %v989_v60  ;;  %12287 = vmatpush3.msra.mxu1 %v1083_v59 }
 0x646   :  { %12296 = vmatprep.subr.mxu1 %v14236_v12 }
 0x647   :  { %v994_v62 = vmul.f32 1.442695, %v991_v61 }
 0x648   :  { %v1007_v63 = vpop.permute.xlu1 %1006 }
 0x649   :  { %13342 = vpow2.f32 %v994_v62  ;;  %12282 = vmatpush3.msra.mxu0 %v1007_v63 }
 0x64a   :  { %12291 = vmatprep.subr.mxu0 %v14236_v12 }
 0x64c   :  { %v1161_v6 = vpop.permute.xlu1 %1160 }
 0x64f   :  { %v13341_v0 = vpop.eup %13340 }
 0x650   :  { %v996_v1 = vsel %vm828_vm7, %v13341_v0, 0.0  ;;  %v1239_v10 = vpop.permute.xlu1 %1238 }
 0x651   :  { %997 = vadd.xlane.f32.xlu0 %v996_v1 }
 0x653   :  { %v13343_v2 = vpop.eup %13342 }
 0x654   :  { %v999_v3 = vsel %vm828_vm7, %v13343_v2, 0.0  ;;  %v1237_v14 = vpop.permute.xlu1 %1236 }
 0x655   :  { %1000 = vadd.xlane.f32.xlu0 %v999_v3 }
 0x66b   :  { %1158 = vrot.lane.b32.xlu0 %v14693_v37, %s14241_s5 }
 0x6de   :  { %v998_v4 = vpop.xlane.xlu0 %997 }
 0x6df   :  { %13344 = vrcp.f32 %v998_v4 }
 0x6e2   :  { %v1001_v5 = vpop.xlane.xlu0 %1000 }
 0x6e3   :  { %13346 = vrcp.f32 %v1001_v5 }
 0x6e6   :  { %v1159_v13 = vpop.permute.xlu0 %1158 }
 0x6e9   :  { %v13345_v7 = vpop.eup %13344 }
 0x6ea   :  { %v1003_v8 = vmul.f32 %v13345_v7, %v13341_v0 }
 0x6ec   :  { %12284 = vmatmul.mubr.msk.f32.vlgmr.msra.gmra.mrb[2].mxu0 %vm828_vm7, %v1003_v8 }
 0x6ed   :  { %v13347_v9 = vpop.eup %13346  ;;  %12292 = vmatpush3.xpose.msk.msra.mxu0 %vm828_vm7, %v1161_v6  ;;  %12293 = vmatprep.mubr.msk.f32.mxu0 %vm14237_vm6, %v14236_v12 }
 0x6ee   :  { %v1005_v11 = vmul.f32 %v13347_v9, %v13343_v2  ;;  %12301 = vmatprep.subr.mxu0 %v14236_v12 }
 0x6f0   :  { %12289 = vmatmul.mubr.msk.f32.vlgmr.msra.gmra.mrb[8].mxu1 %vm828_vm7, %v1005_v11  ;;  %12294 = vmatmul.mubr.msk.f32.vlgmr.msra.gmra.mrb[4].mxu0 %vm828_vm7, %v1159_v13 }
 0x6f1   :  { %12297 = vmatpush3.xpose.msk.msra.mxu1 %vm828_vm7, %v1239_v10  ;;  %12298 = vmatprep.mubr.msk.f32.mxu1 %vm14237_vm6, %v14236_v12 }
 0x6f2   :  { %12306 = vmatprep.subr.mxu1 %v14236_v12  ;;  %12303 = vmatprep.mubr.msk.f32.mxu0 %vm14237_vm6, %v14236_v12 }
 0x6f4   :  { %12299 = vmatmul.mubr.msk.f32.vlgmr.msra.gmra.mrb[10].mxu1 %vm828_vm7, %v1237_v14 }
 0x6f5   :  { %12308 = vmatprep.mubr.msk.f32.mxu1 %vm14237_vm6, %v14236_v12 }
 0x7bf   :  { %v14765_v15 = vpop.f32.mrb[2].mxu0 }
 0x7c0   :  { %v12285_v16 = vpop.f32.mrb[3].mxu0 }
 0x7c3   :  { %v14767_v17 = vpop.f32.mrb[8].mxu1  ;;  %v1232_v18 = vpop.f32.mrb[4].mxu0 }
 0x7c4   :  { %v1314_v19 = vmul.f32 %v1232_v18, %v14716_v42  ;;  %v12290_v20 = vpop.f32.mrb[9].mxu1  ;;  %v12295_v21 = vpop.f32.mrb[5].mxu0 }
 0x7c6   :  { %v1316_v22 = vadd.f32 %v1314_v19, %v14719_v44 }
 0x7c7   :  { %v1310_v23 = vpop.f32.mrb[10].mxu1 }
 0x7c8   :  { %v1315_v26 = vmul.f32 %v1310_v23, %v14723_v47  ;;  %v12300_v27 = vpop.f32.mrb[11].mxu1  ;;  %v1318_v28 = vsel %vm828_vm7, %v1316_v22, -inf }
 0x7c9   :  { %1319 = vmax.xlane.f32.xlu0 %v1318_v28 }
 0x7ca   :  { %v1317_v29 = vadd.f32 %v1315_v26, %v14727_v50 }
 0x7cc   :  { %v1321_v30 = vsel %vm828_vm7, %v1317_v29, -inf }
 0x7cd   :  { %1322 = vmax.xlane.f32.xlu1 %v1321_v30 }
 0x7de   :  { %1340 = vrot.lane.b32.xlu1 %v14693_v37, %s14242_s1 }
 0x7df   :  { %1416 = vrot.lane.b32.xlu0 %v14691_v35, %s14242_s1 }
 0x7e2   :  { %1494 = vrot.lane.b32.xlu1 %v14693_v37, %s14243_s30 }
 0x7e6   :  { %1572 = vrot.lane.b32.xlu1 %v14691_v35, %s14243_s30 }
 0x7ea   :  { %1570 = vrot.lane.b32.xlu1 %v14691_v35, %s14244_s6 }
 0x856   :  { %v1320_v31 = vpop.xlane.xlu0 %1319 }
 0x857   :  { %v1324_v32 = vsub.f32 %v1316_v22, %v1320_v31 }
 0x859   :  { %v1326_v33 = vmul.f32 1.442695, %v1324_v32 }
 0x85a   :  { %v1417_v34 = vpop.permute.xlu0 %1416  ;;  %v1323_v36 = vpop.xlane.xlu1 %1322 }
 0x85b   :  { %13348 = vpow2.f32 %v1326_v33  ;;  %v1325_v40 = vsub.f32 %v1317_v29, %v1323_v36  ;;  %12307 = vmatpush3.msra.mxu1 %v1417_v34 }
 0x85c   :  { %12316 = vmatprep.subr.mxu1 %v14236_v12 }
 0x85d   :  { %v1328_v41 = vmul.f32 1.442695, %v1325_v40 }
 0x85e   :  { %v1341_v43 = vpop.permute.xlu1 %1340 }
 0x85f   :  { %13350 = vpow2.f32 %v1328_v41  ;;  %12302 = vmatpush3.msra.mxu0 %v1341_v43 }
 0x860   :  { %12311 = vmatprep.subr.mxu0 %v14236_v12 }
 0x862   :  { %v1495_v53 = vpop.permute.xlu1 %1494 }
 0x865   :  { %v13349_v45 = vpop.eup %13348 }
 0x866   :  { %v1330_v46 = vsel %vm828_vm7, %v13349_v45, 0.0  ;;  %v1573_v57 = vpop.permute.xlu1 %1572 }
 0x867   :  { %1331 = vadd.xlane.f32.xlu0 %v1330_v46 }
 0x869   :  { %v13351_v48 = vpop.eup %13350 }
 0x86a   :  { %v1333_v49 = vsel %vm828_vm7, %v13351_v48, 0.0  ;;  %v1571_v60 = vpop.permute.xlu1 %1570 }
 0x86b   :  { %1334 = vadd.xlane.f32.xlu0 %v1333_v49 }
 0x881   :  { %1492 = vrot.lane.b32.xlu0 %v14693_v37, %s14244_s6 }
 0x8f4   :  { %v1332_v51 = vpop.xlane.xlu0 %1331 }
 0x8f5   :  { %13352 = vrcp.f32 %v1332_v51 }
 0x8f8   :  { %v1335_v52 = vpop.xlane.xlu0 %1334 }
 0x8f9   :  { %13354 = vrcp.f32 %v1335_v52 }
 0x8fc   :  { %v1493_v59 = vpop.permute.xlu0 %1492 }
 0x8ff   :  { %v13353_v54 = vpop.eup %13352 }
 0x900   :  { %v1337_v55 = vmul.f32 %v13353_v54, %v13349_v45 }
 0x902   :  { %12304 = vmatmul.mubr.msk.f32.vlgmr.msra.gmra.mrb[6].mxu0 %vm828_vm7, %v1337_v55 }
 0x903   :  { %v13355_v56 = vpop.eup %13354  ;;  %12312 = vmatpush3.xpose.msk.msra.mxu0 %vm828_vm7, %v1495_v53  ;;  %12313 = vmatprep.mubr.msk.f32.mxu0 %vm14237_vm6, %v14236_v12 }
 0x904   :  { %v1339_v58 = vmul.f32 %v13355_v56, %v13351_v48  ;;  %12321 = vmatprep.subr.mxu0 %v14236_v12 }
 0x906   :  { %12309 = vmatmul.mubr.msk.f32.vlgmr.msra.gmra.mrb[12].mxu1 %vm828_vm7, %v1339_v58  ;;  %12314 = vmatmul.mubr.msk.f32.vlgmr.msra.gmra.mrb[8].mxu0 %vm828_vm7, %v1493_v59 }
 0x907   :  { %12317 = vmatpush3.xpose.msk.msra.mxu1 %vm828_vm7, %v1573_v57  ;;  %12318 = vmatprep.mubr.msk.f32.mxu1 %vm14237_vm6, %v14236_v12 }
 0x908   :  { %12326 = vmatprep.subr.mxu1 %v14236_v12  ;;  %12323 = vmatprep.mubr.msk.f32.mxu0 %vm14237_vm6, %v14236_v12 }
 0x90a   :  { %12319 = vmatmul.mubr.msk.f32.vlgmr.msra.gmra.mrb[14].mxu1 %vm828_vm7, %v1571_v60 }
 0x90b   :  { %12328 = vmatprep.mubr.msk.f32.mxu1 %vm14237_vm6, %v14236_v12 }
 0x9d5   :  { %v14807_v61 = vpop.f32.mrb[6].mxu0 }
 0x9d6   :  { %v12305_v62 = vpop.f32.mrb[7].mxu0 }
 0x9d9   :  { %v14809_v63 = vpop.f32.mrb[12].mxu1  ;;  %v1566_v0 = vpop.f32.mrb[8].mxu0 }
 0x9da   :  { %v1648_v1 = vmul.f32 %v1566_v0, %v14716_v42  ;;  %v12310_v2 = vpop.f32.mrb[13].mxu1  ;;  %v12315_v3 = vpop.f32.mrb[9].mxu0 }
 0x9dc   :  { %v1650_v4 = vadd.f32 %v1648_v1, %v14719_v44 }
 0x9dd   :  { %v1644_v5 = vpop.f32.mrb[14].mxu1 }
 0x9de   :  { %v1649_v6 = vmul.f32 %v1644_v5, %v14723_v47  ;;  %v12320_v7 = vpop.f32.mrb[15].mxu1  ;;  %v1652_v8 = vsel %vm828_vm7, %v1650_v4, -inf }
 0x9df   :  { %1653 = vmax.xlane.f32.xlu0 %v1652_v8 }
 0x9e0   :  { %v1651_v9 = vadd.f32 %v1649_v6, %v14727_v50 }
 0x9e2   :  { %v1655_v10 = vsel %vm828_vm7, %v1651_v9, -inf }
 0x9e3   :  { %1656 = vmax.xlane.f32.xlu1 %v1655_v10 }
 0x9f4   :  { %1674 = vrot.lane.b32.xlu1 %v14693_v37, %s14245_s2 }
 0x9f5   :  { %1750 = vrot.lane.b32.xlu0 %v14691_v35, %s14245_s2 }
 0x9f8   :  { %1828 = vrot.lane.b32.xlu1 %v14693_v37, %s14246_s17 }
 0x9fc   :  { %1906 = vrot.lane.b32.xlu1 %v14691_v35, %s14246_s17 }
 0xa00   :  { %1904 = vrot.lane.b32.xlu1 %v14691_v35, %s14247_s25 }
 0xa6c   :  { %v1654_v11 = vpop.xlane.xlu0 %1653 }
 0xa6d   :  { %v1658_v13 = vsub.f32 %v1650_v4, %v1654_v11 }
 0xa6f   :  { %v1660_v14 = vmul.f32 1.442695, %v1658_v13 }
 0xa70   :  { %v1751_v16 = vpop.permute.xlu0 %1750  ;;  %v1657_v18 = vpop.xlane.xlu1 %1656 }
 0xa71   :  { %13356 = vpow2.f32 %v1660_v14  ;;  %v1659_v19 = vsub.f32 %v1651_v9, %v1657_v18  ;;  %12327 = vmatpush3.msra.mxu1 %v1751_v16  ;;  %v2191_v14 = vld [vmem:[%s16146_s4] sm:$0xff]  ;;  %v2193_v18 = vld [vmem:[%s16146_s4 + $0x10] sm:$0xff] }
 0xa72   :  { %12336 = vmatprep.subr.mxu1 %v14236_v12 }
 0xa73   :  { %v1662_v20 = vmul.f32 1.442695, %v1659_v19  ;;  %v2194_v19 = vld [vmem:[%s16146_s4 + $0x18] sm:$0xff] }
 0xa74   :  { %v1675_v21 = vpop.permute.xlu1 %1674 }
 0xa75   :  { %13358 = vpow2.f32 %v1662_v20  ;;  %12322 = vmatpush3.msra.mxu0 %v1675_v21  ;;  %v13045_v20 = vpack.c.bf16 %v2194_v19, %v2193_v18 }
 0xa76   :  { %12331 = vmatprep.subr.mxu0 %v14236_v12 }
 0xa78   :  { %v1829_v30 = vpop.permute.xlu1 %1828 }
 0xa7b   :  { %v13357_v22 = vpop.eup %13356 }
 0xa7c   :  { %v1664_v23 = vsel %vm828_vm7, %v13357_v22, 0.0  ;;  %v1907_v34 = vpop.permute.xlu1 %1906 }
 0xa7d   :  { %1665 = vadd.xlane.f32.xlu0 %v1664_v23 }
 0xa7f   :  { %v13359_v26 = vpop.eup %13358 }
 0xa80   :  { %v1667_v27 = vsel %vm828_vm7, %v13359_v26, 0.0  ;;  %v1905_v41 = vpop.permute.xlu1 %1904 }
 0xa81   :  { %1668 = vadd.xlane.f32.xlu0 %v1667_v27 }
 0xa97   :  { %1826 = vrot.lane.b32.xlu0 %v14693_v37, %s14247_s25 }
 0xb0a   :  { %v1666_v28 = vpop.xlane.xlu0 %1665 }
 0xb0b   :  { %13360 = vrcp.f32 %v1666_v28 }
 0xb0e   :  { %v1669_v29 = vpop.xlane.xlu0 %1668 }
 0xb0f   :  { %13362 = vrcp.f32 %v1669_v29 }
 0xb12   :  { %v1827_v40 = vpop.permute.xlu0 %1826 }
 0xb15   :  { %v13361_v31 = vpop.eup %13360 }
 0xb16   :  { %v1671_v32 = vmul.f32 %v13361_v31, %v13357_v22 }
 0xb18   :  { %12324 = vmatmul.mubr.msk.f32.vlgmr.msra.gmra.mrb[10].mxu0 %vm828_vm7, %v1671_v32 }
 0xb19   :  { %v13363_v33 = vpop.eup %13362  ;;  %12332 = vmatpush3.xpose.msk.msra.mxu0 %vm828_vm7, %v1829_v30  ;;  %12333 = vmatprep.mubr.msk.f32.mxu0 %vm14237_vm6, %v14236_v12 }
 0xb1a   :  { %v1673_v36 = vmul.f32 %v13363_v33, %v13359_v26  ;;  %12341 = vmatprep.subr.mxu0 %v14236_v12 }
 0xb1c   :  { %12329 = vmatmul.mubr.msk.f32.vlgmr.msra.gmra.mrb[16].mxu1 %vm828_vm7, %v1673_v36  ;;  %12334 = vmatmul.mubr.msk.f32.vlgmr.msra.gmra.mrb[12].mxu0 %vm828_vm7, %v1827_v40 }
 0xb1d   :  { %12337 = vmatpush3.xpose.msk.msra.mxu1 %vm828_vm7, %v1907_v34  ;;  %12338 = vmatprep.mubr.msk.f32.mxu1 %vm14237_vm6, %v14236_v12 }
 0xb1e   :  { %12346 = vmatprep.subr.mxu1 %v14236_v12  ;;  %12343 = vmatprep.mubr.msk.f32.mxu0 %vm14237_vm6, %v14236_v12 }
 0xb20   :  { %12339 = vmatmul.mubr.msk.f32.vlgmr.msra.gmra.mrb[18].mxu1 %vm828_vm7, %v1905_v41 }
 0xb21   :  { %12348 = vmatprep.mubr.msk.f32.mxu1 %vm14237_vm6, %v14236_v12 }
 0xbeb   :  { %v1746_v43 = vpop.f32.mrb[10].mxu0 }
 0xbec   :  { %v12325_v45 = vpop.f32.mrb[11].mxu0 }
 0xbed   :  { %v11642_v45 = vld [vmem:[#allocation6] ss:$0 sm:$0xff] }
 0xbef   :  { %v1822_v46 = vpop.f32.mrb[16].mxu1  ;;  %v1900_v48 = vpop.f32.mrb[12].mxu0 }
 0xbf0   :  { %v1982_v49 = vmul.f32 %v1900_v48, %v14716_v42  ;;  %v12330_v51 = vpop.f32.mrb[17].mxu1  ;;  %v12335_v52 = vpop.f32.mrb[13].mxu0 }
 0xbf2   :  { %v1984_v53 = vadd.f32 %v1982_v49, %v14719_v44 }
 0xbf3   :  { %v1978_v54 = vpop.f32.mrb[18].mxu1 }
 0xbf4   :  { %v1983_v55 = vmul.f32 %v1978_v54, %v14723_v47  ;;  %v12340_v56 = vpop.f32.mrb[19].mxu1  ;;  %v1986_v57 = vsel %vm828_vm7, %v1984_v53, -inf }
 0xbf5   :  { %1987 = vmax.xlane.f32.xlu0 %v1986_v57 }
 0xbf6   :  { %v1985_v58 = vadd.f32 %v1983_v55, %v14727_v50 }
 0xbf8   :  { %v1989_v59 = vsel %vm828_vm7, %v1985_v58, -inf }
 0xbf9   :  { %1990 = vmax.xlane.f32.xlu1 %v1989_v59 }
 0xc0a   :  { %2008 = vrot.lane.b32.xlu1 %v14693_v37, %s14248_s20 }
 0xc0e   :  { %2162 = vrot.lane.b32.xlu1 %v14807_v61, %s14222_s10 }
 0xc12   :  { %2164 = vrot.lane.b32.xlu1 %v14809_v63, %s14222_s10 }
 0xc16   :  { %2172 = vrot.lane.b32.xlu1 %v1822_v46, %s14207_s15 }
 0xc82   :  { %v1988_v60 = vpop.xlane.xlu0 %1987 }
 0xc83   :  { %v1992_v62 = vsub.f32 %v1984_v53, %v1988_v60 }
 0xc85   :  { %v1994_v0 = vmul.f32 1.442695, %v1992_v62 }
 0xc86   :  { %v1991_v1 = vpop.xlane.xlu1 %1990 }
 0xc87   :  { %13364 = vpow2.f32 %v1994_v0  ;;  %v1993_v2 = vsub.f32 %v1985_v58, %v1991_v1  ;;  %v2330_v0 = vld [vmem:[%s16147_s11] sm:$0xff]  ;;  %v2331_v1 = vld [vmem:[%s16147_s11 + $0x8] sm:$0xff] }
 0xc89   :  { %v1996_v3 = vmul.f32 1.442695, %v1993_v2  ;;  %v2332_v2 = vld [vmem:[%s16147_s11 + $0x10] sm:$0xff] }
 0xc8a   :  { %v2009_v4 = vpop.permute.xlu1 %2008 }
 0xc8b   :  { %13366 = vpow2.f32 %v1996_v3  ;;  %12342 = vmatpush3.msra.mxu0 %v2009_v4  ;;  %v13049_v3 = vpack.c.bf16 %v2331_v1, %v2330_v0  ;;  %v2333_v4 = vld [vmem:[%s16147_s11 + $0x18] sm:$0xff] }
 0xc8e   :  { %v2163_v27 = vpop.permute.xlu1 %2162 }
 0xc8f   :  { %v2184_v30 = vsel %vm828_vm7, %v14765_v15, %v2163_v27 }
 0xc91   :  { %v13365_v5 = vpop.eup %13364 }
 0xc92   :  { %v1998_v37 = vsel %vm828_vm7, %v13365_v5, 0.0  ;;  %v2165_v28 = vpop.permute.xlu1 %2164 }
 0xc93   :  { %1999 = vadd.xlane.f32.xlu0 %v1998_v37  ;;  %v2185_v36 = vsel %vm828_vm7, %v14767_v17, %v2165_v28  ;;  %v2335_v37 = vld [vmem:[%s16148_s9] sm:$0xff] }
 0xc95   :  { %v13367_v61 = vpop.eup %13366 }
 0xc96   :  { %v2001_v6 = vsel %vm828_vm7, %v13367_v61, 0.0  ;;  %v2173_v31 = vpop.permute.xlu1 %2172 }
 0xc97   :  { %2002 = vadd.xlane.f32.xlu0 %v2001_v6  ;;  %v2187_v40 = vsel %vm541_vm0, %v2185_v36, %v2173_v31  ;;  %v2337_v6 = vld [vmem:[%s16148_s9 + $0x10] sm:$0xff]  ;;  %v11647_v36 = vld [vmem:[#allocation10] ss:$0 sm:$0xff] }
 0xcad   :  { %2084 = vrot.lane.b32.xlu0 %v14691_v35, %s14248_s20  ;;  %v2192_v35 = vld [vmem:[%s16146_s4 + $0x8] sm:$0xff] }
 0xcae   :  { %v13041_v16 = vpack.c.bf16 %v2192_v35, %v2191_v14 }
 0xcb0   :  { %13042 = vmatprep.subr.bf16.mxu0 %v13041_v16 }
 0xcb1   :  { %2170 = vrot.lane.b32.xlu0 %v1746_v43, %s14207_s15 }
 0xd20   :  { %v2000_v63 = vpop.xlane.xlu0 %1999 }
 0xd21   :  { %13368 = vrcp.f32 %v2000_v63 }
 0xd24   :  { %v2003_v7 = vpop.xlane.xlu0 %2002 }
 0xd25   :  { %13370 = vrcp.f32 %v2003_v7  ;;  %v2338_v7 = vld [vmem:[%s16148_s9 + $0x18] sm:$0xff] }
 0xd28   :  { %v2085_v8 = vpop.permute.xlu0 %2084 }
 0xd29   :  { %12347 = vmatpush3.msra.mxu1 %v2085_v8  ;;  %v13061_v8 = vpack.c.bf16 %v2338_v7, %v2337_v6 }
 0xd2a   :  { %13050 = vmatprep.subr.bf16.mxu1 %v13049_v3 }
 0xd2b   :  { %v13369_v9 = vpop.eup %13368 }
 0xd2c   :  { %v2005_v10 = vmul.f32 %v13369_v9, %v13365_v5  ;;  %v2171_v29 = vpop.permute.xlu0 %2170  ;;  %v13053_v5 = vpack.c.bf16 %v2333_v4, %v2332_v2  ;;  %v2339_v9 = vld [vmem:[%s16148_s9 + $0x20] sm:$0xff]  ;;  %v11656_v4 = vld [vmem:[%s16141_s12 + $0x28] sm:$0xff] }
 0xd2d   :  { %v2186_v32 = vsel %vm541_vm0, %v2184_v30, %v2171_v29 }
 0xd2e   :  { %12344 = vmatmul.mubr.msk.f32.vlgmr.msra.gmra.mrb[14].mxu0 %vm828_vm7, %v2005_v10  ;;  %v2340_v10 = vld [vmem:[%s16148_s9 + $0x28] sm:$0xff] }
 0xd2f   :  { %v13371_v11 = vpop.eup %13370  ;;  %13044 = vmatpush3.bf16.msra.mxu0 %v13041_v16 }
 0xd30   :  { %v2007_v13 = vmul.f32 %v13371_v11, %v13367_v61  ;;  %13046 = vmatprep.subr.bf16.mxu0 %v13045_v20  ;;  %v2336_v61 = vld [vmem:[%s16148_s9 + $0x8] sm:$0xff]  ;;  %v13065_v11 = vpack.c.bf16 %v2340_v10, %v2339_v9 }
 0xd31   :  { %v13057_v63 = vpack.c.bf16 %v2336_v61, %v2335_v37  ;;  %v11658_v61 = vld [vmem:[%s16141_s12 + $0x38] sm:$0xff] }
 0xd32   :  { %12349 = vmatmul.mubr.msk.f32.vlgmr.msra.gmra.mrb[20].mxu1 %vm828_vm7, %v2007_v13 }
 0xd33   :  { %13048 = vmatpush3.bf16.msra.mxu0 %v13045_v20  ;;  %13052 = vmatpush3.bf16.msra.mxu1 %v13049_v3  ;;  %v11655_v3 = vld [vmem:[%s16141_s12 + $0x20] sm:$0xff] }
 0xd34   :  { %13054 = vmatprep.subr.bf16.mxu1 %v13053_v5  ;;  %13058 = vmatprep.subr.bf16.mxu0 %v13057_v63  ;;  %v13073_v37 = vpack.c.bf16 %v11656_v4, %v11655_v3 }
 0xd37   :  { %13056 = vmatpush3.bf16.msra.mxu1 %v13053_v5  ;;  %v11657_v5 = vld [vmem:[%s16141_s12 + $0x30] sm:$0xff]  ;;  %s16156_s12 = sld [smem:[#allocation75_spill]] }
 0xd38   :  { %v13077_v6 = vpack.c.bf16 %v11658_v61, %v11657_v5  ;;  %13074 = vmatprep.subr.bf16.mxu1 %v13073_v37  ;;  %v14992_v61 = vld [vmem:[%s16144_s29] sm:$0xff] }
 0xe01   :  { %v2080_v21 = vpop.f32.mrb[14].mxu0 }
 0xe02   :  { %2178 = vrot.lane.b32.xlu0 %v2080_v21, %s14249_s0  ;;  %v12345_v22 = vpop.f32.mrb[15].mxu0  ;;  %v11645_v21 = vld [vmem:[#allocation7] ss:$0 sm:$0xff] }
 0xe05   :  { %v2156_v23 = vpop.f32.mrb[20].mxu1 }
 0xe06   :  { %2180 = vrot.lane.b32.xlu1 %v2156_v23, %s14249_s0  ;;  %v12350_v26 = vpop.f32.mrb[21].mxu1  ;;  %v11646_v23 = vld [vmem:[#allocation9] ss:$0 sm:$0xff] }
 0xe74   :  { %v2179_v33 = vpop.permute.xlu0 %2178 }
 0xe75   :  { %v2189_v34 = vsel %vm2188_vm8, %v2186_v32, %v2179_v33  ;;  %v2341_v32 = vld [vmem:[%s16148_s9 + $0x30] sm:$0xff]  ;;  %v2342_v33 = vld [vmem:[%s16148_s9 + $0x38] sm:$0xff] }
 0xe76   :  { %12359 = vmatprep.mubr.msk.f32.mxu0 %vm743_vm3, %v2189_v34  ;;  %v13069_v34 = vpack.c.bf16 %v2342_v33, %v2341_v32 }
 0xe78   :  { %v2181_v41 = vpop.permute.xlu1 %2180 }
 0xe79   :  { %v2190_v43 = vsel %vm2188_vm8, %v2187_v40, %v2181_v41 }
 0xe7a   :  { %12360 = vmatmul.mubr.msk.f32.vlgmr.msra.gmra.mrb[16].mxu0 %vm743_vm3, %v2190_v43 }
 0xe7b   :  { %13060 = vmatpush3.bf16.msra.mxu0 %v13057_v63 }
 0xe7c   :  { %13062 = vmatprep.subr.bf16.mxu0 %v13061_v8 }
 0xe7f   :  { %13064 = vmatpush3.bf16.msra.mxu0 %v13061_v8 }
 0xe80   :  { %13066 = vmatprep.subr.bf16.mxu0 %v13065_v11 }
 0xe83   :  { %13068 = vmatpush3.bf16.msra.mxu0 %v13065_v11 }
 0xe84   :  { %13070 = vmatprep.subr.bf16.mxu0 %v13069_v34 }
 0xe87   :  { %13072 = vmatpush3.bf16.msra.mxu0 %v13069_v34 }
 0xe88   :  { %12413 = vmatprep.subr.mxu0 %v14236_v12 }
 0xf4d   :  { %v12361_v15 = vpop.f32.mrb[16].mxu0 }
 0xf4e   :  { %v2280_v46 = vadd.f32 %v12361_v15, %v11642_v45  ;;  %v2274_v48 = vpop.f32.mrb[17].mxu0 }
 0xf4f   :  { %v2275_v49 = vadd.f32 %v11642_v45, %v2274_v48  ;;  %v11650_v48 = vld [vmem:[#allocation12] ss:$0 sm:$0xff] }
 0xf50   :  { %v2286_v51 = vadd.f32 %v2280_v46, %v14674_v25 }
 0xf51   :  { %v2285_v52 = vadd.f32 %v2275_v49, %v14672_v24 }
 0xf52   :  { %v2290_v53 = vsel %vm743_vm3, %v2286_v51, 0.0 }
 0xf53   :  { %2291 = vadd.xlane.f32.xlu1 %v2290_v53  ;;  %v2287_v17 = vsel %vm743_vm3, %v2285_v52, 0.0 }
 0xf54   :  { %2288 = vadd.xlane.f32.xlu0 %v2287_v17 }
 0xfe0   :  { %v2292_v54 = vpop.xlane.xlu1 %2291 }
 0xfe1   :  { %v2295_v55 = vmul.f32 0.03125, %v2292_v54  ;;  %v2289_v56 = vpop.xlane.xlu0 %2288 }
 0xfe2   :  { %v2294_v57 = vmul.f32 0.03125, %v2289_v56 }
 0xfe3   :  { %v2297_v58 = vsub.f32 %v2286_v51, %v2295_v55 }
 0xfe4   :  { %v2296_v59 = vsub.f32 %v2285_v52, %v2294_v57 }
 0xfe5   :  { %v2299_v25 = vmul.f32 %v2297_v58, %v2297_v58 }
 0xfe6   :  { %v2298_v60 = vmul.f32 %v2296_v59, %v2296_v59 }
 0xfe7   :  { %v2303_v62 = vsel %vm743_vm3, %v2299_v25, 0.0 }
 0xfe8   :  { %v2300_v24 = vsel %vm743_vm3, %v2298_v60, 0.0 }
 0xfe9   :  { %2301 = vadd.xlane.f32.xlu0 %v2300_v24 }
 0xfed   :  { %2304 = vadd.xlane.f32.xlu0 %v2303_v62 }
0x1076   :  { %v2302_v13 = vpop.xlane.xlu0 %2301 }
0x1077   :  { %v2306_v14 = vmul.f32 0.03125, %v2302_v13 }
0x1079   :  { %v2308_v35 = vadd.f32 1e-05, %v2306_v14  ;;  %v11653_v14 = vld [vmem:[#allocation13] ss:$0 sm:$0xff] }
0x107a   :  { %v2305_v16 = vpop.xlane.xlu0 %2304 }
0x107b   :  { %13372 = vrsqrt.f32 %v2308_v35  ;;  %v2307_v18 = vmul.f32 0.03125, %v2305_v16 }
0x107d   :  { %v2309_v19 = vadd.f32 1e-05, %v2307_v18 }
0x107f   :  { %13374 = vrsqrt.f32 %v2309_v19  ;;  %v11654_v19 = vld [vmem:[#allocation15] ss:$0 sm:$0xff] }
0x1085   :  { %v13373_v20 = vpop.eup %13372 }
0x1086   :  { %v2312_v22 = vmul.f32 %v13373_v20, %v2296_v59 }
0x1088   :  { %v2320_v26 = vmul.f32 %v11645_v21, %v2312_v22 }
0x1089   :  { %v13375_v27 = vpop.eup %13374 }
0x108a   :  { %v2313_v28 = vmul.f32 %v13375_v27, %v2297_v58  ;;  %v2328_v29 = vadd.f32 %v11646_v23, %v2320_v26  ;;  %v11659_v26 = vld [vmem:[#allocation4 + $0x1] ss:$0 sm:$0xff] }
0x108c   :  { %v2321_v30 = vmul.f32 %v11645_v21, %v2313_v28  ;;  %12370 = vmatprep.mubr.msk.f32.mxu1 %vm743_vm3, %v2328_v29 }
0x108e   :  { %v2329_v31 = vadd.f32 %v11646_v23, %v2321_v30 }
0x1090   :  { %12371 = vmatmul.mubr.msk.f32.vlgmr.msra.gmra.mrb[22].mxu1 %vm743_vm3, %v2329_v31 }
0x1091   :  { %13076 = vmatpush3.bf16.msra.mxu1 %v13073_v37 }
0x1092   :  { %13078 = vmatprep.subr.bf16.mxu1 %v13077_v6 }
0x1095   :  { %13080 = vmatpush3.bf16.msra.mxu1 %v13077_v6 }
0x1096   :  { %12403 = vmatprep.subr.mxu1 %v14236_v12 }
0x1163   :  { %v12372_v40 = vpop.f32.mrb[22].mxu1 }
0x1164   :  { %v2428_v41 = vadd.f32 %v12372_v40, %v11647_v36  ;;  %v2422_v43 = vpop.f32.mrb[23].mxu1 }
0x1165   :  { %v2423_v45 = vadd.f32 %v11647_v36, %v2422_v43 }
0x1166   :  { %v2432_v46 = vmax.f32 %v2428_v41, 0.0 }
0x1167   :  { %v2431_v15 = vmax.f32 %v2423_v45, 0.0 }
0x1169   :  { %12389 = vmatprep.mubr.msk.f32.mxu0 %vm2439_vm9, %v2431_v15 }
0x116a   :  { %12390 = vmatmul.mubr.msk.f32.vlgmr.msra.gmra.mrb[18].mxu0 %vm2439_vm9, %v2432_v46 }
0x116b   :  { %12415 = vmatprep.mubr.msk.f32.mxu0 %vm14237_vm6, %v14236_v12 }
0x123d   :  { %v12391_v49 = vpop.f32.mrb[18].mxu0 }
0x123e   :  { %v2518_v51 = vadd.f32 %v12391_v49, %v11650_v48  ;;  %v2512_v52 = vpop.f32.mrb[19].mxu0 }
0x123f   :  { %v2513_v53 = vadd.f32 %v11650_v48, %v2512_v52 }
0x1240   :  { %v2524_v17 = vadd.f32 %v2518_v51, %v2329_v31 }
0x1241   :  { %v2523_v54 = vadd.f32 %v2513_v53, %v2328_v29 }
0x1242   :  { %v2528_v55 = vsel %vm743_vm3, %v2524_v17, 0.0 }
0x1243   :  { %2529 = vadd.xlane.f32.xlu0 %v2528_v55  ;;  %v2525_v56 = vsel %vm743_vm3, %v2523_v54, 0.0 }
0x1244   :  { %2526 = vadd.xlane.f32.xlu1 %v2525_v56 }
0x12d0   :  { %v2530_v57 = vpop.xlane.xlu0 %2529 }
0x12d1   :  { %v2532_v58 = vmul.f32 0.03125, %v2530_v57  ;;  %v2527_v59 = vpop.xlane.xlu1 %2526 }
0x12d2   :  { %v2531_v60 = vmul.f32 0.03125, %v2527_v59 }
0x12d3   :  { %v2534_v24 = vsub.f32 %v2524_v17, %v2532_v58 }
0x12d4   :  { %v2533_v25 = vsub.f32 %v2523_v54, %v2531_v60 }
0x12d5   :  { %v2536_v62 = vmul.f32 %v2534_v24, %v2534_v24 }
0x12d6   :  { %v2535_v0 = vmul.f32 %v2533_v25, %v2533_v25 }
0x12d7   :  { %v2540_v1 = vsel %vm743_vm3, %v2536_v62, 0.0 }
0x12d8   :  { %2541 = vadd.xlane.f32.xlu0 %v2540_v1  ;;  %v2537_v2 = vsel %vm743_vm3, %v2535_v0, 0.0 }
0x12d9   :  { %2538 = vadd.xlane.f32.xlu1 %v2537_v2 }
0x1365   :  { %v2542_v63 = vpop.xlane.xlu0 %2541 }
0x1366   :  { %v2544_v7 = vmul.f32 0.03125, %v2542_v63  ;;  %v2539_v8 = vpop.xlane.xlu1 %2538 }
0x1367   :  { %v2543_v9 = vmul.f32 0.03125, %v2539_v8  ;;  %v14996_v8 = vld [vmem:[%s16145_s28] sm:$0xff] }
0x1368   :  { %v2546_v10 = vadd.f32 1e-05, %v2544_v7 }
0x1369   :  { %v2545_v11 = vadd.f32 1e-05, %v2543_v9 }
0x136a   :  { %13376 = vrsqrt.f32 %v2546_v10 }
0x136b   :  { %13378 = vrsqrt.f32 %v2545_v11  ;;  %v15000_v11 = vld [vmem:[%s16144_s29 + $0x8] sm:$0xff] }
0x1374   :  { %v13377_v13 = vpop.eup %13376 }
0x1375   :  { %v13379_v35 = vpop.eup %13378  ;;  %v2550_v16 = vmul.f32 %v13377_v13, %v2534_v24 }
0x1376   :  { %v2549_v18 = vmul.f32 %v13379_v35, %v2533_v25 }
0x1377   :  { %v2558_v20 = vmul.f32 %v11653_v14, %v2550_v16  ;;  %v15005_v16 = vld [vmem:[%s16145_s28 + $0x8] sm:$0xff] }
0x1378   :  { %v2557_v21 = vmul.f32 %v11653_v14, %v2549_v18 }
0x1379   :  { %v14921_v23 = vadd.f32 %v11654_v19, %v2558_v20 }
0x137a   :  { %v14919_v22 = vadd.f32 %v11654_v19, %v2557_v21 }
0x137c   :  { %12400 = vmatprep.mubr.msk.f32.mxu1 %vm743_vm3, %v14919_v22 }
0x137d   :  { %12401 = vmatmul.mubr.msk.f32.vlgmr.msra.gmra.mrb[24].mxu1 %vm743_vm3, %v14921_v23 }
0x137e   :  { %12405 = vmatprep.mubr.msk.f32.mxu1 %vm14237_vm6, %v14236_v12 }
0x1450   :  { %v12402_v27 = vpop.f32.mrb[24].mxu1 }
0x1451   :  { %v14929_v28 = vadd.f32 %v12402_v27, %v11659_v26  ;;  %v2652_v29 = vpop.f32.mrb[25].mxu1 }
0x1452   :  { %v14931_v30 = vadd.f32 %v11659_v26, %v2652_v29 }
0x1453   :  { %2739 = vrot.lane.b32.xlu0 %v14929_v28, %s14238_s26 }
0x1454   :  { %2662 = vrot.lane.b32.xlu1 %v14931_v30, %s14238_s26 }
0x14c5   :  { %v2740_v32 = vpop.permute.xlu0 %2739 }
0x14c6   :  { %v2663_v31 = vpop.permute.xlu1 %2662 }
0x14c7   :  { %12404 = vmatpush3.xpose.msk.msra.mxu1 %vm828_vm7, %v2663_v31 }
0x14c8   :  { %12408 = vmatprep.subr.mxu1 %v14236_v12 }
0x14ca   :  { %12406 = vmatmul.mubr.msk.f32.vlgmr.msra.gmra.mrb[26].mxu1 %vm828_vm7, %v14931_v30 }
0x14cb   :  { %12409 = vmatpush3.xpose.msk.msra.mxu1 %vm828_vm7, %v2740_v32  ;;  %12410 = vmatprep.mubr.msk.f32.mxu1 %vm14237_vm6, %v14236_v12 }
0x14cc   :  { %12418 = vmatprep.subr.mxu1 %v14236_v12 }
0x14ce   :  { %12411 = vmatmul.mubr.msk.f32.vlgmr.msra.gmra.mrb[28].mxu1 %vm828_vm7, %v14929_v28 }
0x14cf   :  { %12420 = vmatprep.mubr.msk.f32.mxu1 %vm14237_vm6, %v14236_v12 }
0x159d   :  { %v2734_v33 = vpop.f32.mrb[26].mxu1 }
0x159e   :  { %v2815_v34 = vmul.f32 %v2734_v33, %v14716_v42  ;;  %v12407_v36 = vpop.f32.mrb[27].mxu1 }
0x15a0   :  { %v2817_v40 = vadd.f32 %v2815_v34, %v14719_v44 }
0x15a1   :  { %v2811_v41 = vpop.f32.mrb[28].mxu1 }
0x15a2   :  { %v2816_v43 = vmul.f32 %v2811_v41, %v14723_v47  ;;  %v12412_v45 = vpop.f32.mrb[29].mxu1  ;;  %v2819_v15 = vsel %vm828_vm7, %v2817_v40, -inf }
0x15a3   :  { %2820 = vmax.xlane.f32.xlu1 %v2819_v15 }
0x15a4   :  { %v2818_v46 = vadd.f32 %v2816_v43, %v14727_v50 }
0x15a6   :  { %v2822_v48 = vsel %vm828_vm7, %v2818_v46, -inf }
0x15a7   :  { %2823 = vmax.xlane.f32.xlu0 %v2822_v48 }
0x15b4   :  { %2841 = vrot.lane.b32.xlu1 %v14931_v30, %s14239_s7 }
0x15b8   :  { %2995 = vrot.lane.b32.xlu1 %v14931_v30, %s14240_s27 }
0x15bc   :  { %3073 = vrot.lane.b32.xlu1 %v14929_v28, %s14240_s27 }
0x15bd   :  { %2917 = vrot.lane.b32.xlu0 %v14929_v28, %s14239_s7 }
0x1630   :  { %v2821_v42 = vpop.xlane.xlu1 %2820 }
0x1631   :  { %v2825_v44 = vsub.f32 %v2817_v40, %v2821_v42 }
0x1633   :  { %v2827_v47 = vmul.f32 1.442695, %v2825_v44 }
0x1634   :  { %v2842_v49 = vpop.permute.xlu1 %2841  ;;  %v2824_v50 = vpop.xlane.xlu0 %2823 }
0x1635   :  { %13380 = vpow2.f32 %v2827_v47  ;;  %v2826_v51 = vsub.f32 %v2818_v46, %v2824_v50  ;;  %12414 = vmatpush3.msra.mxu0 %v2842_v49 }
0x1636   :  { %12423 = vmatprep.subr.mxu0 %v14236_v12 }
0x1637   :  { %v2829_v52 = vmul.f32 1.442695, %v2826_v51 }
0x1638   :  { %v2918_v53 = vpop.permute.xlu0 %2917  ;;  %v2996_v57 = vpop.permute.xlu1 %2995 }
0x1639   :  { %13382 = vpow2.f32 %v2829_v52  ;;  %12419 = vmatpush3.msra.mxu1 %v2918_v53 }
0x163a   :  { %12428 = vmatprep.subr.mxu1 %v14236_v12 }
0x163c   :  { %v3074_v58 = vpop.permute.xlu1 %3073 }
0x163f   :  { %v13381_v17 = vpop.eup %13380 }
0x1640   :  { %v2831_v54 = vsel %vm828_vm7, %v13381_v17, 0.0 }
0x1641   :  { %2832 = vadd.xlane.f32.xlu1 %v2831_v54 }
0x1643   :  { %v13383_v55 = vpop.eup %13382 }
0x1644   :  { %v2834_v56 = vsel %vm828_vm7, %v13383_v55, 0.0 }
0x1645   :  { %2835 = vadd.xlane.f32.xlu0 %v2834_v56 }
0x1652   :  { %3071 = vrot.lane.b32.xlu1 %v14929_v28, %s14241_s5 }
0x165b   :  { %2993 = vrot.lane.b32.xlu0 %v14931_v30, %s14241_s5 }
0x16ce   :  { %v2833_v59 = vpop.xlane.xlu1 %2832 }
0x16cf   :  { %13384 = vrcp.f32 %v2833_v59 }
0x16d2   :  { %v2836_v60 = vpop.xlane.xlu0 %2835  ;;  %v3072_v2 = vpop.permute.xlu1 %3071 }
0x16d3   :  { %13386 = vrcp.f32 %v2836_v60 }
0x16d6   :  { %v2994_v1 = vpop.permute.xlu0 %2993 }
0x16d9   :  { %v13385_v24 = vpop.eup %13384 }
0x16da   :  { %v2838_v25 = vmul.f32 %v13385_v24, %v13381_v17 }
0x16dc   :  { %12416 = vmatmul.mubr.msk.f32.vlgmr.msra.gmra.mrb[20].mxu0 %vm828_vm7, %v2838_v25 }
0x16dd   :  { %v13387_v62 = vpop.eup %13386  ;;  %12424 = vmatpush3.xpose.msk.msra.mxu0 %vm828_vm7, %v2996_v57  ;;  %12425 = vmatprep.mubr.msk.f32.mxu0 %vm14237_vm6, %v14236_v12 }
0x16de   :  { %v2840_v0 = vmul.f32 %v13387_v62, %v13383_v55  ;;  %12433 = vmatprep.subr.mxu0 %v14236_v12 }
0x16e0   :  { %12421 = vmatmul.mubr.msk.f32.vlgmr.msra.gmra.mrb[30].mxu1 %vm828_vm7, %v2840_v0  ;;  %12426 = vmatmul.mubr.msk.f32.vlgmr.msra.gmra.mrb[22].mxu0 %vm828_vm7, %v2994_v1 }
0x16e1   :  { %12429 = vmatpush3.xpose.msk.msra.mxu1 %vm828_vm7, %v3074_v58  ;;  %12430 = vmatprep.mubr.msk.f32.mxu1 %vm14237_vm6, %v14236_v12 }
0x16e2   :  { %12438 = vmatprep.subr.mxu1 %v14236_v12  ;;  %12435 = vmatprep.mubr.msk.f32.mxu0 %vm14237_vm6, %v14236_v12 }
0x16e4   :  { %12431 = vmatmul.mubr.msk.f32.vlgmr.msra.gmra.mrb[32].mxu1 %vm828_vm7, %v3072_v2 }
0x16e5   :  { %12440 = vmatprep.mubr.msk.f32.mxu1 %vm14237_vm6, %v14236_v12 }
0x17af   :  { %v14987_v3 = vpop.f32.mrb[20].mxu0 }
0x17b0   :  { %v12417_v4 = vpop.f32.mrb[21].mxu0 }
0x17b3   :  { %v14989_v5 = vpop.f32.mrb[30].mxu1  ;;  %v3067_v37 = vpop.f32.mrb[22].mxu0 }
0x17b4   :  { %v3149_v6 = vmul.f32 %v14992_v61, %v3067_v37  ;;  %v12422_v63 = vpop.f32.mrb[31].mxu1  ;;  %v12427_v7 = vpop.f32.mrb[23].mxu0 }
0x17b6   :  { %v3151_v9 = vadd.f32 %v14996_v8, %v3149_v6 }
0x17b7   :  { %v3145_v10 = vpop.f32.mrb[32].mxu1 }
0x17b8   :  { %v3150_v13 = vmul.f32 %v15000_v11, %v3145_v10  ;;  %v12432_v14 = vpop.f32.mrb[33].mxu1  ;;  %v3153_v35 = vsel %vm828_vm7, %v3151_v9, -inf }
0x17b9   :  { %3154 = vmax.xlane.f32.xlu0 %v3153_v35 }
0x17ba   :  { %v3152_v18 = vadd.f32 %v15005_v16, %v3150_v13 }
0x17bc   :  { %v3156_v19 = vsel %vm828_vm7, %v3152_v18, -inf }
0x17bd   :  { %3157 = vmax.xlane.f32.xlu1 %v3156_v19 }
0x17ce   :  { %3175 = vrot.lane.b32.xlu1 %v14931_v30, %s14242_s1 }
0x17cf   :  { %3251 = vrot.lane.b32.xlu0 %v14929_v28, %s14242_s1 }
0x17d2   :  { %3329 = vrot.lane.b32.xlu1 %v14931_v30, %s14243_s30 }
0x17d6   :  { %3407 = vrot.lane.b32.xlu1 %v14929_v28, %s14243_s30 }
0x17da   :  { %3405 = vrot.lane.b32.xlu1 %v14929_v28, %s14244_s6 }
0x1846   :  { %v3155_v20 = vpop.xlane.xlu0 %3154 }
0x1847   :  { %v3159_v21 = vsub.f32 %v3151_v9, %v3155_v20 }
0x1849   :  { %v3161_v26 = vmul.f32 1.442695, %v3159_v21 }
0x184a   :  { %v3252_v27 = vpop.permute.xlu0 %3251  ;;  %v3158_v29 = vpop.xlane.xlu1 %3157 }
0x184b   :  { %13388 = vpow2.f32 %v3161_v26  ;;  %v3160_v31 = vsub.f32 %v3152_v18, %v3158_v29  ;;  %12439 = vmatpush3.msra.mxu1 %v3252_v27 }
0x184c   :  { %12448 = vmatprep.subr.mxu1 %v14236_v12 }
0x184d   :  { %v3163_v32 = vmul.f32 1.442695, %v3160_v31 }
0x184e   :  { %v3176_v33 = vpop.permute.xlu1 %3175 }
0x184f   :  { %13390 = vpow2.f32 %v3163_v32  ;;  %12434 = vmatpush3.msra.mxu0 %v3176_v33 }
0x1850   :  { %12443 = vmatprep.subr.mxu0 %v14236_v12 }
0x1852   :  { %v3330_v15 = vpop.permute.xlu1 %3329 }
0x1855   :  { %v13389_v34 = vpop.eup %13388 }
0x1856   :  { %v3165_v36 = vsel %vm828_vm7, %v13389_v34, 0.0  ;;  %v3408_v44 = vpop.permute.xlu1 %3407 }
0x1857   :  { %3166 = vadd.xlane.f32.xlu0 %v3165_v36 }
0x1859   :  { %v13391_v40 = vpop.eup %13390 }
0x185a   :  { %v3168_v41 = vsel %vm828_vm7, %v13391_v40, 0.0  ;;  %v3406_v50 = vpop.permute.xlu1 %3405 }
0x185b   :  { %3169 = vadd.xlane.f32.xlu0 %v3168_v41 }
0x1871   :  { %3327 = vrot.lane.b32.xlu0 %v14931_v30, %s14244_s6 }
0x18e4   :  { %v3167_v43 = vpop.xlane.xlu0 %3166 }
0x18e5   :  { %13392 = vrcp.f32 %v3167_v43 }
0x18e8   :  { %v3170_v45 = vpop.xlane.xlu0 %3169 }
0x18e9   :  { %13394 = vrcp.f32 %v3170_v45 }
0x18ec   :  { %v3328_v49 = vpop.permute.xlu0 %3327 }
0x18ef   :  { %v13393_v46 = vpop.eup %13392 }
0x18f0   :  { %v3172_v48 = vmul.f32 %v13393_v46, %v13389_v34 }
0x18f2   :  { %12436 = vmatmul.mubr.msk.f32.vlgmr.msra.gmra.mrb[24].mxu0 %vm828_vm7, %v3172_v48 }
0x18f3   :  { %v13395_v42 = vpop.eup %13394  ;;  %12444 = vmatpush3.xpose.msk.msra.mxu0 %vm828_vm7, %v3330_v15  ;;  %12445 = vmatprep.mubr.msk.f32.mxu0 %vm14237_vm6, %v14236_v12 }
0x18f4   :  { %v3174_v47 = vmul.f32 %v13395_v42, %v13391_v40  ;;  %12453 = vmatprep.subr.mxu0 %v14236_v12 }
0x18f6   :  { %12441 = vmatmul.mubr.msk.f32.vlgmr.msra.gmra.mrb[34].mxu1 %vm828_vm7, %v3174_v47  ;;  %12446 = vmatmul.mubr.msk.f32.vlgmr.msra.gmra.mrb[26].mxu0 %vm828_vm7, %v3328_v49 }
0x18f7   :  { %12449 = vmatpush3.xpose.msk.msra.mxu1 %vm828_vm7, %v3408_v44  ;;  %12450 = vmatprep.mubr.msk.f32.mxu1 %vm14237_vm6, %v14236_v12 }
0x18f8   :  { %12458 = vmatprep.subr.mxu1 %v14236_v12  ;;  %12455 = vmatprep.mubr.msk.f32.mxu0 %vm14237_vm6, %v14236_v12 }
0x18fa   :  { %12451 = vmatmul.mubr.msk.f32.vlgmr.msra.gmra.mrb[36].mxu1 %vm828_vm7, %v3406_v50 }
0x18fb   :  { %12460 = vmatprep.mubr.msk.f32.mxu1 %vm14237_vm6, %v14236_v12 }
0x19c5   :  { %v15041_v51 = vpop.f32.mrb[24].mxu0 }
0x19c6   :  { %v12437_v52 = vpop.f32.mrb[25].mxu0 }
0x19c9   :  { %v15043_v53 = vpop.f32.mrb[34].mxu1  ;;  %v3401_v17 = vpop.f32.mrb[26].mxu0 }
0x19ca   :  { %v3483_v54 = vmul.f32 %v14992_v61, %v3401_v17  ;;  %v12442_v55 = vpop.f32.mrb[35].mxu1  ;;  %v12447_v56 = vpop.f32.mrb[27].mxu0 }
0x19cc   :  { %v3485_v57 = vadd.f32 %v14996_v8, %v3483_v54 }
0x19cd   :  { %v3479_v58 = vpop.f32.mrb[36].mxu1 }
0x19ce   :  { %v3484_v59 = vmul.f32 %v15000_v11, %v3479_v58  ;;  %v12452_v60 = vpop.f32.mrb[37].mxu1  ;;  %v3487_v24 = vsel %vm828_vm7, %v3485_v57, -inf }
0x19cf   :  { %3488 = vmax.xlane.f32.xlu0 %v3487_v24 }
0x19d0   :  { %v3486_v25 = vadd.f32 %v15005_v16, %v3484_v59 }
0x19d2   :  { %v3490_v62 = vsel %vm828_vm7, %v3486_v25, -inf }
0x19d3   :  { %3491 = vmax.xlane.f32.xlu1 %v3490_v62 }
0x19e4   :  { %3509 = vrot.lane.b32.xlu1 %v14931_v30, %s14245_s2 }
0x19e5   :  { %3585 = vrot.lane.b32.xlu0 %v14929_v28, %s14245_s2 }
0x19e8   :  { %3663 = vrot.lane.b32.xlu1 %v14931_v30, %s14246_s17 }
0x19ec   :  { %3741 = vrot.lane.b32.xlu1 %v14929_v28, %s14246_s17 }
0x19f0   :  { %3739 = vrot.lane.b32.xlu1 %v14929_v28, %s14247_s25 }
0x1a5c   :  { %v3489_v0 = vpop.xlane.xlu0 %3488 }
0x1a5d   :  { %v3493_v1 = vsub.f32 %v3485_v57, %v3489_v0  ;;  %v11688_v0 = vld [vmem:[%s16146_s4 + $0x30] sm:$0xff] }
0x1a5f   :  { %v3495_v2 = vmul.f32 1.442695, %v3493_v1  ;;  %v11689_v1 = vld [vmem:[%s16146_s4 + $0x38] sm:$0xff] }
0x1a60   :  { %v3586_v4 = vpop.permute.xlu0 %3585  ;;  %v3492_v37 = vpop.xlane.xlu1 %3491 }
0x1a61   :  { %13396 = vpow2.f32 %v3495_v2  ;;  %v3494_v6 = vsub.f32 %v3486_v25, %v3492_v37  ;;  %12459 = vmatpush3.msra.mxu1 %v3586_v4  ;;  %v11686_v25 = vld [vmem:[%s16146_s4 + $0x20] sm:$0xff]  ;;  %v13085_v2 = vpack.c.bf16 %v11689_v1, %v11688_v0 }
0x1a62   :  { %12468 = vmatprep.subr.mxu1 %v14236_v12 }
0x1a63   :  { %v3497_v63 = vmul.f32 1.442695, %v3494_v6 }
0x1a64   :  { %v3510_v7 = vpop.permute.xlu1 %3509 }
0x1a65   :  { %13398 = vpow2.f32 %v3497_v63  ;;  %12454 = vmatpush3.msra.mxu0 %v3510_v7 }
0x1a66   :  { %12463 = vmatprep.subr.mxu0 %v14236_v12 }
0x1a68   :  { %v3664_v19 = vpop.permute.xlu1 %3663 }
0x1a6b   :  { %v13397_v9 = vpop.eup %13396 }
0x1a6c   :  { %v3499_v10 = vsel %vm828_vm7, %v13397_v9, 0.0  ;;  %v3742_v27 = vpop.permute.xlu1 %3741 }
0x1a6d   :  { %3500 = vadd.xlane.f32.xlu0 %v3499_v10 }
0x1a6f   :  { %v13399_v13 = vpop.eup %13398 }
0x1a70   :  { %v3502_v14 = vsel %vm828_vm7, %v13399_v13, 0.0  ;;  %v3740_v32 = vpop.permute.xlu1 %3739 }
0x1a71   :  { %3503 = vadd.xlane.f32.xlu0 %v3502_v14 }
0x1a87   :  { %3661 = vrot.lane.b32.xlu0 %v14931_v30, %s14247_s25 }
0x1afa   :  { %v3501_v35 = vpop.xlane.xlu0 %3500 }
0x1afb   :  { %13400 = vrcp.f32 %v3501_v35 }
0x1afe   :  { %v3504_v18 = vpop.xlane.xlu0 %3503 }
0x1aff   :  { %13402 = vrcp.f32 %v3504_v18 }
0x1b02   :  { %v3662_v31 = vpop.permute.xlu0 %3661 }
0x1b05   :  { %v13401_v20 = vpop.eup %13400 }
0x1b06   :  { %v3506_v21 = vmul.f32 %v13401_v20, %v13397_v9 }
0x1b08   :  { %12456 = vmatmul.mubr.msk.f32.vlgmr.msra.gmra.mrb[28].mxu0 %vm828_vm7, %v3506_v21 }
0x1b09   :  { %v13403_v26 = vpop.eup %13402  ;;  %12464 = vmatpush3.xpose.msk.msra.mxu0 %vm828_vm7, %v3664_v19  ;;  %12465 = vmatprep.mubr.msk.f32.mxu0 %vm14237_vm6, %v14236_v12 }
0x1b0a   :  { %v3508_v29 = vmul.f32 %v13403_v26, %v13399_v13  ;;  %12473 = vmatprep.subr.mxu0 %v14236_v12 }
0x1b0c   :  { %12461 = vmatmul.mubr.msk.f32.vlgmr.msra.gmra.mrb[38].mxu1 %vm828_vm7, %v3508_v29  ;;  %12466 = vmatmul.mubr.msk.f32.vlgmr.msra.gmra.mrb[30].mxu0 %vm828_vm7, %v3662_v31  ;;  %v11690_v29 = vld [vmem:[#allocation6 + $0x1] ss:$0 sm:$0xff] }
0x1b0d   :  { %12469 = vmatpush3.xpose.msk.msra.mxu1 %vm828_vm7, %v3742_v27  ;;  %12470 = vmatprep.mubr.msk.f32.mxu1 %vm14237_vm6, %v14236_v12 }
0x1b0e   :  { %12478 = vmatprep.subr.mxu1 %v14236_v12  ;;  %12475 = vmatprep.mubr.msk.f32.mxu0 %vm14237_vm6, %v14236_v12 }
0x1b10   :  { %12471 = vmatmul.mubr.msk.f32.vlgmr.msra.gmra.mrb[40].mxu1 %vm828_vm7, %v3740_v32 }
0x1b11   :  { %12480 = vmatprep.mubr.msk.f32.mxu1 %vm14237_vm6, %v14236_v12 }
0x1bdb   :  { %v3581_v33 = vpop.f32.mrb[28].mxu0 }
0x1bdc   :  { %v12457_v34 = vpop.f32.mrb[29].mxu0 }
0x1bdf   :  { %v3657_v36 = vpop.f32.mrb[38].mxu1  ;;  %v3735_v40 = vpop.f32.mrb[30].mxu0 }
0x1be0   :  { %v3817_v41 = vmul.f32 %v14992_v61, %v3735_v40  ;;  %v12462_v43 = vpop.f32.mrb[39].mxu1  ;;  %v12467_v45 = vpop.f32.mrb[31].mxu0 }
0x1be2   :  { %v3819_v15 = vadd.f32 %v14996_v8, %v3817_v41 }
0x1be3   :  { %v3813_v46 = vpop.f32.mrb[40].mxu1 }
0x1be4   :  { %v3818_v48 = vmul.f32 %v15000_v11, %v3813_v46  ;;  %v12472_v42 = vpop.f32.mrb[41].mxu1  ;;  %v3821_v44 = vsel %vm828_vm7, %v3819_v15, -inf }
0x1be5   :  { %3822 = vmax.xlane.f32.xlu0 %v3821_v44 }
0x1be6   :  { %v3820_v47 = vadd.f32 %v15005_v16, %v3818_v48 }
0x1be8   :  { %v3824_v49 = vsel %vm828_vm7, %v3820_v47, -inf }
0x1be9   :  { %3825 = vmax.xlane.f32.xlu1 %v3824_v49  ;;  %v11696_v49 = vld [vmem:[%s16147_s11 + $0x28] sm:$0xff] }
0x1bfa   :  { %3843 = vrot.lane.b32.xlu1 %v14931_v30, %s14248_s20 }
0x1bfe   :  { %3997 = vrot.lane.b32.xlu1 %v15041_v51, %s14222_s10 }
0x1c02   :  { %3999 = vrot.lane.b32.xlu1 %v15043_v53, %s14222_s10 }
0x1c06   :  { %4007 = vrot.lane.b32.xlu1 %v3657_v36, %s14207_s15 }
0x1c72   :  { %v3823_v61 = vpop.xlane.xlu0 %3822 }
0x1c73   :  { %v3827_v8 = vsub.f32 %v3819_v15, %v3823_v61  ;;  %v11697_v61 = vld [vmem:[%s16147_s11 + $0x30] sm:$0xff] }
0x1c75   :  { %v3829_v11 = vmul.f32 1.442695, %v3827_v8 }
0x1c76   :  { %v3826_v50 = vpop.xlane.xlu1 %3825 }
0x1c77   :  { %13404 = vpow2.f32 %v3829_v11  ;;  %v3828_v16 = vsub.f32 %v3820_v47, %v3826_v50  ;;  %v11695_v47 = vld [vmem:[%s16147_s11 + $0x20] sm:$0xff]  ;;  %v11698_v11 = vld [vmem:[%s16147_s11 + $0x38] sm:$0xff] }
0x1c78   :  { %v13089_v8 = vpack.c.bf16 %v11696_v49, %v11695_v47  ;;  %v13093_v50 = vpack.c.bf16 %v11698_v11, %v11697_v61  ;;  %v15199_v49 = vld [vmem:[%s16150_s24 + $0x8] sm:$0xff] }
0x1c79   :  { %v3831_v52 = vmul.f32 1.442695, %v3828_v16  ;;  %v4409_v16 = vld [vmem:[%s16149_s18] sm:$0xff] }
0x1c7a   :  { %v3844_v17 = vpop.permute.xlu1 %3843 }
0x1c7b   :  { %13406 = vpow2.f32 %v3831_v52  ;;  %12474 = vmatpush3.msra.mxu0 %v3844_v17  ;;  %v4410_v52 = vld [vmem:[%s16149_s18 + $0x8] sm:$0xff] }
0x1c7c   :  { %v13113_v17 = vpack.c.bf16 %v4410_v52, %v4409_v16 }
0x1c7e   :  { %v3998_v7 = vpop.permute.xlu1 %3997 }
0x1c7f   :  { %v4019_v13 = vsel %vm828_vm7, %v14987_v3, %v3998_v7 }
0x1c81   :  { %v13405_v54 = vpop.eup %13404 }
0x1c82   :  { %v3833_v30 = vsel %vm828_vm7, %v13405_v54, 0.0  ;;  %v4000_v9 = vpop.permute.xlu1 %3999 }
0x1c83   :  { %3834 = vadd.xlane.f32.xlu0 %v3833_v30  ;;  %v4020_v20 = vsel %vm828_vm7, %v14989_v5, %v4000_v9  ;;  %v11700_v30 = vld [vmem:[%s16148_s9 + $0x48] sm:$0xff] }
0x1c85   :  { %v13407_v51 = vpop.eup %13406 }
0x1c86   :  { %v3836_v55 = vsel %vm828_vm7, %v13407_v51, 0.0  ;;  %v4008_v14 = vpop.permute.xlu1 %4007 }
0x1c87   :  { %3837 = vadd.xlane.f32.xlu0 %v3836_v55  ;;  %v4022_v21 = vsel %vm541_vm0, %v4020_v20, %v4008_v14 }
0x1c9d   :  { %3919 = vrot.lane.b32.xlu0 %v14929_v28, %s14248_s20  ;;  %v11687_v28 = vld [vmem:[%s16146_s4 + $0x28] sm:$0xff] }
0x1c9e   :  { %v13081_v62 = vpack.c.bf16 %v11687_v28, %v11686_v25 }
0x1ca0   :  { %13082 = vmatprep.subr.bf16.mxu0 %v13081_v62 }
0x1ca1   :  { %4005 = vrot.lane.b32.xlu0 %v3581_v33, %s14207_s15 }
0x1d10   :  { %v3835_v53 = vpop.xlane.xlu0 %3834 }
0x1d11   :  { %13408 = vrcp.f32 %v3835_v53  ;;  %v11702_v53 = vld [vmem:[%s16148_s9 + $0x58] sm:$0xff] }
0x1d14   :  { %v3838_v56 = vpop.xlane.xlu0 %3837 }
0x1d15   :  { %13410 = vrcp.f32 %v3838_v56 }
0x1d18   :  { %v3920_v57 = vpop.permute.xlu0 %3919 }
0x1d19   :  { %12479 = vmatpush3.msra.mxu1 %v3920_v57  ;;  %v11703_v57 = vld [vmem:[%s16148_s9 + $0x60] sm:$0xff] }
0x1d1a   :  { %13090 = vmatprep.subr.bf16.mxu1 %v13089_v8 }
0x1d1b   :  { %v13409_v58 = vpop.eup %13408 }
0x1d1c   :  { %v3840_v59 = vmul.f32 %v13409_v58, %v13405_v54  ;;  %v4006_v10 = vpop.permute.xlu0 %4005  ;;  %v11699_v54 = vld [vmem:[%s16148_s9 + $0x40] sm:$0xff]  ;;  %v11704_v58 = vld [vmem:[%s16148_s9 + $0x68] sm:$0xff] }
0x1d1d   :  { %v4021_v35 = vsel %vm541_vm0, %v4019_v13, %v4006_v10  ;;  %v13097_v55 = vpack.c.bf16 %v11700_v30, %v11699_v54  ;;  %v4411_v10 = vld [vmem:[%s16149_s18 + $0x10] sm:$0xff]  ;;  %v4412_v13 = vld [vmem:[%s16149_s18 + $0x18] sm:$0xff] }
0x1d1e   :  { %12476 = vmatmul.mubr.msk.f32.vlgmr.msra.gmra.mrb[32].mxu0 %vm828_vm7, %v3840_v59  ;;  %v13105_v59 = vpack.c.bf16 %v11704_v58, %v11703_v57 }
0x1d1f   :  { %v13411_v60 = vpop.eup %13410  ;;  %13084 = vmatpush3.bf16.msra.mxu0 %v13081_v62 }
0x1d20   :  { %v3842_v24 = vmul.f32 %v13411_v60, %v13407_v51  ;;  %13086 = vmatprep.subr.bf16.mxu0 %v13085_v2  ;;  %v11701_v51 = vld [vmem:[%s16148_s9 + $0x50] sm:$0xff] }
0x1d21   :  { %v13101_v56 = vpack.c.bf16 %v11702_v53, %v11701_v51 }
0x1d22   :  { %12481 = vmatmul.mubr.msk.f32.vlgmr.msra.gmra.mrb[42].mxu1 %vm828_vm7, %v3842_v24 }
0x1d23   :  { %13088 = vmatpush3.bf16.msra.mxu0 %v13085_v2  ;;  %13092 = vmatpush3.bf16.msra.mxu1 %v13089_v8  ;;  %v11693_v2 = vld [vmem:[#allocation7 + $0x1] ss:$0 sm:$0xff]  ;;  %v15203_v8 = vld [vmem:[%s16151_s21 + $0x8] sm:$0xff] }
0x1d24   :  { %13094 = vmatprep.subr.bf16.mxu1 %v13093_v50  ;;  %13098 = vmatprep.subr.bf16.mxu0 %v13097_v55 }
0x1d27   :  { %13096 = vmatpush3.bf16.msra.mxu1 %v13093_v50 }
0x1d28   :  { %13114 = vmatprep.subr.bf16.mxu1 %v13113_v17 }
0x1df1   :  { %v3915_v4 = vpop.f32.mrb[32].mxu0 }
0x1df2   :  { %4013 = vrot.lane.b32.xlu0 %v3915_v4, %s14249_s0  ;;  %v12477_v37 = vpop.f32.mrb[33].mxu0 }
0x1df3   :  { %v11694_v37 = vld [vmem:[#allocation9 + $0x1] ss:$0 sm:$0xff] }
0x1df5   :  { %v3991_v6 = vpop.f32.mrb[42].mxu1 }
0x1df6   :  { %4015 = vrot.lane.b32.xlu1 %v3991_v6, %s14249_s0  ;;  %v12482_v63 = vpop.f32.mrb[43].mxu1 }
0x1e64   :  { %v4014_v18 = vpop.permute.xlu0 %4013 }
0x1e65   :  { %v4023_v19 = vsel %vm2188_vm8, %v4021_v35, %v4014_v18  ;;  %v13117_v18 = vpack.c.bf16 %v4412_v13, %v4411_v10 }
0x1e66   :  { %12491 = vmatprep.mubr.msk.f32.mxu0 %vm743_vm3, %v4023_v19  ;;  %v13576_v19 = vld [vmem:[#allocation2] sm:$0xff] }
0x1e67   :  { %v15146_v20 = vadd.f32 %v13576_v19, %v14701_v39  ;;  %v11705_v39 = vld [vmem:[%s16148_s9 + $0x70] sm:$0xff] }
0x1e68   :  { %v4016_v26 = vpop.permute.xlu1 %4015 }
0x1e69   :  { %v4024_v27 = vsel %vm2188_vm8, %v4022_v21, %v4016_v26  ;;  %v15153_v21 = vadd.f32 %v13576_v19, %v14699_v38  ;;  %v11706_v26 = vld [vmem:[%s16148_s9 + $0x78] sm:$0xff] }
0x1e6a   :  { %12492 = vmatmul.mubr.msk.f32.vlgmr.msra.gmra.mrb[34].mxu0 %vm743_vm3, %v4024_v27  ;;  %v13109_v27 = vpack.c.bf16 %v11706_v26, %v11705_v39 }
0x1e6b   :  { %13100 = vmatpush3.bf16.msra.mxu0 %v13097_v55 }
0x1e6c   :  { %13102 = vmatprep.subr.bf16.mxu0 %v13101_v56 }
0x1e6f   :  { %13104 = vmatpush3.bf16.msra.mxu0 %v13101_v56 }
0x1e70   :  { %13106 = vmatprep.subr.bf16.mxu0 %v13105_v59 }
0x1e73   :  { %13108 = vmatpush3.bf16.msra.mxu0 %v13105_v59 }
0x1e74   :  { %13110 = vmatprep.subr.bf16.mxu0 %v13109_v27 }
0x1e77   :  { %13112 = vmatpush3.bf16.msra.mxu0 %v13109_v27 }
0x1e78   :  { %12545 = vmatprep.subr.mxu0 %v14236_v12 }
0x1f3d   :  { %v12493_v3 = vpop.f32.mrb[34].mxu0 }
0x1f3e   :  { %v4116_v31 = vadd.f32 %v12493_v3, %v11690_v29  ;;  %v4110_v32 = vpop.f32.mrb[35].mxu0 }
0x1f3f   :  { %v4111_v33 = vadd.f32 %v11690_v29, %v4110_v32  ;;  %v11707_v29 = vld [vmem:[#allocation10 + $0x1] ss:$0 sm:$0xff] }
0x1f40   :  { %v4124_v34 = vadd.f32 %v4116_v31, %v14921_v23 }
0x1f41   :  { %v4123_v36 = vadd.f32 %v4111_v33, %v14919_v22 }
0x1f42   :  { %v4128_v40 = vsel %vm743_vm3, %v4124_v34, 0.0 }
0x1f43   :  { %4129 = vadd.xlane.f32.xlu1 %v4128_v40  ;;  %v4125_v5 = vsel %vm743_vm3, %v4123_v36, 0.0 }
0x1f44   :  { %4126 = vadd.xlane.f32.xlu0 %v4125_v5 }
0x1fd0   :  { %v4130_v41 = vpop.xlane.xlu1 %4129 }
0x1fd1   :  { %v4132_v43 = vmul.f32 0.03125, %v4130_v41  ;;  %v4127_v45 = vpop.xlane.xlu0 %4126 }
0x1fd2   :  { %v4131_v15 = vmul.f32 0.03125, %v4127_v45 }
0x1fd3   :  { %v4134_v46 = vsub.f32 %v4124_v34, %v4132_v43 }
0x1fd4   :  { %v4133_v48 = vsub.f32 %v4123_v36, %v4131_v15  ;;  %v11715_v36 = vld [vmem:[#allocation16] ss:$0 sm:$0xff] }
0x1fd5   :  { %v4136_v23 = vmul.f32 %v4134_v46, %v4134_v46 }
0x1fd6   :  { %v4135_v42 = vmul.f32 %v4133_v48, %v4133_v48 }
0x1fd7   :  { %v4140_v44 = vsel %vm743_vm3, %v4136_v23, 0.0 }
0x1fd8   :  { %v4137_v22 = vsel %vm743_vm3, %v4135_v42, 0.0  ;;  %v15192_v42 = vld [vmem:[%s16150_s24] sm:$0xff] }
0x1fd9   :  { %4138 = vadd.xlane.f32.xlu0 %v4137_v22  ;;  %v15195_v22 = vld [vmem:[%s16151_s21] sm:$0xff] }
0x1fdd   :  { %4141 = vadd.xlane.f32.xlu0 %v4140_v44 }
0x2066   :  { %v4139_v60 = vpop.xlane.xlu0 %4138 }
0x2067   :  { %v4143_v24 = vmul.f32 0.03125, %v4139_v60 }
0x2069   :  { %v4145_v25 = vadd.f32 1e-05, %v4143_v24 }
0x206a   :  { %v4142_v28 = vpop.xlane.xlu0 %4141 }
0x206b   :  { %13412 = vrsqrt.f32 %v4145_v25  ;;  %v4144_v62 = vmul.f32 0.03125, %v4142_v28 }
0x206d   :  { %v4146_v0 = vadd.f32 1e-05, %v4144_v62 }
0x206f   :  { %13414 = vrsqrt.f32 %v4146_v0 }
0x2075   :  { %v13413_v1 = vpop.eup %13412 }
0x2076   :  { %v4149_v4 = vmul.f32 %v13413_v1, %v4133_v48 }
0x2078   :  { %v4157_v6 = vmul.f32 %v11693_v2, %v4149_v4 }
0x2079   :  { %v13415_v63 = vpop.eup %13414 }
0x207a   :  { %v4150_v7 = vmul.f32 %v13415_v63, %v4134_v46  ;;  %v15137_v9 = vadd.f32 %v11694_v37, %v4157_v6 }
0x207c   :  { %v4158_v14 = vmul.f32 %v11693_v2, %v4150_v7  ;;  %12502 = vmatprep.mubr.msk.f32.mxu1 %vm743_vm3, %v15137_v9 }
0x207e   :  { %v15143_v35 = vadd.f32 %v11694_v37, %v4158_v14 }
0x2080   :  { %12503 = vmatmul.mubr.msk.f32.vlgmr.msra.gmra.mrb[44].mxu1 %vm743_vm3, %v15143_v35 }
0x2081   :  { %13116 = vmatpush3.bf16.msra.mxu1 %v13113_v17  ;;  %12532 = vmatprep.mubr.msk.f32.mxu1 %vm743_vm3, %v15146_v20 }
0x2082   :  { %13118 = vmatprep.subr.bf16.mxu1 %v13117_v18 }
0x2085   :  { %13120 = vmatpush3.bf16.msra.mxu1 %v13117_v18 }
0x2086   :  { %12535 = vmatprep.subr.mxu1 %v14236_v12 }
0x2088   :  { %12533 = vmatmul.mubr.msk.f32.vlgmr.msra.gmra.mrb[46].mxu1 %vm743_vm3, %v15153_v21 }
0x2089   :  { %12537 = vmatprep.mubr.msk.f32.mxu1 %vm14237_vm6, %v14236_v12 }
0x2153   :  { %v12504_v3 = vpop.f32.mrb[44].mxu1 }
0x2154   :  { %v4269_v31 = vadd.f32 %v12504_v3, %v11707_v29  ;;  %v4263_v38 = vpop.f32.mrb[45].mxu1 }
0x2155   :  { %v4264_v32 = vadd.f32 %v11707_v29, %v4263_v38 }
0x2156   :  { %v4273_v34 = vmax.f32 %v4269_v31, 0.0 }
0x2157   :  { %v4272_v33 = vmax.f32 %v4264_v32, 0.0 }
0x2159   :  { %12521 = vmatprep.mubr.msk.f32.mxu0 %vm2439_vm9, %v4272_v33 }
0x215a   :  { %12522 = vmatmul.mubr.msk.f32.vlgmr.msra.gmra.mrb[36].mxu0 %vm2439_vm9, %v4273_v34 }
0x215b   :  { %v12534_v40 = vpop.f32.mrb[46].mxu1  ;;  %12547 = vmatprep.mubr.msk.f32.mxu0 %vm14237_vm6, %v14236_v12 }
0x215c   :  { %v15167_v5 = vadd.f32 %v12534_v40, %v11715_v36  ;;  %v4492_v41 = vpop.f32.mrb[47].mxu1 }
0x215d   :  { %v15169_v43 = vadd.f32 %v11715_v36, %v4492_v41 }
0x215e   :  { %4579 = vrot.lane.b32.xlu0 %v15167_v5, %s14238_s26 }
0x215f   :  { %4502 = vrot.lane.b32.xlu1 %v15169_v43, %s14238_s26 }
0x21d0   :  { %v4580_v15 = vpop.permute.xlu0 %4579 }
0x21d1   :  { %v4503_v45 = vpop.permute.xlu1 %4502 }
0x21d2   :  { %12536 = vmatpush3.xpose.msk.msra.mxu1 %vm828_vm7, %v4503_v45 }
0x21d3   :  { %12540 = vmatprep.subr.mxu1 %v14236_v12 }
0x21d5   :  { %12538 = vmatmul.mubr.msk.f32.vlgmr.msra.gmra.mrb[48].mxu1 %vm828_vm7, %v15169_v43 }
0x21d6   :  { %12541 = vmatpush3.xpose.msk.msra.mxu1 %vm828_vm7, %v4580_v15  ;;  %12542 = vmatprep.mubr.msk.f32.mxu1 %vm14237_vm6, %v14236_v12 }
0x21d7   :  { %12550 = vmatprep.subr.mxu1 %v14236_v12 }
0x21d9   :  { %12543 = vmatmul.mubr.msk.f32.vlgmr.msra.gmra.mrb[50].mxu1 %vm828_vm7, %v15167_v5 }
0x21da   :  { %12552 = vmatprep.mubr.msk.f32.mxu1 %vm14237_vm6, %v14236_v12 }
0x222d   :  { %v15187_v46 = vpop.f32.mrb[36].mxu0 }
0x222e   :  { %v15189_v48 = vpop.f32.mrb[37].mxu0 }
0x22a8   :  { %v4574_v23 = vpop.f32.mrb[48].mxu1 }
0x22a9   :  { %v4655_v44 = vmul.f32 %v4574_v23, %v15192_v42  ;;  %v12539_v47 = vpop.f32.mrb[49].mxu1 }
0x22ab   :  { %v4657_v61 = vadd.f32 %v4655_v44, %v15195_v22 }
0x22ac   :  { %v4651_v11 = vpop.f32.mrb[50].mxu1 }
0x22ad   :  { %v4656_v50 = vmul.f32 %v4651_v11, %v15199_v49  ;;  %v12544_v16 = vpop.f32.mrb[51].mxu1  ;;  %v4659_v52 = vsel %vm828_vm7, %v4657_v61, -inf }
0x22ae   :  { %4660 = vmax.xlane.f32.xlu1 %v4659_v52 }
0x22af   :  { %v4658_v17 = vadd.f32 %v4656_v50, %v15203_v8 }
0x22b1   :  { %v4662_v54 = vsel %vm828_vm7, %v4658_v17, -inf }
0x22b2   :  { %4663 = vmax.xlane.f32.xlu0 %v4662_v54 }
0x22bf   :  { %4681 = vrot.lane.b32.xlu1 %v15169_v43, %s14239_s7 }
0x22c3   :  { %4835 = vrot.lane.b32.xlu1 %v15169_v43, %s14240_s27 }
0x22c7   :  { %4913 = vrot.lane.b32.xlu1 %v15167_v5, %s14240_s27 }
0x22c8   :  { %4757 = vrot.lane.b32.xlu0 %v15167_v5, %s14239_s7 }
0x233b   :  { %v4661_v30 = vpop.xlane.xlu1 %4660 }
0x233c   :  { %v4665_v51 = vsub.f32 %v4657_v61, %v4661_v30 }
0x233e   :  { %v4667_v55 = vmul.f32 1.442695, %v4665_v51 }
0x233f   :  { %v4682_v53 = vpop.permute.xlu1 %4681  ;;  %v4664_v56 = vpop.xlane.xlu0 %4663 }
0x2340   :  { %13416 = vpow2.f32 %v4667_v55  ;;  %v4666_v57 = vsub.f32 %v4658_v17, %v4664_v56  ;;  %12546 = vmatpush3.msra.mxu0 %v4682_v53 }
0x2341   :  { %12555 = vmatprep.subr.mxu0 %v14236_v12 }
0x2342   :  { %v4669_v58 = vmul.f32 1.442695, %v4666_v57 }
0x2343   :  { %v4758_v59 = vpop.permute.xlu0 %4757  ;;  %v4836_v62 = vpop.permute.xlu1 %4835 }
0x2344   :  { %13418 = vpow2.f32 %v4669_v58  ;;  %12551 = vmatpush3.msra.mxu1 %v4758_v59 }
0x2345   :  { %12560 = vmatprep.subr.mxu1 %v14236_v12 }
0x2347   :  { %v4914_v0 = vpop.permute.xlu1 %4913 }
0x234a   :  { %v13417_v60 = vpop.eup %13416 }
0x234b   :  { %v4671_v24 = vsel %vm828_vm7, %v13417_v60, 0.0 }
0x234c   :  { %4672 = vadd.xlane.f32.xlu1 %v4671_v24 }
0x234e   :  { %v13419_v25 = vpop.eup %13418 }
0x234f   :  { %v4674_v28 = vsel %vm828_vm7, %v13419_v25, 0.0 }
0x2350   :  { %4675 = vadd.xlane.f32.xlu0 %v4674_v28 }
0x235d   :  { %4911 = vrot.lane.b32.xlu1 %v15167_v5, %s14241_s5 }
0x2366   :  { %4833 = vrot.lane.b32.xlu0 %v15169_v43, %s14241_s5 }
0x23d9   :  { %v4673_v1 = vpop.xlane.xlu1 %4672 }
0x23da   :  { %13420 = vrcp.f32 %v4673_v1 }
0x23dd   :  { %v4676_v2 = vpop.xlane.xlu0 %4675  ;;  %v4912_v10 = vpop.permute.xlu1 %4911 }
0x23de   :  { %13422 = vrcp.f32 %v4676_v2 }
0x23e1   :  { %v4834_v7 = vpop.permute.xlu0 %4833 }
0x23e4   :  { %v13421_v4 = vpop.eup %13420 }
0x23e5   :  { %v4678_v37 = vmul.f32 %v13421_v4, %v13417_v60 }
0x23e7   :  { %12548 = vmatmul.mubr.msk.f32.vlgmr.msra.gmra.mrb[38].mxu0 %vm828_vm7, %v4678_v37 }
0x23e8   :  { %v13423_v6 = vpop.eup %13422  ;;  %12556 = vmatpush3.xpose.msk.msra.mxu0 %vm828_vm7, %v4836_v62  ;;  %12557 = vmatprep.mubr.msk.f32.mxu0 %vm14237_vm6, %v14236_v12 }
0x23e9   :  { %v4680_v63 = vmul.f32 %v13423_v6, %v13419_v25  ;;  %12565 = vmatprep.subr.mxu0 %v14236_v12 }
0x23eb   :  { %12553 = vmatmul.mubr.msk.f32.vlgmr.msra.gmra.mrb[52].mxu1 %vm828_vm7, %v4680_v63  ;;  %12558 = vmatmul.mubr.msk.f32.vlgmr.msra.gmra.mrb[40].mxu0 %vm828_vm7, %v4834_v7 }
0x23ec   :  { %12561 = vmatpush3.xpose.msk.msra.mxu1 %vm828_vm7, %v4914_v0  ;;  %12562 = vmatprep.mubr.msk.f32.mxu1 %vm14237_vm6, %v14236_v12 }
0x23ed   :  { %12570 = vmatprep.subr.mxu1 %v14236_v12  ;;  %12567 = vmatprep.mubr.msk.f32.mxu0 %vm14237_vm6, %v14236_v12 }
0x23ef   :  { %12563 = vmatmul.mubr.msk.f32.vlgmr.msra.gmra.mrb[54].mxu1 %vm828_vm7, %v4912_v10 }
0x23f0   :  { %12572 = vmatprep.mubr.msk.f32.mxu1 %vm14237_vm6, %v14236_v12 }
0x24ba   :  { %v15241_v13 = vpop.f32.mrb[38].mxu0 }
0x24bb   :  { %v12549_v14 = vpop.f32.mrb[39].mxu0 }
0x24be   :  { %v15243_v18 = vpop.f32.mrb[52].mxu1  ;;  %v4907_v19 = vpop.f32.mrb[40].mxu0 }
0x24bf   :  { %v4989_v39 = vmul.f32 %v4907_v19, %v15192_v42  ;;  %v12554_v26 = vpop.f32.mrb[53].mxu1  ;;  %v12559_v27 = vpop.f32.mrb[41].mxu0 }
0x24c1   :  { %v4991_v29 = vadd.f32 %v4989_v39, %v15195_v22 }
0x24c2   :  { %v4985_v3 = vpop.f32.mrb[54].mxu1 }
0x24c3   :  { %v4990_v31 = vmul.f32 %v4985_v3, %v15199_v49  ;;  %v12564_v38 = vpop.f32.mrb[55].mxu1  ;;  %v4993_v32 = vsel %vm828_vm7, %v4991_v29, -inf }
0x24c4   :  { %4994 = vmax.xlane.f32.xlu0 %v4993_v32 }
0x24c5   :  { %v4992_v33 = vadd.f32 %v4990_v31, %v15203_v8 }
0x24c7   :  { %v4996_v34 = vsel %vm828_vm7, %v4992_v33, -inf }
0x24c8   :  { %4997 = vmax.xlane.f32.xlu1 %v4996_v34 }
0x24d9   :  { %5015 = vrot.lane.b32.xlu1 %v15169_v43, %s14242_s1 }
0x24da   :  { %5091 = vrot.lane.b32.xlu0 %v15167_v5, %s14242_s1 }
0x24dd   :  { %5169 = vrot.lane.b32.xlu1 %v15169_v43, %s14243_s30 }
0x24e1   :  { %5247 = vrot.lane.b32.xlu1 %v15167_v5, %s14243_s30 }
0x24e5   :  { %5245 = vrot.lane.b32.xlu1 %v15167_v5, %s14244_s6 }
0x2551   :  { %v4995_v36 = vpop.xlane.xlu0 %4994 }
0x2552   :  { %v4999_v40 = vsub.f32 %v4991_v29, %v4995_v36 }
0x2554   :  { %v5001_v41 = vmul.f32 1.442695, %v4999_v40 }
0x2555   :  { %v4998_v45 = vpop.xlane.xlu1 %4997  ;;  %v5092_v15 = vpop.permute.xlu0 %5091 }
0x2556   :  { %13424 = vpow2.f32 %v5001_v41  ;;  %v5000_v23 = vsub.f32 %v4992_v33, %v4998_v45  ;;  %12571 = vmatpush3.msra.mxu1 %v5092_v15 }
0x2557   :  { %12580 = vmatprep.subr.mxu1 %v14236_v12 }
0x2558   :  { %v5003_v44 = vmul.f32 1.442695, %v5000_v23 }
0x2559   :  { %v5016_v47 = vpop.permute.xlu1 %5015 }
0x255a   :  { %13426 = vpow2.f32 %v5003_v44  ;;  %12566 = vmatpush3.msra.mxu0 %v5016_v47 }
0x255b   :  { %12575 = vmatprep.subr.mxu0 %v14236_v12 }
0x255d   :  { %v5170_v54 = vpop.permute.xlu1 %5169 }
0x2560   :  { %v13425_v61 = vpop.eup %13424 }
0x2561   :  { %v5005_v11 = vsel %vm828_vm7, %v13425_v61, 0.0  ;;  %v5248_v53 = vpop.permute.xlu1 %5247 }
0x2562   :  { %5006 = vadd.xlane.f32.xlu0 %v5005_v11 }
0x2564   :  { %v13427_v50 = vpop.eup %13426 }
0x2565   :  { %v5008_v16 = vsel %vm828_vm7, %v13427_v50, 0.0  ;;  %v5246_v58 = vpop.permute.xlu1 %5245 }
0x2566   :  { %5009 = vadd.xlane.f32.xlu0 %v5008_v16 }
0x257c   :  { %5167 = vrot.lane.b32.xlu0 %v15169_v43, %s14244_s6 }
0x25ef   :  { %v5007_v52 = vpop.xlane.xlu0 %5006 }
0x25f0   :  { %13428 = vrcp.f32 %v5007_v52 }
0x25f3   :  { %v5010_v17 = vpop.xlane.xlu0 %5009 }
0x25f4   :  { %13430 = vrcp.f32 %v5010_v17 }
0x25f7   :  { %v5168_v57 = vpop.permute.xlu0 %5167 }
0x25fa   :  { %v13429_v30 = vpop.eup %13428 }
0x25fb   :  { %v5012_v51 = vmul.f32 %v13429_v30, %v13425_v61 }
0x25fd   :  { %12568 = vmatmul.mubr.msk.f32.vlgmr.msra.gmra.mrb[42].mxu0 %vm828_vm7, %v5012_v51 }
0x25fe   :  { %v13431_v55 = vpop.eup %13430  ;;  %12576 = vmatpush3.xpose.msk.msra.mxu0 %vm828_vm7, %v5170_v54  ;;  %12577 = vmatprep.mubr.msk.f32.mxu0 %vm14237_vm6, %v14236_v12 }
0x25ff   :  { %v5014_v56 = vmul.f32 %v13431_v55, %v13427_v50  ;;  %12585 = vmatprep.subr.mxu0 %v14236_v12 }
0x2601   :  { %12573 = vmatmul.mubr.msk.f32.vlgmr.msra.gmra.mrb[56].mxu1 %vm828_vm7, %v5014_v56  ;;  %12578 = vmatmul.mubr.msk.f32.vlgmr.msra.gmra.mrb[44].mxu0 %vm828_vm7, %v5168_v57 }
0x2602   :  { %12581 = vmatpush3.xpose.msk.msra.mxu1 %vm828_vm7, %v5248_v53  ;;  %12582 = vmatprep.mubr.msk.f32.mxu1 %vm14237_vm6, %v14236_v12 }
0x2603   :  { %12590 = vmatprep.subr.mxu1 %v14236_v12  ;;  %12587 = vmatprep.mubr.msk.f32.mxu0 %vm14237_vm6, %v14236_v12 }
0x2605   :  { %12583 = vmatmul.mubr.msk.f32.vlgmr.msra.gmra.mrb[58].mxu1 %vm828_vm7, %v5246_v58 }
0x2606   :  { %12592 = vmatprep.mubr.msk.f32.mxu1 %vm14237_vm6, %v14236_v12 }
0x26d0   :  { %v15283_v59 = vpop.f32.mrb[42].mxu0 }
0x26d1   :  { %v12569_v60 = vpop.f32.mrb[43].mxu0 }
0x26d4   :  { %v15285_v24 = vpop.f32.mrb[56].mxu1  ;;  %v5241_v25 = vpop.f32.mrb[44].mxu0 }
0x26d5   :  { %v5323_v28 = vmul.f32 %v5241_v25, %v15192_v42  ;;  %v12574_v62 = vpop.f32.mrb[57].mxu1  ;;  %v12579_v0 = vpop.f32.mrb[45].mxu0 }
0x26d7   :  { %v5325_v1 = vadd.f32 %v5323_v28, %v15195_v22 }
0x26d8   :  { %v5319_v2 = vpop.f32.mrb[58].mxu1 }
0x26d9   :  { %v5324_v4 = vmul.f32 %v5319_v2, %v15199_v49  ;;  %v12584_v37 = vpop.f32.mrb[59].mxu1  ;;  %v5327_v6 = vsel %vm828_vm7, %v5325_v1, -inf }
0x26da   :  { %5328 = vmax.xlane.f32.xlu0 %v5327_v6 }
0x26db   :  { %v5326_v63 = vadd.f32 %v5324_v4, %v15203_v8 }
0x26dd   :  { %v5330_v7 = vsel %vm828_vm7, %v5326_v63, -inf }
0x26de   :  { %5331 = vmax.xlane.f32.xlu1 %v5330_v7 }
0x26ef   :  { %5349 = vrot.lane.b32.xlu1 %v15169_v43, %s14245_s2 }
0x26f0   :  { %5425 = vrot.lane.b32.xlu0 %v15167_v5, %s14245_s2 }
0x26f3   :  { %5503 = vrot.lane.b32.xlu1 %v15169_v43, %s14246_s17 }
0x26f7   :  { %5581 = vrot.lane.b32.xlu1 %v15167_v5, %s14246_s17 }
0x26fb   :  { %5579 = vrot.lane.b32.xlu1 %v15167_v5, %s14247_s25 }
0x2767   :  { %v5329_v10 = vpop.xlane.xlu0 %5328 }
0x2768   :  { %v5333_v14 = vsub.f32 %v5325_v1, %v5329_v10  ;;  %v5865_v10 = vld [vmem:[%s16152_s19] sm:$0xff] }
0x276a   :  { %v5335_v19 = vmul.f32 1.442695, %v5333_v14 }
0x276b   :  { %v5332_v39 = vpop.xlane.xlu1 %5331  ;;  %v5426_v26 = vpop.permute.xlu0 %5425 }
0x276c   :  { %13432 = vpow2.f32 %v5335_v19  ;;  %v5334_v27 = vsub.f32 %v5326_v63, %v5332_v39  ;;  %12591 = vmatpush3.msra.mxu1 %v5426_v26  ;;  %v5867_v19 = vld [vmem:[%s16152_s19 + $0x10] sm:$0xff]  ;;  %v5868_v39 = vld [vmem:[%s16152_s19 + $0x18] sm:$0xff] }
0x276d   :  { %12600 = vmatprep.subr.mxu1 %v14236_v12  ;;  %v13125_v26 = vpack.c.bf16 %v5868_v39, %v5867_v19 }
0x276e   :  { %v5337_v29 = vmul.f32 1.442695, %v5334_v27 }
0x276f   :  { %v5350_v3 = vpop.permute.xlu1 %5349 }
0x2770   :  { %13434 = vpow2.f32 %v5337_v29  ;;  %12586 = vmatpush3.msra.mxu0 %v5350_v3 }
0x2771   :  { %12595 = vmatprep.subr.mxu0 %v14236_v12 }
0x2773   :  { %v5504_v40 = vpop.permute.xlu1 %5503 }
0x2776   :  { %v13433_v31 = vpop.eup %13432 }
0x2777   :  { %v5339_v38 = vsel %vm828_vm7, %v13433_v31, 0.0  ;;  %v5582_v23 = vpop.permute.xlu1 %5581 }
0x2778   :  { %5340 = vadd.xlane.f32.xlu0 %v5339_v38  ;;  %v11710_v38 = vld [vmem:[#allocation12 + $0x1] ss:$0 sm:$0xff] }
0x277a   :  { %v13435_v32 = vpop.eup %13434 }
0x277b   :  { %v5342_v33 = vsel %vm828_vm7, %v13435_v32, 0.0  ;;  %v5580_v61 = vpop.permute.xlu1 %5579 }
0x277c   :  { %5343 = vadd.xlane.f32.xlu0 %v5342_v33 }
0x2792   :  { %5501 = vrot.lane.b32.xlu0 %v15169_v43, %s14247_s25 }
0x2805   :  { %v5341_v34 = vpop.xlane.xlu0 %5340 }
0x2806   :  { %13436 = vrcp.f32 %v5341_v34 }
0x2809   :  { %v5344_v36 = vpop.xlane.xlu0 %5343 }
0x280a   :  { %13438 = vrcp.f32 %v5344_v36  ;;  %v4358_v36 = vadd.f32 %v15187_v46, %v11710_v38 }
0x280d   :  { %v5502_v47 = vpop.permute.xlu0 %5501 }
0x2810   :  { %v13437_v41 = vpop.eup %13436 }
0x2811   :  { %v5346_v45 = vmul.f32 %v13437_v41, %v13433_v31 }
0x2813   :  { %12588 = vmatmul.mubr.msk.f32.vlgmr.msra.gmra.mrb[46].mxu0 %vm828_vm7, %v5346_v45 }
0x2814   :  { %v13439_v15 = vpop.eup %13438  ;;  %12596 = vmatpush3.xpose.msk.msra.mxu0 %vm828_vm7, %v5504_v40  ;;  %12597 = vmatprep.mubr.msk.f32.mxu0 %vm14237_vm6, %v14236_v12  ;;  %v4366_v40 = vadd.f32 %v4358_v36, %v15143_v35 }
0x2815   :  { %v5348_v44 = vmul.f32 %v13439_v15, %v13435_v32  ;;  %12605 = vmatprep.subr.mxu0 %v14236_v12  ;;  %v4353_v32 = vadd.f32 %v11710_v38, %v15189_v48 }
0x2816   :  { %v4370_v41 = vsel %vm743_vm3, %v4366_v40, 0.0 }
0x2817   :  { %12593 = vmatmul.mubr.msk.f32.vlgmr.msra.gmra.mrb[60].mxu1 %vm828_vm7, %v5348_v44  ;;  %12598 = vmatmul.mubr.msk.f32.vlgmr.msra.gmra.mrb[48].mxu0 %vm828_vm7, %v5502_v47  ;;  %v4365_v33 = vadd.f32 %v4353_v32, %v15137_v9 }
0x2818   :  { %12601 = vmatpush3.xpose.msk.msra.mxu1 %vm828_vm7, %v5582_v23  ;;  %12602 = vmatprep.mubr.msk.f32.mxu1 %vm14237_vm6, %v14236_v12 }
0x2819   :  { %12610 = vmatprep.subr.mxu1 %v14236_v12  ;;  %12607 = vmatprep.mubr.msk.f32.mxu0 %vm14237_vm6, %v14236_v12  ;;  %v4367_v34 = vsel %vm743_vm3, %v4365_v33, 0.0 }
0x281b   :  { %12603 = vmatmul.mubr.msk.f32.vlgmr.msra.gmra.mrb[62].mxu1 %vm828_vm7, %v5580_v61 }
0x281c   :  { %12612 = vmatprep.mubr.msk.f32.mxu1 %vm14237_vm6, %v14236_v12 }
0x28e6   :  { %v5421_v11 = vpop.f32.mrb[46].mxu0 }
0x28e7   :  { %v12589_v50 = vpop.f32.mrb[47].mxu0 }
0x28ea   :  { %v5497_v16 = vpop.f32.mrb[60].mxu1  ;;  %v5575_v52 = vpop.f32.mrb[48].mxu0 }
0x28eb   :  { %v5657_v17 = vmul.f32 %v5575_v52, %v15192_v42  ;;  %v12594_v54 = vpop.f32.mrb[61].mxu1  ;;  %v12599_v30 = vpop.f32.mrb[49].mxu0 }
0x28ed   :  { %v5659_v51 = vadd.f32 %v5657_v17, %v15195_v22 }
0x28ee   :  { %v5653_v55 = vpop.f32.mrb[62].mxu1 }
0x28ef   :  { %v5658_v53 = vmul.f32 %v5653_v55, %v15199_v49  ;;  %v12604_v56 = vpop.f32.mrb[63].mxu1  ;;  %v5661_v57 = vsel %vm828_vm7, %v5659_v51, -inf }
0x28f0   :  { %5662 = vmax.xlane.f32.xlu0 %v5661_v57 }
0x28f1   :  { %v5660_v58 = vadd.f32 %v5658_v53, %v15203_v8 }
0x28f3   :  { %v5664_v60 = vsel %vm828_vm7, %v5660_v58, -inf }
0x28f4   :  { %5665 = vmax.xlane.f32.xlu1 %v5664_v60 }
0x2905   :  { %5683 = vrot.lane.b32.xlu1 %v15169_v43, %s14248_s20 }
0x2909   :  { %5837 = vrot.lane.b32.xlu1 %v15283_v59, %s14222_s10 }
0x290d   :  { %5839 = vrot.lane.b32.xlu1 %v15285_v24, %s14222_s10 }
0x2911   :  { %5847 = vrot.lane.b32.xlu1 %v5497_v16, %s14207_s15 }
0x297d   :  { %v5663_v42 = vpop.xlane.xlu0 %5662 }
0x297e   :  { %v5667_v22 = vsub.f32 %v5659_v51, %v5663_v42 }
0x2980   :  { %v5669_v49 = vmul.f32 1.442695, %v5667_v22 }
0x2981   :  { %v5666_v25 = vpop.xlane.xlu1 %5665 }
0x2982   :  { %13440 = vpow2.f32 %v5669_v49  ;;  %v5668_v8 = vsub.f32 %v5660_v58, %v5666_v25  ;;  %v11713_v25 = vld [vmem:[#allocation13 + $0x1] ss:$0 sm:$0xff] }
0x2984   :  { %v5671_v28 = vmul.f32 1.442695, %v5668_v8 }
0x2985   :  { %v5684_v62 = vpop.permute.xlu1 %5683 }
0x2986   :  { %13442 = vpow2.f32 %v5671_v28  ;;  %12606 = vmatpush3.msra.mxu0 %v5684_v62 }
0x2989   :  { %v5838_v45 = vpop.permute.xlu1 %5837 }
0x298a   :  { %v5859_v44 = vsel %vm828_vm7, %v15241_v13, %v5838_v45  ;;  %v6003_v45 = vld [vmem:[%s16153_s22] sm:$0xff] }
0x298c   :  { %v13441_v0 = vpop.eup %13440 }
0x298d   :  { %v5673_v43 = vsel %vm828_vm7, %v13441_v0, 0.0  ;;  %v5840_v15 = vpop.permute.xlu1 %5839 }
0x298e   :  { %5674 = vadd.xlane.f32.xlu0 %v5673_v43  ;;  %v5860_v35 = vsel %vm828_vm7, %v15243_v18, %v5840_v15  ;;  %v11742_v18 = vld [vmem:[#allocation18] ss:$0 sm:$0xff]  ;;  %v11714_v43 = vld [vmem:[#allocation15 + $0x1] ss:$0 sm:$0xff]  ;;  %v6004_v15 = vld [vmem:[%s16153_s22 + $0x8] sm:$0xff] }
0x2990   :  { %v13443_v59 = vpop.eup %13442 }
0x2991   :  { %v5676_v1 = vsel %vm828_vm7, %v13443_v59, 0.0  ;;  %v5848_v47 = vpop.permute.xlu1 %5847 }
0x2992   :  { %5677 = vadd.xlane.f32.xlu0 %v5676_v1  ;;  %v5862_v46 = vsel %vm541_vm0, %v5860_v35, %v5848_v47  ;;  %v6006_v47 = vld [vmem:[%s16153_s22 + $0x18] sm:$0xff] }
0x29a8   :  { %5759 = vrot.lane.b32.xlu0 %v15167_v5, %s14248_s20  ;;  %v5866_v5 = vld [vmem:[%s16152_s19 + $0x8] sm:$0xff] }
0x29a9   :  { %v13121_v14 = vpack.c.bf16 %v5866_v5, %v5865_v10 }
0x29ab   :  { %13122 = vmatprep.subr.bf16.mxu0 %v13121_v14 }
0x29ac   :  { %5845 = vrot.lane.b32.xlu0 %v5421_v11, %s14207_s15 }
0x2a1b   :  { %v5675_v24 = vpop.xlane.xlu0 %5674 }
0x2a1c   :  { %13444 = vrcp.f32 %v5675_v24 }
0x2a1f   :  { %v5678_v2 = vpop.xlane.xlu0 %5677 }
0x2a20   :  { %13446 = vrcp.f32 %v5678_v2 }
0x2a23   :  { %v5760_v4 = vpop.permute.xlu0 %5759 }
0x2a24   :  { %12611 = vmatpush3.msra.mxu1 %v5760_v4  ;;  %v6095_v4 = vld [vmem:[#allocation21] sm:$0xff] }
0x2a26   :  { %v13445_v37 = vpop.eup %13444 }
0x2a27   :  { %v5680_v6 = vmul.f32 %v13445_v37, %v13441_v0  ;;  %v5846_v23 = vpop.permute.xlu0 %5845 }
0x2a28   :  { %v5861_v48 = vsel %vm541_vm0, %v5859_v44, %v5846_v23  ;;  %v6005_v23 = vld [vmem:[%s16153_s22 + $0x10] sm:$0xff]  ;;  %v13129_v44 = vpack.c.bf16 %v6004_v15, %v6003_v45 }
0x2a29   :  { %12608 = vmatmul.mubr.msk.f32.vlgmr.msra.gmra.mrb[50].mxu0 %vm828_vm7, %v5680_v6  ;;  %v6097_v6 = vld [vmem:[#allocation21 + $0x10] sm:$0xff] }
0x2a2a   :  { %v13447_v63 = vpop.eup %13446  ;;  %13124 = vmatpush3.bf16.msra.mxu0 %v13121_v14  ;;  %13130 = vmatprep.subr.bf16.mxu1 %v13129_v44 }
0x2a2b   :  { %v5682_v7 = vmul.f32 %v13447_v63, %v13443_v59  ;;  %13126 = vmatprep.subr.bf16.mxu0 %v13125_v26  ;;  %v6098_v63 = vld [vmem:[#allocation21 + $0x18] sm:$0xff] }
0x2a2d   :  { %12613 = vmatmul.mubr.msk.f32.vlgmr.msra.gmra.mrb[64].mxu1 %vm828_vm7, %v5682_v7  ;;  %v13141_v7 = vpack.c.bf16 %v6098_v63, %v6097_v6 }
0x2a2e   :  { %13128 = vmatpush3.bf16.msra.mxu0 %v13125_v26  ;;  %13132 = vmatpush3.bf16.msra.mxu1 %v13129_v44 }
0x2afc   :  { %v5755_v27 = vpop.f32.mrb[50].mxu0 }
0x2afd   :  { %5853 = vrot.lane.b32.xlu0 %v5755_v27, %s14249_s0  ;;  %v12609_v29 = vpop.f32.mrb[51].mxu0 }
0x2b00   :  { %v5831_v3 = vpop.f32.mrb[64].mxu1 }
0x2b01   :  { %5855 = vrot.lane.b32.xlu1 %v5831_v3, %s14249_s0  ;;  %v12614_v31 = vpop.f32.mrb[65].mxu1 }
0x2b1c   :  { %4368 = vadd.xlane.f32.xlu0 %v4367_v34 }
0x2b25   :  { %4371 = vadd.xlane.f32.xlu1 %v4370_v41 }
0x2b6f   :  { %v5854_v9 = vpop.permute.xlu0 %5853 }
0x2b70   :  { %v5863_v61 = vsel %vm2188_vm8, %v5861_v48, %v5854_v9  ;;  %v13133_v48 = vpack.c.bf16 %v6006_v47, %v6005_v23 }
0x2b71   :  { %12623 = vmatprep.mubr.msk.f32.mxu0 %vm743_vm3, %v5863_v61 }
0x2b72   :  { %13134 = vmatprep.subr.bf16.mxu1 %v13133_v48 }
0x2b73   :  { %v5856_v11 = vpop.permute.xlu1 %5855  ;;  %13136 = vmatpush3.bf16.msra.mxu1 %v13133_v48 }
0x2b74   :  { %v5864_v50 = vsel %vm2188_vm8, %v5862_v46, %v5856_v11  ;;  %12648 = vmatprep.subr.mxu1 %v14236_v12 }
0x2b75   :  { %12624 = vmatmul.mubr.msk.f32.vlgmr.msra.gmra.mrb[52].mxu0 %vm743_vm3, %v5864_v50 }
0x2ba9   :  { %v4369_v16 = vpop.xlane.xlu0 %4368 }
0x2baa   :  { %v4373_v13 = vmul.f32 0.03125, %v4369_v16 }
0x2bac   :  { %v4375_v52 = vsub.f32 %v4365_v33, %v4373_v13  ;;  %v11745_v13 = vld [vmem:[#allocation30] ss:$0 sm:$0xff] }
0x2bae   :  { %v4377_v17 = vmul.f32 %v4375_v52, %v4375_v52 }
0x2bb0   :  { %v4379_v54 = vsel %vm743_vm3, %v4377_v17, 0.0  ;;  %v11746_v17 = vld [vmem:[#allocation31] ss:$0 sm:$0xff] }
0x2bb1   :  { %4380 = vadd.xlane.f32.xlu1 %v4379_v54 }
0x2bb2   :  { %v4372_v30 = vpop.xlane.xlu1 %4371 }
0x2bb3   :  { %v4374_v58 = vmul.f32 0.03125, %v4372_v30 }
0x2bb5   :  { %v4376_v8 = vsub.f32 %v4366_v40, %v4374_v58 }
0x2bb7   :  { %v4378_v2 = vmul.f32 %v4376_v8, %v4376_v8 }
0x2c3e   :  { %v4381_v51 = vpop.xlane.xlu1 %4380 }
0x2c3f   :  { %v4385_v55 = vmul.f32 0.03125, %v4381_v51 }
0x2c41   :  { %v4387_v53 = vadd.f32 1e-05, %v4385_v55 }
0x2c43   :  { %13448 = vrsqrt.f32 %v4387_v53 }
0x2c48   :  { %v12625_v56 = vpop.f32.mrb[52].mxu0 }
0x2c49   :  { %v5948_v57 = vpop.f32.mrb[53].mxu0  ;;  %v5954_v60 = vadd.f32 %v12625_v56, %v11742_v18  ;;  %v11750_v56 = vld [vmem:[#allocation22] ss:$0 sm:$0xff] }
0x2c4a   :  { %v5949_v42 = vadd.f32 %v11742_v18, %v5948_v57 }
0x2c4b   :  { %v5960_v28 = vadd.f32 %v5954_v60, %v15153_v21  ;;  %v6096_v21 = vld [vmem:[#allocation21 + $0x8] sm:$0xff] }
0x2c4c   :  { %v5959_v22 = vadd.f32 %v5949_v42, %v15146_v20  ;;  %v4382_v20 = vsel %vm743_vm3, %v4378_v2, 0.0  ;;  %v13137_v37 = vpack.c.bf16 %v6096_v21, %v6095_v4  ;;  %v15431_v2 = vld [vmem:[%s16154_s8 + $0x8] sm:$0xff] }
0x2c4d   :  { %v13449_v49 = vpop.eup %13448  ;;  %v5964_v1 = vsel %vm743_vm3, %v5960_v28, 0.0  ;;  %v15435_v4 = vld [vmem:[%s16155_s16 + $0x8] sm:$0xff] }
0x2c4e   :  { %v5961_v62 = vsel %vm743_vm3, %v5959_v22, 0.0  ;;  %v4391_v0 = vmul.f32 %v13449_v49, %v4375_v52  ;;  %13138 = vmatprep.subr.bf16.mxu0 %v13137_v37 }
0x2c4f   :  { %5962 = vadd.xlane.f32.xlu0 %v5961_v62  ;;  %13140 = vmatpush3.bf16.msra.mxu0 %v13137_v37  ;;  %v15424_v62 = vld [vmem:[%s16154_s8] sm:$0xff] }
0x2c50   :  { %v4399_v59 = vmul.f32 %v11713_v25, %v4391_v0  ;;  %13142 = vmatprep.subr.bf16.mxu0 %v13141_v7  ;;  %v15427_v0 = vld [vmem:[%s16155_s16] sm:$0xff] }
0x2c52   :  { %v15372_v24 = vadd.f32 %v11714_v43, %v4399_v59 }
0x2c53   :  { %5965 = vadd.xlane.f32.xlu0 %v5964_v1  ;;  %13144 = vmatpush3.bf16.msra.mxu0 %v13141_v7 }
0x2c54   :  { %12645 = vmatprep.mubr.msk.f32.mxu0 %vm743_vm3, %v15372_v24  ;;  %12658 = vmatprep.subr.mxu0 %v14236_v12 }
0x2c57   :  { %4383 = vadd.xlane.f32.xlu0 %v4382_v20 }
0x2cdc   :  { %v5963_v10 = vpop.xlane.xlu0 %5962 }
0x2cdd   :  { %v5967_v5 = vmul.f32 0.03125, %v5963_v10 }
0x2cdf   :  { %v5969_v14 = vsub.f32 %v5959_v22, %v5967_v5  ;;  %v11747_v22 = vld [vmem:[#allocation19] ss:$0 sm:$0xff] }
0x2ce0   :  { %v5966_v19 = vpop.xlane.xlu0 %5965 }
0x2ce1   :  { %v5968_v39 = vmul.f32 0.03125, %v5966_v19  ;;  %v5971_v26 = vmul.f32 %v5969_v14, %v5969_v14 }
0x2ce3   :  { %v5970_v27 = vsub.f32 %v5960_v28, %v5968_v39  ;;  %v5973_v29 = vsel %vm743_vm3, %v5971_v26, 0.0 }
0x2ce4   :  { %5974 = vadd.xlane.f32.xlu1 %v5973_v29  ;;  %v4384_v3 = vpop.xlane.xlu0 %4383 }
0x2ce5   :  { %v4386_v31 = vmul.f32 0.03125, %v4384_v3  ;;  %v5972_v38 = vmul.f32 %v5970_v27, %v5970_v27 }
0x2ce7   :  { %v4388_v32 = vadd.f32 1e-05, %v4386_v31  ;;  %v5976_v33 = vsel %vm743_vm3, %v5972_v38, 0.0 }
0x2ce8   :  { %5977 = vadd.xlane.f32.xlu0 %v5976_v33 }
0x2ce9   :  { %13450 = vrsqrt.f32 %v4388_v32 }
0x2cf3   :  { %v13451_v34 = vpop.eup %13450 }
0x2cf4   :  { %v4392_v36 = vmul.f32 %v13451_v34, %v4376_v8 }
0x2cf6   :  { %v4400_v40 = vmul.f32 %v11713_v25, %v4392_v36 }
0x2cf8   :  { %v15380_v41 = vadd.f32 %v11714_v43, %v4400_v40 }
0x2cfa   :  { %12646 = vmatmul.mubr.msk.f32.vlgmr.msra.gmra.mrb[54].mxu0 %vm743_vm3, %v15380_v41 }
0x2cfb   :  { %12660 = vmatprep.mubr.msk.f32.mxu0 %vm14237_vm6, %v14236_v12 }
0x2d71   :  { %v5975_v9 = vpop.xlane.xlu1 %5974 }
0x2d72   :  { %v5979_v61 = vmul.f32 0.03125, %v5975_v9 }
0x2d74   :  { %v5981_v35 = vadd.f32 1e-05, %v5979_v61 }
0x2d75   :  { %v5978_v46 = vpop.xlane.xlu0 %5977 }
0x2d76   :  { %13452 = vrsqrt.f32 %v5981_v35  ;;  %v5980_v11 = vmul.f32 0.03125, %v5978_v46 }
0x2d78   :  { %v5982_v50 = vadd.f32 1e-05, %v5980_v11 }
0x2d7a   :  { %13454 = vrsqrt.f32 %v5982_v50 }
0x2d80   :  { %v13453_v16 = vpop.eup %13452 }
0x2d81   :  { %v5985_v52 = vmul.f32 %v13453_v16, %v5969_v14 }
0x2d83   :  { %v5993_v54 = vmul.f32 %v11745_v13, %v5985_v52 }
0x2d84   :  { %v13455_v30 = vpop.eup %13454 }
0x2d85   :  { %v5986_v51 = vmul.f32 %v13455_v30, %v5970_v27  ;;  %v15391_v55 = vadd.f32 %v11746_v17, %v5993_v54 }
0x2d87   :  { %v5994_v53 = vmul.f32 %v11745_v13, %v5986_v51  ;;  %12634 = vmatprep.mubr.msk.f32.mxu1 %vm743_vm3, %v15391_v55 }
0x2d89   :  { %v15395_v18 = vadd.f32 %v11746_v17, %v5994_v53 }
0x2d8b   :  { %12635 = vmatmul.mubr.msk.f32.vlgmr.msra.gmra.mrb[66].mxu1 %vm743_vm3, %v15395_v18 }
0x2d8c   :  { %12650 = vmatprep.mubr.msk.f32.mxu1 %vm14237_vm6, %v14236_v12 }
0x2dcd   :  { %v12647_v57 = vpop.f32.mrb[54].mxu0 }
0x2dce   :  { %v15401_v58 = vadd.f32 %v12647_v57, %v11750_v56  ;;  %v6178_v60 = vpop.f32.mrb[55].mxu0 }
0x2dcf   :  { %v15403_v42 = vadd.f32 %v11750_v56, %v6178_v60 }
0x2dd1   :  { %12649 = vmatpush3.xpose.msk.msra.mxu1 %vm828_vm7, %v15403_v42 }
0x2dd2   :  { %12653 = vmatprep.subr.mxu1 %v14236_v12 }
0x2e5e   :  { %v12636_v49 = vpop.f32.mrb[66].mxu1 }
0x2e5f   :  { %v6086_v25 = vpop.f32.mrb[67].mxu1  ;;  %v15416_v28 = vadd.f32 %v12636_v49, %v11747_v22 }
0x2e60   :  { %v15408_v8 = vadd.f32 %v11747_v22, %v6086_v25 }
0x2e62   :  { %12651 = vmatmul.mubr.msk.f32.vlgmr.msra.gmra.mrb[68].mxu1 %vm828_vm7, %v15408_v8 }
0x2e63   :  { %12654 = vmatpush3.xpose.msk.msra.mxu1 %vm828_vm7, %v15401_v58  ;;  %12655 = vmatprep.mubr.msk.f32.mxu1 %vm14237_vm6, %v14236_v12 }
0x2e64   :  { %12663 = vmatprep.subr.mxu1 %v14236_v12 }
0x2e66   :  { %12656 = vmatmul.mubr.msk.f32.vlgmr.msra.gmra.mrb[70].mxu1 %vm828_vm7, %v15416_v28 }
0x2e67   :  { %12665 = vmatprep.mubr.msk.f32.mxu1 %vm14237_vm6, %v14236_v12 }
0x2f35   :  { %v6259_v43 = vpop.f32.mrb[68].mxu1 }
0x2f36   :  { %v6339_v59 = vmul.f32 %v6259_v43, %v15424_v62  ;;  %v12652_v1 = vpop.f32.mrb[69].mxu1 }
0x2f38   :  { %v6341_v20 = vadd.f32 %v6339_v59, %v15427_v0 }
0x2f39   :  { %v6335_v21 = vpop.f32.mrb[70].mxu1 }
0x2f3a   :  { %v6340_v37 = vmul.f32 %v6335_v21, %v15431_v2  ;;  %v12657_v6 = vpop.f32.mrb[71].mxu1  ;;  %v6343_v63 = vsel %vm828_vm7, %v6341_v20, -inf }
0x2f3b   :  { %6344 = vmax.xlane.f32.xlu1 %v6343_v63 }
0x2f3c   :  { %v6342_v7 = vadd.f32 %v6340_v37, %v15435_v4 }
0x2f3e   :  { %v6346_v10 = vsel %vm828_vm7, %v6342_v7, -inf }
0x2f3f   :  { %6347 = vmax.xlane.f32.xlu0 %v6346_v10 }
0x2f4c   :  { %6365 = vrot.lane.b32.xlu1 %v15403_v42, %s14238_s26 }
0x2f50   :  { %6519 = vrot.lane.b32.xlu1 %v15403_v42, %s14241_s5 }
0x2f54   :  { %6597 = vrot.lane.b32.xlu1 %v15401_v58, %s14241_s5 }
0x2f55   :  { %6441 = vrot.lane.b32.xlu0 %v15401_v58, %s14238_s26 }
0x2fc8   :  { %v6345_v5 = vpop.xlane.xlu1 %6344 }
0x2fc9   :  { %v6349_v14 = vsub.f32 %v6341_v20, %v6345_v5 }
0x2fcb   :  { %v6351_v19 = vmul.f32 1.442695, %v6349_v14 }
0x2fcc   :  { %v6366_v39 = vpop.permute.xlu1 %6365  ;;  %v6348_v26 = vpop.xlane.xlu0 %6347 }
0x2fcd   :  { %13456 = vpow2.f32 %v6351_v19  ;;  %v6350_v27 = vsub.f32 %v6342_v7, %v6348_v26  ;;  %12659 = vmatpush3.msra.mxu0 %v6366_v39 }
0x2fce   :  { %12668 = vmatprep.subr.mxu0 %v14236_v12 }
0x2fcf   :  { %v6353_v29 = vmul.f32 1.442695, %v6350_v27 }
0x2fd0   :  { %v6442_v3 = vpop.permute.xlu0 %6441  ;;  %v6520_v34 = vpop.permute.xlu1 %6519 }
0x2fd1   :  { %13458 = vpow2.f32 %v6353_v29  ;;  %12664 = vmatpush3.msra.mxu1 %v6442_v3 }
0x2fd2   :  { %12673 = vmatprep.subr.mxu1 %v14236_v12 }
0x2fd4   :  { %v6598_v36 = vpop.permute.xlu1 %6597 }
0x2fd7   :  { %v13457_v31 = vpop.eup %13456 }
0x2fd8   :  { %v6355_v38 = vsel %vm828_vm7, %v13457_v31, 0.0 }
0x2fd9   :  { %6356 = vadd.xlane.f32.xlu1 %v6355_v38 }
0x2fdb   :  { %v13459_v32 = vpop.eup %13458 }
0x2fdc   :  { %v6358_v33 = vsel %vm828_vm7, %v13459_v32, 0.0 }
0x2fdd   :  { %6359 = vadd.xlane.f32.xlu0 %v6358_v33 }
0x2fea   :  { %6595 = vrot.lane.b32.xlu1 %v15416_v28, %s14241_s5 }
0x2ff3   :  { %6517 = vrot.lane.b32.xlu0 %v15408_v8, %s14241_s5 }
0x3066   :  { %v6357_v40 = vpop.xlane.xlu1 %6356 }
0x3067   :  { %13460 = vrcp.f32 %v6357_v40 }
0x306a   :  { %v6360_v45 = vpop.xlane.xlu0 %6359  ;;  %v6596_v9 = vpop.permute.xlu1 %6595 }
0x306b   :  { %13462 = vrcp.f32 %v6360_v45 }
0x306e   :  { %v6518_v48 = vpop.permute.xlu0 %6517 }
0x3071   :  { %v13461_v15 = vpop.eup %13460 }
0x3072   :  { %v6362_v23 = vmul.f32 %v13461_v15, %v13457_v31 }
0x3074   :  { %12661 = vmatmul.mubr.msk.f32.vlgmr.msra.gmra.mrb[56].mxu0 %vm828_vm7, %v6362_v23 }
0x3075   :  { %v13463_v44 = vpop.eup %13462  ;;  %12669 = vmatpush3.xpose.msk.msra.mxu0 %vm828_vm7, %v6520_v34  ;;  %12670 = vmatprep.mubr.msk.f32.mxu0 %vm14237_vm6, %v14236_v12 }
0x3076   :  { %v6364_v47 = vmul.f32 %v13463_v44, %v13459_v32  ;;  %12678 = vmatprep.subr.mxu0 %v14236_v12 }
0x3078   :  { %12666 = vmatmul.mubr.msk.f32.vlgmr.msra.gmra.mrb[72].mxu1 %vm828_vm7, %v6364_v47  ;;  %12671 = vmatmul.mubr.msk.f32.vlgmr.msra.gmra.mrb[58].mxu0 %vm828_vm7, %v6518_v48 }
0x3079   :  { %12674 = vmatpush3.xpose.msk.msra.mxu1 %vm828_vm7, %v6598_v36  ;;  %12675 = vmatprep.mubr.msk.f32.mxu1 %vm14237_vm6, %v14236_v12 }
0x307a   :  { %12683 = vmatprep.subr.mxu1 %v14236_v12  ;;  %12680 = vmatprep.mubr.msk.f32.mxu0 %vm14237_vm6, %v14236_v12 }
0x307c   :  { %12676 = vmatmul.mubr.msk.f32.vlgmr.msra.gmra.mrb[74].mxu1 %vm828_vm7, %v6596_v9 }
0x307d   :  { %12685 = vmatprep.mubr.msk.f32.mxu1 %vm14237_vm6, %v14236_v12 }
0x3147   :  { %v15473_v61 = vpop.f32.mrb[56].mxu0 }
0x3148   :  { %v12662_v35 = vpop.f32.mrb[57].mxu0 }
0x314b   :  { %v15475_v46 = vpop.f32.mrb[72].mxu1  ;;  %v6591_v11 = vpop.f32.mrb[58].mxu0 }
0x314c   :  { %v6673_v50 = vmul.f32 %v6591_v11, %v15424_v62  ;;  %v12667_v16 = vpop.f32.mrb[73].mxu1  ;;  %v12672_v13 = vpop.f32.mrb[59].mxu0 }
0x314e   :  { %v6675_v52 = vadd.f32 %v6673_v50, %v15427_v0 }
0x314f   :  { %v6669_v17 = vpop.f32.mrb[74].mxu1 }
0x3150   :  { %v6674_v54 = vmul.f32 %v6669_v17, %v15431_v2  ;;  %v12677_v30 = vpop.f32.mrb[75].mxu1  ;;  %v6677_v51 = vsel %vm828_vm7, %v6675_v52, -inf }
0x3151   :  { %6678 = vmax.xlane.f32.xlu0 %v6677_v51 }
0x3152   :  { %v6676_v53 = vadd.f32 %v6674_v54, %v15435_v4 }
0x3154   :  { %v6680_v56 = vsel %vm828_vm7, %v6676_v53, -inf }
0x3155   :  { %6681 = vmax.xlane.f32.xlu1 %v6680_v56 }
0x3166   :  { %6699 = vrot.lane.b32.xlu1 %v15403_v42, %s14240_s27 }
0x3167   :  { %6775 = vrot.lane.b32.xlu0 %v15401_v58, %s14240_s27 }
0x316a   :  { %6853 = vrot.lane.b32.xlu1 %v15403_v42, %s14244_s6 }
0x316e   :  { %6931 = vrot.lane.b32.xlu1 %v15401_v58, %s14244_s6 }
0x3172   :  { %6929 = vrot.lane.b32.xlu1 %v15416_v28, %s14244_s6 }
0x31de   :  { %v6679_v57 = vpop.xlane.xlu0 %6678 }
0x31df   :  { %v6683_v60 = vsub.f32 %v6675_v52, %v6679_v57 }
0x31e1   :  { %v6685_v22 = vmul.f32 1.442695, %v6683_v60 }
0x31e2   :  { %v6776_v49 = vpop.permute.xlu0 %6775  ;;  %v6682_v25 = vpop.xlane.xlu1 %6681 }
0x31e3   :  { %13464 = vpow2.f32 %v6685_v22  ;;  %v6684_v43 = vsub.f32 %v6676_v53, %v6682_v25  ;;  %12684 = vmatpush3.msra.mxu1 %v6776_v49 }
0x31e4   :  { %12693 = vmatprep.subr.mxu1 %v14236_v12 }
0x31e5   :  { %v6687_v59 = vmul.f32 1.442695, %v6684_v43 }
0x31e6   :  { %v6700_v1 = vpop.permute.xlu1 %6699 }
0x31e7   :  { %13466 = vpow2.f32 %v6687_v59  ;;  %12679 = vmatpush3.msra.mxu0 %v6700_v1 }
0x31e8   :  { %12688 = vmatprep.subr.mxu0 %v14236_v12 }
0x31ea   :  { %v6854_v10 = vpop.permute.xlu1 %6853 }
0x31ed   :  { %v13465_v20 = vpop.eup %13464 }
0x31ee   :  { %v6689_v21 = vsel %vm828_vm7, %v13465_v20, 0.0  ;;  %v6932_v39 = vpop.permute.xlu1 %6931 }
0x31ef   :  { %6690 = vadd.xlane.f32.xlu0 %v6689_v21 }
0x31f1   :  { %v13467_v37 = vpop.eup %13466 }
0x31f2   :  { %v6692_v6 = vsel %vm828_vm7, %v13467_v37, 0.0  ;;  %v6930_v29 = vpop.permute.xlu1 %6929 }
0x31f3   :  { %6693 = vadd.xlane.f32.xlu0 %v6692_v6 }
0x3209   :  { %6851 = vrot.lane.b32.xlu0 %v15408_v8, %s14244_s6 }
0x327c   :  { %v6691_v63 = vpop.xlane.xlu0 %6690 }
0x327d   :  { %13468 = vrcp.f32 %v6691_v63 }
0x3280   :  { %v6694_v7 = vpop.xlane.xlu0 %6693 }
0x3281   :  { %13470 = vrcp.f32 %v6694_v7 }
0x3284   :  { %v6852_v27 = vpop.permute.xlu0 %6851 }
0x3287   :  { %v13469_v5 = vpop.eup %13468 }
0x3288   :  { %v6696_v14 = vmul.f32 %v13469_v5, %v13465_v20 }
0x328a   :  { %12681 = vmatmul.mubr.msk.f32.vlgmr.msra.gmra.mrb[60].mxu0 %vm828_vm7, %v6696_v14 }
0x328b   :  { %v13471_v19 = vpop.eup %13470  ;;  %12689 = vmatpush3.xpose.msk.msra.mxu0 %vm828_vm7, %v6854_v10  ;;  %12690 = vmatprep.mubr.msk.f32.mxu0 %vm14237_vm6, %v14236_v12 }
0x328c   :  { %v6698_v26 = vmul.f32 %v13471_v19, %v13467_v37  ;;  %12698 = vmatprep.subr.mxu0 %v14236_v12 }
0x328e   :  { %12686 = vmatmul.mubr.msk.f32.vlgmr.msra.gmra.mrb[76].mxu1 %vm828_vm7, %v6698_v26  ;;  %12691 = vmatmul.mubr.msk.f32.vlgmr.msra.gmra.mrb[62].mxu0 %vm828_vm7, %v6852_v27 }
0x328f   :  { %12694 = vmatpush3.xpose.msk.msra.mxu1 %vm828_vm7, %v6932_v39  ;;  %12695 = vmatprep.mubr.msk.f32.mxu1 %vm14237_vm6, %v14236_v12 }
0x3290   :  { %12703 = vmatprep.subr.mxu1 %v14236_v12  ;;  %12700 = vmatprep.mubr.msk.f32.mxu0 %vm14237_vm6, %v14236_v12 }
0x3292   :  { %12696 = vmatmul.mubr.msk.f32.vlgmr.msra.gmra.mrb[78].mxu1 %vm828_vm7, %v6930_v29 }
0x3293   :  { %12705 = vmatprep.mubr.msk.f32.mxu1 %vm14237_vm6, %v14236_v12 }
0x335d   :  { %v15515_v3 = vpop.f32.mrb[60].mxu0 }
0x335e   :  { %v12682_v31 = vpop.f32.mrb[61].mxu0 }
0x3361   :  { %v15517_v38 = vpop.f32.mrb[76].mxu1  ;;  %v6925_v32 = vpop.f32.mrb[62].mxu0 }
0x3362   :  { %v7007_v33 = vmul.f32 %v6925_v32, %v15424_v62  ;;  %v12687_v34 = vpop.f32.mrb[77].mxu1  ;;  %v12692_v36 = vpop.f32.mrb[63].mxu0 }
0x3364   :  { %v7009_v40 = vadd.f32 %v7007_v33, %v15427_v0 }
0x3365   :  { %v7003_v45 = vpop.f32.mrb[78].mxu1 }
0x3366   :  { %v7008_v15 = vmul.f32 %v7003_v45, %v15431_v2  ;;  %v12697_v23 = vpop.f32.mrb[79].mxu1  ;;  %v7011_v44 = vsel %vm828_vm7, %v7009_v40, -inf }
0x3367   :  { %7012 = vmax.xlane.f32.xlu0 %v7011_v44 }
0x3368   :  { %v7010_v47 = vadd.f32 %v7008_v15, %v15435_v4 }
0x336a   :  { %v7014_v48 = vsel %vm828_vm7, %v7010_v47, -inf }
0x336b   :  { %7015 = vmax.xlane.f32.xlu1 %v7014_v48  ;;  %v7550_v48 = vld [vmem:[#allocation24 + $0x8] sm:$0xff] }
0x337c   :  { %7033 = vrot.lane.b32.xlu1 %v15403_v42, %s14243_s30 }
0x337d   :  { %7109 = vrot.lane.b32.xlu0 %v15401_v58, %s14243_s30 }
0x3380   :  { %7187 = vrot.lane.b32.xlu1 %v15403_v42, %s14247_s25 }
0x3384   :  { %7265 = vrot.lane.b32.xlu1 %v15401_v58, %s14247_s25 }
0x3388   :  { %7263 = vrot.lane.b32.xlu1 %v15416_v28, %s14247_s25 }
0x33f4   :  { %v7013_v9 = vpop.xlane.xlu0 %7012 }
0x33f5   :  { %v7017_v35 = vsub.f32 %v7009_v40, %v7013_v9 }
0x33f7   :  { %v7019_v11 = vmul.f32 1.442695, %v7017_v35  ;;  %v7552_v35 = vld [vmem:[#allocation24 + $0x18] sm:$0xff] }
0x33f8   :  { %v7110_v50 = vpop.permute.xlu0 %7109  ;;  %v7016_v16 = vpop.xlane.xlu1 %7015 }
0x33f9   :  { %13472 = vpow2.f32 %v7019_v11  ;;  %v7018_v13 = vsub.f32 %v7010_v47, %v7016_v16  ;;  %12704 = vmatpush3.msra.mxu1 %v7110_v50  ;;  %v7549_v47 = vld [vmem:[#allocation24] sm:$0xff] }
0x33fa   :  { %12713 = vmatprep.subr.mxu1 %v14236_v12  ;;  %v13145_v9 = vpack.c.bf16 %v7550_v48, %v7549_v47 }
0x33fb   :  { %v7021_v52 = vmul.f32 1.442695, %v7018_v13 }
0x33fc   :  { %v7034_v17 = vpop.permute.xlu1 %7033 }
0x33fd   :  { %13474 = vpow2.f32 %v7021_v52  ;;  %12699 = vmatpush3.msra.mxu0 %v7034_v17 }
0x33fe   :  { %12708 = vmatprep.subr.mxu0 %v14236_v12 }
0x3400   :  { %v7188_v57 = vpop.permute.xlu1 %7187 }
0x3403   :  { %v13473_v54 = vpop.eup %13472 }
0x3404   :  { %v7023_v30 = vsel %vm828_vm7, %v13473_v54, 0.0  ;;  %v7266_v25 = vpop.permute.xlu1 %7265 }
0x3405   :  { %7024 = vadd.xlane.f32.xlu0 %v7023_v30 }
0x3407   :  { %v13475_v28 = vpop.eup %13474 }
0x3408   :  { %v7026_v51 = vsel %vm828_vm7, %v13475_v28, 0.0  ;;  %v7264_v59 = vpop.permute.xlu1 %7263 }
0x3409   :  { %7027 = vadd.xlane.f32.xlu0 %v7026_v51 }
0x341f   :  { %7185 = vrot.lane.b32.xlu0 %v15408_v8, %s14247_s25 }
0x3492   :  { %v7025_v53 = vpop.xlane.xlu0 %7024 }
0x3493   :  { %13476 = vrcp.f32 %v7025_v53 }
0x3496   :  { %v7028_v56 = vpop.xlane.xlu0 %7027 }
0x3497   :  { %13478 = vrcp.f32 %v7028_v56 }
0x349a   :  { %v7186_v8 = vpop.permute.xlu0 %7185 }
0x349d   :  { %v13477_v60 = vpop.eup %13476 }
0x349e   :  { %v7030_v22 = vmul.f32 %v13477_v60, %v13473_v54 }
0x34a0   :  { %12701 = vmatmul.mubr.msk.f32.vlgmr.msra.gmra.mrb[64].mxu0 %vm828_vm7, %v7030_v22 }
0x34a1   :  { %v13479_v49 = vpop.eup %13478  ;;  %12709 = vmatpush3.xpose.msk.msra.mxu0 %vm828_vm7, %v7188_v57  ;;  %12710 = vmatprep.mubr.msk.f32.mxu0 %vm14237_vm6, %v14236_v12 }
0x34a2   :  { %v7032_v43 = vmul.f32 %v13479_v49, %v13475_v28  ;;  %12718 = vmatprep.subr.mxu0 %v14236_v12 }
0x34a4   :  { %12706 = vmatmul.mubr.msk.f32.vlgmr.msra.gmra.mrb[80].mxu1 %vm828_vm7, %v7032_v43  ;;  %12711 = vmatmul.mubr.msk.f32.vlgmr.msra.gmra.mrb[66].mxu0 %vm828_vm7, %v7186_v8  ;;  %v11777_v43 = vld [vmem:[#allocation25] ss:$0 sm:$0xff] }
0x34a5   :  { %12714 = vmatpush3.xpose.msk.msra.mxu1 %vm828_vm7, %v7266_v25  ;;  %12715 = vmatprep.mubr.msk.f32.mxu1 %vm14237_vm6, %v14236_v12 }
0x34a6   :  { %12723 = vmatprep.subr.mxu1 %v14236_v12  ;;  %12720 = vmatprep.mubr.msk.f32.mxu0 %vm14237_vm6, %v14236_v12 }
0x34a8   :  { %12716 = vmatmul.mubr.msk.f32.vlgmr.msra.gmra.mrb[82].mxu1 %vm828_vm7, %v7264_v59 }
0x34a9   :  { %12725 = vmatprep.mubr.msk.f32.mxu1 %vm14237_vm6, %v14236_v12 }
0x3573   :  { %v7105_v1 = vpop.f32.mrb[64].mxu0 }
0x3574   :  { %v12702_v20 = vpop.f32.mrb[65].mxu0 }
0x3577   :  { %v7181_v21 = vpop.f32.mrb[80].mxu1  ;;  %v7259_v37 = vpop.f32.mrb[66].mxu0 }
0x3578   :  { %v7341_v6 = vmul.f32 %v7259_v37, %v15424_v62  ;;  %v12707_v63 = vpop.f32.mrb[81].mxu1  ;;  %v12712_v7 = vpop.f32.mrb[67].mxu0 }
0x357a   :  { %v7343_v10 = vadd.f32 %v7341_v6, %v15427_v0 }
0x357b   :  { %v7337_v5 = vpop.f32.mrb[82].mxu1 }
0x357c   :  { %v7342_v14 = vmul.f32 %v7337_v5, %v15431_v2  ;;  %v12717_v19 = vpop.f32.mrb[83].mxu1  ;;  %v7345_v39 = vsel %vm828_vm7, %v7343_v10, -inf }
0x357d   :  { %7346 = vmax.xlane.f32.xlu0 %v7345_v39 }
0x357e   :  { %v7344_v26 = vadd.f32 %v7342_v14, %v15435_v4 }
0x3580   :  { %v7348_v27 = vsel %vm828_vm7, %v7344_v26, -inf }
0x3581   :  { %7349 = vmax.xlane.f32.xlu1 %v7348_v27  ;;  %v7688_v27 = vld [vmem:[%s16156_s12 + $0x8] sm:$0xff] }
0x3592   :  { %7367 = vrot.lane.b32.xlu1 %v15403_v42, %s14246_s17 }
0x3596   :  { %7521 = vrot.lane.b32.xlu1 %v15515_v3, %s14222_s10 }
0x359a   :  { %7523 = vrot.lane.b32.xlu1 %v15517_v38, %s14222_s10 }
0x359e   :  { %7531 = vrot.lane.b32.xlu1 %v7181_v21, %s14207_s15 }
0x360a   :  { %v7347_v62 = vpop.xlane.xlu0 %7346 }
0x360b   :  { %v7351_v0 = vsub.f32 %v7343_v10, %v7347_v62  ;;  %v7689_v62 = vld [vmem:[%s16156_s12 + $0x10] sm:$0xff] }
0x360d   :  { %v7353_v2 = vmul.f32 1.442695, %v7351_v0 }
0x360e   :  { %v7350_v29 = vpop.xlane.xlu1 %7349 }
0x360f   :  { %13480 = vpow2.f32 %v7353_v2  ;;  %v7352_v4 = vsub.f32 %v7344_v26, %v7350_v29  ;;  %v7687_v26 = vld [vmem:[%s16156_s12] sm:$0xff]  ;;  %v7690_v2 = vld [vmem:[%s16156_s12 + $0x18] sm:$0xff] }
0x3610   :  { %v13153_v0 = vpack.c.bf16 %v7688_v27, %v7687_v26  ;;  %v13157_v29 = vpack.c.bf16 %v7690_v2, %v7689_v62  ;;  %v11791_v26 = vld [vmem:[%s16149_s18 + $0x28] sm:$0xff]  ;;  %v11792_v27 = vld [vmem:[%s16149_s18 + $0x30] sm:$0xff] }
0x3611   :  { %v7355_v31 = vmul.f32 1.442695, %v7352_v4  ;;  %v7692_v4 = vld [vmem:[%s16157_s3] sm:$0xff] }
0x3612   :  { %v7368_v32 = vpop.permute.xlu1 %7367 }
0x3613   :  { %13482 = vpow2.f32 %v7355_v31  ;;  %12719 = vmatpush3.msra.mxu0 %v7368_v32  ;;  %v7693_v31 = vld [vmem:[%s16157_s3 + $0x8] sm:$0xff]  ;;  %v7694_v32 = vld [vmem:[%s16157_s3 + $0x10] sm:$0xff] }
0x3614   :  { %13146 = vmatprep.subr.bf16.mxu0 %v13145_v9 }
0x3616   :  { %v7522_v17 = vpop.permute.xlu1 %7521 }
0x3617   :  { %v7543_v28 = vsel %vm828_vm7, %v15473_v61, %v7522_v17 }
0x3619   :  { %v13481_v33 = vpop.eup %13480 }
0x361a   :  { %v7357_v42 = vsel %vm828_vm7, %v13481_v33, 0.0  ;;  %v7524_v54 = vpop.permute.xlu1 %7523 }
0x361b   :  { %7358 = vadd.xlane.f32.xlu0 %v7357_v42  ;;  %v7544_v60 = vsel %vm828_vm7, %v15475_v46, %v7524_v54  ;;  %v7695_v42 = vld [vmem:[%s16157_s3 + $0x18] sm:$0xff]  ;;  %v7698_v54 = vld [vmem:[%s16157_s3 + $0x30] sm:$0xff] }
0x361d   :  { %v13483_v3 = vpop.eup %13482 }
0x361e   :  { %v7360_v34 = vsel %vm828_vm7, %v13483_v3, 0.0  ;;  %v7532_v51 = vpop.permute.xlu1 %7531 }
0x361f   :  { %7361 = vadd.xlane.f32.xlu0 %v7360_v34  ;;  %v7546_v22 = vsel %vm541_vm0, %v7544_v60, %v7532_v51  ;;  %v7696_v34 = vld [vmem:[%s16157_s3 + $0x20] sm:$0xff]  ;;  %v11782_v51 = vld [vmem:[#allocation27] ss:$0 sm:$0xff] }
0x3635   :  { %7443 = vrot.lane.b32.xlu0 %v15401_v58, %s14246_s17  ;;  %v7551_v58 = vld [vmem:[#allocation24 + $0x10] sm:$0xff] }
0x3636   :  { %v13149_v11 = vpack.c.bf16 %v7552_v35, %v7551_v58  ;;  %v11781_v35 = vld [vmem:[#allocation34] ss:$0 sm:$0xff] }
0x3639   :  { %7529 = vrot.lane.b32.xlu0 %v7105_v1, %s14207_s15 }
0x36a8   :  { %v7359_v38 = vpop.xlane.xlu0 %7358 }
0x36a9   :  { %13484 = vrcp.f32 %v7359_v38  ;;  %v7697_v38 = vld [vmem:[%s16157_s3 + $0x28] sm:$0xff] }
0x36ac   :  { %v7362_v36 = vpop.xlane.xlu0 %7361 }
0x36ad   :  { %13486 = vrcp.f32 %v7362_v36  ;;  %v13169_v36 = vpack.c.bf16 %v7697_v38, %v7696_v34  ;;  %v11788_v34 = vld [vmem:[#allocation36] ss:$0 sm:$0xff] }
0x36b0   :  { %v7444_v40 = vpop.permute.xlu0 %7443 }
0x36b1   :  { %12724 = vmatpush3.msra.mxu1 %v7444_v40 }
0x36b2   :  { %13154 = vmatprep.subr.bf16.mxu1 %v13153_v0 }
0x36b3   :  { %v13485_v45 = vpop.eup %13484 }
0x36b4   :  { %v7364_v15 = vmul.f32 %v13485_v45, %v13481_v33  ;;  %v7530_v30 = vpop.permute.xlu0 %7529  ;;  %v13161_v33 = vpack.c.bf16 %v7693_v31, %v7692_v4 }
0x36b5   :  { %v7545_v53 = vsel %vm541_vm0, %v7543_v28, %v7530_v30  ;;  %v7699_v30 = vld [vmem:[%s16157_s3 + $0x38] sm:$0xff] }
0x36b6   :  { %12721 = vmatmul.mubr.msk.f32.vlgmr.msra.gmra.mrb[68].mxu0 %vm828_vm7, %v7364_v15  ;;  %v13173_v28 = vpack.c.bf16 %v7699_v30, %v7698_v54  ;;  %v15658_v30 = vld [vmem:[%s16151_s21] sm:$0xff] }
0x36b7   :  { %v13487_v23 = vpop.eup %13486  ;;  %13148 = vmatpush3.bf16.msra.mxu0 %v13145_v9  ;;  %v11780_v9 = vld [vmem:[#allocation33] ss:$0 sm:$0xff] }
0x36b8   :  { %v7366_v44 = vmul.f32 %v13487_v23, %v13483_v3  ;;  %13150 = vmatprep.subr.bf16.mxu0 %v13149_v11  ;;  %v13165_v3 = vpack.c.bf16 %v7695_v42, %v7694_v32 }
0x36ba   :  { %12726 = vmatmul.mubr.msk.f32.vlgmr.msra.gmra.mrb[84].mxu1 %vm828_vm7, %v7366_v44 }
0x36bb   :  { %13152 = vmatpush3.bf16.msra.mxu0 %v13149_v11  ;;  %13156 = vmatpush3.bf16.msra.mxu1 %v13153_v0  ;;  %v11793_v0 = vld [vmem:[%s16149_s18 + $0x38] sm:$0xff] }
0x36bc   :  { %13158 = vmatprep.subr.bf16.mxu1 %v13157_v29  ;;  %13162 = vmatprep.subr.bf16.mxu0 %v13161_v33  ;;  %v13181_v2 = vpack.c.bf16 %v11793_v0, %v11792_v27 }
0x36bf   :  { %13160 = vmatpush3.bf16.msra.mxu1 %v13157_v29 }
0x3789   :  { %v7439_v50 = vpop.f32.mrb[68].mxu0 }
0x378a   :  { %7537 = vrot.lane.b32.xlu0 %v7439_v50, %s14249_s0  ;;  %v12722_v16 = vpop.f32.mrb[69].mxu0 }
0x378d   :  { %v7515_v13 = vpop.f32.mrb[84].mxu1 }
0x378e   :  { %7539 = vrot.lane.b32.xlu1 %v7515_v13, %s14249_s0  ;;  %v12727_v52 = vpop.f32.mrb[85].mxu1 }
0x37fc   :  { %v7538_v56 = vpop.permute.xlu0 %7537 }
0x37fd   :  { %v7547_v57 = vsel %vm2188_vm8, %v7545_v53, %v7538_v56 }
0x37fe   :  { %12736 = vmatprep.mubr.msk.f32.mxu0 %vm743_vm3, %v7547_v57 }
0x3800   :  { %v7540_v49 = vpop.permute.xlu1 %7539 }
0x3801   :  { %v7548_v25 = vsel %vm2188_vm8, %v7546_v22, %v7540_v49 }
0x3802   :  { %12737 = vmatmul.mubr.msk.f32.vlgmr.msra.gmra.mrb[70].mxu0 %vm743_vm3, %v7548_v25  ;;  %v11785_v25 = vld [vmem:[#allocation28] ss:$0 sm:$0xff] }
0x3803   :  { %13164 = vmatpush3.bf16.msra.mxu0 %v13161_v33 }
0x3804   :  { %13166 = vmatprep.subr.bf16.mxu0 %v13165_v3 }
0x3807   :  { %13168 = vmatpush3.bf16.msra.mxu0 %v13165_v3 }
0x3808   :  { %13170 = vmatprep.subr.bf16.mxu0 %v13169_v36 }
0x380b   :  { %13172 = vmatpush3.bf16.msra.mxu0 %v13169_v36 }
0x380c   :  { %13174 = vmatprep.subr.bf16.mxu0 %v13173_v28 }
0x380f   :  { %13176 = vmatpush3.bf16.msra.mxu0 %v13173_v28 }
0x3810   :  { %12790 = vmatprep.subr.mxu0 %v14236_v12 }
0x38d5   :  { %v12738_v61 = vpop.f32.mrb[70].mxu0 }
0x38d6   :  { %v7638_v8 = vadd.f32 %v12738_v61, %v11777_v43  ;;  %v7632_v59 = vpop.f32.mrb[71].mxu0 }
0x38d7   :  { %v7633_v1 = vadd.f32 %v11777_v43, %v7632_v59 }
0x38d8   :  { %v7644_v20 = vadd.f32 %v7638_v8, %v15395_v18 }
0x38d9   :  { %v7643_v21 = vadd.f32 %v7633_v1, %v15391_v55 }
0x38da   :  { %v7648_v37 = vsel %vm743_vm3, %v7644_v20, 0.0 }
0x38db   :  { %7649 = vadd.xlane.f32.xlu1 %v7648_v37  ;;  %v7645_v46 = vsel %vm743_vm3, %v7643_v21, 0.0 }
0x38dc   :  { %7646 = vadd.xlane.f32.xlu0 %v7645_v46 }
0x3968   :  { %v7650_v6 = vpop.xlane.xlu1 %7649 }
0x3969   :  { %v7652_v63 = vmul.f32 0.03125, %v7650_v6  ;;  %v7647_v7 = vpop.xlane.xlu0 %7646 }
0x396a   :  { %v7651_v10 = vmul.f32 0.03125, %v7647_v7 }
0x396b   :  { %v7654_v5 = vsub.f32 %v7644_v20, %v7652_v63 }
0x396c   :  { %v7653_v14 = vsub.f32 %v7643_v21, %v7651_v10 }
0x396d   :  { %v7656_v18 = vmul.f32 %v7654_v5, %v7654_v5 }
0x396e   :  { %v7655_v19 = vmul.f32 %v7653_v14, %v7653_v14 }
0x396f   :  { %v7660_v39 = vsel %vm743_vm3, %v7656_v18, 0.0 }
0x3970   :  { %v7657_v55 = vsel %vm743_vm3, %v7655_v19, 0.0 }
0x3971   :  { %7658 = vadd.xlane.f32.xlu0 %v7657_v55 }
0x3975   :  { %7661 = vadd.xlane.f32.xlu0 %v7660_v39  ;;  %v11790_v39 = vld [vmem:[%s16149_s18 + $0x20] sm:$0xff] }
0x3976   :  { %v13177_v62 = vpack.c.bf16 %v11791_v26, %v11790_v39 }
0x3978   :  { %13178 = vmatprep.subr.bf16.mxu1 %v13177_v62 }
0x39fe   :  { %v7659_v40 = vpop.xlane.xlu0 %7658 }
0x39ff   :  { %v7663_v45 = vmul.f32 0.03125, %v7659_v40 }
0x3a01   :  { %v7665_v15 = vadd.f32 1e-05, %v7663_v45  ;;  %v11789_v45 = vld [vmem:[#allocation37] ss:$0 sm:$0xff] }
0x3a02   :  { %v7662_v23 = vpop.xlane.xlu0 %7661 }
0x3a03   :  { %13488 = vrsqrt.f32 %v7665_v15  ;;  %v7664_v44 = vmul.f32 0.03125, %v7662_v23 }
0x3a05   :  { %v7666_v47 = vadd.f32 1e-05, %v7664_v44 }
0x3a07   :  { %13490 = vrsqrt.f32 %v7666_v47 }
0x3a0d   :  { %v13489_v48 = vpop.eup %13488 }
0x3a0e   :  { %v7669_v58 = vmul.f32 %v13489_v48, %v7653_v14  ;;  %v11794_v48 = vld [vmem:[#allocation16 + $0x1] ss:$0 sm:$0xff] }
0x3a10   :  { %v7677_v11 = vmul.f32 %v11780_v9, %v7669_v58 }
0x3a11   :  { %v13491_v50 = vpop.eup %13490 }
0x3a12   :  { %v7670_v16 = vmul.f32 %v13491_v50, %v7654_v5  ;;  %v7685_v13 = vadd.f32 %v11781_v35, %v7677_v11 }
0x3a14   :  { %v7678_v52 = vmul.f32 %v11780_v9, %v7670_v16  ;;  %12747 = vmatprep.mubr.msk.f32.mxu1 %vm743_vm3, %v7685_v13 }
0x3a16   :  { %v7686_v17 = vadd.f32 %v11781_v35, %v7678_v52  ;;  %v15654_v52 = vld [vmem:[%s16150_s24] sm:$0xff] }
0x3a18   :  { %12748 = vmatmul.mubr.msk.f32.vlgmr.msra.gmra.mrb[86].mxu1 %vm743_vm3, %v7686_v17 }
0x3a19   :  { %13180 = vmatpush3.bf16.msra.mxu1 %v13177_v62 }
0x3a1a   :  { %13182 = vmatprep.subr.bf16.mxu1 %v13181_v2 }
0x3a1d   :  { %13184 = vmatpush3.bf16.msra.mxu1 %v13181_v2 }
0x3a1e   :  { %12780 = vmatprep.subr.mxu1 %v14236_v12 }
0x3aeb   :  { %v12749_v53 = vpop.f32.mrb[86].mxu1 }
0x3aec   :  { %v7785_v56 = vadd.f32 %v12749_v53, %v11782_v51  ;;  %v7779_v57 = vpop.f32.mrb[87].mxu1  ;;  %v15662_v53 = vld [vmem:[%s16150_s24 + $0x8] sm:$0xff] }
0x3aed   :  { %v7780_v60 = vadd.f32 %v11782_v51, %v7779_v57 }
0x3aee   :  { %v7789_v49 = vmax.f32 %v7785_v56, 0.0 }
0x3aef   :  { %v7788_v22 = vmax.f32 %v7780_v60, 0.0 }
0x3af1   :  { %12766 = vmatprep.mubr.msk.f32.mxu0 %vm2439_vm9, %v7788_v22  ;;  %v15667_v22 = vld [vmem:[%s16151_s21 + $0x8] sm:$0xff] }
0x3af2   :  { %12767 = vmatmul.mubr.msk.f32.vlgmr.msra.gmra.mrb[72].mxu0 %vm2439_vm9, %v7789_v49 }
0x3af3   :  { %12792 = vmatprep.mubr.msk.f32.mxu0 %vm14237_vm6, %v14236_v12 }
0x3bc5   :  { %v12768_v43 = vpop.f32.mrb[72].mxu0 }
0x3bc6   :  { %v7874_v61 = vadd.f32 %v12768_v43, %v11785_v25  ;;  %v7868_v8 = vpop.f32.mrb[73].mxu0 }
0x3bc7   :  { %v7869_v59 = vadd.f32 %v11785_v25, %v7868_v8 }
0x3bc8   :  { %v7880_v1 = vadd.f32 %v7874_v61, %v7686_v17 }
0x3bc9   :  { %v7879_v20 = vadd.f32 %v7869_v59, %v7685_v13 }
0x3bca   :  { %v7884_v21 = vsel %vm743_vm3, %v7880_v1, 0.0 }
0x3bcb   :  { %7885 = vadd.xlane.f32.xlu0 %v7884_v21  ;;  %v7881_v37 = vsel %vm743_vm3, %v7879_v20, 0.0 }
0x3bcc   :  { %7882 = vadd.xlane.f32.xlu1 %v7881_v37 }
0x3c58   :  { %v7886_v46 = vpop.xlane.xlu0 %7885 }
0x3c59   :  { %v7888_v6 = vmul.f32 0.03125, %v7886_v46  ;;  %v7883_v63 = vpop.xlane.xlu1 %7882 }
0x3c5a   :  { %v7887_v7 = vmul.f32 0.03125, %v7883_v63 }
0x3c5b   :  { %v7890_v10 = vsub.f32 %v7880_v1, %v7888_v6 }
0x3c5c   :  { %v7889_v5 = vsub.f32 %v7879_v20, %v7887_v7 }
0x3c5d   :  { %v7892_v14 = vmul.f32 %v7890_v10, %v7890_v10 }
0x3c5e   :  { %v7891_v19 = vmul.f32 %v7889_v5, %v7889_v5 }
0x3c5f   :  { %v7896_v55 = vsel %vm743_vm3, %v7892_v14, 0.0 }
0x3c60   :  { %7897 = vadd.xlane.f32.xlu0 %v7896_v55  ;;  %v7893_v18 = vsel %vm743_vm3, %v7891_v19, 0.0 }
0x3c61   :  { %7894 = vadd.xlane.f32.xlu1 %v7893_v18 }
0x3ced   :  { %v7898_v29 = vpop.xlane.xlu0 %7897 }
0x3cee   :  { %v7900_v4 = vmul.f32 0.03125, %v7898_v29  ;;  %v7895_v31 = vpop.xlane.xlu1 %7894 }
0x3cef   :  { %v7899_v32 = vmul.f32 0.03125, %v7895_v31 }
0x3cf0   :  { %v7902_v33 = vadd.f32 1e-05, %v7900_v4 }
0x3cf1   :  { %v7901_v42 = vadd.f32 1e-05, %v7899_v32 }
0x3cf2   :  { %13492 = vrsqrt.f32 %v7902_v33 }
0x3cf3   :  { %13494 = vrsqrt.f32 %v7901_v42 }
0x3cfc   :  { %v13493_v3 = vpop.eup %13492 }
0x3cfd   :  { %v13495_v38 = vpop.eup %13494  ;;  %v7906_v36 = vmul.f32 %v13493_v3, %v7890_v10 }
0x3cfe   :  { %v7905_v40 = vmul.f32 %v13495_v38, %v7889_v5 }
0x3cff   :  { %v7914_v15 = vmul.f32 %v11788_v34, %v7906_v36 }
0x3d00   :  { %v7913_v23 = vmul.f32 %v11788_v34, %v7905_v40 }
0x3d01   :  { %v15625_v47 = vadd.f32 %v11789_v45, %v7914_v15 }
0x3d02   :  { %v15623_v44 = vadd.f32 %v11789_v45, %v7913_v23 }
0x3d04   :  { %12777 = vmatprep.mubr.msk.f32.mxu1 %vm743_vm3, %v15623_v44 }
0x3d05   :  { %12778 = vmatmul.mubr.msk.f32.vlgmr.msra.gmra.mrb[88].mxu1 %vm743_vm3, %v15625_v47 }
0x3d06   :  { %12782 = vmatprep.mubr.msk.f32.mxu1 %vm14237_vm6, %v14236_v12 }
0x3dd8   :  { %v12779_v9 = vpop.f32.mrb[88].mxu1 }
0x3dd9   :  { %v15633_v58 = vadd.f32 %v12779_v9, %v11794_v48  ;;  %v8008_v35 = vpop.f32.mrb[89].mxu1 }
0x3dda   :  { %v15635_v11 = vadd.f32 %v11794_v48, %v8008_v35 }
0x3ddb   :  { %8095 = vrot.lane.b32.xlu0 %v15633_v58, %s14238_s26 }
0x3ddc   :  { %8018 = vrot.lane.b32.xlu1 %v15635_v11, %s14238_s26 }
0x3e4d   :  { %v8096_v16 = vpop.permute.xlu0 %8095 }
0x3e4e   :  { %v8019_v50 = vpop.permute.xlu1 %8018 }
0x3e4f   :  { %12781 = vmatpush3.xpose.msk.msra.mxu1 %vm828_vm7, %v8019_v50 }
0x3e50   :  { %12785 = vmatprep.subr.mxu1 %v14236_v12 }
0x3e52   :  { %12783 = vmatmul.mubr.msk.f32.vlgmr.msra.gmra.mrb[90].mxu1 %vm828_vm7, %v15635_v11 }
0x3e53   :  { %12786 = vmatpush3.xpose.msk.msra.mxu1 %vm828_vm7, %v8096_v16  ;;  %12787 = vmatprep.mubr.msk.f32.mxu1 %vm14237_vm6, %v14236_v12 }
0x3e54   :  { %12795 = vmatprep.subr.mxu1 %v14236_v12 }
0x3e56   :  { %12788 = vmatmul.mubr.msk.f32.vlgmr.msra.gmra.mrb[92].mxu1 %vm828_vm7, %v15633_v58 }
0x3e57   :  { %12797 = vmatprep.mubr.msk.f32.mxu1 %vm14237_vm6, %v14236_v12 }
0x3f25   :  { %v8090_v13 = vpop.f32.mrb[90].mxu1 }
0x3f26   :  { %v8171_v17 = vmul.f32 %v15654_v52, %v8090_v13  ;;  %v12784_v54 = vpop.f32.mrb[91].mxu1 }
0x3f28   :  { %v8173_v28 = vadd.f32 %v15658_v30, %v8171_v17 }
0x3f29   :  { %v8167_v51 = vpop.f32.mrb[92].mxu1 }
0x3f2a   :  { %v8172_v56 = vmul.f32 %v15662_v53, %v8167_v51  ;;  %v12789_v57 = vpop.f32.mrb[93].mxu1  ;;  %v8175_v60 = vsel %vm828_vm7, %v8173_v28, -inf }
0x3f2b   :  { %8176 = vmax.xlane.f32.xlu1 %v8175_v60 }
0x3f2c   :  { %v8174_v49 = vadd.f32 %v15667_v22, %v8172_v56 }
0x3f2e   :  { %v8178_v25 = vsel %vm828_vm7, %v8174_v49, -inf }
0x3f2f   :  { %8179 = vmax.xlane.f32.xlu0 %v8178_v25 }
0x3f3c   :  { %8197 = vrot.lane.b32.xlu1 %v15635_v11, %s14239_s7 }
0x3f40   :  { %8351 = vrot.lane.b32.xlu1 %v15635_v11, %s14240_s27 }
0x3f44   :  { %8429 = vrot.lane.b32.xlu1 %v15633_v58, %s14240_s27 }
0x3f45   :  { %8273 = vrot.lane.b32.xlu0 %v15633_v58, %s14239_s7 }
0x3fb8   :  { %v8177_v43 = vpop.xlane.xlu1 %8176 }
0x3fb9   :  { %v8181_v61 = vsub.f32 %v8173_v28, %v8177_v43 }
0x3fbb   :  { %v8183_v8 = vmul.f32 1.442695, %v8181_v61 }
0x3fbc   :  { %v8198_v59 = vpop.permute.xlu1 %8197  ;;  %v8180_v1 = vpop.xlane.xlu0 %8179 }
0x3fbd   :  { %13496 = vpow2.f32 %v8183_v8  ;;  %v8182_v20 = vsub.f32 %v8174_v49, %v8180_v1  ;;  %12791 = vmatpush3.msra.mxu0 %v8198_v59 }
0x3fbe   :  { %12800 = vmatprep.subr.mxu0 %v14236_v12 }
0x3fbf   :  { %v8185_v21 = vmul.f32 1.442695, %v8182_v20 }
0x3fc0   :  { %v8274_v37 = vpop.permute.xlu0 %8273  ;;  %v8352_v10 = vpop.permute.xlu1 %8351 }
0x3fc1   :  { %13498 = vpow2.f32 %v8185_v21  ;;  %12796 = vmatpush3.msra.mxu1 %v8274_v37 }
0x3fc2   :  { %12805 = vmatprep.subr.mxu1 %v14236_v12 }
0x3fc4   :  { %v8430_v5 = vpop.permute.xlu1 %8429 }
0x3fc7   :  { %v13497_v46 = vpop.eup %13496 }
0x3fc8   :  { %v8187_v6 = vsel %vm828_vm7, %v13497_v46, 0.0 }
0x3fc9   :  { %8188 = vadd.xlane.f32.xlu1 %v8187_v6 }
0x3fcb   :  { %v13499_v63 = vpop.eup %13498 }
0x3fcc   :  { %v8190_v7 = vsel %vm828_vm7, %v13499_v63, 0.0 }
0x3fcd   :  { %8191 = vadd.xlane.f32.xlu0 %v8190_v7 }
0x3fda   :  { %8427 = vrot.lane.b32.xlu1 %v15633_v58, %s14241_s5 }
0x3fe3   :  { %8349 = vrot.lane.b32.xlu0 %v15635_v11, %s14241_s5 }
0x4056   :  { %v8189_v14 = vpop.xlane.xlu1 %8188 }
0x4057   :  { %13500 = vrcp.f32 %v8189_v14 }
0x405a   :  { %v8192_v19 = vpop.xlane.xlu0 %8191  ;;  %v8428_v62 = vpop.permute.xlu1 %8427 }
0x405b   :  { %13502 = vrcp.f32 %v8192_v19 }
0x405e   :  { %v8350_v27 = vpop.permute.xlu0 %8349 }
0x4061   :  { %v13501_v55 = vpop.eup %13500 }
0x4062   :  { %v8194_v18 = vmul.f32 %v13501_v55, %v13497_v46 }
0x4064   :  { %12793 = vmatmul.mubr.msk.f32.vlgmr.msra.gmra.mrb[74].mxu0 %vm828_vm7, %v8194_v18 }
0x4065   :  { %v13503_v39 = vpop.eup %13502  ;;  %12801 = vmatpush3.xpose.msk.msra.mxu0 %vm828_vm7, %v8352_v10  ;;  %12802 = vmatprep.mubr.msk.f32.mxu0 %vm14237_vm6, %v14236_v12 }
0x4066   :  { %v8196_v26 = vmul.f32 %v13503_v39, %v13499_v63  ;;  %12810 = vmatprep.subr.mxu0 %v14236_v12 }
0x4068   :  { %12798 = vmatmul.mubr.msk.f32.vlgmr.msra.gmra.mrb[94].mxu1 %vm828_vm7, %v8196_v26  ;;  %12803 = vmatmul.mubr.msk.f32.vlgmr.msra.gmra.mrb[76].mxu0 %vm828_vm7, %v8350_v27 }
0x4069   :  { %12806 = vmatpush3.xpose.msk.msra.mxu1 %vm828_vm7, %v8430_v5  ;;  %12807 = vmatprep.mubr.msk.f32.mxu1 %vm14237_vm6, %v14236_v12 }
0x406a   :  { %12815 = vmatprep.subr.mxu1 %v14236_v12  ;;  %12812 = vmatprep.mubr.msk.f32.mxu0 %vm14237_vm6, %v14236_v12 }
0x406c   :  { %12808 = vmatmul.mubr.msk.f32.vlgmr.msra.gmra.mrb[96].mxu1 %vm828_vm7, %v8428_v62 }
0x406d   :  { %12817 = vmatprep.mubr.msk.f32.mxu1 %vm14237_vm6, %v14236_v12 }
0x4137   :  { %v15703_v0 = vpop.f32.mrb[74].mxu0 }
0x4138   :  { %v12794_v2 = vpop.f32.mrb[75].mxu0 }
0x413b   :  { %v15705_v29 = vpop.f32.mrb[94].mxu1  ;;  %v8423_v4 = vpop.f32.mrb[76].mxu0 }
0x413c   :  { %v8505_v31 = vmul.f32 %v15654_v52, %v8423_v4  ;;  %v12799_v32 = vpop.f32.mrb[95].mxu1  ;;  %v12804_v33 = vpop.f32.mrb[77].mxu0 }
0x413e   :  { %v8507_v42 = vadd.f32 %v15658_v30, %v8505_v31 }
0x413f   :  { %v8501_v3 = vpop.f32.mrb[96].mxu1 }
0x4140   :  { %v8506_v34 = vmul.f32 %v15662_v53, %v8501_v3  ;;  %v12809_v38 = vpop.f32.mrb[97].mxu1  ;;  %v8509_v36 = vsel %vm828_vm7, %v8507_v42, -inf }
0x4141   :  { %8510 = vmax.xlane.f32.xlu0 %v8509_v36 }
0x4142   :  { %v8508_v40 = vadd.f32 %v15667_v22, %v8506_v34 }
0x4144   :  { %v8512_v45 = vsel %vm828_vm7, %v8508_v40, -inf }
0x4145   :  { %8513 = vmax.xlane.f32.xlu1 %v8512_v45 }
0x4156   :  { %8531 = vrot.lane.b32.xlu1 %v15635_v11, %s14242_s1 }
0x4157   :  { %8607 = vrot.lane.b32.xlu0 %v15633_v58, %s14242_s1 }
0x415a   :  { %8685 = vrot.lane.b32.xlu1 %v15635_v11, %s14243_s30 }
0x415e   :  { %8763 = vrot.lane.b32.xlu1 %v15633_v58, %s14243_s30 }
0x4162   :  { %8761 = vrot.lane.b32.xlu1 %v15633_v58, %s14244_s6 }
0x41ce   :  { %v8511_v15 = vpop.xlane.xlu0 %8510 }
0x41cf   :  { %v8515_v23 = vsub.f32 %v8507_v42, %v8511_v15 }
0x41d1   :  { %v8517_v48 = vmul.f32 1.442695, %v8515_v23 }
0x41d2   :  { %v8608_v9 = vpop.permute.xlu0 %8607  ;;  %v8514_v35 = vpop.xlane.xlu1 %8513 }
0x41d3   :  { %13504 = vpow2.f32 %v8517_v48  ;;  %v8516_v50 = vsub.f32 %v8508_v40, %v8514_v35  ;;  %12816 = vmatpush3.msra.mxu1 %v8608_v9 }
0x41d4   :  { %12825 = vmatprep.subr.mxu1 %v14236_v12 }
0x41d5   :  { %v8519_v16 = vmul.f32 1.442695, %v8516_v50 }
0x41d6   :  { %v8532_v13 = vpop.permute.xlu1 %8531 }
0x41d7   :  { %13506 = vpow2.f32 %v8519_v16  ;;  %12811 = vmatpush3.msra.mxu0 %v8532_v13 }
0x41d8   :  { %12820 = vmatprep.subr.mxu0 %v14236_v12 }
0x41da   :  { %v8686_v60 = vpop.permute.xlu1 %8685 }
0x41dd   :  { %v13505_v17 = vpop.eup %13504 }
0x41de   :  { %v8521_v54 = vsel %vm828_vm7, %v13505_v17, 0.0  ;;  %v8764_v61 = vpop.permute.xlu1 %8763 }
0x41df   :  { %8522 = vadd.xlane.f32.xlu0 %v8521_v54 }
0x41e1   :  { %v13507_v28 = vpop.eup %13506 }
0x41e2   :  { %v8524_v51 = vsel %vm828_vm7, %v13507_v28, 0.0  ;;  %v8762_v1 = vpop.permute.xlu1 %8761 }
0x41e3   :  { %8525 = vadd.xlane.f32.xlu0 %v8524_v51 }
0x41f9   :  { %8683 = vrot.lane.b32.xlu0 %v15635_v11, %s14244_s6 }
0x426c   :  { %v8523_v56 = vpop.xlane.xlu0 %8522 }
0x426d   :  { %13508 = vrcp.f32 %v8523_v56 }
0x4270   :  { %v8526_v57 = vpop.xlane.xlu0 %8525 }
0x4271   :  { %13510 = vrcp.f32 %v8526_v57 }
0x4274   :  { %v8684_v59 = vpop.permute.xlu0 %8683 }
0x4277   :  { %v13509_v49 = vpop.eup %13508 }
0x4278   :  { %v8528_v25 = vmul.f32 %v13509_v49, %v13505_v17 }
0x427a   :  { %12813 = vmatmul.mubr.msk.f32.vlgmr.msra.gmra.mrb[78].mxu0 %vm828_vm7, %v8528_v25 }
0x427b   :  { %v13511_v43 = vpop.eup %13510  ;;  %12821 = vmatpush3.xpose.msk.msra.mxu0 %vm828_vm7, %v8686_v60  ;;  %12822 = vmatprep.mubr.msk.f32.mxu0 %vm14237_vm6, %v14236_v12 }
0x427c   :  { %v8530_v8 = vmul.f32 %v13511_v43, %v13507_v28  ;;  %12830 = vmatprep.subr.mxu0 %v14236_v12 }
0x427e   :  { %12818 = vmatmul.mubr.msk.f32.vlgmr.msra.gmra.mrb[98].mxu1 %vm828_vm7, %v8530_v8  ;;  %12823 = vmatmul.mubr.msk.f32.vlgmr.msra.gmra.mrb[80].mxu0 %vm828_vm7, %v8684_v59 }
0x427f   :  { %12826 = vmatpush3.xpose.msk.msra.mxu1 %vm828_vm7, %v8764_v61  ;;  %12827 = vmatprep.mubr.msk.f32.mxu1 %vm14237_vm6, %v14236_v12 }
0x4280   :  { %12835 = vmatprep.subr.mxu1 %v14236_v12  ;;  %12832 = vmatprep.mubr.msk.f32.mxu0 %vm14237_vm6, %v14236_v12 }
0x4282   :  { %12828 = vmatmul.mubr.msk.f32.vlgmr.msra.gmra.mrb[100].mxu1 %vm828_vm7, %v8762_v1 }
0x4283   :  { %12837 = vmatprep.mubr.msk.f32.mxu1 %vm14237_vm6, %v14236_v12 }
0x434d   :  { %v15745_v20 = vpop.f32.mrb[78].mxu0 }
0x434e   :  { %v12814_v21 = vpop.f32.mrb[79].mxu0 }
0x4351   :  { %v15747_v37 = vpop.f32.mrb[98].mxu1  ;;  %v8757_v46 = vpop.f32.mrb[80].mxu0 }
0x4352   :  { %v8839_v6 = vmul.f32 %v15654_v52, %v8757_v46  ;;  %v12819_v63 = vpop.f32.mrb[99].mxu1  ;;  %v12824_v7 = vpop.f32.mrb[81].mxu0 }
0x4354   :  { %v8841_v10 = vadd.f32 %v15658_v30, %v8839_v6 }
0x4355   :  { %v8835_v5 = vpop.f32.mrb[100].mxu1 }
0x4356   :  { %v8840_v14 = vmul.f32 %v15662_v53, %v8835_v5  ;;  %v12829_v19 = vpop.f32.mrb[101].mxu1  ;;  %v8843_v55 = vsel %vm828_vm7, %v8841_v10, -inf }
0x4357   :  { %8844 = vmax.xlane.f32.xlu0 %v8843_v55 }
0x4358   :  { %v8842_v18 = vadd.f32 %v15667_v22, %v8840_v14 }
0x435a   :  { %v8846_v39 = vsel %vm828_vm7, %v8842_v18, -inf }
0x435b   :  { %8847 = vmax.xlane.f32.xlu1 %v8846_v39 }
0x436c   :  { %8865 = vrot.lane.b32.xlu1 %v15635_v11, %s14245_s2 }
0x436d   :  { %8941 = vrot.lane.b32.xlu0 %v15633_v58, %s14245_s2 }
0x4370   :  { %9019 = vrot.lane.b32.xlu1 %v15635_v11, %s14246_s17 }
0x4374   :  { %9097 = vrot.lane.b32.xlu1 %v15633_v58, %s14246_s17 }
0x4378   :  { %9095 = vrot.lane.b32.xlu1 %v15633_v58, %s14247_s25 }
0x43e4   :  { %v8845_v26 = vpop.xlane.xlu0 %8844 }
0x43e5   :  { %v8849_v27 = vsub.f32 %v8841_v10, %v8845_v26  ;;  %v11823_v26 = vld [vmem:[%s16152_s19 + $0x30] sm:$0xff] }
0x43e7   :  { %v8851_v62 = vmul.f32 1.442695, %v8849_v27  ;;  %v11824_v27 = vld [vmem:[%s16152_s19 + $0x38] sm:$0xff] }
0x43e8   :  { %v8942_v2 = vpop.permute.xlu0 %8941  ;;  %v8848_v4 = vpop.xlane.xlu1 %8847 }
0x43e9   :  { %13512 = vpow2.f32 %v8851_v62  ;;  %v8850_v31 = vsub.f32 %v8842_v18, %v8848_v4  ;;  %12836 = vmatpush3.msra.mxu1 %v8942_v2  ;;  %v11821_v18 = vld [vmem:[%s16152_s19 + $0x20] sm:$0xff]  ;;  %v13189_v62 = vpack.c.bf16 %v11824_v27, %v11823_v26  ;;  %v9619_v4 = vld [vmem:[#allocation21 + $0x28] sm:$0xff] }
0x43ea   :  { %12845 = vmatprep.subr.mxu1 %v14236_v12  ;;  %v9618_v2 = vld [vmem:[#allocation21 + $0x20] sm:$0xff]  ;;  %v11829_v26 = vld [vmem:[#allocation31 + $0x1] ss:$0 sm:$0xff] }
0x43eb   :  { %v8853_v32 = vmul.f32 1.442695, %v8850_v31  ;;  %v13201_v31 = vpack.c.bf16 %v9619_v4, %v9618_v2 }
0x43ec   :  { %v8866_v33 = vpop.permute.xlu1 %8865 }
0x43ed   :  { %13514 = vpow2.f32 %v8853_v32  ;;  %12831 = vmatpush3.msra.mxu0 %v8866_v33 }
0x43ee   :  { %12840 = vmatprep.subr.mxu0 %v14236_v12 }
0x43f0   :  { %v9020_v45 = vpop.permute.xlu1 %9019 }
0x43f3   :  { %v13513_v42 = vpop.eup %13512 }
0x43f4   :  { %v8855_v3 = vsel %vm828_vm7, %v13513_v42, 0.0  ;;  %v9098_v9 = vpop.permute.xlu1 %9097 }
0x43f5   :  { %8856 = vadd.xlane.f32.xlu0 %v8855_v3 }
0x43f7   :  { %v13515_v34 = vpop.eup %13514 }
0x43f8   :  { %v8858_v38 = vsel %vm828_vm7, %v13515_v34, 0.0  ;;  %v9096_v16 = vpop.permute.xlu1 %9095 }
0x43f9   :  { %8859 = vadd.xlane.f32.xlu0 %v8858_v38 }
0x440f   :  { %9017 = vrot.lane.b32.xlu0 %v15635_v11, %s14247_s25 }
0x4482   :  { %v8857_v36 = vpop.xlane.xlu0 %8856 }
0x4483   :  { %13516 = vrcp.f32 %v8857_v36 }
0x4486   :  { %v8860_v40 = vpop.xlane.xlu0 %8859 }
0x4487   :  { %13518 = vrcp.f32 %v8860_v40 }
0x448a   :  { %v9018_v50 = vpop.permute.xlu0 %9017 }
0x448d   :  { %v13517_v15 = vpop.eup %13516 }
0x448e   :  { %v8862_v23 = vmul.f32 %v13517_v15, %v13513_v42 }
0x4490   :  { %12833 = vmatmul.mubr.msk.f32.vlgmr.msra.gmra.mrb[82].mxu0 %vm828_vm7, %v8862_v23 }
0x4491   :  { %v13519_v48 = vpop.eup %13518  ;;  %12841 = vmatpush3.xpose.msk.msra.mxu0 %vm828_vm7, %v9020_v45  ;;  %12842 = vmatprep.mubr.msk.f32.mxu0 %vm14237_vm6, %v14236_v12 }
0x4492   :  { %v8864_v35 = vmul.f32 %v13519_v48, %v13515_v34  ;;  %12850 = vmatprep.subr.mxu0 %v14236_v12 }
0x4494   :  { %12838 = vmatmul.mubr.msk.f32.vlgmr.msra.gmra.mrb[102].mxu1 %vm828_vm7, %v8864_v35  ;;  %12843 = vmatmul.mubr.msk.f32.vlgmr.msra.gmra.mrb[84].mxu0 %vm828_vm7, %v9018_v50  ;;  %v9621_v35 = vld [vmem:[#allocation21 + $0x38] sm:$0xff] }
0x4495   :  { %12846 = vmatpush3.xpose.msk.msra.mxu1 %vm828_vm7, %v9098_v9  ;;  %12847 = vmatprep.mubr.msk.f32.mxu1 %vm14237_vm6, %v14236_v12  ;;  %v9620_v9 = vld [vmem:[#allocation21 + $0x30] sm:$0xff] }
0x4496   :  { %12855 = vmatprep.subr.mxu1 %v14236_v12  ;;  %12852 = vmatprep.mubr.msk.f32.mxu0 %vm14237_vm6, %v14236_v12 }
0x4498   :  { %12848 = vmatmul.mubr.msk.f32.vlgmr.msra.gmra.mrb[104].mxu1 %vm828_vm7, %v9096_v16 }
0x4499   :  { %12857 = vmatprep.mubr.msk.f32.mxu1 %vm14237_vm6, %v14236_v12 }
0x4563   :  { %v8937_v13 = vpop.f32.mrb[82].mxu0 }
0x4564   :  { %v12834_v17 = vpop.f32.mrb[83].mxu0 }
0x4565   :  { %v13205_v17 = vpack.c.bf16 %v9621_v35, %v9620_v9 }
0x4567   :  { %v9013_v54 = vpop.f32.mrb[102].mxu1  ;;  %v9091_v28 = vpop.f32.mrb[84].mxu0 }
0x4568   :  { %v9173_v51 = vmul.f32 %v15654_v52, %v9091_v28  ;;  %v12839_v56 = vpop.f32.mrb[103].mxu1  ;;  %v12844_v57 = vpop.f32.mrb[85].mxu0 }
0x456a   :  { %v9175_v60 = vadd.f32 %v15658_v30, %v9173_v51 }
0x456b   :  { %v9169_v49 = vpop.f32.mrb[104].mxu1 }
0x456c   :  { %v9174_v25 = vmul.f32 %v15662_v53, %v9169_v49  ;;  %v12849_v43 = vpop.f32.mrb[105].mxu1  ;;  %v9177_v61 = vsel %vm828_vm7, %v9175_v60, -inf  ;;  %v11837_v49 = vld [vmem:[#allocation22 + $0x1] ss:$0 sm:$0xff] }
0x456d   :  { %9178 = vmax.xlane.f32.xlu0 %v9177_v61 }
0x456e   :  { %v9176_v8 = vadd.f32 %v15667_v22, %v9174_v25 }
0x4570   :  { %v9180_v59 = vsel %vm828_vm7, %v9176_v8, -inf }
0x4571   :  { %9181 = vmax.xlane.f32.xlu1 %v9180_v59 }
0x4582   :  { %9199 = vrot.lane.b32.xlu1 %v15635_v11, %s14248_s20 }
0x4586   :  { %9353 = vrot.lane.b32.xlu1 %v15745_v20, %s14222_s10 }
0x458a   :  { %9355 = vrot.lane.b32.xlu1 %v15747_v37, %s14222_s10 }
0x458e   :  { %9363 = vrot.lane.b32.xlu1 %v9013_v54, %s14207_s15 }
0x45fa   :  { %v9179_v52 = vpop.xlane.xlu0 %9178 }
0x45fb   :  { %v9183_v30 = vsub.f32 %v9175_v60, %v9179_v52 }
0x45fd   :  { %v9185_v53 = vmul.f32 1.442695, %v9183_v30 }
0x45fe   :  { %v9182_v1 = vpop.xlane.xlu1 %9181 }
0x45ff   :  { %13520 = vpow2.f32 %v9185_v53  ;;  %v9184_v22 = vsub.f32 %v9176_v8, %v9182_v1 }
0x4601   :  { %v9187_v21 = vmul.f32 1.442695, %v9184_v22 }
0x4602   :  { %v9200_v46 = vpop.permute.xlu1 %9199 }
0x4603   :  { %13522 = vpow2.f32 %v9187_v21  ;;  %12851 = vmatpush3.msra.mxu0 %v9200_v46  ;;  %v11830_v46 = vld [vmem:[%s16153_s22 + $0x20] sm:$0xff] }
0x4606   :  { %v9354_v34 = vpop.permute.xlu1 %9353 }
0x4607   :  { %v9375_v40 = vsel %vm828_vm7, %v15703_v0, %v9354_v34  ;;  %v11825_v0 = vld [vmem:[#allocation18 + $0x1] ss:$0 sm:$0xff] }
0x4609   :  { %v13521_v6 = vpop.eup %13520 }
0x460a   :  { %v9189_v11 = vsel %vm828_vm7, %v13521_v6, 0.0  ;;  %v9356_v38 = vpop.permute.xlu1 %9355 }
0x460b   :  { %9190 = vadd.xlane.f32.xlu0 %v9189_v11  ;;  %v9376_v50 = vsel %vm828_vm7, %v15705_v29, %v9356_v38 }
0x460d   :  { %v13523_v20 = vpop.eup %13522 }
0x460e   :  { %v9192_v63 = vsel %vm828_vm7, %v13523_v20, 0.0  ;;  %v9364_v45 = vpop.permute.xlu1 %9363 }
0x460f   :  { %9193 = vadd.xlane.f32.xlu0 %v9192_v63  ;;  %v9378_v16 = vsel %vm541_vm0, %v9376_v50, %v9364_v45  ;;  %v11833_v63 = vld [vmem:[%s16153_s22 + $0x38] sm:$0xff]  ;;  %v15874_v45 = vld [vmem:[%s16154_s8] sm:$0xff]  ;;  %v15882_v50 = vld [vmem:[%s16154_s8 + $0x8] sm:$0xff] }
0x4625   :  { %9275 = vrot.lane.b32.xlu0 %v15633_v58, %s14248_s20  ;;  %v11822_v58 = vld [vmem:[%s16152_s19 + $0x28] sm:$0xff] }
0x4626   :  { %v13185_v39 = vpack.c.bf16 %v11822_v58, %v11821_v18  ;;  %v11828_v58 = vld [vmem:[#allocation30 + $0x1] ss:$0 sm:$0xff] }
0x4628   :  { %13186 = vmatprep.subr.bf16.mxu0 %v13185_v39 }
0x4629   :  { %9361 = vrot.lane.b32.xlu0 %v8937_v13, %s14207_s15 }
0x4698   :  { %v9191_v37 = vpop.xlane.xlu0 %9190 }
0x4699   :  { %13524 = vrcp.f32 %v9191_v37 }
0x469c   :  { %v9194_v7 = vpop.xlane.xlu0 %9193 }
0x469d   :  { %13526 = vrcp.f32 %v9194_v7 }
0x46a0   :  { %v9276_v10 = vpop.permute.xlu0 %9275 }
0x46a1   :  { %12856 = vmatpush3.msra.mxu1 %v9276_v10 }
0x46a3   :  { %v13525_v5 = vpop.eup %13524 }
0x46a4   :  { %v9196_v14 = vmul.f32 %v13525_v5, %v13521_v6  ;;  %v9362_v36 = vpop.permute.xlu0 %9361  ;;  %v11831_v6 = vld [vmem:[%s16153_s22 + $0x28] sm:$0xff] }
0x46a5   :  { %v9377_v15 = vsel %vm541_vm0, %v9375_v40, %v9362_v36  ;;  %v13193_v11 = vpack.c.bf16 %v11831_v6, %v11830_v46 }
0x46a6   :  { %12853 = vmatmul.mubr.msk.f32.vlgmr.msra.gmra.mrb[86].mxu0 %vm828_vm7, %v9196_v14 }
0x46a7   :  { %v13527_v19 = vpop.eup %13526  ;;  %13188 = vmatpush3.bf16.msra.mxu0 %v13185_v39  ;;  %13194 = vmatprep.subr.bf16.mxu1 %v13193_v11 }
0x46a8   :  { %v9198_v55 = vmul.f32 %v13527_v19, %v13523_v20  ;;  %13190 = vmatprep.subr.bf16.mxu0 %v13189_v62  ;;  %v11832_v20 = vld [vmem:[%s16153_s22 + $0x30] sm:$0xff] }
0x46a9   :  { %v13197_v37 = vpack.c.bf16 %v11833_v63, %v11832_v20 }
0x46aa   :  { %12858 = vmatmul.mubr.msk.f32.vlgmr.msra.gmra.mrb[106].mxu1 %vm828_vm7, %v9198_v55 }
0x46ab   :  { %13192 = vmatpush3.bf16.msra.mxu0 %v13189_v62  ;;  %13196 = vmatpush3.bf16.msra.mxu1 %v13193_v11 }
0x46ac   :  { %13202 = vmatprep.subr.bf16.mxu0 %v13201_v31  ;;  %13198 = vmatprep.subr.bf16.mxu1 %v13197_v37 }
0x46af   :  { %13200 = vmatpush3.bf16.msra.mxu1 %v13197_v37 }
0x46b0   :  { %12893 = vmatprep.subr.mxu1 %v14236_v12 }
0x4779   :  { %v9271_v32 = vpop.f32.mrb[86].mxu0 }
0x477a   :  { %9369 = vrot.lane.b32.xlu0 %v9271_v32, %s14249_s0  ;;  %v12854_v33 = vpop.f32.mrb[87].mxu0 }
0x477d   :  { %v9347_v42 = vpop.f32.mrb[106].mxu1 }
0x477e   :  { %9371 = vrot.lane.b32.xlu1 %v9347_v42, %s14249_s0  ;;  %v12859_v3 = vpop.f32.mrb[107].mxu1  ;;  %v11834_v42 = vld [vmem:[#allocation19 + $0x1] ss:$0 sm:$0xff] }
0x47ec   :  { %v9370_v23 = vpop.permute.xlu0 %9369 }
0x47ed   :  { %v9379_v48 = vsel %vm2188_vm8, %v9377_v15, %v9370_v23 }
0x47ee   :  { %12868 = vmatprep.mubr.msk.f32.mxu0 %vm743_vm3, %v9379_v48  ;;  %v15878_v48 = vld [vmem:[%s16155_s16] sm:$0xff] }
0x47f0   :  { %v9372_v13 = vpop.permute.xlu1 %9371 }
0x47f1   :  { %v9380_v54 = vsel %vm2188_vm8, %v9378_v16, %v9372_v13 }
0x47f2   :  { %12869 = vmatmul.mubr.msk.f32.vlgmr.msra.gmra.mrb[88].mxu0 %vm743_vm3, %v9380_v54  ;;  %v15887_v54 = vld [vmem:[%s16155_s16 + $0x8] sm:$0xff] }
0x47f3   :  { %13204 = vmatpush3.bf16.msra.mxu0 %v13201_v31  ;;  %12890 = vmatprep.mubr.msk.f32.mxu0 %vm743_vm3, %v15372_v24 }
0x47f4   :  { %13206 = vmatprep.subr.bf16.mxu0 %v13205_v17 }
0x47f7   :  { %13208 = vmatpush3.bf16.msra.mxu0 %v13205_v17 }
0x47f8   :  { %12903 = vmatprep.subr.mxu0 %v14236_v12 }
0x47fa   :  { %12891 = vmatmul.mubr.msk.f32.vlgmr.msra.gmra.mrb[90].mxu0 %vm743_vm3, %v15380_v41 }
0x47fb   :  { %12905 = vmatprep.mubr.msk.f32.mxu0 %vm14237_vm6, %v14236_v12 }
0x48c5   :  { %v12870_v29 = vpop.f32.mrb[88].mxu0 }
0x48c6   :  { %v9472_v28 = vadd.f32 %v12870_v29, %v11825_v0  ;;  %v9466_v51 = vpop.f32.mrb[89].mxu0 }
0x48c7   :  { %v9467_v56 = vadd.f32 %v11825_v0, %v9466_v51 }
0x48c8   :  { %v9480_v57 = vadd.f32 %v9472_v28, %v15625_v47 }
0x48c9   :  { %v9479_v60 = vadd.f32 %v9467_v56, %v15623_v44 }
0x48ca   :  { %v9484_v24 = vsel %vm743_vm3, %v9480_v57, 0.0 }
0x48cb   :  { %9485 = vadd.xlane.f32.xlu1 %v9484_v24  ;;  %v9481_v25 = vsel %vm743_vm3, %v9479_v60, 0.0 }
0x48cc   :  { %9482 = vadd.xlane.f32.xlu0 %v9481_v25 }
0x48cd   :  { %v12892_v41 = vpop.f32.mrb[90].mxu0 }
0x48ce   :  { %v15834_v43 = vadd.f32 %v12892_v41, %v11837_v49  ;;  %v9696_v61 = vpop.f32.mrb[91].mxu0 }
0x48cf   :  { %v15849_v33 = vadd.f32 %v11837_v49, %v9696_v61 }
0x4958   :  { %v9486_v8 = vpop.xlane.xlu1 %9485 }
0x4959   :  { %v9488_v59 = vmul.f32 0.03125, %v9486_v8  ;;  %v9483_v52 = vpop.xlane.xlu0 %9482 }
0x495a   :  { %v9487_v47 = vmul.f32 0.03125, %v9483_v52 }
0x495b   :  { %v9490_v44 = vsub.f32 %v9480_v57, %v9488_v59 }
0x495c   :  { %v9489_v30 = vsub.f32 %v9479_v60, %v9487_v47 }
0x495d   :  { %v9492_v22 = vmul.f32 %v9490_v44, %v9490_v44 }
0x495e   :  { %v9491_v53 = vmul.f32 %v9489_v30, %v9489_v30 }
0x495f   :  { %v9496_v21 = vsel %vm743_vm3, %v9492_v22, 0.0 }
0x4960   :  { %v9493_v1 = vsel %vm743_vm3, %v9491_v53, 0.0 }
0x4961   :  { %9494 = vadd.xlane.f32.xlu0 %v9493_v1 }
0x4965   :  { %9497 = vadd.xlane.f32.xlu0 %v9496_v21 }
0x49ee   :  { %v9495_v7 = vpop.xlane.xlu0 %9494 }
0x49ef   :  { %v9499_v10 = vmul.f32 0.03125, %v9495_v7 }
0x49f1   :  { %v9501_v5 = vadd.f32 1e-05, %v9499_v10 }
0x49f2   :  { %v9498_v14 = vpop.xlane.xlu0 %9497 }
0x49f3   :  { %13528 = vrsqrt.f32 %v9501_v5  ;;  %v9500_v19 = vmul.f32 0.03125, %v9498_v14 }
0x49f5   :  { %v9502_v55 = vadd.f32 1e-05, %v9500_v19 }
0x49f7   :  { %13530 = vrsqrt.f32 %v9502_v55 }
0x49fd   :  { %v13529_v18 = vpop.eup %13528 }
0x49fe   :  { %v9505_v39 = vmul.f32 %v13529_v18, %v9489_v30 }
0x4a00   :  { %v9513_v27 = vmul.f32 %v11828_v58, %v9505_v39 }
0x4a01   :  { %v13531_v62 = vpop.eup %13530 }
0x4a02   :  { %v9506_v2 = vmul.f32 %v13531_v62, %v9490_v44  ;;  %v15843_v4 = vadd.f32 %v11829_v26, %v9513_v27 }
0x4a04   :  { %v9514_v31 = vmul.f32 %v11828_v58, %v9506_v2  ;;  %12879 = vmatprep.mubr.msk.f32.mxu1 %vm743_vm3, %v15843_v4 }
0x4a06   :  { %v15847_v32 = vadd.f32 %v11829_v26, %v9514_v31 }
0x4a08   :  { %12880 = vmatmul.mubr.msk.f32.vlgmr.msra.gmra.mrb[108].mxu1 %vm743_vm3, %v15847_v32 }
0x4a09   :  { %12894 = vmatpush3.xpose.msk.msra.mxu1 %vm828_vm7, %v15849_v33  ;;  %12895 = vmatprep.mubr.msk.f32.mxu1 %vm14237_vm6, %v14236_v12 }
0x4a0a   :  { %12898 = vmatprep.subr.mxu1 %v14236_v12 }
0x4adb   :  { %v12881_v3 = vpop.f32.mrb[108].mxu1 }
0x4adc   :  { %v9608_v34 = vpop.f32.mrb[109].mxu1  ;;  %v15866_v36 = vadd.f32 %v12881_v3, %v11834_v42 }
0x4add   :  { %v15858_v38 = vadd.f32 %v11834_v42, %v9608_v34 }
0x4adf   :  { %12896 = vmatmul.mubr.msk.f32.vlgmr.msra.gmra.mrb[110].mxu1 %vm828_vm7, %v15858_v38 }
0x4ae0   :  { %12899 = vmatpush3.xpose.msk.msra.mxu1 %vm828_vm7, %v15834_v43  ;;  %12900 = vmatprep.mubr.msk.f32.mxu1 %vm14237_vm6, %v14236_v12 }
0x4ae1   :  { %12908 = vmatprep.subr.mxu1 %v14236_v12 }
0x4ae3   :  { %12901 = vmatmul.mubr.msk.f32.vlgmr.msra.gmra.mrb[112].mxu1 %vm828_vm7, %v15866_v36 }
0x4ae4   :  { %12910 = vmatprep.mubr.msk.f32.mxu1 %vm14237_vm6, %v14236_v12 }
0x4bb2   :  { %v9777_v40 = vpop.f32.mrb[110].mxu1 }
0x4bb3   :  { %v9857_v15 = vmul.f32 %v15874_v45, %v9777_v40  ;;  %v12897_v23 = vpop.f32.mrb[111].mxu1 }
0x4bb5   :  { %v9859_v9 = vadd.f32 %v15878_v48, %v9857_v15 }
0x4bb6   :  { %v9853_v35 = vpop.f32.mrb[112].mxu1 }
0x4bb7   :  { %v9858_v16 = vmul.f32 %v15882_v50, %v9853_v35  ;;  %v12902_v13 = vpop.f32.mrb[113].mxu1  ;;  %v9861_v17 = vsel %vm828_vm7, %v9859_v9, -inf }
0x4bb8   :  { %9862 = vmax.xlane.f32.xlu1 %v9861_v17 }
0x4bb9   :  { %v9860_v0 = vadd.f32 %v15887_v54, %v9858_v16 }
0x4bbb   :  { %v9864_v29 = vsel %vm828_vm7, %v9860_v0, -inf }
0x4bbc   :  { %9865 = vmax.xlane.f32.xlu0 %v9864_v29 }
0x4bc9   :  { %9883 = vrot.lane.b32.xlu1 %v15849_v33, %s14238_s26 }
0x4bcd   :  { %10037 = vrot.lane.b32.xlu1 %v15849_v33, %s14241_s5 }
0x4bd1   :  { %10115 = vrot.lane.b32.xlu1 %v15834_v43, %s14241_s5 }
0x4bd2   :  { %9959 = vrot.lane.b32.xlu0 %v15834_v43, %s14238_s26 }
0x4c45   :  { %v9863_v28 = vpop.xlane.xlu1 %9862 }
0x4c46   :  { %v9867_v51 = vsub.f32 %v9859_v9, %v9863_v28 }
0x4c48   :  { %v9869_v56 = vmul.f32 1.442695, %v9867_v51 }
0x4c49   :  { %v9884_v57 = vpop.permute.xlu1 %9883  ;;  %v9866_v60 = vpop.xlane.xlu0 %9865 }
0x4c4a   :  { %13532 = vpow2.f32 %v9869_v56  ;;  %v9868_v24 = vsub.f32 %v9860_v0, %v9866_v60  ;;  %12904 = vmatpush3.msra.mxu0 %v9884_v57 }
0x4c4b   :  { %12913 = vmatprep.subr.mxu0 %v14236_v12 }
0x4c4c   :  { %v9871_v49 = vmul.f32 1.442695, %v9868_v24 }
0x4c4d   :  { %v9960_v25 = vpop.permute.xlu0 %9959  ;;  %v10038_v52 = vpop.permute.xlu1 %10037 }
0x4c4e   :  { %13534 = vpow2.f32 %v9871_v49  ;;  %12909 = vmatpush3.msra.mxu1 %v9960_v25 }
0x4c4f   :  { %12918 = vmatprep.subr.mxu1 %v14236_v12 }
0x4c51   :  { %v10116_v47 = vpop.permute.xlu1 %10115 }
0x4c54   :  { %v13533_v41 = vpop.eup %13532 }
0x4c55   :  { %v9873_v61 = vsel %vm828_vm7, %v13533_v41, 0.0 }
0x4c56   :  { %9874 = vadd.xlane.f32.xlu1 %v9873_v61 }
0x4c58   :  { %v13535_v8 = vpop.eup %13534 }
0x4c59   :  { %v9876_v59 = vsel %vm828_vm7, %v13535_v8, 0.0 }
0x4c5a   :  { %9877 = vadd.xlane.f32.xlu0 %v9876_v59 }
0x4c67   :  { %10113 = vrot.lane.b32.xlu1 %v15866_v36, %s14241_s5 }
0x4c70   :  { %10035 = vrot.lane.b32.xlu0 %v15858_v38, %s14241_s5 }
0x4ce3   :  { %v9875_v44 = vpop.xlane.xlu1 %9874 }
0x4ce4   :  { %13536 = vrcp.f32 %v9875_v44 }
0x4ce7   :  { %v9878_v30 = vpop.xlane.xlu0 %9877  ;;  %v10114_v6 = vpop.permute.xlu1 %10113 }
0x4ce8   :  { %13538 = vrcp.f32 %v9878_v30 }
0x4ceb   :  { %v10036_v46 = vpop.permute.xlu0 %10035 }
0x4cee   :  { %v13537_v53 = vpop.eup %13536 }
0x4cef   :  { %v9880_v1 = vmul.f32 %v13537_v53, %v13533_v41 }
0x4cf1   :  { %12906 = vmatmul.mubr.msk.f32.vlgmr.msra.gmra.mrb[92].mxu0 %vm828_vm7, %v9880_v1 }
0x4cf2   :  { %v13539_v22 = vpop.eup %13538  ;;  %12914 = vmatpush3.xpose.msk.msra.mxu0 %vm828_vm7, %v10038_v52  ;;  %12915 = vmatprep.mubr.msk.f32.mxu0 %vm14237_vm6, %v14236_v12 }
0x4cf3   :  { %v9882_v21 = vmul.f32 %v13539_v22, %v13535_v8  ;;  %12923 = vmatprep.subr.mxu0 %v14236_v12 }
0x4cf5   :  { %12911 = vmatmul.mubr.msk.f32.vlgmr.msra.gmra.mrb[114].mxu1 %vm828_vm7, %v9882_v21  ;;  %12916 = vmatmul.mubr.msk.f32.vlgmr.msra.gmra.mrb[94].mxu0 %vm828_vm7, %v10036_v46 }
0x4cf6   :  { %12919 = vmatpush3.xpose.msk.msra.mxu1 %vm828_vm7, %v10116_v47  ;;  %12920 = vmatprep.mubr.msk.f32.mxu1 %vm14237_vm6, %v14236_v12 }
0x4cf7   :  { %12928 = vmatprep.subr.mxu1 %v14236_v12  ;;  %12925 = vmatprep.mubr.msk.f32.mxu0 %vm14237_vm6, %v14236_v12 }
0x4cf9   :  { %12921 = vmatmul.mubr.msk.f32.vlgmr.msra.gmra.mrb[116].mxu1 %vm828_vm7, %v10114_v6 }
0x4cfa   :  { %12930 = vmatprep.mubr.msk.f32.mxu1 %vm14237_vm6, %v14236_v12 }
0x4dc4   :  { %v15923_v11 = vpop.f32.mrb[92].mxu0 }
0x4dc5   :  { %v12907_v20 = vpop.f32.mrb[93].mxu0 }
0x4dc8   :  { %v15925_v63 = vpop.f32.mrb[114].mxu1  ;;  %v10109_v37 = vpop.f32.mrb[94].mxu0 }
0x4dc9   :  { %v10191_v7 = vmul.f32 %v15874_v45, %v10109_v37  ;;  %v12912_v10 = vpop.f32.mrb[115].mxu1  ;;  %v12917_v5 = vpop.f32.mrb[95].mxu0 }
0x4dcb   :  { %v10193_v14 = vadd.f32 %v15878_v48, %v10191_v7 }
0x4dcc   :  { %v10187_v19 = vpop.f32.mrb[116].mxu1 }
0x4dcd   :  { %v10192_v55 = vmul.f32 %v15882_v50, %v10187_v19  ;;  %v12922_v18 = vpop.f32.mrb[117].mxu1  ;;  %v10195_v58 = vsel %vm828_vm7, %v10193_v14, -inf }
0x4dce   :  { %10196 = vmax.xlane.f32.xlu0 %v10195_v58 }
0x4dcf   :  { %v10194_v39 = vadd.f32 %v15887_v54, %v10192_v55 }
0x4dd1   :  { %v10198_v26 = vsel %vm828_vm7, %v10194_v39, -inf }
0x4dd2   :  { %10199 = vmax.xlane.f32.xlu1 %v10198_v26 }
0x4de3   :  { %10217 = vrot.lane.b32.xlu1 %v15849_v33, %s14240_s27 }
0x4de4   :  { %10293 = vrot.lane.b32.xlu0 %v15834_v43, %s14240_s27 }
0x4de7   :  { %10371 = vrot.lane.b32.xlu1 %v15849_v33, %s14244_s6 }
0x4deb   :  { %10449 = vrot.lane.b32.xlu1 %v15834_v43, %s14244_s6 }
0x4def   :  { %10447 = vrot.lane.b32.xlu1 %v15866_v36, %s14244_s6 }
0x4e5b   :  { %v10197_v27 = vpop.xlane.xlu0 %10196 }
0x4e5c   :  { %v10201_v62 = vsub.f32 %v10193_v14, %v10197_v27 }
0x4e5e   :  { %v10203_v2 = vmul.f32 1.442695, %v10201_v62 }
0x4e5f   :  { %v10294_v31 = vpop.permute.xlu0 %10293  ;;  %v10200_v42 = vpop.xlane.xlu1 %10199 }
0x4e60   :  { %13540 = vpow2.f32 %v10203_v2  ;;  %v10202_v3 = vsub.f32 %v10194_v39, %v10200_v42  ;;  %12929 = vmatpush3.msra.mxu1 %v10294_v31 }
0x4e61   :  { %12938 = vmatprep.subr.mxu1 %v14236_v12 }
0x4e62   :  { %v10205_v34 = vmul.f32 1.442695, %v10202_v3 }
0x4e63   :  { %v10218_v40 = vpop.permute.xlu1 %10217 }
0x4e64   :  { %13542 = vpow2.f32 %v10205_v34  ;;  %12924 = vmatpush3.msra.mxu0 %v10218_v40 }
0x4e65   :  { %12933 = vmatprep.subr.mxu0 %v14236_v12 }
0x4e67   :  { %v10372_v17 = vpop.permute.xlu1 %10371 }
0x4e6a   :  { %v13541_v15 = vpop.eup %13540 }
0x4e6b   :  { %v10207_v23 = vsel %vm828_vm7, %v13541_v15, 0.0  ;;  %v10450_v51 = vpop.permute.xlu1 %10449 }
0x4e6c   :  { %10208 = vadd.xlane.f32.xlu0 %v10207_v23 }
0x4e6e   :  { %v13543_v9 = vpop.eup %13542 }
0x4e6f   :  { %v10210_v35 = vsel %vm828_vm7, %v13543_v9, 0.0  ;;  %v10448_v60 = vpop.permute.xlu1 %10447 }
0x4e70   :  { %10211 = vadd.xlane.f32.xlu0 %v10210_v35 }
0x4e86   :  { %10369 = vrot.lane.b32.xlu0 %v15858_v38, %s14244_s6 }
0x4ef9   :  { %v10209_v16 = vpop.xlane.xlu0 %10208 }
0x4efa   :  { %13544 = vrcp.f32 %v10209_v16 }
0x4efd   :  { %v10212_v13 = vpop.xlane.xlu0 %10211 }
0x4efe   :  { %13546 = vrcp.f32 %v10212_v13 }
0x4f01   :  { %v10370_v57 = vpop.permute.xlu0 %10369 }
0x4f04   :  { %v13545_v0 = vpop.eup %13544 }
0x4f05   :  { %v10214_v29 = vmul.f32 %v13545_v0, %v13541_v15 }
0x4f07   :  { %12926 = vmatmul.mubr.msk.f32.vlgmr.msra.gmra.mrb[96].mxu0 %vm828_vm7, %v10214_v29 }
0x4f08   :  { %v13547_v28 = vpop.eup %13546  ;;  %12934 = vmatpush3.xpose.msk.msra.mxu0 %vm828_vm7, %v10372_v17  ;;  %12935 = vmatprep.mubr.msk.f32.mxu0 %vm14237_vm6, %v14236_v12 }
0x4f09   :  { %v10216_v56 = vmul.f32 %v13547_v28, %v13543_v9  ;;  %12943 = vmatprep.subr.mxu0 %v14236_v12 }
0x4f0b   :  { %12931 = vmatmul.mubr.msk.f32.vlgmr.msra.gmra.mrb[118].mxu1 %vm828_vm7, %v10216_v56  ;;  %12936 = vmatmul.mubr.msk.f32.vlgmr.msra.gmra.mrb[98].mxu0 %vm828_vm7, %v10370_v57 }
0x4f0c   :  { %12939 = vmatpush3.xpose.msk.msra.mxu1 %vm828_vm7, %v10450_v51  ;;  %12940 = vmatprep.mubr.msk.f32.mxu1 %vm14237_vm6, %v14236_v12 }
0x4f0d   :  { %12948 = vmatprep.subr.mxu1 %v14236_v12  ;;  %12945 = vmatprep.mubr.msk.f32.mxu0 %vm14237_vm6, %v14236_v12 }
0x4f0f   :  { %12941 = vmatmul.mubr.msk.f32.vlgmr.msra.gmra.mrb[120].mxu1 %vm828_vm7, %v10448_v60 }
0x4f10   :  { %12950 = vmatprep.mubr.msk.f32.mxu1 %vm14237_vm6, %v14236_v12 }
0x4fda   :  { %v15965_v24 = vpop.f32.mrb[96].mxu0 }
0x4fdb   :  { %v12927_v49 = vpop.f32.mrb[97].mxu0 }
0x4fde   :  { %v15967_v25 = vpop.f32.mrb[118].mxu1  ;;  %v10443_v41 = vpop.f32.mrb[98].mxu0 }
0x4fdf   :  { %v10525_v61 = vmul.f32 %v15874_v45, %v10443_v41  ;;  %v12932_v8 = vpop.f32.mrb[119].mxu1  ;;  %v12937_v59 = vpop.f32.mrb[99].mxu0 }
0x4fe1   :  { %v10527_v52 = vadd.f32 %v15878_v48, %v10525_v61 }
0x4fe2   :  { %v10521_v47 = vpop.f32.mrb[120].mxu1 }
0x4fe3   :  { %v10526_v44 = vmul.f32 %v15882_v50, %v10521_v47  ;;  %v12942_v30 = vpop.f32.mrb[121].mxu1  ;;  %v10529_v53 = vsel %vm828_vm7, %v10527_v52, -inf }
0x4fe4   :  { %10530 = vmax.xlane.f32.xlu0 %v10529_v53  ;;  %v11069_v30 = vld [vmem:[#allocation24 + $0x28] sm:$0xff] }
0x4fe5   :  { %v10528_v1 = vadd.f32 %v15887_v54, %v10526_v44  ;;  %v11068_v44 = vld [vmem:[#allocation24 + $0x20] sm:$0xff] }
0x4fe6   :  { %v13209_v53 = vpack.c.bf16 %v11069_v30, %v11068_v44  ;;  %v11868_v30 = vld [vmem:[#allocation34 + $0x1] ss:$0 sm:$0xff] }
0x4fe7   :  { %v10532_v22 = vsel %vm828_vm7, %v10528_v1, -inf }
0x4fe8   :  { %10533 = vmax.xlane.f32.xlu1 %v10532_v22 }
0x4ff9   :  { %10551 = vrot.lane.b32.xlu1 %v15849_v33, %s14243_s30 }
0x4ffa   :  { %10627 = vrot.lane.b32.xlu0 %v15834_v43, %s14243_s30 }
0x4ffd   :  { %10705 = vrot.lane.b32.xlu1 %v15849_v33, %s14247_s25 }
0x5001   :  { %10783 = vrot.lane.b32.xlu1 %v15834_v43, %s14247_s25 }
0x5005   :  { %10781 = vrot.lane.b32.xlu1 %v15866_v36, %s14247_s25 }
0x5071   :  { %v10531_v21 = vpop.xlane.xlu0 %10530 }
0x5072   :  { %v10535_v46 = vsub.f32 %v10527_v52, %v10531_v21 }
0x5074   :  { %v10537_v6 = vmul.f32 1.442695, %v10535_v46 }
0x5075   :  { %v10628_v20 = vpop.permute.xlu0 %10627  ;;  %v10534_v37 = vpop.xlane.xlu1 %10533 }
0x5076   :  { %13548 = vpow2.f32 %v10537_v6  ;;  %v10536_v7 = vsub.f32 %v10528_v1, %v10534_v37  ;;  %12949 = vmatpush3.msra.mxu1 %v10628_v20  ;;  %v11071_v1 = vld [vmem:[#allocation24 + $0x38] sm:$0xff] }
0x5077   :  { %12958 = vmatprep.subr.mxu1 %v14236_v12 }
0x5078   :  { %v10539_v10 = vmul.f32 1.442695, %v10536_v7 }
0x5079   :  { %v10552_v5 = vpop.permute.xlu1 %10551 }
0x507a   :  { %13550 = vpow2.f32 %v10539_v10  ;;  %12944 = vmatpush3.msra.mxu0 %v10552_v5 }
0x507b   :  { %12953 = vmatprep.subr.mxu0 %v14236_v12 }
0x507d   :  { %v10706_v39 = vpop.permute.xlu1 %10705 }
0x5080   :  { %v13549_v14 = vpop.eup %13548 }
0x5081   :  { %v10541_v19 = vsel %vm828_vm7, %v13549_v14, 0.0  ;;  %v10784_v2 = vpop.permute.xlu1 %10783 }
0x5082   :  { %10542 = vadd.xlane.f32.xlu0 %v10541_v19 }
0x5084   :  { %v13551_v36 = vpop.eup %13550 }
0x5085   :  { %v10544_v55 = vsel %vm828_vm7, %v13551_v36, 0.0  ;;  %v10782_v42 = vpop.permute.xlu1 %10781 }
0x5086   :  { %10545 = vadd.xlane.f32.xlu0 %v10544_v55 }
0x509c   :  { %10703 = vrot.lane.b32.xlu0 %v15858_v38, %s14247_s25 }
0x510f   :  { %v10543_v18 = vpop.xlane.xlu0 %10542 }
0x5110   :  { %13552 = vrcp.f32 %v10543_v18 }
0x5113   :  { %v10546_v58 = vpop.xlane.xlu0 %10545 }
0x5114   :  { %13554 = vrcp.f32 %v10546_v58 }
0x5117   :  { %v10704_v38 = vpop.permute.xlu0 %10703 }
0x511a   :  { %v13553_v26 = vpop.eup %13552 }
0x511b   :  { %v10548_v27 = vmul.f32 %v13553_v26, %v13549_v14 }
0x511d   :  { %12946 = vmatmul.mubr.msk.f32.vlgmr.msra.gmra.mrb[100].mxu0 %vm828_vm7, %v10548_v27  ;;  %v11864_v27 = vld [vmem:[#allocation25 + $0x1] ss:$0 sm:$0xff] }
0x511e   :  { %v13555_v62 = vpop.eup %13554  ;;  %12954 = vmatpush3.xpose.msk.msra.mxu0 %vm828_vm7, %v10706_v39  ;;  %12955 = vmatprep.mubr.msk.f32.mxu0 %vm14237_vm6, %v14236_v12 }
0x511f   :  { %v10550_v31 = vmul.f32 %v13555_v62, %v13551_v36  ;;  %12963 = vmatprep.subr.mxu0 %v14236_v12 }
0x5121   :  { %12951 = vmatmul.mubr.msk.f32.vlgmr.msra.gmra.mrb[122].mxu1 %vm828_vm7, %v10550_v31  ;;  %12956 = vmatmul.mubr.msk.f32.vlgmr.msra.gmra.mrb[102].mxu0 %vm828_vm7, %v10704_v38 }
0x5122   :  { %12959 = vmatpush3.xpose.msk.msra.mxu1 %vm828_vm7, %v10784_v2  ;;  %12960 = vmatprep.mubr.msk.f32.mxu1 %vm14237_vm6, %v14236_v12 }
0x5123   :  { %12968 = vmatprep.subr.mxu1 %v14236_v12  ;;  %12965 = vmatprep.mubr.msk.f32.mxu0 %vm14237_vm6, %v14236_v12 }
0x5125   :  { %12961 = vmatmul.mubr.msk.f32.vlgmr.msra.gmra.mrb[124].mxu1 %vm828_vm7, %v10782_v42 }
0x5126   :  { %12970 = vmatprep.mubr.msk.f32.mxu1 %vm14237_vm6, %v14236_v12 }
0x51f0   :  { %v10623_v3 = vpop.f32.mrb[100].mxu0 }
0x51f1   :  { %v12947_v34 = vpop.f32.mrb[101].mxu0 }
0x51f4   :  { %v10699_v40 = vpop.f32.mrb[122].mxu1  ;;  %v10777_v15 = vpop.f32.mrb[102].mxu0 }
0x51f5   :  { %v10859_v23 = vmul.f32 %v15874_v45, %v10777_v15  ;;  %v12952_v9 = vpop.f32.mrb[123].mxu1  ;;  %v12957_v35 = vpop.f32.mrb[103].mxu0 }
0x51f7   :  { %v10861_v16 = vadd.f32 %v15878_v48, %v10859_v23 }
0x51f8   :  { %v10855_v13 = vpop.f32.mrb[124].mxu1 }
0x51f9   :  { %v10860_v17 = vmul.f32 %v15882_v50, %v10855_v13  ;;  %v12962_v0 = vpop.f32.mrb[125].mxu1  ;;  %v10863_v29 = vsel %vm828_vm7, %v10861_v16, -inf }
0x51fa   :  { %10864 = vmax.xlane.f32.xlu0 %v10863_v29  ;;  %v11870_v0 = vld [vmem:[%s16156_s12 + $0x28] sm:$0xff] }
0x51fb   :  { %v10862_v28 = vadd.f32 %v15887_v54, %v10860_v17  ;;  %v11869_v17 = vld [vmem:[%s16156_s12 + $0x20] sm:$0xff] }
0x51fc   :  { %v13217_v29 = vpack.c.bf16 %v11870_v0, %v11869_v17  ;;  %v11454_v17 = vld [vmem:[%s14473_s14 + $0x18] sm:$0xff] }
0x51fd   :  { %v10866_v12 = vsel %vm828_vm7, %v10862_v28, -inf }
0x51fe   :  { %10867 = vmax.xlane.f32.xlu1 %v10866_v12  ;;  %v11872_v12 = vld [vmem:[%s16156_s12 + $0x38] sm:$0xff] }
0x520f   :  { %10885 = vrot.lane.b32.xlu1 %v15849_v33, %s14246_s17 }
0x5213   :  { %11039 = vrot.lane.b32.xlu1 %v15965_v24, %s14222_s10 }
0x5217   :  { %11041 = vrot.lane.b32.xlu1 %v15967_v25, %s14222_s10 }
0x521b   :  { %11049 = vrot.lane.b32.xlu1 %v10699_v40, %s14207_s15 }
0x5287   :  { %v10865_v45 = vpop.xlane.xlu0 %10864 }
0x5288   :  { %v10869_v48 = vsub.f32 %v10861_v16, %v10865_v45 }
0x528a   :  { %v10871_v50 = vmul.f32 1.442695, %v10869_v48  ;;  %v11873_v48 = vld [vmem:[%s16157_s3 + $0x40] sm:$0xff] }
0x528b   :  { %v10868_v51 = vpop.xlane.xlu1 %10867 }
0x528c   :  { %13556 = vpow2.f32 %v10871_v50  ;;  %v10870_v54 = vsub.f32 %v10862_v28, %v10868_v51  ;;  %v11871_v28 = vld [vmem:[%s16156_s12 + $0x30] sm:$0xff]  ;;  %v11874_v50 = vld [vmem:[%s16157_s3 + $0x48] sm:$0xff] }
0x528d   :  { %v13221_v45 = vpack.c.bf16 %v11872_v12, %v11871_v28  ;;  %v11875_v51 = vld [vmem:[%s16157_s3 + $0x50] sm:$0xff] }
0x528e   :  { %v10873_v56 = vmul.f32 1.442695, %v10870_v54  ;;  %v13225_v54 = vpack.c.bf16 %v11874_v50, %v11873_v48 }
0x528f   :  { %v10886_v57 = vpop.permute.xlu1 %10885 }
0x5290   :  { %13558 = vpow2.f32 %v10873_v56  ;;  %12964 = vmatpush3.msra.mxu0 %v10886_v57  ;;  %v11876_v56 = vld [vmem:[%s16157_s3 + $0x58] sm:$0xff] }
0x5291   :  { %13210 = vmatprep.subr.bf16.mxu0 %v13209_v53  ;;  %v13229_v57 = vpack.c.bf16 %v11876_v56, %v11875_v51 }
0x5293   :  { %v11040_v37 = vpop.permute.xlu1 %11039 }
0x5294   :  { %v11061_v5 = vsel %vm828_vm7, %v15923_v11, %v11040_v37 }
0x5296   :  { %v13557_v60 = vpop.eup %13556 }
0x5297   :  { %v10875_v33 = vsel %vm828_vm7, %v13557_v60, 0.0  ;;  %v11042_v7 = vpop.permute.xlu1 %11041 }
0x5298   :  { %10876 = vadd.xlane.f32.xlu0 %v10875_v33  ;;  %v11062_v18 = vsel %vm828_vm7, %v15925_v63, %v11042_v7  ;;  %v11878_v33 = vld [vmem:[%s16157_s3 + $0x68] sm:$0xff] }
0x5299   :  { %v11881_v7 = vld [vmem:[#allocation27 + $0x1] ss:$0 sm:$0xff] }
0x529a   :  { %v13559_v24 = vpop.eup %13558 }
0x529b   :  { %v10878_v49 = vsel %vm828_vm7, %v13559_v24, 0.0  ;;  %v11050_v14 = vpop.permute.xlu1 %11049 }
0x529c   :  { %10879 = vadd.xlane.f32.xlu0 %v10878_v49  ;;  %v11064_v58 = vsel %vm541_vm0, %v11062_v18, %v11050_v14  ;;  %v11884_v18 = vld [vmem:[#allocation28 + $0x1] ss:$0 sm:$0xff] }
0x52b2   :  { %10961 = vrot.lane.b32.xlu0 %v15834_v43, %s14246_s17  ;;  %v11070_v43 = vld [vmem:[#allocation24 + $0x30] sm:$0xff] }
0x52b3   :  { %v13213_v22 = vpack.c.bf16 %v11071_v1, %v11070_v43 }
0x52b6   :  { %11047 = vrot.lane.b32.xlu0 %v10623_v3, %s14207_s15 }
0x5325   :  { %v10877_v25 = vpop.xlane.xlu0 %10876 }
0x5326   :  { %13560 = vrcp.f32 %v10877_v25 }
0x5329   :  { %v10880_v41 = vpop.xlane.xlu0 %10879 }
0x532a   :  { %13562 = vrcp.f32 %v10880_v41 }
0x532d   :  { %v10962_v61 = vpop.permute.xlu0 %10961 }
0x532e   :  { %12969 = vmatpush3.msra.mxu1 %v10962_v61 }
0x532f   :  { %13218 = vmatprep.subr.bf16.mxu1 %v13217_v29 }
0x5330   :  { %v13561_v8 = vpop.eup %13560 }
0x5331   :  { %v10882_v59 = vmul.f32 %v13561_v8, %v13557_v60  ;;  %v11048_v10 = vpop.permute.xlu0 %11047  ;;  %v11877_v60 = vld [vmem:[%s16157_s3 + $0x60] sm:$0xff] }
0x5332   :  { %v11063_v19 = vsel %vm541_vm0, %v11061_v5, %v11048_v10 }
0x5333   :  { %12966 = vmatmul.mubr.msk.f32.vlgmr.msra.gmra.mrb[104].mxu0 %vm828_vm7, %v10882_v59 }
0x5334   :  { %v13563_v52 = vpop.eup %13562  ;;  %13212 = vmatpush3.bf16.msra.mxu0 %v13209_v53 }
0x5335   :  { %v10884_v47 = vmul.f32 %v13563_v52, %v13559_v24  ;;  %13214 = vmatprep.subr.bf16.mxu0 %v13213_v22  ;;  %v13233_v24 = vpack.c.bf16 %v11878_v33, %v11877_v60  ;;  %v11888_v33 = vld [vmem:[#allocation37 + $0x1] ss:$0 sm:$0xff] }
0x5337   :  { %12971 = vmatmul.mubr.msk.f32.vlgmr.msra.gmra.mrb[126].mxu1 %vm828_vm7, %v10884_v47  ;;  %v11867_v47 = vld [vmem:[#allocation33 + $0x1] ss:$0 sm:$0xff] }
0x5338   :  { %13216 = vmatpush3.bf16.msra.mxu0 %v13213_v22  ;;  %13220 = vmatpush3.bf16.msra.mxu1 %v13217_v29 }
0x5339   :  { %13222 = vmatprep.subr.bf16.mxu1 %v13221_v45  ;;  %13226 = vmatprep.subr.bf16.mxu0 %v13225_v54 }
0x533c   :  { %13224 = vmatpush3.bf16.msra.mxu1 %v13221_v45 }
0x5406   :  { %v10957_v21 = vpop.f32.mrb[104].mxu0 }
0x5407   :  { %11055 = vrot.lane.b32.xlu0 %v10957_v21, %s14249_s0  ;;  %v12967_v46 = vpop.f32.mrb[105].mxu0 }
0x540a   :  { %v11033_v6 = vpop.f32.mrb[126].mxu1 }
0x540b   :  { %11057 = vrot.lane.b32.xlu1 %v11033_v6, %s14249_s0  ;;  %v12972_v20 = vpop.f32.mrb[127].mxu1  ;;  %v11879_v6 = vld [vmem:[%s16157_s3 + $0x70] sm:$0xff] }
0x540c   :  { %v11880_v20 = vld [vmem:[%s16157_s3 + $0x78] sm:$0xff] }
0x540d   :  { %v13237_v37 = vpack.c.bf16 %v11880_v20, %v11879_v6 }
0x5479   :  { %v11056_v36 = vpop.permute.xlu0 %11055 }
0x547a   :  { %v11065_v55 = vsel %vm2188_vm8, %v11063_v19, %v11056_v36 }
0x547b   :  { %12981 = vmatprep.mubr.msk.f32.mxu0 %vm743_vm3, %v11065_v55 }
0x547d   :  { %v11058_v39 = vpop.permute.xlu1 %11057 }
0x547e   :  { %v11066_v26 = vsel %vm2188_vm8, %v11064_v58, %v11058_v39 }
0x547f   :  { %12982 = vmatmul.mubr.msk.f32.vlgmr.msra.gmra.mrb[106].mxu0 %vm743_vm3, %v11066_v26 }
0x5480   :  { %13228 = vmatpush3.bf16.msra.mxu0 %v13225_v54  ;;  %v11887_v54 = vld [vmem:[#allocation36 + $0x1] ss:$0 sm:$0xff] }
0x5481   :  { %13230 = vmatprep.subr.bf16.mxu0 %v13229_v57 }
0x5484   :  { %13232 = vmatpush3.bf16.msra.mxu0 %v13229_v57 }
0x5485   :  { %13234 = vmatprep.subr.bf16.mxu0 %v13233_v24 }
0x5488   :  { %13236 = vmatpush3.bf16.msra.mxu0 %v13233_v24 }
0x5489   :  { %13238 = vmatprep.subr.bf16.mxu0 %v13237_v37 }
0x548c   :  { %13240 = vmatpush3.bf16.msra.mxu0 %v13237_v37 }
0x5552   :  { %v12983_v11 = vpop.f32.mrb[106].mxu0 }
0x5553   :  { %v11158_v62 = vadd.f32 %v12983_v11, %v11864_v27  ;;  %v11152_v2 = vpop.f32.mrb[107].mxu0 }
0x5554   :  { %v11153_v31 = vadd.f32 %v11864_v27, %v11152_v2 }
0x5555   :  { %v11166_v38 = vadd.f32 %v11158_v62, %v15847_v32 }
0x5556   :  { %v11165_v42 = vadd.f32 %v11153_v31, %v15843_v4 }
0x5557   :  { %v11170_v3 = vsel %vm743_vm3, %v11166_v38, 0.0 }
0x5558   :  { %11171 = vadd.xlane.f32.xlu1 %v11170_v3  ;;  %v11167_v63 = vsel %vm743_vm3, %v11165_v42, 0.0 }
0x5559   :  { %11168 = vadd.xlane.f32.xlu0 %v11167_v63 }
0x55e5   :  { %v11172_v34 = vpop.xlane.xlu1 %11171 }
0x55e6   :  { %v11174_v40 = vmul.f32 0.03125, %v11172_v34  ;;  %v11169_v15 = vpop.xlane.xlu0 %11168 }
0x55e7   :  { %v11173_v23 = vmul.f32 0.03125, %v11169_v15 }
0x55e8   :  { %v11176_v9 = vsub.f32 %v11166_v38, %v11174_v40 }
0x55e9   :  { %v11175_v35 = vsub.f32 %v11165_v42, %v11173_v23 }
0x55ea   :  { %v11178_v32 = vmul.f32 %v11176_v9, %v11176_v9 }
0x55eb   :  { %v11177_v16 = vmul.f32 %v11175_v35, %v11175_v35 }
0x55ec   :  { %v11182_v13 = vsel %vm743_vm3, %v11178_v32, 0.0 }
0x55ed   :  { %v11179_v4 = vsel %vm743_vm3, %v11177_v16, 0.0  ;;  %v11451_v16 = vld [vmem:[%s14473_s14] sm:$0xff] }
0x55ee   :  { %11180 = vadd.xlane.f32.xlu0 %v11179_v4  ;;  %v11452_v4 = vld [vmem:[%s14473_s14 + $0x8] sm:$0xff] }
0x55ef   :  { %v13241_v32 = vpack.c.bf16 %v11452_v4, %v11451_v16 }
0x55f1   :  { %13242 = vmatprep.subr.bf16.mxu1 %v13241_v32 }
0x55f2   :  { %11183 = vadd.xlane.f32.xlu0 %v11182_v13  ;;  %v11453_v13 = vld [vmem:[%s14473_s14 + $0x10] sm:$0xff] }
0x55f3   :  { %v13245_v0 = vpack.c.bf16 %v11454_v17, %v11453_v13 }
0x567b   :  { %v11181_v49 = vpop.xlane.xlu0 %11180 }
0x567c   :  { %v11185_v25 = vmul.f32 0.03125, %v11181_v49 }
0x567e   :  { %v11187_v41 = vadd.f32 1e-05, %v11185_v25 }
0x567f   :  { %v11184_v61 = vpop.xlane.xlu0 %11183 }
0x5680   :  { %13564 = vrsqrt.f32 %v11187_v41  ;;  %v11186_v8 = vmul.f32 0.03125, %v11184_v61  ;;  %v11889_v61 = vld [vmem:[#allocation39] ss:$0 sm:$0xff] }
0x5682   :  { %v11188_v59 = vadd.f32 1e-05, %v11186_v8 }
0x5684   :  { %13566 = vrsqrt.f32 %v11188_v59 }
0x568a   :  { %v13565_v52 = vpop.eup %13564 }
0x568b   :  { %v11191_v44 = vmul.f32 %v13565_v52, %v11175_v35 }
0x568d   :  { %v11199_v53 = vmul.f32 %v11867_v47, %v11191_v44 }
0x568e   :  { %v13567_v43 = vpop.eup %13566 }
0x568f   :  { %v11192_v1 = vmul.f32 %v13567_v43, %v11176_v9  ;;  %v11207_v22 = vadd.f32 %v11868_v30, %v11199_v53 }
0x5691   :  { %v11200_v21 = vmul.f32 %v11867_v47, %v11192_v1  ;;  %12992 = vmatprep.mubr.msk.f32.mxu1 %vm743_vm3, %v11207_v22 }
0x5693   :  { %v11208_v46 = vadd.f32 %v11868_v30, %v11200_v21 }
0x5695   :  { %12993 = vmatmul.mubr.msk.f32.vlgmr.msra.gmra.mrb[128].mxu1 %vm743_vm3, %v11208_v46 }
0x5696   :  { %13244 = vmatpush3.bf16.msra.mxu1 %v13241_v32 }
0x5697   :  { %13246 = vmatprep.subr.bf16.mxu1 %v13245_v0 }
0x569a   :  { %13248 = vmatpush3.bf16.msra.mxu1 %v13245_v0 }
0x5768   :  { %v12994_v10 = vpop.f32.mrb[128].mxu1 }
0x5769   :  { %v11311_v5 = vadd.f32 %v12994_v10, %v11881_v7  ;;  %v11305_v14 = vpop.f32.mrb[129].mxu1 }
0x576a   :  { %v11306_v19 = vadd.f32 %v11881_v7, %v11305_v14 }
0x576b   :  { %v11315_v55 = vmax.f32 %v11311_v5, 0.0 }
0x576c   :  { %v11314_v36 = vmax.f32 %v11306_v19, 0.0 }
0x576e   :  { %13011 = vmatprep.mubr.msk.f32.mxu0 %vm2439_vm9, %v11314_v36 }
0x576f   :  { %13012 = vmatmul.mubr.msk.f32.vlgmr.msra.gmra.mrb[108].mxu0 %vm2439_vm9, %v11315_v55 }
0x5842   :  { %v13013_v58 = vpop.f32.mrb[108].mxu0 }
0x5843   :  { %v11400_v39 = vadd.f32 %v13013_v58, %v11884_v18  ;;  %v11394_v26 = vpop.f32.mrb[109].mxu0 }
0x5844   :  { %v11395_v27 = vadd.f32 %v11884_v18, %v11394_v26 }
0x5845   :  { %v11408_v11 = vadd.f32 %v11400_v39, %v11208_v46 }
0x5846   :  { %v11407_v62 = vadd.f32 %v11395_v27, %v11207_v22 }
0x5847   :  { %v11412_v2 = vsel %vm743_vm3, %v11408_v11, 0.0 }
0x5848   :  { %11413 = vadd.xlane.f32.xlu0 %v11412_v2  ;;  %v11409_v31 = vsel %vm743_vm3, %v11407_v62, 0.0 }
0x5849   :  { %11410 = vadd.xlane.f32.xlu1 %v11409_v31 }
0x58d5   :  { %v11414_v38 = vpop.xlane.xlu0 %11413 }
0x58d6   :  { %v11416_v42 = vmul.f32 0.03125, %v11414_v38  ;;  %v11411_v3 = vpop.xlane.xlu1 %11410 }
0x58d7   :  { %v11415_v63 = vmul.f32 0.03125, %v11411_v3 }
0x58d8   :  { %v11418_v34 = vsub.f32 %v11408_v11, %v11416_v42 }
0x58d9   :  { %v11417_v40 = vsub.f32 %v11407_v62, %v11415_v63 }
0x58da   :  { %v11420_v15 = vmul.f32 %v11418_v34, %v11418_v34 }
0x58db   :  { %v11419_v23 = vmul.f32 %v11417_v40, %v11417_v40 }
0x58dc   :  { %v11424_v9 = vsel %vm743_vm3, %v11420_v15, 0.0 }
0x58dd   :  { %11425 = vadd.xlane.f32.xlu0 %v11424_v9  ;;  %v11421_v35 = vsel %vm743_vm3, %v11419_v23, 0.0 }
0x58de   :  { %11422 = vadd.xlane.f32.xlu1 %v11421_v35 }
0x596a   :  { %v11426_v29 = vpop.xlane.xlu0 %11425 }
0x596b   :  { %v11428_v28 = vmul.f32 0.03125, %v11426_v29  ;;  %v11423_v12 = vpop.xlane.xlu1 %11422 }
0x596c   :  { %v11427_v45 = vmul.f32 0.03125, %v11423_v12 }
0x596d   :  { %v11430_v48 = vadd.f32 1e-05, %v11428_v28 }
0x596e   :  { %v11429_v50 = vadd.f32 1e-05, %v11427_v45 }
0x596f   :  { %13568 = vrsqrt.f32 %v11430_v48 }
0x5970   :  { %13570 = vrsqrt.f32 %v11429_v50 }
0x5979   :  { %v13569_v51 = vpop.eup %13568 }
0x597a   :  { %v13571_v56 = vpop.eup %13570  ;;  %v11434_v57 = vmul.f32 %v13569_v51, %v11418_v34 }
0x597b   :  { %v11433_v60 = vmul.f32 %v13571_v56, %v11417_v40 }
0x597c   :  { %v11442_v24 = vmul.f32 %v11887_v54, %v11434_v57 }
0x597d   :  { %v11441_v49 = vmul.f32 %v11887_v54, %v11433_v60 }
0x597e   :  { %v11450_v41 = vadd.f32 %v11888_v33, %v11442_v24 }
0x597f   :  { %v11449_v25 = vadd.f32 %v11888_v33, %v11441_v49 }
0x5981   :  { %13022 = vmatprep.mubr.msk.f32.mxu1 %vm743_vm3, %v11449_v25 }
0x5982   :  { %13023 = vmatmul.mubr.msk.f32.vlgmr.msra.gmra.mrb[130].mxu1 %vm743_vm3, %v11450_v41 }
0x5a55   :  { %v13024_v8 = vpop.f32.mrb[130].mxu1 }
0x5a56   :  { %v11540_v59 = vadd.f32 %v13024_v8, %v11889_v61  ;;  %v11534_v52 = vpop.f32.mrb[131].mxu1 }
0x5a57   :  { %v11535_v47 = vadd.f32 %v11889_v61, %v11534_v52 }
0x5a58   :  { %11544 = vst [vmem:[%s14483_s13 + $0x8] sm:$0xff] %v11540_v59 }
0x5a59   :  { %11543 = vst [vmem:[%s14483_s13] sm:$0xff] %v11535_v47 }
0x5a5a   :  { %11549 = vsyncpa [#allocation3], 1 }
0x5a5b   :  { %11550 = vsyncpa [#allocation5], 1 }
0x5a5c   :  { %11551 = vsyncpa [#allocation8], 1 }
0x5a5d   :  { %11552 = vsyncpa [#allocation11], 1 }
0x5a5e   :  { %11553 = vsyncpa [#allocation14], 1 }
0x5a5f   :  { %11554 = vsyncpa [#allocation17], 1 }
0x5a60   :  { %11555 = vsyncpa [#allocation20], 1 }
0x5a61   :  { %11556 = vsyncpa [#allocation23], 1 }
0x5a62   :  { %11557 = vsyncpa [#allocation26], 1 }
0x5a63   :  { %11558 = vsyncpa [#allocation29], 1 }
0x5a64   :  { %11559 = vsyncpa [#allocation32], 1 }
0x5a65   :  { %11560 = vsyncpa [#allocation35], 1 }
0x5a66   :  { %11561 = vsyncpa [#allocation38], 1 }

</bundles_post_ra>
